<compile_context>
chip_gen: v7x
topology: tpu7x:2x2x1
jax: 0.10.0
libtpu: 0.0.40
codegen_flags: <defaults>
</compile_context>

<pallas_src>
import functools

import jax
import jax.numpy as jnp
from jax.experimental import pallas as pl
from jax.experimental.pallas import tpu as pltpu


# ----------------------------------------------------------------------------
# Fused conv3x3(pad=1) + maxpool2x2 + bias + relu
# ----------------------------------------------------------------------------
def _conv3x3_pool_relu_kernel(xe_ref, xo_ref, w_ref, b_ref, o_ref,
                              *, RB, WH, n_dh, Cout):
    # xe_ref / xo_ref : (RB + n_dh - 1, WH, Kc) bf16  even / odd output-column taps
    # w_ref           : (n_dh, Kc, Cout)        bf16  taps stacked on the K axis
    # b_ref           : (1, Cout)               f32
    # o_ref           : (RB // 2, WH, Cout)     bf16  pooled rows of this block
    Kc = w_ref.shape[1]
    M = RB * WH
    acc_e = jnp.zeros((M, Cout), jnp.float32)
    acc_o = jnp.zeros((M, Cout), jnp.float32)
    for dh in range(n_dh):                       # static unroll: 1 or 3 matmuls/parity
        wk = w_ref[dh]                           # (Kc, Cout)
        pe = xe_ref[dh:dh + RB, :, :].reshape(M, Kc)   # layout-free (WH % 8 == 0)
        po = xo_ref[dh:dh + RB, :, :].reshape(M, Kc)
        acc_e = acc_e + jnp.dot(pe, wk, preferred_element_type=jnp.float32)
        acc_o = acc_o + jnp.dot(po, wk, preferred_element_type=jnp.float32)
    cmax = jnp.maximum(acc_e, acc_o)             # horizontal 2x max-pool (even vs odd col)
    c4 = cmax.reshape(RB // 2, 2, WH, Cout)
    rmax = jnp.maximum(c4[:, 0], c4[:, 1])       # vertical 2x max-pool (adjacent rows)
    out = jnp.maximum(rmax + b_ref[...], 0.0)    # bias + relu, single broadcast
    o_ref[...] = out.astype(o_ref.dtype)         # one contiguous store per block


def conv3x3_pool_relu(x, w_k, b, *, RB, n_dh):
    """relu(maxpool2(conv3x3_pad1(x) + b)).

    x   : (N, H, W, Cin) bf16 NHWC
    w_k : (n_dh, (9 // n_dh) * Cin, Cout) bf16  (see conv_weight_to_kernel)
    b   : (Cout,) f32
    n_dh = 1: all 9 taps folded into K (full im2col, no row halo) -- best for tiny Cin
    n_dh = 3: 3 column taps folded into K, 3 row taps looped in-kernel (halo = 2 rows)
    Returns (N, H//2, W//2, Cout) bf16.
    """
    N, H, W, Cin = x.shape
    n_dh_, Kc, Cout = w_k.shape
    WH = W // 2
    halo = n_dh - 1
    assert n_dh in (1, 3) and n_dh_ == n_dh and Kc == (9 // n_dh) * Cin
    assert H % RB == 0 and RB % 2 == 0 and W % 2 == 0 and WH % 8 == 0
    nblk = H // RB

    # Even / odd output-column tap planes (cheap one-shot XLA copies):
    #   even output col 2m   needs padded cols (2m,   2m+1, 2m+2)
    #   odd  output col 2m+1 needs padded cols (2m+1, 2m+2, 2m+3)
    xpad = jnp.pad(x, ((0, 0), (1, 1), (1, 1), (0, 0)))
    pe = xpad[:, :, 0::2, :]                     # (N, H+2, WH+1, Cin) cols 2m
    po = xpad[:, :, 1::2, :]                     # (N, H+2, WH+1, Cin) cols 2m+1
    e0, e1 = pe[:, :, :WH, :], pe[:, :, 1:, :]
    o0, o1 = po[:, :, :WH, :], po[:, :, 1:, :]
    even = jnp.concatenate([e0, o0, e1], axis=-1)    # dw = 0,1,2 taps -> (N,H+2,WH,3Cin)
    odd = jnp.concatenate([o0, e1, o1], axis=-1)
    if n_dh == 1:                                # fold the 3 row taps into K as well
        even = jnp.concatenate([even[:, d:d + H] for d in range(3)], axis=-1)
        odd = jnp.concatenate([odd[:, d:d + H] for d in range(3)], axis=-1)

    if halo == 0:                                # plain row tiling straight off the array
        ins = (even, odd)
        in_block = (None, RB, WH, Kc)
        in_map = lambda n, r: (n, r, 0, 0)
    else:                                        # materialize overlapping row-halo blocks
        def blocked(p):
            return jnp.stack(
                [p[:, r * RB:r * RB + RB + halo] for r in range(nblk)], axis=1)
        ins = (blocked(even), blocked(odd))      # (N, nblk, RB+halo, WH, Kc)
        in_block = (None, None, RB + halo, WH, Kc)
        in_map = lambda n, r: (n, r, 0, 0, 0)

    kernel = functools.partial(_conv3x3_pool_relu_kernel,
                               RB=RB, WH=WH, n_dh=n_dh, Cout=Cout)
    return pl.pallas_call(
        kernel,
        out_shape=jax.ShapeDtypeStruct((N, H // 2, WH, Cout), jnp.bfloat16),
        grid=(N, nblk),
        in_specs=[
            pl.BlockSpec(in_block, in_map),
            pl.BlockSpec(in_block, in_map),
            pl.BlockSpec((n_dh, Kc, Cout), lambda n, r: (0, 0, 0)),
            pl.BlockSpec((1, Cout), lambda n, r: (0, 0)),
        ],
        out_specs=pl.BlockSpec((None, RB // 2, WH, Cout), lambda n, r: (n, r, 0, 0)),
        compiler_params=pltpu.CompilerParams(
            dimension_semantics=("parallel", "parallel")),
    )(ins[0], ins[1], w_k, b.reshape(1, Cout))


# ----------------------------------------------------------------------------
# MLP head: fc1 (bf16 weights, large K tiles, reduction split into 2 "parallel"
# halves so both v7x TensorCores stream weights) + tiny sum/bias/relu/fc2 fuse.
# ----------------------------------------------------------------------------
def _fc1_partial_kernel(x_ref, w1_ref, hp_ref, acc_ref):
    k = pl.program_id(1)

    @pl.when(k == 0)
    def _():
        acc_ref[...] = jnp.zeros_like(acc_ref)

    acc_ref[...] += jnp.dot(x_ref[...], w1_ref[...],
                            preferred_element_type=jnp.float32)

    @pl.when(k == pl.num_programs(1) - 1)
    def _():
        hp_ref[...] = acc_ref[...]


def _head_finish_kernel(hp_ref, b1_ref, w2_ref, b2_ref, o_ref):
    h = jnp.maximum(jnp.sum(hp_ref[...], axis=0) + b1_ref[...], 0.0)   # fc1 + relu
    o_ref[...] = (jnp.dot(h, w2_ref[...], preferred_element_type=jnp.float32)
                  + b2_ref[...]).astype(o_ref.dtype)                   # fc2


def mlp_head(x, w1, b1, w2, b2, *, tk=14336, nsplit=2):
    """x: (N, K) bf16; w1: (K, D1) bf16; w2: (D1, D2) f32 -> (N, D2) f32."""
    N, K = x.shape
    D1 = w1.shape[1]
    D2 = w2.shape[1]
    assert K % (nsplit * tk) == 0
    kb = K // (nsplit * tk)                       # K tiles per reduction half

    hp = pl.pallas_call(
        _fc1_partial_kernel,
        out_shape=jax.ShapeDtypeStruct((nsplit, N, D1), jnp.float32),
        grid=(nsplit, kb),
        in_specs=[
            pl.BlockSpec((N, tk), lambda c, k: (0, c * kb + k)),
            pl.BlockSpec((tk, D1), lambda c, k: (c * kb + k, 0)),
        ],
        out_specs=pl.BlockSpec((None, N, D1), lambda c, k: (c, 0, 0)),
        scratch_shapes=[pltpu.VMEM((N, D1), jnp.float32)],
        compiler_params=pltpu.CompilerParams(
            dimension_semantics=("parallel", "arbitrary")),
    )(x, w1)

    return pl.pallas_call(
        _head_finish_kernel,
        out_shape=jax.ShapeDtypeStruct((N, D2), jnp.float32),
        grid=(1,),
        in_specs=[
            pl.BlockSpec((nsplit, N, D1), lambda i: (0, 0, 0)),
            pl.BlockSpec((1, D1), lambda i: (0, 0)),
            pl.BlockSpec((D1, D2), lambda i: (0, 0)),
            pl.BlockSpec((1, D2), lambda i: (0, 0)),
        ],
        out_specs=pl.BlockSpec((N, D2), lambda i: (0, 0)),
    )(hp, b1.reshape(1, D1), w2, b2.reshape(1, D2))


# ----------------------------------------------------------------------------
# Weight layout converters (torch checkpoint layout -> kernel layout)
# ----------------------------------------------------------------------------
def conv_weight_to_kernel(w_torch, n_dh):
    # torch (Cout, Cin, 3, 3) -> (n_dh, (9//n_dh)*Cin, Cout); channel order
    # (dh-within-group, dw, ci) matches the tap concatenation in conv3x3_pool_relu.
    cout, cin = w_torch.shape[0], w_torch.shape[1]
    w = jnp.transpose(w_torch, (2, 3, 1, 0))          # (dh, dw, ci, co)
    return w.reshape(n_dh, (9 // n_dh) * cin, cout).astype(jnp.bfloat16)


def fc1_weight_to_kernel(w_torch):
    # torch fc1.weight (128, 64*56*56) expects an NCHW flatten; permute its input
    # rows to NHWC-flatten order so the conv2 output can be reshaped directly.
    d_out = w_torch.shape[0]
    w = w_torch.reshape(d_out, 64, 56, 56)            # (out, c, h, w)
    w = jnp.transpose(w, (2, 3, 1, 0))                # (h, w, c, out)
    return w.reshape(64 * 56 * 56, d_out).astype(jnp.bfloat16)


# ----------------------------------------------------------------------------
# Full SimpleCNN forward
# ----------------------------------------------------------------------------
def simple_cnn_forward(x_nchw, params):
    x = jnp.transpose(x_nchw, (0, 2, 3, 1)).astype(jnp.bfloat16)        # NCHW -> NHWC
    x = conv3x3_pool_relu(x, params["w_conv1"], params["b_conv1"],
                          RB=16, n_dh=1)                                # (N,112,112,32)
    x = conv3x3_pool_relu(x, params["w_conv2"], params["b_conv2"],
                          RB=28, n_dh=3)                                # (N, 56, 56,64)
    x = x.reshape(x.shape[0], -1)          # NHWC flatten (fc1 weight rows pre-permuted)
    return mlp_head(x, params["w_fc1"], params["b_fc1"],
                    params["w_fc2"], params["b_fc2"])                   # (N, 4) f32


def init_params(key):
    ks = jax.random.split(key, 8)

    def u(k, shape, fan_in):
        bound = 1.0 / jnp.sqrt(jnp.float32(fan_in))
        return jax.random.uniform(k, shape, jnp.float32, -bound, bound)

    K = 64 * 56 * 56
    wc1 = u(ks[0], (32, 3, 3, 3), 3 * 9)        # torch conv1.weight
    wc2 = u(ks[1], (64, 32, 3, 3), 32 * 9)      # torch conv2.weight
    wf1 = u(ks[2], (128, K), K)                 # torch fc1.weight (out, in) NCHW-flat
    wf2 = u(ks[3], (4, 128), 128)               # torch fc2.weight
    return dict(
        w_conv1=conv_weight_to_kernel(wc1, n_dh=1), b_conv1=u(ks[4], (32,), 3 * 9),
        w_conv2=conv_weight_to_kernel(wc2, n_dh=3), b_conv2=u(ks[5], (64,), 32 * 9),
        w_fc1=fc1_weight_to_kernel(wf1), b_fc1=u(ks[6], (128,), K),
        w_fc2=jnp.transpose(wf2), b_fc2=u(ks[7], (4,), 128),
    )


if __name__ == "__main__":
    # fc1 = Linear(64*56*56, 128) fixes the input spatial size at 224x224; batch small.
    x = jax.random.normal(jax.random.PRNGKey(0), (2, 3, 224, 224), jnp.float32)  # NCHW
    params = init_params(jax.random.PRNGKey(42))

    out = jax.jit(simple_cnn_forward)(x, params)
    out = jax.block_until_ready(out)
    assert out.shape == (2, 4) and out.dtype == jnp.float32
    print("KERNEL_OK")
</pallas_src>

<mosaic_0001>
module attributes {stable_mosaic.version = 11 : i64} {
  func.func @_conv3x3_pool_relu_kernel(%arg0: i32, %arg1: i32, %arg2: memref<1x16x112x27xbf16, #tpu.memory_space<vmem>>, %arg3: memref<1x16x112x27xbf16, #tpu.memory_space<vmem>>, %arg4: memref<1x27x32xbf16, #tpu.memory_space<vmem>>, %arg5: memref<1x32xf32, #tpu.memory_space<vmem>>, %arg6: memref<1x8x112x32xbf16, #tpu.memory_space<vmem>>) attributes {dimension_semantics = [#tpu.dimension_semantics<parallel>, #tpu.dimension_semantics<parallel>], iteration_bounds = array<i64: 2, 14>, scalar_prefetch = 0 : i64, scratch_operands = 0 : i64, tpu.core_type = #tpu.core_type<tc>, window_params = [{transform_indices = @transform_0, window_bounds = array<i64: 1, 16, 112, 27>}, {transform_indices = @transform_1, window_bounds = array<i64: 1, 16, 112, 27>}, {pipeline_mode = #tpu.pipeline_mode<synchronous>, transform_indices = @transform_2, window_bounds = array<i64: 1, 27, 32>}, {pipeline_mode = #tpu.pipeline_mode<synchronous>, transform_indices = @transform_3, window_bounds = array<i64: 1, 32>}, {transform_indices = @transform_4, window_bounds = array<i64: 1, 8, 112, 32>}]} {
    %cst = arith.constant 0.000000e+00 : f32
    %0 = vector.broadcast %cst : f32 to vector<1792x32xf32>
    %cst_0 = arith.constant 0.000000e+00 : f32
    %1 = vector.broadcast %cst_0 : f32 to vector<1792x32xf32>
    %c0 = arith.constant 0 : index
    %c0_1 = arith.constant 0 : index
    %c0_2 = arith.constant 0 : index
    %2 = vector.load %arg4[%c0, %c0_1, %c0_2] : memref<1x27x32xbf16, #tpu.memory_space<vmem>>, vector<1x27x32xbf16>
    %3 = vector.shape_cast %2 : vector<1x27x32xbf16> to vector<27x32xbf16>
    %c0_3 = arith.constant 0 : index
    %c0_4 = arith.constant 0 : index
    %c0_5 = arith.constant 0 : index
    %c0_6 = arith.constant 0 : index
    %4 = vector.load %arg2[%c0_3, %c0_4, %c0_5, %c0_6] : memref<1x16x112x27xbf16, #tpu.memory_space<vmem>>, vector<1x16x112x27xbf16>
    %5 = vector.shape_cast %4 : vector<1x16x112x27xbf16> to vector<16x112x27xbf16>
    %6 = vector.shape_cast %5 : vector<16x112x27xbf16> to vector<1792x27xbf16>
    %c0_7 = arith.constant 0 : index
    %c0_8 = arith.constant 0 : index
    %c0_9 = arith.constant 0 : index
    %c0_10 = arith.constant 0 : index
    %7 = vector.load %arg3[%c0_7, %c0_8, %c0_9, %c0_10] : memref<1x16x112x27xbf16, #tpu.memory_space<vmem>>, vector<1x16x112x27xbf16>
    %8 = vector.shape_cast %7 : vector<1x16x112x27xbf16> to vector<16x112x27xbf16>
    %9 = vector.shape_cast %8 : vector<16x112x27xbf16> to vector<1792x27xbf16>
    %cst_11 = arith.constant dense<0.000000e+00> : vector<1792x32xf32>
    %10 = tpu.matmul %6, %3, %cst_11 {dimension_numbers = #tpu.dot_dimension_numbers<[1], [0], [0], [1], [0, 0, 1, 1], [], []>} : vector<1792x27xbf16>, vector<27x32xbf16>, vector<1792x32xf32> -> vector<1792x32xf32>
    %11 = arith.addf %0, %10 : vector<1792x32xf32>
    %cst_12 = arith.constant dense<0.000000e+00> : vector<1792x32xf32>
    %12 = tpu.matmul %9, %3, %cst_12 {dimension_numbers = #tpu.dot_dimension_numbers<[1], [0], [0], [1], [0, 0, 1, 1], [], []>} : vector<1792x27xbf16>, vector<27x32xbf16>, vector<1792x32xf32> -> vector<1792x32xf32>
    %13 = arith.addf %1, %12 : vector<1792x32xf32>
    %14 = arith.maximumf %11, %13 : vector<1792x32xf32>
    %15 = vector.shape_cast %14 : vector<1792x32xf32> to vector<8x2x112x32xf32>
    %16 = vector.extract_strided_slice %15 {offsets = [0, 0, 0, 0], sizes = [8, 1, 112, 32], strides = [1, 1, 1, 1]} : vector<8x2x112x32xf32> to vector<8x1x112x32xf32>
    %17 = vector.shape_cast %16 : vector<8x1x112x32xf32> to vector<8x112x32xf32>
    %18 = vector.extract_strided_slice %15 {offsets = [0, 1, 0, 0], sizes = [8, 1, 112, 32], strides = [1, 1, 1, 1]} : vector<8x2x112x32xf32> to vector<8x1x112x32xf32>
    %19 = vector.shape_cast %18 : vector<8x1x112x32xf32> to vector<8x112x32xf32>
    %20 = arith.maximumf %17, %19 : vector<8x112x32xf32>
    %c0_13 = arith.constant 0 : index
    %c0_14 = arith.constant 0 : index
    %21 = vector.load %arg5[%c0_13, %c0_14] : memref<1x32xf32, #tpu.memory_space<vmem>>, vector<1x32xf32>
    %22 = vector.shape_cast %21 : vector<1x32xf32> to vector<1x1x32xf32>
    %23 = vector.broadcast %22 : vector<1x1x32xf32> to vector<8x112x32xf32>
    %24 = arith.addf %20, %23 : vector<8x112x32xf32>
    %cst_15 = arith.constant 0.000000e+00 : f32
    %25 = vector.broadcast %cst_15 : f32 to vector<8x112x32xf32>
    %26 = arith.maximumf %24, %25 : vector<8x112x32xf32>
    %27 = arith.truncf %26 : vector<8x112x32xf32> to vector<8x112x32xbf16>
    %c0_16 = arith.constant 0 : index
    %c0_17 = arith.constant 0 : index
    %c0_18 = arith.constant 0 : index
    %c0_19 = arith.constant 0 : index
    %28 = vector.load %arg6[%c0_16, %c0_17, %c0_18, %c0_19] : memref<1x8x112x32xbf16, #tpu.memory_space<vmem>>, vector<1x8x112x32xbf16>
    %29 = vector.shape_cast %28 : vector<1x8x112x32xbf16> to vector<8x112x32xbf16>
    %30 = vector.shape_cast %27 : vector<8x112x32xbf16> to vector<1x8x112x32xbf16>
    tpu.vector_store %arg6[%c0_16, %c0_17, %c0_18, %c0_19], %30 {strides = array<i32>} : memref<1x8x112x32xbf16, #tpu.memory_space<vmem>>, vector<1x8x112x32xbf16>,
    return
  }
  func.func @transform_0(%arg0: i32, %arg1: i32) -> (i32, i32, i32, i32) {
    %c0_i32 = arith.constant 0 : i32
    %c0_i32_0 = arith.constant 0 : i32
    %c0_i32_1 = arith.constant 0 : i32
    return %arg0, %arg1, %c0_i32, %c0_i32_0 : i32, i32, i32, i32
  }
  func.func @transform_1(%arg0: i32, %arg1: i32) -> (i32, i32, i32, i32) {
    %c0_i32 = arith.constant 0 : i32
    %c0_i32_0 = arith.constant 0 : i32
    %c0_i32_1 = arith.constant 0 : i32
    return %arg0, %arg1, %c0_i32, %c0_i32_0 : i32, i32, i32, i32
  }
  func.func @transform_2(%arg0: i32, %arg1: i32) -> (i32, i32, i32) {
    %c0_i32 = arith.constant 0 : i32
    %c0_i32_0 = arith.constant 0 : i32
    %c0_i32_1 = arith.constant 0 : i32
    %c0_i32_2 = arith.constant 0 : i32
    return %c0_i32, %c0_i32_0, %c0_i32_1 : i32, i32, i32
  }
  func.func @transform_3(%arg0: i32, %arg1: i32) -> (i32, i32) {
    %c0_i32 = arith.constant 0 : i32
    %c0_i32_0 = arith.constant 0 : i32
    %c0_i32_1 = arith.constant 0 : i32
    return %c0_i32, %c0_i32_0 : i32, i32
  }
  func.func @transform_4(%arg0: i32, %arg1: i32) -> (i32, i32, i32, i32) {
    %c0_i32 = arith.constant 0 : i32
    %c0_i32_0 = arith.constant 0 : i32
    %c0_i32_1 = arith.constant 0 : i32
    return %arg0, %arg1, %c0_i32, %c0_i32_0 : i32, i32, i32, i32
  }
}

module attributes {stable_mosaic.version = 11 : i64} {
  func.func @_conv3x3_pool_relu_kernel(%arg0: i32, %arg1: i32, %arg2: memref<1x1x30x56x96xbf16, #tpu.memory_space<vmem>>, %arg3: memref<1x1x30x56x96xbf16, #tpu.memory_space<vmem>>, %arg4: memref<3x96x64xbf16, #tpu.memory_space<vmem>>, %arg5: memref<1x64xf32, #tpu.memory_space<vmem>>, %arg6: memref<1x14x56x64xbf16, #tpu.memory_space<vmem>>) attributes {dimension_semantics = [#tpu.dimension_semantics<parallel>, #tpu.dimension_semantics<parallel>], iteration_bounds = array<i64: 2, 4>, scalar_prefetch = 0 : i64, scratch_operands = 0 : i64, tpu.core_type = #tpu.core_type<tc>, window_params = [{transform_indices = @transform_0, window_bounds = array<i64: 1, 1, 30, 56, 96>}, {transform_indices = @transform_1, window_bounds = array<i64: 1, 1, 30, 56, 96>}, {pipeline_mode = #tpu.pipeline_mode<synchronous>, transform_indices = @transform_2, window_bounds = array<i64: 3, 96, 64>}, {pipeline_mode = #tpu.pipeline_mode<synchronous>, transform_indices = @transform_3, window_bounds = array<i64: 1, 64>}, {transform_indices = @transform_4, window_bounds = array<i64: 1, 14, 56, 64>}]} {
    %cst = arith.constant 0.000000e+00 : f32
    %0 = vector.broadcast %cst : f32 to vector<1568x64xf32>
    %cst_0 = arith.constant 0.000000e+00 : f32
    %1 = vector.broadcast %cst_0 : f32 to vector<1568x64xf32>
    %c0 = arith.constant 0 : index
    %c0_1 = arith.constant 0 : index
    %c0_2 = arith.constant 0 : index
    %2 = vector.load %arg4[%c0, %c0_1, %c0_2] : memref<3x96x64xbf16, #tpu.memory_space<vmem>>, vector<1x96x64xbf16>
    %3 = vector.shape_cast %2 : vector<1x96x64xbf16> to vector<96x64xbf16>
    %c0_3 = arith.constant 0 : index
    %c0_4 = arith.constant 0 : index
    %c0_5 = arith.constant 0 : index
    %c0_6 = arith.constant 0 : index
    %c0_7 = arith.constant 0 : index
    %4 = vector.load %arg2[%c0_3, %c0_4, %c0_5, %c0_6, %c0_7] : memref<1x1x30x56x96xbf16, #tpu.memory_space<vmem>>, vector<1x1x28x56x96xbf16>
    %5 = vector.shape_cast %4 : vector<1x1x28x56x96xbf16> to vector<28x56x96xbf16>
    %6 = vector.shape_cast %5 : vector<28x56x96xbf16> to vector<1568x96xbf16>
    %c0_8 = arith.constant 0 : index
    %c0_9 = arith.constant 0 : index
    %c0_10 = arith.constant 0 : index
    %c0_11 = arith.constant 0 : index
    %c0_12 = arith.constant 0 : index
    %7 = vector.load %arg3[%c0_8, %c0_9, %c0_10, %c0_11, %c0_12] : memref<1x1x30x56x96xbf16, #tpu.memory_space<vmem>>, vector<1x1x28x56x96xbf16>
    %8 = vector.shape_cast %7 : vector<1x1x28x56x96xbf16> to vector<28x56x96xbf16>
    %9 = vector.shape_cast %8 : vector<28x56x96xbf16> to vector<1568x96xbf16>
    %cst_13 = arith.constant dense<0.000000e+00> : vector<1568x64xf32>
    %10 = tpu.matmul %6, %3, %cst_13 {dimension_numbers = #tpu.dot_dimension_numbers<[1], [0], [0], [1], [0, 0, 1, 1], [], []>} : vector<1568x96xbf16>, vector<96x64xbf16>, vector<1568x64xf32> -> vector<1568x64xf32>
    %11 = arith.addf %0, %10 : vector<1568x64xf32>
    %cst_14 = arith.constant dense<0.000000e+00> : vector<1568x64xf32>
    %12 = tpu.matmul %9, %3, %cst_14 {dimension_numbers = #tpu.dot_dimension_numbers<[1], [0], [0], [1], [0, 0, 1, 1], [], []>} : vector<1568x96xbf16>, vector<96x64xbf16>, vector<1568x64xf32> -> vector<1568x64xf32>
    %13 = arith.addf %1, %12 : vector<1568x64xf32>
    %c1 = arith.constant 1 : index
    %c0_15 = arith.constant 0 : index
    %c0_16 = arith.constant 0 : index
    %14 = vector.load %arg4[%c1, %c0_15, %c0_16] : memref<3x96x64xbf16, #tpu.memory_space<vmem>>, vector<1x96x64xbf16>
    %15 = vector.shape_cast %14 : vector<1x96x64xbf16> to vector<96x64xbf16>
    %c0_17 = arith.constant 0 : index
    %c0_18 = arith.constant 0 : index
    %c1_19 = arith.constant 1 : index
    %c0_20 = arith.constant 0 : index
    %c0_21 = arith.constant 0 : index
    %16 = vector.load %arg2[%c0_17, %c0_18, %c1_19, %c0_20, %c0_21] : memref<1x1x30x56x96xbf16, #tpu.memory_space<vmem>>, vector<1x1x28x56x96xbf16>
    %17 = vector.shape_cast %16 : vector<1x1x28x56x96xbf16> to vector<28x56x96xbf16>
    %18 = vector.shape_cast %17 : vector<28x56x96xbf16> to vector<1568x96xbf16>
    %c0_22 = arith.constant 0 : index
    %c0_23 = arith.constant 0 : index
    %c1_24 = arith.constant 1 : index
    %c0_25 = arith.constant 0 : index
    %c0_26 = arith.constant 0 : index
    %19 = vector.load %arg3[%c0_22, %c0_23, %c1_24, %c0_25, %c0_26] : memref<1x1x30x56x96xbf16, #tpu.memory_space<vmem>>, vector<1x1x28x56x96xbf16>
    %20 = vector.shape_cast %19 : vector<1x1x28x56x96xbf16> to vector<28x56x96xbf16>
    %21 = vector.shape_cast %20 : vector<28x56x96xbf16> to vector<1568x96xbf16>
    %cst_27 = arith.constant dense<0.000000e+00> : vector<1568x64xf32>
    %22 = tpu.matmul %18, %15, %cst_27 {dimension_numbers = #tpu.dot_dimension_numbers<[1], [0], [0], [1], [0, 0, 1, 1], [], []>} : vector<1568x96xbf16>, vector<96x64xbf16>, vector<1568x64xf32> -> vector<1568x64xf32>
    %23 = arith.addf %11, %22 : vector<1568x64xf32>
    %cst_28 = arith.constant dense<0.000000e+00> : vector<1568x64xf32>
    %24 = tpu.matmul %21, %15, %cst_28 {dimension_numbers = #tpu.dot_dimension_numbers<[1], [0], [0], [1], [0, 0, 1, 1], [], []>} : vector<1568x96xbf16>, vector<96x64xbf16>, vector<1568x64xf32> -> vector<1568x64xf32>
    %25 = arith.addf %13, %24 : vector<1568x64xf32>
    %c2 = arith.constant 2 : index
    %c0_29 = arith.constant 0 : index
    %c0_30 = arith.constant 0 : index
    %26 = vector.load %arg4[%c2, %c0_29, %c0_30] : memref<3x96x64xbf16, #tpu.memory_space<vmem>>, vector<1x96x64xbf16>
    %27 = vector.shape_cast %26 : vector<1x96x64xbf16> to vector<96x64xbf16>
    %c0_31 = arith.constant 0 : index
    %c0_32 = arith.constant 0 : index
    %c2_33 = arith.constant 2 : index
    %c0_34 = arith.constant 0 : index
    %c0_35 = arith.constant 0 : index
    %28 = vector.load %arg2[%c0_31, %c0_32, %c2_33, %c0_34, %c0_35] : memref<1x1x30x56x96xbf16, #tpu.memory_space<vmem>>, vector<1x1x28x56x96xbf16>
    %29 = vector.shape_cast %28 : vector<1x1x28x56x96xbf16> to vector<28x56x96xbf16>
    %30 = vector.shape_cast %29 : vector<28x56x96xbf16> to vector<1568x96xbf16>
    %c0_36 = arith.constant 0 : index
    %c0_37 = arith.constant 0 : index
    %c2_38 = arith.constant 2 : index
    %c0_39 = arith.constant 0 : index
    %c0_40 = arith.constant 0 : index
    %31 = vector.load %arg3[%c0_36, %c0_37, %c2_38, %c0_39, %c0_40] : memref<1x1x30x56x96xbf16, #tpu.memory_space<vmem>>, vector<1x1x28x56x96xbf16>
    %32 = vector.shape_cast %31 : vector<1x1x28x56x96xbf16> to vector<28x56x96xbf16>
    %33 = vector.shape_cast %32 : vector<28x56x96xbf16> to vector<1568x96xbf16>
    %cst_41 = arith.constant dense<0.000000e+00> : vector<1568x64xf32>
    %34 = tpu.matmul %30, %27, %cst_41 {dimension_numbers = #tpu.dot_dimension_numbers<[1], [0], [0], [1], [0, 0, 1, 1], [], []>} : vector<1568x96xbf16>, vector<96x64xbf16>, vector<1568x64xf32> -> vector<1568x64xf32>
    %35 = arith.addf %23, %34 : vector<1568x64xf32>
    %cst_42 = arith.constant dense<0.000000e+00> : vector<1568x64xf32>
    %36 = tpu.matmul %33, %27, %cst_42 {dimension_numbers = #tpu.dot_dimension_numbers<[1], [0], [0], [1], [0, 0, 1, 1], [], []>} : vector<1568x96xbf16>, vector<96x64xbf16>, vector<1568x64xf32> -> vector<1568x64xf32>
    %37 = arith.addf %25, %36 : vector<1568x64xf32>
    %38 = arith.maximumf %35, %37 : vector<1568x64xf32>
    %39 = vector.shape_cast %38 : vector<1568x64xf32> to vector<14x2x56x64xf32>
    %40 = vector.extract_strided_slice %39 {offsets = [0, 0, 0, 0], sizes = [14, 1, 56, 64], strides = [1, 1, 1, 1]} : vector<14x2x56x64xf32> to vector<14x1x56x64xf32>
    %41 = vector.shape_cast %40 : vector<14x1x56x64xf32> to vector<14x56x64xf32>
    %42 = vector.extract_strided_slice %39 {offsets = [0, 1, 0, 0], sizes = [14, 1, 56, 64], strides = [1, 1, 1, 1]} : vector<14x2x56x64xf32> to vector<14x1x56x64xf32>
    %43 = vector.shape_cast %42 : vector<14x1x56x64xf32> to vector<14x56x64xf32>
    %44 = arith.maximumf %41, %43 : vector<14x56x64xf32>
    %c0_43 = arith.constant 0 : index
    %c0_44 = arith.constant 0 : index
    %45 = vector.load %arg5[%c0_43, %c0_44] : memref<1x64xf32, #tpu.memory_space<vmem>>, vector<1x64xf32>
    %46 = vector.shape_cast %45 : vector<1x64xf32> to vector<1x1x64xf32>
    %47 = vector.broadcast %46 : vector<1x1x64xf32> to vector<14x56x64xf32>
    %48 = arith.addf %44, %47 : vector<14x56x64xf32>
    %cst_45 = arith.constant 0.000000e+00 : f32
    %49 = vector.broadcast %cst_45 : f32 to vector<14x56x64xf32>
    %50 = arith.maximumf %48, %49 : vector<14x56x64xf32>
    %51 = arith.truncf %50 : vector<14x56x64xf32> to vector<14x56x64xbf16>
    %c0_46 = arith.constant 0 : index
    %c0_47 = arith.constant 0 : index
    %c0_48 = arith.constant 0 : index
    %c0_49 = arith.constant 0 : index
    %52 = vector.load %arg6[%c0_46, %c0_47, %c0_48, %c0_49] : memref<1x14x56x64xbf16, #tpu.memory_space<vmem>>, vector<1x14x56x64xbf16>
    %53 = vector.shape_cast %52 : vector<1x14x56x64xbf16> to vector<14x56x64xbf16>
    %54 = vector.shape_cast %51 : vector<14x56x64xbf16> to vector<1x14x56x64xbf16>
    tpu.vector_store %arg6[%c0_46, %c0_47, %c0_48, %c0_49], %54 {strides = array<i32>} : memref<1x14x56x64xbf16, #tpu.memory_space<vmem>>, vector<1x14x56x64xbf16>,
    return
  }
  func.func @transform_0(%arg0: i32, %arg1: i32) -> (i32, i32, i32, i32, i32) {
    %c0_i32 = arith.constant 0 : i32
    %c0_i32_0 = arith.constant 0 : i32
    %c0_i32_1 = arith.constant 0 : i32
    %c0_i32_2 = arith.constant 0 : i32
    return %arg0, %arg1, %c0_i32, %c0_i32_0, %c0_i32_1 : i32, i32, i32, i32, i32
  }
  func.func @transform_1(%arg0: i32, %arg1: i32) -> (i32, i32, i32, i32, i32) {
    %c0_i32 = arith.constant 0 : i32
    %c0_i32_0 = arith.constant 0 : i32
    %c0_i32_1 = arith.constant 0 : i32
    %c0_i32_2 = arith.constant 0 : i32
    return %arg0, %arg1, %c0_i32, %c0_i32_0, %c0_i32_1 : i32, i32, i32, i32, i32
  }
  func.func @transform_2(%arg0: i32, %arg1: i32) -> (i32, i32, i32) {
    %c0_i32 = arith.constant 0 : i32
    %c0_i32_0 = arith.constant 0 : i32
    %c0_i32_1 = arith.constant 0 : i32
    %c0_i32_2 = arith.constant 0 : i32
    return %c0_i32, %c0_i32_0, %c0_i32_1 : i32, i32, i32
  }
  func.func @transform_3(%arg0: i32, %arg1: i32) -> (i32, i32) {
    %c0_i32 = arith.constant 0 : i32
    %c0_i32_0 = arith.constant 0 : i32
    %c0_i32_1 = arith.constant 0 : i32
    return %c0_i32, %c0_i32_0 : i32, i32
  }
  func.func @transform_4(%arg0: i32, %arg1: i32) -> (i32, i32, i32, i32) {
    %c0_i32 = arith.constant 0 : i32
    %c0_i32_0 = arith.constant 0 : i32
    %c0_i32_1 = arith.constant 0 : i32
    return %arg0, %arg1, %c0_i32, %c0_i32_0 : i32, i32, i32, i32
  }
}

module attributes {stable_mosaic.version = 11 : i64} {
  func.func @_fc1_partial_kernel(%arg0: i32, %arg1: i32, %arg2: memref<2x14336xbf16, #tpu.memory_space<vmem>>, %arg3: memref<14336x128xbf16, #tpu.memory_space<vmem>>, %arg4: memref<1x2x128xf32, #tpu.memory_space<vmem>>, %arg5: memref<2x128xf32, #tpu.memory_space<vmem>>) attributes {dimension_semantics = [#tpu.dimension_semantics<parallel>, #tpu.dimension_semantics<arbitrary>], iteration_bounds = array<i64: 2, 7>, scalar_prefetch = 0 : i64, scratch_operands = 1 : i64, tpu.core_type = #tpu.core_type<tc>, window_params = [{transform_indices = @transform_0, window_bounds = array<i64: 2, 14336>}, {transform_indices = @transform_1, window_bounds = array<i64: 14336, 128>}, {transform_indices = @transform_2, window_bounds = array<i64: 1, 2, 128>}]} {
    %c0_i32 = arith.constant 0 : i32
    %0 = arith.cmpi eq, %arg1, %c0_i32 : i32
    %1 = arith.extui %0 : i1 to i32
    %c0_i32_0 = arith.constant 0 : i32
    %2 = arith.cmpi ne, %1, %c0_i32_0 : i32
    scf.if %2 {
      %cst_9 = arith.constant 0.000000e+00 : f32
      %12 = vector.broadcast %cst_9 : f32 to vector<2x128xf32>
      %c0_10 = arith.constant 0 : index
      %c0_11 = arith.constant 0 : index
      %13 = vector.load %arg5[%c0_10, %c0_11] : memref<2x128xf32, #tpu.memory_space<vmem>>, vector<2x128xf32>
      tpu.vector_store %arg5[%c0_10, %c0_11], %12 {strides = array<i32>} : memref<2x128xf32, #tpu.memory_space<vmem>>, vector<2x128xf32>,
    } else {
    }
    %c0 = arith.constant 0 : index
    %c0_1 = arith.constant 0 : index
    %3 = vector.load %arg5[%c0, %c0_1] : memref<2x128xf32, #tpu.memory_space<vmem>>, vector<2x128xf32>
    %c0_2 = arith.constant 0 : index
    %c0_3 = arith.constant 0 : index
    %4 = vector.load %arg2[%c0_2, %c0_3] : memref<2x14336xbf16, #tpu.memory_space<vmem>>, vector<2x14336xbf16>
    %c0_4 = arith.constant 0 : index
    %c0_5 = arith.constant 0 : index
    %5 = vector.load %arg3[%c0_4, %c0_5] : memref<14336x128xbf16, #tpu.memory_space<vmem>>, vector<14336x128xbf16>
    %cst = arith.constant dense<0.000000e+00> : vector<2x128xf32>
    %6 = tpu.matmul %4, %5, %cst {dimension_numbers = #tpu.dot_dimension_numbers<[1], [0], [0], [1], [0, 0, 1, 1], [], []>} : vector<2x14336xbf16>, vector<14336x128xbf16>, vector<2x128xf32> -> vector<2x128xf32>
    %7 = arith.addf %3, %6 : vector<2x128xf32>
    %c0_6 = arith.constant 0 : index
    %c0_7 = arith.constant 0 : index
    %8 = vector.load %arg5[%c0_6, %c0_7] : memref<2x128xf32, #tpu.memory_space<vmem>>, vector<2x128xf32>
    tpu.vector_store %arg5[%c0_6, %c0_7], %7 {strides = array<i32>} : memref<2x128xf32, #tpu.memory_space<vmem>>, vector<2x128xf32>,
    %c6_i32 = arith.constant 6 : i32
    %9 = arith.cmpi eq, %arg1, %c6_i32 : i32
    %10 = arith.extui %9 : i1 to i32
    %c0_i32_8 = arith.constant 0 : i32
    %11 = arith.cmpi ne, %10, %c0_i32_8 : i32
    scf.if %11 {
      %c0_9 = arith.constant 0 : index
      %c0_10 = arith.constant 0 : index
      %12 = vector.load %arg5[%c0_9, %c0_10] : memref<2x128xf32, #tpu.memory_space<vmem>>, vector<2x128xf32>
      %c0_11 = arith.constant 0 : index
      %c0_12 = arith.constant 0 : index
      %c0_13 = arith.constant 0 : index
      %13 = vector.load %arg4[%c0_11, %c0_12, %c0_13] : memref<1x2x128xf32, #tpu.memory_space<vmem>>, vector<1x2x128xf32>
      %14 = vector.shape_cast %13 : vector<1x2x128xf32> to vector<2x128xf32>
      %15 = vector.shape_cast %12 : vector<2x128xf32> to vector<1x2x128xf32>
      tpu.vector_store %arg4[%c0_11, %c0_12, %c0_13], %15 {strides = array<i32>} : memref<1x2x128xf32, #tpu.memory_space<vmem>>, vector<1x2x128xf32>,
    } else {
    }
    return
  }
  func.func @transform_0(%arg0: i32, %arg1: i32) -> (i32, i32) {
    %c7_i32 = arith.constant 7 : i32
    %0 = arith.muli %arg0, %c7_i32 : i32
    %1 = arith.addi %0, %arg1 : i32
    %c0_i32 = arith.constant 0 : i32
    %c0_i32_0 = arith.constant 0 : i32
    return %c0_i32, %1 : i32, i32
  }
  func.func @transform_1(%arg0: i32, %arg1: i32) -> (i32, i32) {
    %c7_i32 = arith.constant 7 : i32
    %0 = arith.muli %arg0, %c7_i32 : i32
    %1 = arith.addi %0, %arg1 : i32
    %c0_i32 = arith.constant 0 : i32
    %c0_i32_0 = arith.constant 0 : i32
    return %1, %c0_i32 : i32, i32
  }
  func.func @transform_2(%arg0: i32, %arg1: i32) -> (i32, i32, i32) {
    %c0_i32 = arith.constant 0 : i32
    %c0_i32_0 = arith.constant 0 : i32
    %c0_i32_1 = arith.constant 0 : i32
    return %arg0, %c0_i32, %c0_i32_0 : i32, i32, i32
  }
}

module attributes {stable_mosaic.version = 11 : i64} {
  func.func @_head_finish_kernel(%arg0: i32, %arg1: memref<2x2x128xf32, #tpu.memory_space<vmem>>, %arg2: memref<1x128xf32, #tpu.memory_space<vmem>>, %arg3: memref<128x4xf32, #tpu.memory_space<vmem>>, %arg4: memref<1x4xf32, #tpu.memory_space<vmem>>, %arg5: memref<2x4xf32, #tpu.memory_space<vmem>>) attributes {dimension_semantics = [#tpu.dimension_semantics<arbitrary>], iteration_bounds = array<i64: 1>, scalar_prefetch = 0 : i64, scratch_operands = 0 : i64, tpu.core_type = #tpu.core_type<tc>, window_params = [{pipeline_mode = #tpu.pipeline_mode<synchronous>, transform_indices = @transform_0, window_bounds = array<i64: 2, 2, 128>}, {pipeline_mode = #tpu.pipeline_mode<synchronous>, transform_indices = @transform_1, window_bounds = array<i64: 1, 128>}, {pipeline_mode = #tpu.pipeline_mode<synchronous>, transform_indices = @transform_2, window_bounds = array<i64: 128, 4>}, {pipeline_mode = #tpu.pipeline_mode<synchronous>, transform_indices = @transform_3, window_bounds = array<i64: 1, 4>}, {pipeline_mode = #tpu.pipeline_mode<synchronous>, transform_indices = @transform_4, window_bounds = array<i64: 2, 4>}]} {
    %c0 = arith.constant 0 : index
    %c0_0 = arith.constant 0 : index
    %c0_1 = arith.constant 0 : index
    %0 = vector.load %arg1[%c0, %c0_0, %c0_1] : memref<2x2x128xf32, #tpu.memory_space<vmem>>, vector<2x2x128xf32>
    %cst = arith.constant dense<0.000000e+00> : vector<2x128xf32>
    %1 = vector.multi_reduction <add>, %0, %cst [0] : vector<2x2x128xf32> to vector<2x128xf32>
    %c0_2 = arith.constant 0 : index
    %c0_3 = arith.constant 0 : index
    %2 = vector.load %arg2[%c0_2, %c0_3] : memref<1x128xf32, #tpu.memory_space<vmem>>, vector<1x128xf32>
    %3 = vector.broadcast %2 : vector<1x128xf32> to vector<2x128xf32>
    %4 = arith.addf %1, %3 : vector<2x128xf32>
    %cst_4 = arith.constant 0.000000e+00 : f32
    %5 = vector.broadcast %cst_4 : f32 to vector<2x128xf32>
    %6 = arith.maximumf %4, %5 : vector<2x128xf32>
    %c0_5 = arith.constant 0 : index
    %c0_6 = arith.constant 0 : index
    %7 = vector.load %arg3[%c0_5, %c0_6] : memref<128x4xf32, #tpu.memory_space<vmem>>, vector<128x4xf32>
    %cst_7 = arith.constant dense<0.000000e+00> : vector<2x4xf32>
    %8 = tpu.matmul %6, %7, %cst_7 {dimension_numbers = #tpu.dot_dimension_numbers<[1], [0], [0], [1], [0, 0, 1, 1], [], []>} : vector<2x128xf32>, vector<128x4xf32>, vector<2x4xf32> -> vector<2x4xf32>
    %c0_8 = arith.constant 0 : index
    %c0_9 = arith.constant 0 : index
    %9 = vector.load %arg4[%c0_8, %c0_9] : memref<1x4xf32, #tpu.memory_space<vmem>>, vector<1x4xf32>
    %10 = vector.broadcast %9 : vector<1x4xf32> to vector<2x4xf32>
    %11 = arith.addf %8, %10 : vector<2x4xf32>
    %c0_10 = arith.constant 0 : index
    %c0_11 = arith.constant 0 : index
    %12 = vector.load %arg5[%c0_10, %c0_11] : memref<2x4xf32, #tpu.memory_space<vmem>>, vector<2x4xf32>
    tpu.vector_store %arg5[%c0_10, %c0_11], %11 {strides = array<i32>} : memref<2x4xf32, #tpu.memory_space<vmem>>, vector<2x4xf32>,
    return
  }
  func.func @transform_0(%arg0: i32) -> (i32, i32, i32) {
    %c0_i32 = arith.constant 0 : i32
    %c0_i32_0 = arith.constant 0 : i32
    %c0_i32_1 = arith.constant 0 : i32
    %c0_i32_2 = arith.constant 0 : i32
    return %c0_i32, %c0_i32_0, %c0_i32_1 : i32, i32, i32
  }
  func.func @transform_1(%arg0: i32) -> (i32, i32) {
    %c0_i32 = arith.constant 0 : i32
    %c0_i32_0 = arith.constant 0 : i32
    %c0_i32_1 = arith.constant 0 : i32
    return %c0_i32, %c0_i32_0 : i32, i32
  }
  func.func @transform_2(%arg0: i32) -> (i32, i32) {
    %c0_i32 = arith.constant 0 : i32
    %c0_i32_0 = arith.constant 0 : i32
    %c0_i32_1 = arith.constant 0 : i32
    return %c0_i32, %c0_i32_0 : i32, i32
  }
  func.func @transform_3(%arg0: i32) -> (i32, i32) {
    %c0_i32 = arith.constant 0 : i32
    %c0_i32_0 = arith.constant 0 : i32
    %c0_i32_1 = arith.constant 0 : i32
    return %c0_i32, %c0_i32_0 : i32, i32
  }
  func.func @transform_4(%arg0: i32) -> (i32, i32) {
    %c0_i32 = arith.constant 0 : i32
    %c0_i32_0 = arith.constant 0 : i32
    %c0_i32_1 = arith.constant 0 : i32
    return %c0_i32, %c0_i32_0 : i32, i32
  }
}

</mosaic_0001>

<bundles_post_ra>
// kernel: simple_cnn_forward.4
= control target key start
LH: loop header
LB: loop body
LE: loop exit
PB: predicated region body
PF: predicated region fallthrough
CT: control target
= control target key end

     0   :  { %9 = vsyncpa [#allocation3], 0  ;;  %s9300_s0 = inlined_call_operand.hbm [shape: bf16[2,224,112,27], index: 0, kind: input, shape index: {}]   ;;  %s9301_s1 = inlined_call_operand.vmem [shape: bf16[2,224,112,27], index: 1, kind: input, shape index: {}]   ;;  %s9302_s2 = inlined_call_operand.vmem [shape: bf16[1,27,32], index: 2, kind: input, shape index: {}]   ;;  %s9303_s3 = inlined_call_operand.vmem [shape: f32[1,32], index: 3, kind: input, shape index: {}]   ;;  %s9304_s4 = inlined_call_operand.vmem [shape: bf16[2,112,112,32], index: 4, kind: output, shape index: {}]  }
   0x1   :  { %11 = vsyncpa [#allocation3 + $0x1], 0  ;;  %s7473_s15 = smov 0   ;;  %s7475_s16 = smov 0  }
   0x2   :  { %s7477_s17 = smov 0   ;;  %s7479_s18 = smov 0  }
   0x3   :  { %s7481_s19 = smov 0   ;;  %s7483_s20 = smov 0  }
   0x4   :  { %s7485_s21 = smov 0   ;;  %s7487_s22 = smov 0  }
   0x5 LB: > { %s5663_s23 = sadd.s32 4294967295, %s7442_s22   ;;  %s26_s24 = sadd.s32 1, %s7434_s20  ;;  %s7442_s22 = sphi %s7487_s22, %s17_s22   ;;  %s7438_s21 = sphi %s7485_s21, %s9314_s21   ;;  %s7434_s20 = sphi %s7483_s20, %s9313_s20   ;;  %s7430_s19 = sphi %s7481_s19, %s9312_s19   ;;  %s7426_s18 = sphi %s7479_s18, %s9311_s18   ;;  %s7422_s17 = sphi %s7477_s17, %s9310_s17   ;;  %s7418_s16 = sphi %s7475_s16, %s9309_s16   ;;  %s7414_s15 = sphi %s7473_s15, %s9308_s15  }
   0x6   : > { %p27_p0 = scmp.ge.s32.totalorder %s26_s24, 14  ;;  %s29_s25 = sadd.s32 1, %s7438_s21 }
   0x7   : > { %s38_s26 = sadd.s32 1, %s7422_s17  ;;  %p45_p1 = scmp.ne.s32.totalorder %s7422_s17, %s7418_s16 }
   0x8   : > { %s9316_s24 = smov (%p27_p0, %s26_s24), 0  ;;  %s9318_s25 = smov (!%p27_p0, %s29_s25), %s7438_s21 }
   0x9   : > { %s34_s27 = ssub.s32 %s7434_s20, %s9316_s24  ;;  %p46_p2 = scmp.eq.s32.totalorder %s7442_s22, 0 }
   0xa   : > { %p31_p3 = scmp.ge.s32.totalorder %s9318_s25, 2  ;;  %p51_p4 = scmp.ne.s32.totalorder %s7418_s16, %s7414_s15 }
   0xb   : > { %p47_p5 = por %p46_p2, %p45_p1  ;;  %p52_p6 = scmp.eq.s32.totalorder %s5663_s23, 0 }
   0xc   : > { %s9320_s25 = smov (%p31_p3, %s9318_s25), 0  ;;  %p7050_p8 = scmp.lt.s32.totalorder %s7442_s22, 28 }
   0xd   : > { %p7526_p7 = por %p52_p6, %p51_p4  ;;  %s33_s29 = ssub.s32 %s7438_s21, %s9320_s25 }
   0xe   : > { %s35_s30 = sor.u32 %s34_s27, %s33_s29  ;;  %s179_s5 = sand.u32 1, %s7422_s17  }
   0xf   : > { %p36_p9 = scmp.eq.s32.totalorder %s35_s30, 0  ;;  %s7036_s6 = smul.u32 896, %s179_s5 }
  0x10   : > { %p7534_p10 = pnand %p7050_p8, %p47_p5  ;;  %s7037_s9 = smul.u32 224, %s7434_s20 }
  0x11   : > { %s7539_s8 = scalar_select %p36_p9, %s7422_s17, %s38_s26  }
  0x12   : > { %s7038_s10 = smul.u32 3136, %s7438_s21  ;;  %s183_s11 = scalar_lea.vmem [#allocation2], %s7036_s6 }
  0x13   : > { %s193_s12 = sshll.u32 %s183_s11, 4  ;;  %s7551_s26 = scalar_lea.sflag [#allocation3], %s179_s5  ;;  %s7543_s12 = int_to_ptr.vmem [resolvable:$true] %s193_s12 }
  0x14   : > { %s190_s13 = sadd.s32 %s7038_s10, %s7037_s9  ;;  %p7348_p13 = pneg %p7534_p10 }
  0x15   : > { %s5669_s14 = sshll.u32 %s190_s13, 6  ;;  %s7351_s9 = scalar_lea.hbm %s9300_s0, 401408 }
  0x16   : > { %s7548_s27 = scalar_lea.hbm %s9300_s0, %s5669_s14 }
  0x17   : > { %s7346_s29 = scalar_lea.hbm %s7548_s27, 14336  ;;  %p7352_p2 = scmp.lt.u32.totalorder %s7548_s27, %s9300_s0 }
  0x18   : > { %p7347_p12 = scmp.ne.s32.totalorder %s7548_s27, %s7346_s29  ;;  %p7353_p3 = scmp.lt.u32.totalorder %s7351_s9, %s7346_s29 }
  0x19   : > { %p7355_p5 = scmp.lt.u32.totalorder %s7346_s29, %s7548_s27 }
  0x1a   : > { %p7349_p0 = pnand %p7348_p13, %p7347_p12  ;;  %p7354_p4 = por %p7353_p3, %p7352_p2 }
  0x1c   : > { %p7350_p1 = pneg %p7349_p0  ;;  %p7356_p6 = por %p7355_p5, %p7354_p4 }
  0x1e   : > { %p7357_p8 = pnand %p7356_p6, %p7350_p1 }
  0x20   : > { %7360 = shalt.err (!%p7357_p8)
}
  0x21   : > { %s7361_s5 = scalar_lea.vmem %s7543_s12, 14336  ;;  %s7444_s13 = smov [#allocation2]  }
  0x22   : > { %p7362_p9 = scmp.ne.s32.totalorder %s7543_s12, %s7361_s5  ;;  %s7366_s14 = sshll.u32 %s7444_s13, 4  ;;  %s7367_s14 = int_to_ptr.vmem [resolvable:$false] %s7366_s14 }
  0x23   : > { %s7368_s15 = scalar_lea.vmem %s7367_s14, 28672  ;;  %p7369_p11 = scmp.lt.s32.totalorder %s7543_s12, %s7367_s14 }
  0x24   : > { %p7364_p12 = pnand %p7362_p9, %p7348_p13  ;;  %p7370_p2 = scmp.lt.s32.totalorder %s7368_s15, %s7361_s5 }
  0x26   : > { %p7365_p0 = pneg %p7364_p12  ;;  %p7371_p3 = por %p7370_p2, %p7369_p11 }
  0x28   : > { %p7372_p4 = pnand %p7371_p3, %p7365_p0 }
  0x2a   : > { %7375 = shalt.err (!%p7372_p4)
}
  0x2b   : > { %s7445_s23 = smov 64   ;;  %s7446_s29 = smov 4  }
  0x2c   : > { %7049 = dma.hbm_to_vmem [thread:$0]  (!%p7534_p10), %s7548_s27, 14336, %s7543_s12, %s7551_s26, %s7445_s23, %s7445_s23, %s7446_s29  }
  0x2d   : > { %p215_p13 = scmp.lt.s32.totalorder %s7442_s22, 29  ;;  %p9307_p1 = scmp.ge.s32.totalorder %s7442_s22, 1 }
  0x2f   : > { %p216_p5 = pnand %p9307_p1, %p215_p13 }
  0x30   : > { %s221_s30 = sand.u32 (!%p216_p5), 1, %s7418_s16  }
  0x31   : > { %219 = sbr.rel (%p216_p5) target bundleno = 734 (0x2de), region = 36  ;;  %s222_s9 = scalar_lea.sflag (!%p216_p5), [#allocation3], %s221_s30 }
  0x32   : > { %s7039_s6 = smul.u32 (!%p216_p5), 896, %s221_s30 }
  0x34   : > { %s7583_s10 = scalar_lea.vmem (!%p216_p5), [#allocation2], %s7039_s6 }
  0x38   : > { %7409 = dma.done.wait (%p7526_p7), %s222_s9, 14336  }
  0x39   : > { %7411 = vsyncadd (%p7526_p7), %s222_s9, 4294952960  ;;  %s5671_s7 = sshll.u32 %s7426_s18, 4  ;;  %vm1649_vm0 = vcmask 1044480   ;;  %p267_p10 = scmp.lt.s32.totalorder %s7430_s19, 1  ;;  %vm1650_vm1 = vcmask 1045504   ;;  %v7447_v0 = vmov 65535  }
  0x3a   : > { %p269_p11 = scmp.lt.s32.totalorder %s5671_s7, 223  ;;  %v1651_v1 = vsel %vm1649_vm0, 4294967295, %v7447_v0  ;;  %vm1312_vm2 = vcmask 220160   ;;  %v7118_v2 = vld [vmem:[%s9302_s2] sm:$0xff]   ;;  %v7119_v4 = vld [vmem:[%s9302_s2 + $0x8] sm:$0x3f]  }
  0x3b   : > { %s9322_s19 = smov (!%p267_p10, %s7430_s19), 1  ;;  %v1652_v3 = vsel %vm1650_vm1, %v1651_v1, 0  ;;  %6580 = vmatprep.subr.bf16.mxu0 %v7118_v2  ;;  %6808 = vmatprep.subr.bf16.mxu1 %v7118_v2  ;;  %v7120_v5 = vld [vmem:[%s7583_s10] sm:$0xff]   ;;  %v7122_v8 = vld [vmem:[%s7583_s10 + $0x8] sm:$0xff]   ;;  %v7124_v10 = vld [vmem:[%s7583_s10 + $0x10] sm:$0xff]   ;;  %s5673_s30 = sshll.u32 %s7426_s18, 3 }
  0x3c   : > { %s9324_s7 = smov (!%p269_p11, %s5671_s7), 223  ;;  %s7041_s12 = smul.u32 3136, %s9322_s19  ;;  %6581 = vmatpush3.bf16.msra.mxu0 %v7118_v2  ;;  %6809 = vmatpush3.bf16.msra.mxu1 %v7118_v2  ;;  %v1654_v6 = vand.u32 %v7119_v4, %v1652_v3  ;;  %v7126_v12 = vld [vmem:[%s7583_s10 + $0x18] sm:$0xff]   ;;  %v7128_v14 = vld [vmem:[%s7583_s10 + $0x20] sm:$0xff]   ;;  %v7130_v16 = vld [vmem:[%s7583_s10 + $0x28] sm:$0xff]   ;;  %vm5425_vm3 = vcmask 257024  }
  0x3d   : > { %s7040_s28 = smul.u32 14, %s9324_s7  ;;  %6584 = vmatprep.mubr.msk.bf16.mxu0 %vm1312_vm2, %v7120_v5  ;;  %v7132_v18 = vld [vmem:[%s7583_s10 + $0x30] sm:$0xff]   ;;  %v7134_v20 = vld [vmem:[%s7583_s10 + $0x38] sm:$0xff]   ;;  %v7136_v22 = vld [vmem:[%s7583_s10 + $0x40] sm:$0xff]   ;;  %p280_p7 = scmp.lt.s32.totalorder %s5673_s30, 111 }
  0x3e   : > { %6582 = vmatprep.subr.bf16.mxu0 %v1654_v6  ;;  %6810 = vmatprep.subr.bf16.mxu1 %v1654_v6  ;;  %v7138_v24 = vld [vmem:[%s7583_s10 + $0x48] sm:$0xff]   ;;  %v7140_v26 = vld [vmem:[%s7583_s10 + $0x50] sm:$0xff]   ;;  %v7142_v28 = vld [vmem:[%s7583_s10 + $0x58] sm:$0xff]   ;;  %s7043_s18 = smul.u32 1568, %s9322_s19 }
  0x3f   : > { %s273_s13 = sadd.s32 %s7041_s12, %s7040_s28  ;;  %v7144_v30 = vld [vmem:[%s7583_s10 + $0x60] sm:$0xff]   ;;  %v7146_v32 = vld [vmem:[%s7583_s10 + $0x68] sm:$0xff]   ;;  %v7148_v34 = vld [vmem:[%s7583_s10 + $0x70] sm:$0xff]   ;;  %s9326_s30 = smov (!%p280_p7, %s5673_s30), 111 }
  0x40   : > { %s5672_s14 = sshll.u32 %s273_s13, 2  ;;  %6583 = vmatpush3.bf16.msra.mxu0 %v1654_v6  ;;  %6811 = vmatpush3.bf16.msra.mxu1 %v1654_v6  ;;  %v7150_v36 = vld [vmem:[%s7583_s10 + $0x78] sm:$0xff]   ;;  %v7152_v38 = vld [vmem:[%s7583_s10 + $0x80] sm:$0xff]   ;;  %v7154_v40 = vld [vmem:[%s7583_s10 + $0x88] sm:$0xff]   ;;  %s7042_s6 = smul.u32 14, %s9326_s30 }
  0x41   : > { %s7605_s29 = scalar_lea.vmem %s9301_s1, %s5672_s14  ;;  %v7156_v42 = vld [vmem:[%s7583_s10 + $0x90] sm:$0xff]   ;;  %v7158_v44 = vld [vmem:[%s7583_s10 + $0x98] sm:$0xff]   ;;  %v7160_v46 = vld [vmem:[%s7583_s10 + $0xa0] sm:$0xff]  }
  0x42   : > { %v7121_v7 = vld [vmem:[%s7605_s29] sm:$0xff]   ;;  %v7123_v9 = vld [vmem:[%s7605_s29 + $0x8] sm:$0xff]   ;;  %v7125_v11 = vld [vmem:[%s7605_s29 + $0x10] sm:$0xff]   ;;  %s284_s9 = sadd.s32 %s7043_s18, %s7042_s6 }
  0x43   : > { %6812 = vmatprep.mubr.msk.bf16.mxu1 %vm1312_vm2, %v7121_v7  ;;  %6585 = vmatmul.mubr.msk.bf16.vlgmr.msra.gmra.mrb[0].mxu0 %vm1312_vm2, %v7122_v8  ;;  %v7127_v13 = vld [vmem:[%s7605_s29 + $0x18] sm:$0xff]   ;;  %v7129_v15 = vld [vmem:[%s7605_s29 + $0x20] sm:$0xff]   ;;  %v7131_v17 = vld [vmem:[%s7605_s29 + $0x28] sm:$0xff]   ;;  %s5674_s19 = sshll.u32 %s284_s9, 2 }
  0x44   : > { %6813 = vmatmul.mubr.msk.bf16.vlgmr.msra.gmra.mrb[0].mxu1 %vm1312_vm2, %v7123_v9  ;;  %6588 = vmatprep.mubr.msk.bf16.mxu0 %vm1312_vm2, %v7124_v10  ;;  %v7133_v19 = vld [vmem:[%s7605_s29 + $0x30] sm:$0xff]   ;;  %v7135_v21 = vld [vmem:[%s7605_s29 + $0x38] sm:$0xff]   ;;  %v7137_v23 = vld [vmem:[%s7605_s29 + $0x40] sm:$0xff]   ;;  %s7960_s26 = scalar_lea.vmem %s9304_s4, %s5674_s19 }
  0x45   : > { %6816 = vmatprep.mubr.msk.bf16.mxu1 %vm1312_vm2, %v7125_v11  ;;  %v7139_v25 = vld [vmem:[%s7605_s29 + $0x48] sm:$0xff]   ;;  %v7141_v27 = vld [vmem:[%s7605_s29 + $0x50] sm:$0xff]   ;;  %v7143_v29 = vld [vmem:[%s7605_s29 + $0x58] sm:$0xff]  }
  0x46   : > { %v7145_v31 = vld [vmem:[%s7605_s29 + $0x60] sm:$0xff]   ;;  %v7147_v33 = vld [vmem:[%s7605_s29 + $0x68] sm:$0xff]   ;;  %v7149_v35 = vld [vmem:[%s7605_s29 + $0x70] sm:$0xff]  }
  0x47   : > { %v7151_v37 = vld [vmem:[%s7605_s29 + $0x78] sm:$0xff]   ;;  %v7153_v39 = vld [vmem:[%s7605_s29 + $0x80] sm:$0xff]   ;;  %v7155_v41 = vld [vmem:[%s7605_s29 + $0x88] sm:$0xff]  }
  0x48   : > { %v7157_v43 = vld [vmem:[%s7605_s29 + $0x90] sm:$0xff]   ;;  %v7159_v45 = vld [vmem:[%s7605_s29 + $0x98] sm:$0xff]   ;;  %v7161_v47 = vld [vmem:[%s7605_s29 + $0xa0] sm:$0xff]  }
  0x49   : > { %v7162_v48 = vld [vmem:[%s7583_s10 + $0xa8] sm:$0xff]   ;;  %v7164_v50 = vld [vmem:[%s7583_s10 + $0xb0] sm:$0xff]   ;;  %v7166_v52 = vld [vmem:[%s7583_s10 + $0xb8] sm:$0xff]  }
  0x4a   : > { %v7163_v49 = vld [vmem:[%s7605_s29 + $0xa8] sm:$0xff]   ;;  %v7165_v51 = vld [vmem:[%s7605_s29 + $0xb0] sm:$0xff]   ;;  %v7167_v53 = vld [vmem:[%s7605_s29 + $0xb8] sm:$0xff]  }
  0x4b   : > { %6589 = vmatmul.mubr.msk.bf16.gmra.mrb[4].mxu0 %vm1312_vm2, %v7126_v12  ;;  %v7168_v54 = vld [vmem:[%s7583_s10 + $0xc0] sm:$0xff]   ;;  %v7170_v56 = vld [vmem:[%s7583_s10 + $0xc8] sm:$0xff]   ;;  %v7172_v58 = vld [vmem:[%s7583_s10 + $0xd0] sm:$0xff]  }
  0x4c   : > { %6817 = vmatmul.mubr.msk.bf16.gmra.mrb[4].mxu1 %vm1312_vm2, %v7127_v13  ;;  %6592 = vmatprep.mubr.msk.bf16.mxu0 %vm1312_vm2, %v7128_v14  ;;  %v7169_v55 = vld [vmem:[%s7605_s29 + $0xc0] sm:$0xff]   ;;  %v7171_v57 = vld [vmem:[%s7605_s29 + $0xc8] sm:$0xff]   ;;  %v7173_v59 = vld [vmem:[%s7605_s29 + $0xd0] sm:$0xff]  }
  0x4d   : > { %6820 = vmatprep.mubr.msk.bf16.mxu1 %vm1312_vm2, %v7129_v15  ;;  %v7174_v60 = vld [vmem:[%s7583_s10 + $0xd8] sm:$0xff]   ;;  %v7176_v62 = vld [vmem:[%s7583_s10 + $0xe0] sm:$0xff]   ;;  %v7178_v0 = vld [vmem:[%s7583_s10 + $0xe8] sm:$0xff]  }
  0x4e   : > { %v7175_v61 = vld [vmem:[%s7605_s29 + $0xd8] sm:$0xff]   ;;  %v7177_v63 = vld [vmem:[%s7605_s29 + $0xe0] sm:$0xff]   ;;  %v7179_v1 = vld [vmem:[%s7605_s29 + $0xe8] sm:$0xff]  }
  0x4f   : > { %v7180_v2 = vld [vmem:[%s7583_s10 + $0xf0] sm:$0xff]   ;;  %v7182_v4 = vld [vmem:[%s7583_s10 + $0xf8] sm:$0xff]   ;;  %v7184_v6 = vld [vmem:[%s7583_s10 + $0x100] sm:$0xff]  }
  0x50   : > { %v7181_v3 = vld [vmem:[%s7605_s29 + $0xf0] sm:$0xff]   ;;  %v7183_v5 = vld [vmem:[%s7605_s29 + $0xf8] sm:$0xff]   ;;  %v7185_v7 = vld [vmem:[%s7605_s29 + $0x100] sm:$0xff]  }
  0x51   : > { %v7186_v8 = vld [vmem:[%s7583_s10 + $0x108] sm:$0xff]   ;;  %v7188_v10 = vld [vmem:[%s7583_s10 + $0x110] sm:$0xff]   ;;  %v7190_v12 = vld [vmem:[%s7583_s10 + $0x118] sm:$0xff]  }
  0x52   : > { %v7187_v9 = vld [vmem:[%s7605_s29 + $0x108] sm:$0xff]   ;;  %v7189_v11 = vld [vmem:[%s7605_s29 + $0x110] sm:$0xff]   ;;  %v7191_v13 = vld [vmem:[%s7605_s29 + $0x118] sm:$0xff]  }
  0x53   : > { %6593 = vmatmul.mubr.msk.bf16.gmra.mrb[8].mxu0 %vm1312_vm2, %v7130_v16  ;;  %v7192_v14 = vld [vmem:[%s7583_s10 + $0x120] sm:$0xff]   ;;  %v7194_v16 = vld [vmem:[%s7583_s10 + $0x128] sm:$0xff]  }
  0x54   : > { %6821 = vmatmul.mubr.msk.bf16.gmra.mrb[8].mxu1 %vm1312_vm2, %v7131_v17  ;;  %6596 = vmatprep.mubr.msk.bf16.mxu0 %vm1312_vm2, %v7132_v18  ;;  %v7193_v15 = vld [vmem:[%s7605_s29 + $0x120] sm:$0xff]   ;;  %v7195_v17 = vld [vmem:[%s7605_s29 + $0x128] sm:$0xff]   ;;  %v7196_v18 = vld [vmem:[%s7583_s10 + $0x130] sm:$0xff]  }
  0x55   : > { %6824 = vmatprep.mubr.msk.bf16.mxu1 %vm1312_vm2, %v7133_v19  ;;  %v7197_v19 = vld [vmem:[%s7605_s29 + $0x130] sm:$0xff]  }
  0x5b   : > { %6597 = vmatmul.mubr.msk.bf16.gmra.mrb[12].mxu0 %vm1312_vm2, %v7134_v20  ;;  %v7198_v20 = vld [vmem:[%s7583_s10 + $0x138] sm:$0xff]  }
  0x5c   : > { %6825 = vmatmul.mubr.msk.bf16.gmra.mrb[12].mxu1 %vm1312_vm2, %v7135_v21  ;;  %6600 = vmatprep.mubr.msk.bf16.mxu0 %vm1312_vm2, %v7136_v22  ;;  %v7199_v21 = vld [vmem:[%s7605_s29 + $0x138] sm:$0xff]   ;;  %v7200_v22 = vld [vmem:[%s7583_s10 + $0x140] sm:$0xff]  }
  0x5d   : > { %6828 = vmatprep.mubr.msk.bf16.mxu1 %vm1312_vm2, %v7137_v23  ;;  %v7201_v23 = vld [vmem:[%s7605_s29 + $0x140] sm:$0xff]  }
  0x63   : > { %6601 = vmatmul.mubr.msk.bf16.gmra.mrb[16].mxu0 %vm1312_vm2, %v7138_v24  ;;  %v7202_v24 = vld [vmem:[%s7583_s10 + $0x148] sm:$0xff]  }
  0x64   : > { %6829 = vmatmul.mubr.msk.bf16.gmra.mrb[16].mxu1 %vm1312_vm2, %v7139_v25  ;;  %6604 = vmatprep.mubr.msk.bf16.mxu0 %vm1312_vm2, %v7140_v26  ;;  %v7203_v25 = vld [vmem:[%s7605_s29 + $0x148] sm:$0xff]   ;;  %v7204_v26 = vld [vmem:[%s7583_s10 + $0x150] sm:$0xff]  }
  0x65   : > { %6832 = vmatprep.mubr.msk.bf16.mxu1 %vm1312_vm2, %v7141_v27  ;;  %v7205_v27 = vld [vmem:[%s7605_s29 + $0x150] sm:$0xff]  }
  0x6b   : > { %6605 = vmatmul.mubr.msk.bf16.gmra.mrb[20].mxu0 %vm1312_vm2, %v7142_v28  ;;  %v7206_v28 = vld [vmem:[%s7583_s10 + $0x158] sm:$0xff]  }
  0x6c   : > { %6833 = vmatmul.mubr.msk.bf16.gmra.mrb[20].mxu1 %vm1312_vm2, %v7143_v29  ;;  %6608 = vmatprep.mubr.msk.bf16.mxu0 %vm1312_vm2, %v7144_v30  ;;  %v7207_v29 = vld [vmem:[%s7605_s29 + $0x158] sm:$0xff]   ;;  %v7208_v30 = vld [vmem:[%s7583_s10 + $0x160] sm:$0xff]  }
  0x6d   : > { %6836 = vmatprep.mubr.msk.bf16.mxu1 %vm1312_vm2, %v7145_v31  ;;  %v7209_v31 = vld [vmem:[%s7605_s29 + $0x160] sm:$0xff]  }
  0x73   : > { %6609 = vmatmul.mubr.msk.bf16.gmra.mrb[24].mxu0 %vm1312_vm2, %v7146_v32  ;;  %v7210_v32 = vld [vmem:[%s7583_s10 + $0x168] sm:$0xff]  }
  0x74   : > { %6837 = vmatmul.mubr.msk.bf16.gmra.mrb[24].mxu1 %vm1312_vm2, %v7147_v33  ;;  %6612 = vmatprep.mubr.msk.bf16.mxu0 %vm1312_vm2, %v7148_v34  ;;  %v7211_v33 = vld [vmem:[%s7605_s29 + $0x168] sm:$0xff]   ;;  %v7212_v34 = vld [vmem:[%s7583_s10 + $0x170] sm:$0xff]  }
  0x75   : > { %6840 = vmatprep.mubr.msk.bf16.mxu1 %vm1312_vm2, %v7149_v35  ;;  %v7213_v35 = vld [vmem:[%s7605_s29 + $0x170] sm:$0xff]  }
  0x7b   : > { %6613 = vmatmul.mubr.msk.bf16.gmra.mrb[28].mxu0 %vm1312_vm2, %v7150_v36  ;;  %v7214_v36 = vld [vmem:[%s7583_s10 + $0x178] sm:$0xff]  }
  0x7c   : > { %6841 = vmatmul.mubr.msk.bf16.gmra.mrb[28].mxu1 %vm1312_vm2, %v7151_v37  ;;  %6616 = vmatprep.mubr.msk.bf16.mxu0 %vm1312_vm2, %v7152_v38  ;;  %v7215_v37 = vld [vmem:[%s7605_s29 + $0x178] sm:$0xff]   ;;  %v7216_v38 = vld [vmem:[%s7583_s10 + $0x180] sm:$0xff]  }
  0x7d   : > { %6844 = vmatprep.mubr.msk.bf16.mxu1 %vm1312_vm2, %v7153_v39  ;;  %v7217_v39 = vld [vmem:[%s7605_s29 + $0x180] sm:$0xff]  }
  0x83   : > { %6617 = vmatmul.mubr.msk.bf16.gmra.mrb[32].mxu0 %vm1312_vm2, %v7154_v40  ;;  %v7218_v40 = vld [vmem:[%s7583_s10 + $0x188] sm:$0xff]  }
  0x84   : > { %6845 = vmatmul.mubr.msk.bf16.gmra.mrb[32].mxu1 %vm1312_vm2, %v7155_v41  ;;  %6620 = vmatprep.mubr.msk.bf16.mxu0 %vm1312_vm2, %v7156_v42  ;;  %v7219_v41 = vld [vmem:[%s7605_s29 + $0x188] sm:$0xff]   ;;  %v7220_v42 = vld [vmem:[%s7583_s10 + $0x190] sm:$0xff]  }
  0x85   : > { %6848 = vmatprep.mubr.msk.bf16.mxu1 %vm1312_vm2, %v7157_v43  ;;  %v7221_v43 = vld [vmem:[%s7605_s29 + $0x190] sm:$0xff]  }
  0x8b   : > { %6621 = vmatmul.mubr.msk.bf16.gmra.mrb[36].mxu0 %vm1312_vm2, %v7158_v44  ;;  %v7222_v44 = vld [vmem:[%s7583_s10 + $0x198] sm:$0xff]  }
  0x8c   : > { %6849 = vmatmul.mubr.msk.bf16.gmra.mrb[36].mxu1 %vm1312_vm2, %v7159_v45  ;;  %6624 = vmatprep.mubr.msk.bf16.mxu0 %vm1312_vm2, %v7160_v46  ;;  %v7223_v45 = vld [vmem:[%s7605_s29 + $0x198] sm:$0xff]   ;;  %v7224_v46 = vld [vmem:[%s7583_s10 + $0x1a0] sm:$0xff]  }
  0x8d   : > { %6852 = vmatprep.mubr.msk.bf16.mxu1 %vm1312_vm2, %v7161_v47  ;;  %v7225_v47 = vld [vmem:[%s7605_s29 + $0x1a0] sm:$0xff]  }
  0x93   : > { %6625 = vmatmul.mubr.msk.bf16.gmra.mrb[40].mxu0 %vm1312_vm2, %v7162_v48  ;;  %v7226_v48 = vld [vmem:[%s7583_s10 + $0x1a8] sm:$0xff]  }
  0x94   : > { %6853 = vmatmul.mubr.msk.bf16.gmra.mrb[40].mxu1 %vm1312_vm2, %v7163_v49  ;;  %6628 = vmatprep.mubr.msk.bf16.mxu0 %vm1312_vm2, %v7164_v50  ;;  %v7227_v49 = vld [vmem:[%s7605_s29 + $0x1a8] sm:$0xff]   ;;  %v7228_v50 = vld [vmem:[%s7583_s10 + $0x1b0] sm:$0xff]  }
  0x95   : > { %6856 = vmatprep.mubr.msk.bf16.mxu1 %vm1312_vm2, %v7165_v51  ;;  %v7229_v51 = vld [vmem:[%s7605_s29 + $0x1b0] sm:$0xff]  }
  0x9b   : > { %6629 = vmatmul.mubr.msk.bf16.gmra.mrb[44].mxu0 %vm1312_vm2, %v7166_v52 }
  0x9c   : > { %6857 = vmatmul.mubr.msk.bf16.gmra.mrb[44].mxu1 %vm1312_vm2, %v7167_v53  ;;  %6632 = vmatprep.mubr.msk.bf16.mxu0 %vm1312_vm2, %v7168_v54 }
  0x9d   : > { %6860 = vmatprep.mubr.msk.bf16.mxu1 %vm1312_vm2, %v7169_v55 }
  0xa3   : > { %6633 = vmatmul.mubr.msk.bf16.gmra.mrb[48].mxu0 %vm1312_vm2, %v7170_v56 }
  0xa4   : > { %6861 = vmatmul.mubr.msk.bf16.gmra.mrb[48].mxu1 %vm1312_vm2, %v7171_v57  ;;  %6636 = vmatprep.mubr.msk.bf16.mxu0 %vm1312_vm2, %v7172_v58  ;;  %v7230_v57 = vld [vmem:[%s7583_s10 + $0x1b8] sm:$0xff]  }
  0xa5   : > { %6864 = vmatprep.mubr.msk.bf16.mxu1 %vm1312_vm2, %v7173_v59  ;;  %v7231_v58 = vld [vmem:[%s7605_s29 + $0x1b8] sm:$0xff]  }
  0xab   : > { %6637 = vmatmul.mubr.msk.bf16.gmra.mrb[52].mxu0 %vm1312_vm2, %v7174_v60 }
  0xac   : > { %6865 = vmatmul.mubr.msk.bf16.gmra.mrb[52].mxu1 %vm1312_vm2, %v7175_v61  ;;  %6640 = vmatprep.mubr.msk.bf16.mxu0 %vm1312_vm2, %v7176_v62  ;;  %v7232_v62 = vld [vmem:[%s7583_s10 + $0x1c0] sm:$0xff]  }
  0xad   : > { %6868 = vmatprep.mubr.msk.bf16.mxu1 %vm1312_vm2, %v7177_v63  ;;  %v7233_v63 = vld [vmem:[%s7605_s29 + $0x1c0] sm:$0xff]  }
  0xb3   : > { %6641 = vmatmul.mubr.msk.bf16.gmra.mrb[56].mxu0 %vm1312_vm2, %v7178_v0 }
  0xb4   : > { %6869 = vmatmul.mubr.msk.bf16.gmra.mrb[56].mxu1 %vm1312_vm2, %v7179_v1  ;;  %6644 = vmatprep.mubr.msk.bf16.mxu0 %vm1312_vm2, %v7180_v2 }
  0xb5   : > { %6872 = vmatprep.mubr.msk.bf16.mxu1 %vm1312_vm2, %v7181_v3 }
  0xbb   : > { %6645 = vmatmul.mubr.msk.bf16.gmra.mrb[60].mxu0 %vm1312_vm2, %v7182_v4 }
  0xbc   : > { %6873 = vmatmul.mubr.msk.bf16.gmra.mrb[60].mxu1 %vm1312_vm2, %v7183_v5  ;;  %6648 = vmatprep.mubr.msk.bf16.mxu0 %vm1312_vm2, %v7184_v6 }
  0xbd   : > { %6876 = vmatprep.mubr.msk.bf16.mxu1 %vm1312_vm2, %v7185_v7 }
  0xc3   : > { %6649 = vmatmul.mubr.msk.bf16.gmra.mrb[64].mxu0 %vm1312_vm2, %v7186_v8 }
  0xc4   : > { %6877 = vmatmul.mubr.msk.bf16.gmra.mrb[64].mxu1 %vm1312_vm2, %v7187_v9  ;;  %6652 = vmatprep.mubr.msk.bf16.mxu0 %vm1312_vm2, %v7188_v10  ;;  %v7234_v9 = vld [vmem:[%s7583_s10 + $0x1c8] sm:$0xff]  }
  0xc5   : > { %6880 = vmatprep.mubr.msk.bf16.mxu1 %vm1312_vm2, %v7189_v11  ;;  %v7235_v10 = vld [vmem:[%s7605_s29 + $0x1c8] sm:$0xff]  }
  0xcb   : > { %6653 = vmatmul.mubr.msk.bf16.gmra.mrb[68].mxu0 %vm1312_vm2, %v7190_v12 }
  0xcc   : > { %6881 = vmatmul.mubr.msk.bf16.gmra.mrb[68].mxu1 %vm1312_vm2, %v7191_v13  ;;  %6656 = vmatprep.mubr.msk.bf16.mxu0 %vm1312_vm2, %v7192_v14  ;;  %v7236_v14 = vld [vmem:[%s7583_s10 + $0x1d0] sm:$0xff]  }
  0xcd   : > { %6884 = vmatprep.mubr.msk.bf16.mxu1 %vm1312_vm2, %v7193_v15  ;;  %v7237_v15 = vld [vmem:[%s7605_s29 + $0x1d0] sm:$0xff]  }
  0xd3   : > { %6657 = vmatmul.mubr.msk.bf16.gmra.mrb[72].mxu0 %vm1312_vm2, %v7194_v16 }
  0xd4   : > { %6885 = vmatmul.mubr.msk.bf16.gmra.mrb[72].mxu1 %vm1312_vm2, %v7195_v17  ;;  %6660 = vmatprep.mubr.msk.bf16.mxu0 %vm1312_vm2, %v7196_v18 }
  0xd5   : > { %6888 = vmatprep.mubr.msk.bf16.mxu1 %vm1312_vm2, %v7197_v19 }
  0xdb   : > { %6661 = vmatmul.mubr.msk.bf16.gmra.mrb[76].mxu0 %vm1312_vm2, %v7198_v20 }
  0xdc   : > { %6889 = vmatmul.mubr.msk.bf16.gmra.mrb[76].mxu1 %vm1312_vm2, %v7199_v21  ;;  %6664 = vmatprep.mubr.msk.bf16.mxu0 %vm1312_vm2, %v7200_v22 }
  0xdd   : > { %6892 = vmatprep.mubr.msk.bf16.mxu1 %vm1312_vm2, %v7201_v23 }
  0xe3   : > { %6665 = vmatmul.mubr.msk.bf16.gmra.mrb[80].mxu0 %vm1312_vm2, %v7202_v24 }
  0xe4   : > { %6893 = vmatmul.mubr.msk.bf16.gmra.mrb[80].mxu1 %vm1312_vm2, %v7203_v25  ;;  %6668 = vmatprep.mubr.msk.bf16.mxu0 %vm1312_vm2, %v7204_v26  ;;  %v7238_v25 = vld [vmem:[%s7583_s10 + $0x1d8] sm:$0xff]  }
  0xe5   : > { %6896 = vmatprep.mubr.msk.bf16.mxu1 %vm1312_vm2, %v7205_v27  ;;  %v7239_v26 = vld [vmem:[%s7605_s29 + $0x1d8] sm:$0xff]  }
  0xeb   : > { %6669 = vmatmul.mubr.msk.bf16.gmra.mrb[84].mxu0 %vm1312_vm2, %v7206_v28 }
  0xec   : > { %6897 = vmatmul.mubr.msk.bf16.gmra.mrb[84].mxu1 %vm1312_vm2, %v7207_v29  ;;  %6672 = vmatprep.mubr.msk.bf16.mxu0 %vm1312_vm2, %v7208_v30  ;;  %v7240_v30 = vld [vmem:[%s7583_s10 + $0x1e0] sm:$0xff]  }
  0xed   : > { %6900 = vmatprep.mubr.msk.bf16.mxu1 %vm1312_vm2, %v7209_v31  ;;  %v7241_v31 = vld [vmem:[%s7605_s29 + $0x1e0] sm:$0xff]  }
  0xf3   : > { %6673 = vmatmul.mubr.msk.bf16.gmra.mrb[88].mxu0 %vm1312_vm2, %v7210_v32 }
  0xf4   : > { %6901 = vmatmul.mubr.msk.bf16.gmra.mrb[88].mxu1 %vm1312_vm2, %v7211_v33  ;;  %6676 = vmatprep.mubr.msk.bf16.mxu0 %vm1312_vm2, %v7212_v34 }
  0xf5   : > { %6904 = vmatprep.mubr.msk.bf16.mxu1 %vm1312_vm2, %v7213_v35 }
  0xfb   : > { %6677 = vmatmul.mubr.msk.bf16.gmra.mrb[92].mxu0 %vm1312_vm2, %v7214_v36 }
  0xfc   : > { %6905 = vmatmul.mubr.msk.bf16.gmra.mrb[92].mxu1 %vm1312_vm2, %v7215_v37  ;;  %6680 = vmatprep.mubr.msk.bf16.mxu0 %vm1312_vm2, %v7216_v38 }
  0xfd   : > { %6908 = vmatprep.mubr.msk.bf16.mxu1 %vm1312_vm2, %v7217_v39 }
 0x103   : > { %6681 = vmatmul.mubr.msk.bf16.gmra.mrb[96].mxu0 %vm1312_vm2, %v7218_v40 }
 0x104   : > { %6909 = vmatmul.mubr.msk.bf16.gmra.mrb[96].mxu1 %vm1312_vm2, %v7219_v41  ;;  %6684 = vmatprep.mubr.msk.bf16.mxu0 %vm1312_vm2, %v7220_v42  ;;  %v7242_v41 = vld [vmem:[%s7583_s10 + $0x1e8] sm:$0xff]  }
 0x105   : > { %6912 = vmatprep.mubr.msk.bf16.mxu1 %vm1312_vm2, %v7221_v43  ;;  %v7243_v42 = vld [vmem:[%s7605_s29 + $0x1e8] sm:$0xff]   ;;  %v7933_v43 = vld [vmem:[%s9303_s3] ss:$0 sm:$0xff] }
 0x10b   : > { %6685 = vmatmul.mubr.msk.bf16.gmra.mrb[100].mxu0 %vm1312_vm2, %v7222_v44 }
 0x10c   : > { %6913 = vmatmul.mubr.msk.bf16.gmra.mrb[100].mxu1 %vm1312_vm2, %v7223_v45  ;;  %6688 = vmatprep.mubr.msk.bf16.mxu0 %vm1312_vm2, %v7224_v46 }
 0x10d   : > { %6916 = vmatprep.mubr.msk.bf16.mxu1 %vm1312_vm2, %v7225_v47  ;;  %v7244_v47 = vld [vmem:[%s7583_s10 + $0x1f0] sm:$0xff]  }
 0x113   : > { %6689 = vmatmul.mubr.msk.bf16.gmra.mrb[104].mxu0 %vm1312_vm2, %v7226_v48  ;;  %v7245_v48 = vld [vmem:[%s7605_s29 + $0x1f0] sm:$0xff]  }
 0x114   : > { %6917 = vmatmul.mubr.msk.bf16.gmra.mrb[104].mxu1 %vm1312_vm2, %v7227_v49  ;;  %6692 = vmatprep.mubr.msk.bf16.mxu0 %vm1312_vm2, %v7228_v50 }
 0x115   : > { %6920 = vmatprep.mubr.msk.bf16.mxu1 %vm1312_vm2, %v7229_v51 }
 0x116   : > { %v7826_v52 = vpop.f32.mrb[0].mxu0 }
 0x117   : > { %v7828_v53 = vpop.f32.mrb[0].mxu1  ;;  %v7832_v55 = vpop.f32.mrb[1].mxu0 }
 0x118   : > { %v4412_v54 = vmax.f32 %v7826_v52, %v7828_v53  ;;  %v7834_v56 = vpop.f32.mrb[1].mxu1  ;;  %v7840_v60 = vpop.f32.mrb[2].mxu0 }
 0x119   : > { %v4410_v59 = vmax.f32 %v7832_v55, %v7834_v56  ;;  %v7842_v61 = vpop.f32.mrb[2].mxu1  ;;  %v7848_v1 = vpop.f32.mrb[3].mxu0 }
 0x11a   : > { %v4413_v0 = vmax.f32 %v7840_v60, %v7842_v61  ;;  %v7850_v2 = vpop.f32.mrb[3].mxu1 }
 0x11b   : > { %v4411_v3 = vmax.f32 %v7848_v1, %v7850_v2  ;;  %6693 = vmatmul.mubr.msk.bf16.gmra.mrb[108].mxu0 %vm1312_vm2, %v7230_v57 }
 0x11c   : > { %6921 = vmatmul.mubr.msk.bf16.gmra.mrb[108].mxu1 %vm1312_vm2, %v7231_v58  ;;  %6696 = vmatprep.mubr.msk.bf16.mxu0 %vm1312_vm2, %v7232_v62 }
 0x11d   : > { %6924 = vmatprep.mubr.msk.bf16.mxu1 %vm1312_vm2, %v7233_v63 }
 0x11e   : > { %v7858_v4 = vpop.f32.mrb[4].mxu0 }
 0x11f   : > { %v7860_v5 = vpop.f32.mrb[4].mxu1  ;;  %v7864_v7 = vpop.f32.mrb[5].mxu0 }
 0x120   : > { %v4416_v6 = vmax.f32 %v7858_v4, %v7860_v5  ;;  %v7866_v8 = vpop.f32.mrb[5].mxu1  ;;  %v7872_v12 = vpop.f32.mrb[6].mxu0 }
 0x121   : > { %v4414_v11 = vmax.f32 %v7864_v7, %v7866_v8  ;;  %v7874_v13 = vpop.f32.mrb[6].mxu1  ;;  %v7880_v17 = vpop.f32.mrb[7].mxu0 }
 0x122   : > { %v4417_v16 = vmax.f32 %v7872_v12, %v7874_v13  ;;  %v7882_v18 = vpop.f32.mrb[7].mxu1 }
 0x123   : > { %v4415_v19 = vmax.f32 %v7880_v17, %v7882_v18  ;;  %6697 = vmatmul.mubr.msk.bf16.gmra.mrb[112].mxu0 %vm1312_vm2, %v7234_v9 }
 0x124   : > { %6925 = vmatmul.mubr.msk.bf16.gmra.mrb[112].mxu1 %vm1312_vm2, %v7235_v10  ;;  %6700 = vmatprep.mubr.msk.bf16.mxu0 %vm1312_vm2, %v7236_v14 }
 0x125   : > { %6928 = vmatprep.mubr.msk.bf16.mxu1 %vm1312_vm2, %v7237_v15  ;;  %v7246_v15 = vld [vmem:[%s7583_s10 + $0x1f8] sm:$0xff]  }
 0x126   : > { %v7891_v20 = vpop.f32.mrb[8].mxu0 }
 0x127   : > { %v7893_v21 = vpop.f32.mrb[8].mxu1  ;;  %v7897_v23 = vpop.f32.mrb[9].mxu0 }
 0x128   : > { %v4420_v22 = vmax.f32 %v7891_v20, %v7893_v21  ;;  %v7899_v24 = vpop.f32.mrb[9].mxu1  ;;  %v7905_v28 = vpop.f32.mrb[10].mxu0 }
 0x129   : > { %v4418_v27 = vmax.f32 %v7897_v23, %v7899_v24  ;;  %v7907_v29 = vpop.f32.mrb[10].mxu1  ;;  %v7913_v33 = vpop.f32.mrb[11].mxu0 }
 0x12a   : > { %v4421_v32 = vmax.f32 %v7905_v28, %v7907_v29  ;;  %v7915_v34 = vpop.f32.mrb[11].mxu1 }
 0x12b   : > { %v4419_v35 = vmax.f32 %v7913_v33, %v7915_v34  ;;  %6701 = vmatmul.mubr.msk.bf16.gmra.mrb[116].mxu0 %vm1312_vm2, %v7238_v25  ;;  %v7247_v25 = vld [vmem:[%s7605_s29 + $0x1f8] sm:$0xff]  }
 0x12c   : > { %6929 = vmatmul.mubr.msk.bf16.gmra.mrb[116].mxu1 %vm1312_vm2, %v7239_v26  ;;  %6704 = vmatprep.mubr.msk.bf16.mxu0 %vm1312_vm2, %v7240_v30 }
 0x12d   : > { %6932 = vmatprep.mubr.msk.bf16.mxu1 %vm1312_vm2, %v7241_v31 }
 0x12e   : > { %v6598_v36 = vpop.f32.mrb[12].mxu0 }
 0x12f   : > { %v6826_v37 = vpop.f32.mrb[12].mxu1  ;;  %v7924_v39 = vpop.f32.mrb[13].mxu0 }
 0x130   : > { %v4424_v38 = vmax.f32 %v6598_v36, %v6826_v37  ;;  %v7926_v40 = vpop.f32.mrb[13].mxu1  ;;  %v6599_v45 = vpop.f32.mrb[14].mxu0  ;;  %v7248_v36 = vld [vmem:[%s7583_s10 + $0x200] sm:$0xff]  }
 0x131   : > { %v4422_v44 = vmax.f32 %v7924_v39, %v7926_v40  ;;  %v6827_v46 = vpop.f32.mrb[14].mxu1  ;;  %v7942_v51 = vpop.f32.mrb[15].mxu0  ;;  %v7249_v37 = vld [vmem:[%s7605_s29 + $0x200] sm:$0xff]  }
 0x132   : > { %v4634_v49 = vmax.f32 %v4410_v59, %v4424_v38  ;;  %v4425_v50 = vmax.f32 %v6599_v45, %v6827_v46  ;;  %v7944_v57 = vpop.f32.mrb[15].mxu1 }
 0x133   : > { %v4423_v58 = vmax.f32 %v7942_v51, %v7944_v57  ;;  %6705 = vmatmul.mubr.msk.bf16.gmra.mrb[120].mxu0 %vm1312_vm2, %v7242_v41 }
 0x134   : > { %v4753_v62 = vadd.f32 %v7933_v43, %v4634_v49  ;;  %v4635_v63 = vmax.f32 %v4411_v3, %v4425_v50  ;;  %6933 = vmatmul.mubr.msk.bf16.gmra.mrb[120].mxu1 %vm1312_vm2, %v7243_v42  ;;  %6708 = vmatprep.mubr.msk.bf16.mxu0 %vm1312_vm2, %v7244_v47 }
 0x135   : > { %6936 = vmatprep.mubr.msk.bf16.mxu1 %vm1312_vm2, %v7245_v48 }
 0x136   : > { %v4865_v55 = vmax.f32 %v4753_v62, 0.0  ;;  %v4754_v56 = vadd.f32 %v7933_v43, %v4635_v63  ;;  %v6602_v59 = vpop.f32.mrb[16].mxu0  ;;  %v7250_v63 = vld [vmem:[%s7583_s10 + $0x208] sm:$0xff]  }
 0x137   : > { %v6830_v1 = vpop.f32.mrb[16].mxu1  ;;  %v1754_v10 = vpop.f32.mrb[17].mxu0 }
 0x138   : > { %v6240_v2 = vpack.c.bf16 %v4865_v55, %v4865_v55  ;;  %v4866_v3 = vmax.f32 %v4754_v56, 0.0  ;;  %v4428_v9 = vmax.f32 %v6602_v59, %v6830_v1  ;;  %v3579_v14 = vpop.f32.mrb[17].mxu1  ;;  %v6603_v30 = vpop.f32.mrb[18].mxu0  ;;  %v7251_v55 = vld [vmem:[%s7605_s29 + $0x208] sm:$0xff]  }
 0x139   : > { %v4426_v26 = vmax.f32 %v1754_v10, %v3579_v14  ;;  %v6831_v31 = vpop.f32.mrb[18].mxu1  ;;  %v1757_v45 = vpop.f32.mrb[19].mxu0  ;;  %v7253_v10 = vld [vmem:[%s7605_s29 + $0x210] sm:$0xff]  }
 0x13a   : > { %5426 = vst.msk [vmem:[%s7960_s26] sm:$0xf] %vm5425_vm3, %v6240_v2  ;;  %v6241_v38 = vpack.c.bf16 %v4866_v3, %v4866_v3  ;;  %v4638_v41 = vmax.f32 %v4414_v11, %v4428_v9  ;;  %v4429_v42 = vmax.f32 %v6603_v30, %v6831_v31  ;;  %v3582_v46 = vpop.f32.mrb[19].mxu1  ;;  %v7252_v9 = vld [vmem:[%s7583_s10 + $0x210] sm:$0xff]  }
 0x13b   : > { %v4636_v47 = vmax.f32 %v4412_v54, %v4426_v26  ;;  %v4427_v48 = vmax.f32 %v1757_v45, %v3582_v46  ;;  %6709 = vmatmul.mubr.msk.bf16.gmra.mrb[124].mxu0 %vm1312_vm2, %v7246_v15  ;;  %v7254_v45 = vld [vmem:[%s7583_s10 + $0x218] sm:$0xff]  }
 0x13c   : > { %5427 = vst.msk [vmem:[%s7960_s26 + $0x4] sm:$0xf] %vm5425_vm3, %v6241_v38  ;;  %v4757_v49 = vadd.f32 %v7933_v43, %v4638_v41  ;;  %v4639_v50 = vmax.f32 %v4415_v19, %v4429_v42  ;;  %6937 = vmatmul.mubr.msk.bf16.gmra.mrb[124].mxu1 %vm1312_vm2, %v7247_v25  ;;  %6712 = vmatprep.mubr.msk.bf16.mxu0 %vm1312_vm2, %v7248_v36  ;;  %v7255_v46 = vld [vmem:[%s7605_s29 + $0x218] sm:$0xff]  }
 0x13d   : > { %v4755_v7 = vadd.f32 %v7933_v43, %v4636_v47  ;;  %v4637_v52 = vmax.f32 %v4413_v0, %v4427_v48  ;;  %6940 = vmatprep.mubr.msk.bf16.mxu1 %vm1312_vm2, %v7249_v37 }
 0x13e   : > { %v4869_v53 = vmax.f32 %v4757_v49, 0.0  ;;  %v4758_v54 = vadd.f32 %v7933_v43, %v4639_v50  ;;  %v6606_v17 = vpop.f32.mrb[20].mxu0 }
 0x13f   : > { %v4867_v8 = vmax.f32 %v4755_v7, 0.0  ;;  %v4756_v11 = vadd.f32 %v7933_v43, %v4637_v52  ;;  %v6834_v18 = vpop.f32.mrb[20].mxu1  ;;  %v1770_v61 = vpop.f32.mrb[21].mxu0  ;;  %v7256_v52 = vld [vmem:[%s7583_s10 + $0x220] sm:$0xff]  }
 0x140   : > { %v6244_v19 = vpack.c.bf16 %v4869_v53, %v4869_v53  ;;  %v4870_v62 = vmax.f32 %v4758_v54, 0.0  ;;  %v4432_v60 = vmax.f32 %v6606_v17, %v6834_v18  ;;  %v3595_v0 = vpop.f32.mrb[21].mxu1  ;;  %v6607_v2 = vpop.f32.mrb[22].mxu0  ;;  %v7257_v53 = vld [vmem:[%s7605_s29 + $0x220] sm:$0xff]  }
 0x141   : > { %v6242_v56 = vpack.c.bf16 %v4867_v8, %v4867_v8  ;;  %v4868_v59 = vmax.f32 %v4756_v11, 0.0  ;;  %v4430_v1 = vmax.f32 %v1770_v61, %v3595_v0  ;;  %v6835_v3 = vpop.f32.mrb[22].mxu1  ;;  %v1773_v26 = vpop.f32.mrb[23].mxu0 }
 0x142   : > { %5430 = vst.msk [vmem:[%s7960_s26 + $0x10] sm:$0xf] %vm5425_vm3, %v6244_v19  ;;  %v6245_v14 = vpack.c.bf16 %v4870_v62, %v4870_v62  ;;  %v4642_v15 = vmax.f32 %v4418_v27, %v4432_v60  ;;  %v4433_v25 = vmax.f32 %v6607_v2, %v6835_v3  ;;  %v3598_v30 = vpop.f32.mrb[23].mxu1 }
 0x143   : > { %5428 = vst.msk [vmem:[%s7960_s26 + $0x8] sm:$0xf] %vm5425_vm3, %v6242_v56  ;;  %v6243_v31 = vpack.c.bf16 %v4868_v59, %v4868_v59  ;;  %v4640_v36 = vmax.f32 %v4416_v6, %v4430_v1  ;;  %v4431_v37 = vmax.f32 %v1773_v26, %v3598_v30  ;;  %6713 = vmatmul.mubr.msk.bf16.gmra.mrb[128].mxu0 %vm1312_vm2, %v7250_v63  ;;  %v7259_v56 = vld [vmem:[%s7605_s29 + $0x228] sm:$0xff]  }
 0x144   : > { %5431 = vst.msk [vmem:[%s7960_s26 + $0x14] sm:$0xf] %vm5425_vm3, %v6245_v14  ;;  %v4761_v38 = vadd.f32 %v7933_v43, %v4642_v15  ;;  %v4643_v23 = vmax.f32 %v4419_v35, %v4433_v25  ;;  %6941 = vmatmul.mubr.msk.bf16.gmra.mrb[128].mxu1 %vm1312_vm2, %v7251_v55  ;;  %6716 = vmatprep.mubr.msk.bf16.mxu0 %vm1312_vm2, %v7252_v9  ;;  %v7258_v55 = vld [vmem:[%s7583_s10 + $0x228] sm:$0xff]   ;;  %v7261_v14 = vld [vmem:[%s7605_s29 + $0x230] sm:$0xff]  }
 0x145   : > { %5429 = vst.msk [vmem:[%s7960_s26 + $0xc] sm:$0xf] %vm5425_vm3, %v6243_v31  ;;  %v4759_v24 = vadd.f32 %v7933_v43, %v4640_v36  ;;  %v4641_v4 = vmax.f32 %v4417_v16, %v4431_v37  ;;  %6944 = vmatprep.mubr.msk.bf16.mxu1 %vm1312_vm2, %v7253_v10  ;;  %v7260_v10 = vld [vmem:[%s7583_s10 + $0x230] sm:$0xff]  }
 0x146   : > { %v4873_v5 = vmax.f32 %v4761_v38, 0.0  ;;  %v4762_v6 = vadd.f32 %v7933_v43, %v4643_v23  ;;  %v6610_v34 = vpop.f32.mrb[24].mxu0 }
 0x147   : > { %v4871_v27 = vmax.f32 %v4759_v24, 0.0  ;;  %v4760_v33 = vadd.f32 %v7933_v43, %v4641_v4  ;;  %v6838_v35 = vpop.f32.mrb[24].mxu1  ;;  %v1786_v13 = vpop.f32.mrb[25].mxu0 }
 0x148   : > { %v6248_v41 = vpack.c.bf16 %v4873_v5, %v4873_v5  ;;  %v4874_v42 = vmax.f32 %v4762_v6, 0.0  ;;  %v4436_v12 = vmax.f32 %v6610_v34, %v6838_v35  ;;  %v3611_v16 = vpop.f32.mrb[25].mxu1  ;;  %v6611_v50 = vpop.f32.mrb[26].mxu0  ;;  %v7262_v5 = vld [vmem:[%s7583_s10 + $0x238] sm:$0xff]   ;;  %v7264_v35 = vld [vmem:[%s7583_s10 + $0x240] sm:$0xff]  }
 0x149   : > { %v6246_v47 = vpack.c.bf16 %v4871_v27, %v4871_v27  ;;  %v4872_v48 = vmax.f32 %v4760_v33, 0.0  ;;  %v4434_v49 = vmax.f32 %v1786_v13, %v3611_v16  ;;  %v6839_v7 = vpop.f32.mrb[26].mxu1  ;;  %v1789_v17 = vpop.f32.mrb[27].mxu0  ;;  %v7263_v6 = vld [vmem:[%s7605_s29 + $0x238] sm:$0xff]  }
 0x14a   : > { %5434 = vst.msk [vmem:[%s7960_s26 + $0x20] sm:$0xf] %vm5425_vm3, %v6248_v41  ;;  %v6249_v54 = vpack.c.bf16 %v4874_v42, %v4874_v42  ;;  %v4646_v8 = vmax.f32 %v4422_v44, %v4436_v12  ;;  %v4437_v11 = vmax.f32 %v6611_v50, %v6839_v7  ;;  %v3614_v18 = vpop.f32.mrb[27].mxu1  ;;  %v7265_v41 = vld [vmem:[%s7605_s29 + $0x240] sm:$0xff]   ;;  %v7266_v50 = vld [vmem:[%s7583_s10 + $0x248] sm:$0xff]  }
 0x14b   : > { %5432 = vst.msk [vmem:[%s7960_s26 + $0x18] sm:$0xf] %vm5425_vm3, %v6246_v47  ;;  %v6247_v19 = vpack.c.bf16 %v4872_v48, %v4872_v48  ;;  %v4644_v62 = vmax.f32 %v4420_v22, %v4434_v49  ;;  %v4435_v60 = vmax.f32 %v1789_v17, %v3614_v18  ;;  %6717 = vmatmul.mubr.msk.bf16.gmra.mrb[132].mxu0 %vm1312_vm2, %v7254_v45  ;;  %v7267_v7 = vld [vmem:[%s7605_s29 + $0x248] sm:$0xff]  }
 0x14c   : > { %5435 = vst.msk [vmem:[%s7960_s26 + $0x24] sm:$0xf] %vm5425_vm3, %v6249_v54  ;;  %v4765_v61 = vadd.f32 %v7933_v43, %v4646_v8  ;;  %v4647_v39 = vmax.f32 %v4423_v58, %v4437_v11  ;;  %6945 = vmatmul.mubr.msk.bf16.gmra.mrb[132].mxu1 %vm1312_vm2, %v7255_v46  ;;  %6720 = vmatprep.mubr.msk.bf16.mxu0 %vm1312_vm2, %v7256_v52  ;;  %v7268_v8 = vld [vmem:[%s7583_s10 + $0x250] sm:$0xff]  }
 0x14d   : > { %5433 = vst.msk [vmem:[%s7960_s26 + $0x1c] sm:$0xf] %vm5425_vm3, %v6247_v19  ;;  %v4763_v40 = vadd.f32 %v7933_v43, %v4644_v62  ;;  %v4645_v20 = vmax.f32 %v4421_v32, %v4435_v60  ;;  %6948 = vmatprep.mubr.msk.bf16.mxu1 %vm1312_vm2, %v7257_v53  ;;  %v7269_v11 = vld [vmem:[%s7605_s29 + $0x250] sm:$0xff]  }
 0x14e   : > { %v4877_v21 = vmax.f32 %v4765_v61, 0.0  ;;  %v4766_v22 = vadd.f32 %v7933_v43, %v4647_v39  ;;  %v8054_v57 = vpop.f32.mrb[28].mxu0 }
 0x14f   : > { %v4875_v44 = vmax.f32 %v4763_v40, 0.0  ;;  %v4764_v51 = vadd.f32 %v7933_v43, %v4645_v20  ;;  %v8056_v58 = vpop.f32.mrb[28].mxu1  ;;  %v8060_v0 = vpop.f32.mrb[29].mxu0 }
 0x150   : > { %v6252_v28 = vpack.c.bf16 %v4877_v21, %v4877_v21  ;;  %v4878_v29 = vmax.f32 %v4766_v22, 0.0  ;;  %v4440_v32 = vmax.f32 %v8054_v57, %v8056_v58  ;;  %v8062_v63 = vpop.f32.mrb[29].mxu1  ;;  %v8068_v3 = vpop.f32.mrb[30].mxu0  ;;  %v7270_v21 = vld [vmem:[%s7583_s10 + $0x258] sm:$0xff]  }
 0x151   : > { %v6250_v59 = vpack.c.bf16 %v4875_v44, %v4875_v44  ;;  %v4876_v1 = vmax.f32 %v4764_v51, 0.0  ;;  %v4438_v2 = vmax.f32 %v8060_v0, %v8062_v63  ;;  %v8070_v9 = vpop.f32.mrb[30].mxu1  ;;  %v8078_v26 = vpop.f32.mrb[31].mxu0  ;;  %v7271_v22 = vld [vmem:[%s7605_s29 + $0x258] sm:$0xff]  }
 0x152   : > { %5438 = vst.msk [vmem:[%s7960_s26 + $0x30] sm:$0xf] %vm5425_vm3, %v6252_v28  ;;  %v6253_v15 = vpack.c.bf16 %v4878_v29, %v4878_v29  ;;  %v4441_v25 = vmax.f32 %v8068_v3, %v8070_v9  ;;  %v8080_v30 = vpop.f32.mrb[31].mxu1  ;;  %v7272_v29 = vld [vmem:[%s7583_s10 + $0x260] sm:$0xff]  }
 0x153   : > { %5436 = vst.msk [vmem:[%s7960_s26 + $0x28] sm:$0xf] %vm5425_vm3, %v6250_v59  ;;  %v6251_v31 = vpack.c.bf16 %v4876_v1, %v4876_v1  ;;  %v4439_v36 = vmax.f32 %v8078_v26, %v8080_v30  ;;  %6721 = vmatmul.mubr.msk.bf16.gmra.mrb[136].mxu0 %vm1312_vm2, %v7258_v55  ;;  %v7273_v55 = vld [vmem:[%s7605_s29 + $0x260] sm:$0xff]  }
 0x154   : > { %5439 = vst.msk [vmem:[%s7960_s26 + $0x34] sm:$0xf] %vm5425_vm3, %v6253_v15  ;;  %6949 = vmatmul.mubr.msk.bf16.gmra.mrb[136].mxu1 %vm1312_vm2, %v7259_v56  ;;  %6724 = vmatprep.mubr.msk.bf16.mxu0 %vm1312_vm2, %v7260_v10 }
 0x155   : > { %5437 = vst.msk [vmem:[%s7960_s26 + $0x2c] sm:$0xf] %vm5425_vm3, %v6251_v31  ;;  %6952 = vmatprep.mubr.msk.bf16.mxu1 %vm1312_vm2, %v7261_v14 }
 0x156   : > { %v8094_v37 = vpop.f32.mrb[32].mxu0 }
 0x157   : > { %v8096_v38 = vpop.f32.mrb[32].mxu1  ;;  %v8100_v24 = vpop.f32.mrb[33].mxu0 }
 0x158   : > { %v4444_v23 = vmax.f32 %v8094_v37, %v8096_v38  ;;  %v8102_v4 = vpop.f32.mrb[33].mxu1  ;;  %v8108_v33 = vpop.f32.mrb[34].mxu0 }
 0x159   : > { %v4442_v27 = vmax.f32 %v8100_v24, %v8102_v4  ;;  %v8110_v34 = vpop.f32.mrb[34].mxu1  ;;  %v8116_v12 = vpop.f32.mrb[35].mxu0 }
 0x15a   : > { %v4445_v42 = vmax.f32 %v8108_v33, %v8110_v34  ;;  %v8118_v13 = vpop.f32.mrb[35].mxu1 }
 0x15b   : > { %v4443_v16 = vmax.f32 %v8116_v12, %v8118_v13  ;;  %6725 = vmatmul.mubr.msk.bf16.gmra.mrb[140].mxu0 %vm1312_vm2, %v7262_v5 }
 0x15c   : > { %6953 = vmatmul.mubr.msk.bf16.gmra.mrb[140].mxu1 %vm1312_vm2, %v7263_v6  ;;  %6728 = vmatprep.mubr.msk.bf16.mxu0 %vm1312_vm2, %v7264_v35 }
 0x15d   : > { %6956 = vmatprep.mubr.msk.bf16.mxu1 %vm1312_vm2, %v7265_v41  ;;  %v7274_v41 = vld [vmem:[%s7583_s10 + $0x268] sm:$0xff]  }
 0x15e   : > { %v8126_v45 = vpop.f32.mrb[36].mxu0 }
 0x15f   : > { %v8128_v46 = vpop.f32.mrb[36].mxu1  ;;  %v8132_v48 = vpop.f32.mrb[37].mxu0 }
 0x160   : > { %v4448_v47 = vmax.f32 %v8126_v45, %v8128_v46  ;;  %v8134_v49 = vpop.f32.mrb[37].mxu1  ;;  %v8140_v53 = vpop.f32.mrb[38].mxu0 }
 0x161   : > { %v4446_v52 = vmax.f32 %v8132_v48, %v8134_v49  ;;  %v8142_v54 = vpop.f32.mrb[38].mxu1  ;;  %v8148_v18 = vpop.f32.mrb[39].mxu0 }
 0x162   : > { %v4449_v17 = vmax.f32 %v8140_v53, %v8142_v54  ;;  %v8150_v19 = vpop.f32.mrb[39].mxu1 }
 0x163   : > { %v4447_v62 = vmax.f32 %v8148_v18, %v8150_v19  ;;  %6729 = vmatmul.mubr.msk.bf16.gmra.mrb[144].mxu0 %vm1312_vm2, %v7266_v50  ;;  %v7275_v50 = vld [vmem:[%s7605_s29 + $0x268] sm:$0xff]  }
 0x164   : > { %6957 = vmatmul.mubr.msk.bf16.gmra.mrb[144].mxu1 %vm1312_vm2, %v7267_v7  ;;  %6732 = vmatprep.mubr.msk.bf16.mxu0 %vm1312_vm2, %v7268_v8 }
 0x165   : > { %6960 = vmatprep.mubr.msk.bf16.mxu1 %vm1312_vm2, %v7269_v11 }
 0x166   : > { %v6626_v60 = vpop.f32.mrb[40].mxu0 }
 0x167   : > { %v6854_v61 = vpop.f32.mrb[40].mxu1  ;;  %v8158_v40 = vpop.f32.mrb[41].mxu0 }
 0x168   : > { %v4452_v39 = vmax.f32 %v6626_v60, %v6854_v61  ;;  %v8160_v20 = vpop.f32.mrb[41].mxu1  ;;  %v6627_v51 = vpop.f32.mrb[42].mxu0  ;;  %v7276_v60 = vld [vmem:[%s7583_s10 + $0x270] sm:$0xff]  }
 0x169   : > { %v4450_v44 = vmax.f32 %v8158_v40, %v8160_v20  ;;  %v6855_v28 = vpop.f32.mrb[42].mxu1  ;;  %v8171_v1 = vpop.f32.mrb[43].mxu0  ;;  %v7277_v61 = vld [vmem:[%s7605_s29 + $0x270] sm:$0xff]  }
 0x16a   : > { %v4648_v56 = vmax.f32 %v4438_v2, %v4452_v39  ;;  %v4453_v59 = vmax.f32 %v6627_v51, %v6855_v28  ;;  %v8173_v10 = vpop.f32.mrb[43].mxu1 }
 0x16b   : > { %v4451_v14 = vmax.f32 %v8171_v1, %v8173_v10  ;;  %6733 = vmatmul.mubr.msk.bf16.gmra.mrb[148].mxu0 %vm1312_vm2, %v7270_v21 }
 0x16c   : > { %v4767_v15 = vadd.f32 %v7933_v43, %v4648_v56  ;;  %v4649_v31 = vmax.f32 %v4439_v36, %v4453_v59  ;;  %6961 = vmatmul.mubr.msk.bf16.gmra.mrb[148].mxu1 %vm1312_vm2, %v7271_v22  ;;  %6736 = vmatprep.mubr.msk.bf16.mxu0 %vm1312_vm2, %v7272_v29 }
 0x16d   : > { %6964 = vmatprep.mubr.msk.bf16.mxu1 %vm1312_vm2, %v7273_v55 }
 0x16e   : > { %v4879_v0 = vmax.f32 %v4767_v15, 0.0  ;;  %v4768_v63 = vadd.f32 %v7933_v43, %v4649_v31  ;;  %v6630_v2 = vpop.f32.mrb[44].mxu0  ;;  %v7278_v31 = vld [vmem:[%s7583_s10 + $0x278] sm:$0xff]  }
 0x16f   : > { %v6858_v5 = vpop.f32.mrb[44].mxu1  ;;  %v1866_v36 = vpop.f32.mrb[45].mxu0 }
 0x170   : > { %v6254_v6 = vpack.c.bf16 %v4879_v0, %v4879_v0  ;;  %v4880_v26 = vmax.f32 %v4768_v63, 0.0  ;;  %v4456_v30 = vmax.f32 %v6630_v2, %v6858_v5  ;;  %v3691_v35 = vpop.f32.mrb[45].mxu1  ;;  %v6631_v8 = vpop.f32.mrb[46].mxu0  ;;  %v7279_v0 = vld [vmem:[%s7605_s29 + $0x278] sm:$0xff]  }
 0x171   : > { %v4454_v7 = vmax.f32 %v1866_v36, %v3691_v35  ;;  %v6859_v11 = vpop.f32.mrb[46].mxu1  ;;  %v1869_v51 = vpop.f32.mrb[47].mxu0  ;;  %v7281_v36 = vld [vmem:[%s7605_s29 + $0x280] sm:$0xff]  }
 0x172   : > { %5440 = vst.msk [vmem:[%s7960_s26 + $0x38] sm:$0xf] %vm5425_vm3, %v6254_v6  ;;  %v6255_v39 = vpack.c.bf16 %v4880_v26, %v4880_v26  ;;  %v4652_v21 = vmax.f32 %v4442_v27, %v4456_v30  ;;  %v4457_v22 = vmax.f32 %v6631_v8, %v6859_v11  ;;  %v3694_v28 = vpop.f32.mrb[47].mxu1  ;;  %v7280_v30 = vld [vmem:[%s7583_s10 + $0x280] sm:$0xff]  }
 0x173   : > { %v4650_v29 = vmax.f32 %v4440_v32, %v4454_v7  ;;  %v4455_v55 = vmax.f32 %v1869_v51, %v3694_v28  ;;  %6737 = vmatmul.mubr.msk.bf16.gmra.mrb[152].mxu0 %vm1312_vm2, %v7274_v41  ;;  %v7282_v51 = vld [vmem:[%s7583_s10 + $0x288] sm:$0xff]  }
 0x174   : > { %5441 = vst.msk [vmem:[%s7960_s26 + $0x3c] sm:$0xf] %vm5425_vm3, %v6255_v39  ;;  %v4771_v56 = vadd.f32 %v7933_v43, %v4652_v21  ;;  %v4653_v59 = vmax.f32 %v4443_v16, %v4457_v22  ;;  %6965 = vmatmul.mubr.msk.bf16.gmra.mrb[152].mxu1 %vm1312_vm2, %v7275_v50  ;;  %6740 = vmatprep.mubr.msk.bf16.mxu0 %vm1312_vm2, %v7276_v60  ;;  %v7283_v28 = vld [vmem:[%s7605_s29 + $0x288] sm:$0xff]  }
 0x175   : > { %v4769_v24 = vadd.f32 %v7933_v43, %v4650_v29  ;;  %v4651_v57 = vmax.f32 %v4441_v25, %v4455_v55  ;;  %6968 = vmatprep.mubr.msk.bf16.mxu1 %vm1312_vm2, %v7277_v61 }
 0x176   : > { %v4883_v58 = vmax.f32 %v4771_v56, 0.0  ;;  %v4772_v32 = vadd.f32 %v7933_v43, %v4653_v59  ;;  %v6634_v12 = vpop.f32.mrb[48].mxu0 }
 0x177   : > { %v4881_v4 = vmax.f32 %v4769_v24, 0.0  ;;  %v4770_v27 = vadd.f32 %v7933_v43, %v4651_v57  ;;  %v6862_v13 = vpop.f32.mrb[48].mxu1  ;;  %v1882_v9 = vpop.f32.mrb[49].mxu0  ;;  %v7284_v57 = vld [vmem:[%s7583_s10 + $0x290] sm:$0xff]  }
 0x178   : > { %v6258_v16 = vpack.c.bf16 %v4883_v58, %v4883_v58  ;;  %v4884_v15 = vmax.f32 %v4772_v32, 0.0  ;;  %v4460_v3 = vmax.f32 %v6634_v12, %v6862_v13  ;;  %v3707_v25 = vpop.f32.mrb[49].mxu1  ;;  %v6635_v6 = vpop.f32.mrb[50].mxu0  ;;  %v7285_v58 = vld [vmem:[%s7605_s29 + $0x290] sm:$0xff]  }
 0x179   : > { %v6256_v63 = vpack.c.bf16 %v4881_v4, %v4881_v4  ;;  %v4882_v2 = vmax.f32 %v4770_v27, 0.0  ;;  %v4458_v5 = vmax.f32 %v1882_v9, %v3707_v25  ;;  %v6863_v26 = vpop.f32.mrb[50].mxu1  ;;  %v1885_v7 = vpop.f32.mrb[51].mxu0 }
 0x17a   : > { %5444 = vst.msk [vmem:[%s7960_s26 + $0x48] sm:$0xf] %vm5425_vm3, %v6258_v16  ;;  %v6259_v35 = vpack.c.bf16 %v4884_v15, %v4884_v15  ;;  %v4656_v41 = vmax.f32 %v4446_v52, %v4460_v3  ;;  %v4461_v50 = vmax.f32 %v6635_v6, %v6863_v26  ;;  %v3710_v8 = vpop.f32.mrb[51].mxu1 }
 0x17b   : > { %5442 = vst.msk [vmem:[%s7960_s26 + $0x40] sm:$0xf] %vm5425_vm3, %v6256_v63  ;;  %v6257_v11 = vpack.c.bf16 %v4882_v2, %v4882_v2  ;;  %v4654_v60 = vmax.f32 %v4444_v23, %v4458_v5  ;;  %v4459_v61 = vmax.f32 %v1885_v7, %v3710_v8  ;;  %6741 = vmatmul.mubr.msk.bf16.gmra.mrb[156].mxu0 %vm1312_vm2, %v7278_v31  ;;  %v7287_v63 = vld [vmem:[%s7605_s29 + $0x298] sm:$0xff]  }
 0x17c   : > { %5445 = vst.msk [vmem:[%s7960_s26 + $0x4c] sm:$0xf] %vm5425_vm3, %v6259_v35  ;;  %v4775_v39 = vadd.f32 %v7933_v43, %v4656_v41  ;;  %v4657_v48 = vmax.f32 %v4447_v62, %v4461_v50  ;;  %6969 = vmatmul.mubr.msk.bf16.gmra.mrb[156].mxu1 %vm1312_vm2, %v7279_v0  ;;  %6744 = vmatprep.mubr.msk.bf16.mxu0 %vm1312_vm2, %v7280_v30  ;;  %v7286_v0 = vld [vmem:[%s7583_s10 + $0x298] sm:$0xff]   ;;  %v7289_v35 = vld [vmem:[%s7605_s29 + $0x2a0] sm:$0xff]  }
 0x17d   : > { %5443 = vst.msk [vmem:[%s7960_s26 + $0x44] sm:$0xf] %vm5425_vm3, %v6257_v11  ;;  %v4773_v49 = vadd.f32 %v7933_v43, %v4654_v60  ;;  %v4655_v37 = vmax.f32 %v4445_v42, %v4459_v61  ;;  %6972 = vmatprep.mubr.msk.bf16.mxu1 %vm1312_vm2, %v7281_v36  ;;  %v7288_v36 = vld [vmem:[%s7583_s10 + $0x2a0] sm:$0xff]  }
 0x17e   : > { %v4887_v38 = vmax.f32 %v4775_v39, 0.0  ;;  %v4776_v23 = vadd.f32 %v7933_v43, %v4657_v48  ;;  %v6638_v19 = vpop.f32.mrb[52].mxu0 }
 0x17f   : > { %v4885_v52 = vmax.f32 %v4773_v49, 0.0  ;;  %v4774_v18 = vadd.f32 %v7933_v43, %v4655_v37  ;;  %v6866_v62 = vpop.f32.mrb[52].mxu1  ;;  %v1898_v34 = vpop.f32.mrb[53].mxu0 }
 0x180   : > { %v6262_v21 = vpack.c.bf16 %v4887_v38, %v4887_v38  ;;  %v4888_v22 = vmax.f32 %v4776_v23, 0.0  ;;  %v4464_v33 = vmax.f32 %v6638_v19, %v6866_v62  ;;  %v3723_v42 = vpop.f32.mrb[53].mxu1  ;;  %v6639_v59 = vpop.f32.mrb[54].mxu0  ;;  %v7290_v38 = vld [vmem:[%s7583_s10 + $0x2a8] sm:$0xff]   ;;  %v7292_v62 = vld [vmem:[%s7583_s10 + $0x2b0] sm:$0xff]  }
 0x181   : > { %v6260_v29 = vpack.c.bf16 %v4885_v52, %v4885_v52  ;;  %v4886_v55 = vmax.f32 %v4774_v18, 0.0  ;;  %v4462_v56 = vmax.f32 %v1898_v34, %v3723_v42  ;;  %v6867_v24 = vpop.f32.mrb[54].mxu1  ;;  %v1901_v12 = vpop.f32.mrb[55].mxu0  ;;  %v7291_v23 = vld [vmem:[%s7605_s29 + $0x2a8] sm:$0xff]  }
 0x182   : > { %5448 = vst.msk [vmem:[%s7960_s26 + $0x58] sm:$0xf] %vm5425_vm3, %v6262_v21  ;;  %v6263_v32 = vpack.c.bf16 %v4888_v22, %v4888_v22  ;;  %v4660_v4 = vmax.f32 %v4450_v44, %v4464_v33  ;;  %v4465_v27 = vmax.f32 %v6639_v59, %v6867_v24  ;;  %v3726_v13 = vpop.f32.mrb[55].mxu1  ;;  %v7293_v21 = vld [vmem:[%s7605_s29 + $0x2b0] sm:$0xff]   ;;  %v7294_v59 = vld [vmem:[%s7583_s10 + $0x2b8] sm:$0xff]  }
 0x183   : > { %5446 = vst.msk [vmem:[%s7960_s26 + $0x50] sm:$0xf] %vm5425_vm3, %v6260_v29  ;;  %v6261_v16 = vpack.c.bf16 %v4886_v55, %v4886_v55  ;;  %v4658_v15 = vmax.f32 %v4448_v47, %v4462_v56  ;;  %v4463_v3 = vmax.f32 %v1901_v12, %v3726_v13  ;;  %6745 = vmatmul.mubr.msk.bf16.gmra.mrb[160].mxu0 %vm1312_vm2, %v7282_v51  ;;  %v7295_v24 = vld [vmem:[%s7605_s29 + $0x2b8] sm:$0xff]  }
 0x184   : > { %5449 = vst.msk [vmem:[%s7960_s26 + $0x5c] sm:$0xf] %vm5425_vm3, %v6263_v32  ;;  %v4779_v9 = vadd.f32 %v7933_v43, %v4660_v4  ;;  %v4661_v40 = vmax.f32 %v4451_v14, %v4465_v27  ;;  %6973 = vmatmul.mubr.msk.bf16.gmra.mrb[160].mxu1 %vm1312_vm2, %v7283_v28  ;;  %6748 = vmatprep.mubr.msk.bf16.mxu0 %vm1312_vm2, %v7284_v57  ;;  %v7296_v4 = vld [vmem:[%s7583_s10 + $0x2c0] sm:$0xff]  }
 0x185   : > { %5447 = vst.msk [vmem:[%s7960_s26 + $0x54] sm:$0xf] %vm5425_vm3, %v6261_v16  ;;  %v4777_v20 = vadd.f32 %v7933_v43, %v4658_v15  ;;  %v4659_v45 = vmax.f32 %v4449_v17, %v4463_v3  ;;  %6976 = vmatprep.mubr.msk.bf16.mxu1 %vm1312_vm2, %v7285_v58  ;;  %v7297_v27 = vld [vmem:[%s7605_s29 + $0x2c0] sm:$0xff]  }
 0x186   : > { %v4891_v46 = vmax.f32 %v4779_v9, 0.0  ;;  %v4780_v47 = vadd.f32 %v7933_v43, %v4661_v40  ;;  %v8278_v10 = vpop.f32.mrb[56].mxu0 }
 0x187   : > { %v4889_v44 = vmax.f32 %v4777_v20, 0.0  ;;  %v4778_v1 = vadd.f32 %v7933_v43, %v4659_v45  ;;  %v8280_v14 = vpop.f32.mrb[56].mxu1  ;;  %v8284_v25 = vpop.f32.mrb[57].mxu0 }
 0x188   : > { %v6266_v53 = vpack.c.bf16 %v4891_v46, %v4891_v46  ;;  %v4892_v54 = vmax.f32 %v4780_v47, 0.0  ;;  %v4468_v17 = vmax.f32 %v8278_v10, %v8280_v14  ;;  %v8286_v31 = vpop.f32.mrb[57].mxu1  ;;  %v8292_v26 = vpop.f32.mrb[58].mxu0  ;;  %v7298_v46 = vld [vmem:[%s7583_s10 + $0x2c8] sm:$0xff]  }
 0x189   : > { %v6264_v2 = vpack.c.bf16 %v4889_v44, %v4889_v44  ;;  %v4890_v5 = vmax.f32 %v4778_v1, 0.0  ;;  %v4466_v6 = vmax.f32 %v8284_v25, %v8286_v31  ;;  %v8294_v30 = vpop.f32.mrb[58].mxu1  ;;  %v8302_v7 = vpop.f32.mrb[59].mxu0  ;;  %v7299_v47 = vld [vmem:[%s7605_s29 + $0x2c8] sm:$0xff]  }
 0x18a   : > { %5452 = vst.msk [vmem:[%s7960_s26 + $0x68] sm:$0xf] %vm5425_vm3, %v6266_v53  ;;  %v6267_v41 = vpack.c.bf16 %v4892_v54, %v4892_v54  ;;  %v4469_v50 = vmax.f32 %v8292_v26, %v8294_v30  ;;  %v8304_v8 = vpop.f32.mrb[59].mxu1  ;;  %v7300_v54 = vld [vmem:[%s7583_s10 + $0x2d0] sm:$0xff]  }
 0x18b   : > { %5450 = vst.msk [vmem:[%s7960_s26 + $0x60] sm:$0xf] %vm5425_vm3, %v6264_v2  ;;  %v6265_v11 = vpack.c.bf16 %v4890_v5, %v4890_v5  ;;  %v4467_v60 = vmax.f32 %v8302_v7, %v8304_v8  ;;  %6749 = vmatmul.mubr.msk.bf16.gmra.mrb[164].mxu0 %vm1312_vm2, %v7286_v0  ;;  %v7301_v0 = vld [vmem:[%s7605_s29 + $0x2d0] sm:$0xff]  }
 0x18c   : > { %5453 = vst.msk [vmem:[%s7960_s26 + $0x6c] sm:$0xf] %vm5425_vm3, %v6267_v41  ;;  %6977 = vmatmul.mubr.msk.bf16.gmra.mrb[164].mxu1 %vm1312_vm2, %v7287_v63  ;;  %6752 = vmatprep.mubr.msk.bf16.mxu0 %vm1312_vm2, %v7288_v36 }
 0x18d   : > { %5451 = vst.msk [vmem:[%s7960_s26 + $0x64] sm:$0xf] %vm5425_vm3, %v6265_v11  ;;  %6980 = vmatprep.mubr.msk.bf16.mxu1 %vm1312_vm2, %v7289_v35 }
 0x18e   : > { %v8318_v61 = vpop.f32.mrb[60].mxu0 }
 0x18f   : > { %v8320_v39 = vpop.f32.mrb[60].mxu1  ;;  %v8324_v49 = vpop.f32.mrb[61].mxu0 }
 0x190   : > { %v4472_v48 = vmax.f32 %v8318_v61, %v8320_v39  ;;  %v8326_v37 = vpop.f32.mrb[61].mxu1  ;;  %v8332_v18 = vpop.f32.mrb[62].mxu0 }
 0x191   : > { %v4470_v52 = vmax.f32 %v8324_v49, %v8326_v37  ;;  %v8334_v19 = vpop.f32.mrb[62].mxu1  ;;  %v8340_v33 = vpop.f32.mrb[63].mxu0 }
 0x192   : > { %v4473_v22 = vmax.f32 %v8332_v18, %v8334_v19  ;;  %v8342_v34 = vpop.f32.mrb[63].mxu1 }
 0x193   : > { %v4471_v42 = vmax.f32 %v8340_v33, %v8342_v34  ;;  %6753 = vmatmul.mubr.msk.bf16.gmra.mrb[168].mxu0 %vm1312_vm2, %v7290_v38 }
 0x194   : > { %6981 = vmatmul.mubr.msk.bf16.gmra.mrb[168].mxu1 %vm1312_vm2, %v7291_v23  ;;  %6756 = vmatprep.mubr.msk.bf16.mxu0 %vm1312_vm2, %v7292_v62 }
 0x195   : > { %6984 = vmatprep.mubr.msk.bf16.mxu1 %vm1312_vm2, %v7293_v21  ;;  %v7302_v21 = vld [vmem:[%s7583_s10 + $0x2d8] sm:$0xff]  }
 0x196   : > { %v8350_v51 = vpop.f32.mrb[64].mxu0 }
 0x197   : > { %v8352_v28 = vpop.f32.mrb[64].mxu1  ;;  %v8356_v55 = vpop.f32.mrb[65].mxu0 }
 0x198   : > { %v4476_v29 = vmax.f32 %v8350_v51, %v8352_v28  ;;  %v8358_v56 = vpop.f32.mrb[65].mxu1  ;;  %v8364_v58 = vpop.f32.mrb[66].mxu0 }
 0x199   : > { %v4474_v57 = vmax.f32 %v8356_v55, %v8358_v56  ;;  %v8366_v32 = vpop.f32.mrb[66].mxu1  ;;  %v8372_v13 = vpop.f32.mrb[67].mxu0 }
 0x19a   : > { %v4477_v12 = vmax.f32 %v8364_v58, %v8366_v32  ;;  %v8374_v16 = vpop.f32.mrb[67].mxu1 }
 0x19b   : > { %v4475_v15 = vmax.f32 %v8372_v13, %v8374_v16  ;;  %6757 = vmatmul.mubr.msk.bf16.gmra.mrb[172].mxu0 %vm1312_vm2, %v7294_v59  ;;  %v7303_v59 = vld [vmem:[%s7605_s29 + $0x2d8] sm:$0xff]  }
 0x19c   : > { %6985 = vmatmul.mubr.msk.bf16.gmra.mrb[172].mxu1 %vm1312_vm2, %v7295_v24  ;;  %6760 = vmatprep.mubr.msk.bf16.mxu0 %vm1312_vm2, %v7296_v4 }
 0x19d   : > { %6988 = vmatprep.mubr.msk.bf16.mxu1 %vm1312_vm2, %v7297_v27 }
 0x19e   : > { %v6654_v3 = vpop.f32.mrb[68].mxu0 }
 0x19f   : > { %v6882_v9 = vpop.f32.mrb[68].mxu1  ;;  %v8382_v20 = vpop.f32.mrb[69].mxu0 }
 0x1a0   : > { %v4480_v40 = vmax.f32 %v6654_v3, %v6882_v9  ;;  %v8384_v45 = vpop.f32.mrb[69].mxu1  ;;  %v6655_v1 = vpop.f32.mrb[70].mxu0  ;;  %v7304_v3 = vld [vmem:[%s7583_s10 + $0x2e0] sm:$0xff]  }
 0x1a1   : > { %v4478_v44 = vmax.f32 %v8382_v20, %v8384_v45  ;;  %v6883_v53 = vpop.f32.mrb[70].mxu1  ;;  %v8395_v5 = vpop.f32.mrb[71].mxu0  ;;  %v7305_v9 = vld [vmem:[%s7605_s29 + $0x2e0] sm:$0xff]  }
 0x1a2   : > { %v4662_v63 = vmax.f32 %v4466_v6, %v4480_v40  ;;  %v4481_v2 = vmax.f32 %v6655_v1, %v6883_v53  ;;  %v8397_v36 = vpop.f32.mrb[71].mxu1 }
 0x1a3   : > { %v4479_v35 = vmax.f32 %v8395_v5, %v8397_v36  ;;  %6761 = vmatmul.mubr.msk.bf16.gmra.mrb[176].mxu0 %vm1312_vm2, %v7298_v46 }
 0x1a4   : > { %v4781_v41 = vadd.f32 %v7933_v43, %v4662_v63  ;;  %v4663_v11 = vmax.f32 %v4467_v60, %v4481_v2  ;;  %6989 = vmatmul.mubr.msk.bf16.gmra.mrb[176].mxu1 %vm1312_vm2, %v7299_v47  ;;  %6764 = vmatprep.mubr.msk.bf16.mxu0 %vm1312_vm2, %v7300_v54 }
 0x1a5   : > { %6992 = vmatprep.mubr.msk.bf16.mxu1 %vm1312_vm2, %v7301_v0 }
 0x1a6   : > { %v4893_v25 = vmax.f32 %v4781_v41, 0.0  ;;  %v4782_v31 = vadd.f32 %v7933_v43, %v4663_v11  ;;  %v6658_v6 = vpop.f32.mrb[72].mxu0  ;;  %v7306_v11 = vld [vmem:[%s7583_s10 + $0x2e8] sm:$0xff]  }
 0x1a7   : > { %v6886_v38 = vpop.f32.mrb[72].mxu1  ;;  %v1978_v60 = vpop.f32.mrb[73].mxu0 }
 0x1a8   : > { %v6268_v23 = vpack.c.bf16 %v4893_v25, %v4893_v25  ;;  %v4894_v7 = vmax.f32 %v4782_v31, 0.0  ;;  %v4484_v8 = vmax.f32 %v6658_v6, %v6886_v38  ;;  %v3803_v62 = vpop.f32.mrb[73].mxu1  ;;  %v6659_v4 = vpop.f32.mrb[74].mxu0  ;;  %v7307_v25 = vld [vmem:[%s7605_s29 + $0x2e8] sm:$0xff]  }
 0x1a9   : > { %v4482_v24 = vmax.f32 %v1978_v60, %v3803_v62  ;;  %v6887_v27 = vpop.f32.mrb[74].mxu1  ;;  %v1981_v1 = vpop.f32.mrb[75].mxu0  ;;  %v7309_v60 = vld [vmem:[%s7605_s29 + $0x2f0] sm:$0xff]  }
 0x1aa   : > { %5454 = vst.msk [vmem:[%s7960_s26 + $0x70] sm:$0xf] %vm5425_vm3, %v6268_v23  ;;  %v6269_v40 = vpack.c.bf16 %v4894_v7, %v4894_v7  ;;  %v4666_v46 = vmax.f32 %v4470_v52, %v4484_v8  ;;  %v4485_v47 = vmax.f32 %v6659_v4, %v6887_v27  ;;  %v3806_v53 = vpop.f32.mrb[75].mxu1  ;;  %v7308_v8 = vld [vmem:[%s7583_s10 + $0x2f0] sm:$0xff]  }
 0x1ab   : > { %v4664_v54 = vmax.f32 %v4468_v17, %v4482_v24  ;;  %v4483_v0 = vmax.f32 %v1981_v1, %v3806_v53  ;;  %6765 = vmatmul.mubr.msk.bf16.gmra.mrb[180].mxu0 %vm1312_vm2, %v7302_v21  ;;  %v7310_v1 = vld [vmem:[%s7583_s10 + $0x2f8] sm:$0xff]  }
 0x1ac   : > { %5455 = vst.msk [vmem:[%s7960_s26 + $0x74] sm:$0xf] %vm5425_vm3, %v6269_v40  ;;  %v4785_v63 = vadd.f32 %v7933_v43, %v4666_v46  ;;  %v4667_v2 = vmax.f32 %v4471_v42, %v4485_v47  ;;  %6993 = vmatmul.mubr.msk.bf16.gmra.mrb[180].mxu1 %vm1312_vm2, %v7303_v59  ;;  %6768 = vmatprep.mubr.msk.bf16.mxu0 %vm1312_vm2, %v7304_v3  ;;  %v7311_v53 = vld [vmem:[%s7605_s29 + $0x2f8] sm:$0xff]  }
 0x1ad   : > { %v4783_v49 = vadd.f32 %v7933_v43, %v4664_v54  ;;  %v4665_v10 = vmax.f32 %v4469_v50, %v4483_v0  ;;  %6996 = vmatprep.mubr.msk.bf16.mxu1 %vm1312_vm2, %v7305_v9 }
 0x1ae   : > { %v4897_v14 = vmax.f32 %v4785_v63, 0.0  ;;  %v4786_v17 = vadd.f32 %v7933_v43, %v4667_v2  ;;  %v6662_v33 = vpop.f32.mrb[76].mxu0 }
 0x1af   : > { %v4895_v37 = vmax.f32 %v4783_v49, 0.0  ;;  %v4784_v52 = vadd.f32 %v7933_v43, %v4665_v10  ;;  %v6890_v34 = vpop.f32.mrb[76].mxu1  ;;  %v1994_v30 = vpop.f32.mrb[77].mxu0  ;;  %v7312_v10 = vld [vmem:[%s7583_s10 + $0x300] sm:$0xff]  }
 0x1b0   : > { %v6272_v42 = vpack.c.bf16 %v4897_v14, %v4897_v14  ;;  %v4898_v41 = vmax.f32 %v4786_v17, 0.0  ;;  %v4488_v26 = vmax.f32 %v6662_v33, %v6890_v34  ;;  %v3819_v50 = vpop.f32.mrb[77].mxu1  ;;  %v6663_v23 = vpop.f32.mrb[78].mxu0  ;;  %v7313_v14 = vld [vmem:[%s7605_s29 + $0x300] sm:$0xff]  }
 0x1b1   : > { %v6270_v31 = vpack.c.bf16 %v4895_v37, %v4895_v37  ;;  %v4896_v6 = vmax.f32 %v4784_v52, 0.0  ;;  %v4486_v38 = vmax.f32 %v1994_v30, %v3819_v50  ;;  %v6891_v7 = vpop.f32.mrb[78].mxu1  ;;  %v1997_v24 = vpop.f32.mrb[79].mxu0 }
 0x1b2   : > { %5458 = vst.msk [vmem:[%s7960_s26 + $0x80] sm:$0xf] %vm5425_vm3, %v6272_v42  ;;  %v6273_v62 = vpack.c.bf16 %v4898_v41, %v4898_v41  ;;  %v4670_v21 = vmax.f32 %v4474_v57, %v4488_v26  ;;  %v4489_v59 = vmax.f32 %v6663_v23, %v6891_v7  ;;  %v3822_v4 = vpop.f32.mrb[79].mxu1 }
 0x1b3   : > { %5456 = vst.msk [vmem:[%s7960_s26 + $0x78] sm:$0xf] %vm5425_vm3, %v6270_v31  ;;  %v6271_v27 = vpack.c.bf16 %v4896_v6, %v4896_v6  ;;  %v4668_v3 = vmax.f32 %v4472_v48, %v4486_v38  ;;  %v4487_v9 = vmax.f32 %v1997_v24, %v3822_v4  ;;  %6769 = vmatmul.mubr.msk.bf16.gmra.mrb[184].mxu0 %vm1312_vm2, %v7306_v11  ;;  %v8471_v48 = vld [vmem:[%s9303_s3] ss:$0 sm:$0xff]  ;;  %v7315_v31 = vld [vmem:[%s7605_s29 + $0x308] sm:$0xff]  }
 0x1b4   : > { %5459 = vst.msk [vmem:[%s7960_s26 + $0x84] sm:$0xf] %vm5425_vm3, %v6273_v62  ;;  %v4789_v40 = vadd.f32 %v7933_v43, %v4670_v21  ;;  %v4671_v55 = vmax.f32 %v4475_v15, %v4489_v59  ;;  %6997 = vmatmul.mubr.msk.bf16.gmra.mrb[184].mxu1 %vm1312_vm2, %v7307_v25  ;;  %6772 = vmatprep.mubr.msk.bf16.mxu0 %vm1312_vm2, %v7308_v8  ;;  %v7314_v25 = vld [vmem:[%s7583_s10 + $0x308] sm:$0xff]   ;;  %v7317_v62 = vld [vmem:[%s7605_s29 + $0x310] sm:$0xff]  }
 0x1b5   : > { %5457 = vst.msk [vmem:[%s7960_s26 + $0x7c] sm:$0xf] %vm5425_vm3, %v6271_v27  ;;  %v4787_v56 = vadd.f32 %v7933_v43, %v4668_v3  ;;  %v4669_v61 = vmax.f32 %v4473_v22, %v4487_v9  ;;  %7000 = vmatprep.mubr.msk.bf16.mxu1 %vm1312_vm2, %v7309_v60  ;;  %v7316_v60 = vld [vmem:[%s7583_s10 + $0x310] sm:$0xff]  }
 0x1b6   : > { %v4901_v39 = vmax.f32 %v4789_v40, 0.0  ;;  %v4790_v57 = vadd.f32 %v8471_v48, %v4671_v55  ;;  %v6666_v18 = vpop.f32.mrb[80].mxu0 }
 0x1b7   : > { %v4899_v13 = vmax.f32 %v4787_v56, 0.0  ;;  %v4788_v43 = vadd.f32 %v8471_v48, %v4669_v61  ;;  %v6894_v19 = vpop.f32.mrb[80].mxu1  ;;  %v2010_v46 = vpop.f32.mrb[81].mxu0 }
 0x1b8   : > { %v6276_v22 = vpack.c.bf16 %v4901_v39, %v4901_v39  ;;  %v4902_v16 = vmax.f32 %v4790_v57, 0.0  ;;  %v4492_v15 = vmax.f32 %v6666_v18, %v6894_v19  ;;  %v3835_v47 = vpop.f32.mrb[81].mxu1  ;;  %v6667_v2 = vpop.f32.mrb[82].mxu0  ;;  %v7318_v39 = vld [vmem:[%s7583_s10 + $0x318] sm:$0xff]   ;;  %v7320_v19 = vld [vmem:[%s7583_s10 + $0x320] sm:$0xff]  }
 0x1b9   : > { %v6274_v54 = vpack.c.bf16 %v4899_v13, %v4899_v13  ;;  %v4900_v0 = vmax.f32 %v4788_v43, 0.0  ;;  %v4490_v63 = vmax.f32 %v2010_v46, %v3835_v47  ;;  %v6895_v49 = vpop.f32.mrb[82].mxu1  ;;  %v2013_v33 = vpop.f32.mrb[83].mxu0  ;;  %v7319_v57 = vld [vmem:[%s7605_s29 + $0x318] sm:$0xff]  }
 0x1ba   : > { %5462 = vst.msk [vmem:[%s7960_s26 + $0x90] sm:$0xf] %vm5425_vm3, %v6276_v22  ;;  %v6277_v17 = vpack.c.bf16 %v4902_v16, %v4902_v16  ;;  %v4674_v37 = vmax.f32 %v4478_v44, %v4492_v15  ;;  %v4493_v52 = vmax.f32 %v6667_v2, %v6895_v49  ;;  %v3838_v34 = vpop.f32.mrb[83].mxu1  ;;  %v7321_v22 = vld [vmem:[%s7605_s29 + $0x320] sm:$0xff]   ;;  %v7322_v2 = vld [vmem:[%s7583_s10 + $0x328] sm:$0xff]  }
 0x1bb   : > { %5460 = vst.msk [vmem:[%s7960_s26 + $0x88] sm:$0xf] %vm5425_vm3, %v6274_v54  ;;  %v6275_v42 = vpack.c.bf16 %v4900_v0, %v4900_v0  ;;  %v4672_v41 = vmax.f32 %v4476_v29, %v4490_v63  ;;  %v4491_v26 = vmax.f32 %v2013_v33, %v3838_v34  ;;  %6773 = vmatmul.mubr.msk.bf16.gmra.mrb[188].mxu0 %vm1312_vm2, %v7310_v1  ;;  %v7323_v49 = vld [vmem:[%s7605_s29 + $0x328] sm:$0xff]  }
 0x1bc   : > { %5463 = vst.msk [vmem:[%s7960_s26 + $0x94] sm:$0xf] %vm5425_vm3, %v6277_v17  ;;  %v4793_v30 = vadd.f32 %v8471_v48, %v4674_v37  ;;  %v4675_v20 = vmax.f32 %v4479_v35, %v4493_v52  ;;  %7001 = vmatmul.mubr.msk.bf16.gmra.mrb[188].mxu1 %vm1312_vm2, %v7311_v53  ;;  %6776 = vmatprep.mubr.msk.bf16.mxu0 %vm1312_vm2, %v7312_v10  ;;  %v7324_v37 = vld [vmem:[%s7583_s10 + $0x330] sm:$0xff]  }
 0x1bd   : > { %5461 = vst.msk [vmem:[%s7960_s26 + $0x8c] sm:$0xf] %vm5425_vm3, %v6275_v42  ;;  %v4791_v45 = vadd.f32 %v8471_v48, %v4672_v41  ;;  %v4673_v51 = vmax.f32 %v4477_v12, %v4491_v26  ;;  %7004 = vmatprep.mubr.msk.bf16.mxu1 %vm1312_vm2, %v7313_v14  ;;  %v7325_v52 = vld [vmem:[%s7605_s29 + $0x330] sm:$0xff]  }
 0x1be   : > { %v4905_v28 = vmax.f32 %v4793_v30, 0.0  ;;  %v4794_v29 = vadd.f32 %v8471_v48, %v4675_v20  ;;  %v8507_v36 = vpop.f32.mrb[84].mxu0 }
 0x1bf   : > { %v4903_v44 = vmax.f32 %v4791_v45, 0.0  ;;  %v4792_v5 = vadd.f32 %v8471_v48, %v4673_v51  ;;  %v8509_v35 = vpop.f32.mrb[84].mxu1  ;;  %v8513_v50 = vpop.f32.mrb[85].mxu0 }
 0x1c0   : > { %v6280_v58 = vpack.c.bf16 %v4905_v28, %v4905_v28  ;;  %v4906_v32 = vmax.f32 %v4794_v29, 0.0  ;;  %v4496_v12 = vmax.f32 %v8507_v36, %v8509_v35  ;;  %v8515_v11 = vpop.f32.mrb[85].mxu1  ;;  %v8521_v7 = vpop.f32.mrb[86].mxu0  ;;  %v7326_v28 = vld [vmem:[%s7583_s10 + $0x338] sm:$0xff]  }
 0x1c1   : > { %v6278_v6 = vpack.c.bf16 %v4903_v44, %v4903_v44  ;;  %v4904_v38 = vmax.f32 %v4792_v5, 0.0  ;;  %v4494_v23 = vmax.f32 %v8513_v50, %v8515_v11  ;;  %v8523_v8 = vpop.f32.mrb[86].mxu1  ;;  %v8531_v24 = vpop.f32.mrb[87].mxu0  ;;  %v7327_v29 = vld [vmem:[%s7605_s29 + $0x338] sm:$0xff]  }
 0x1c2   : > { %5466 = vst.msk [vmem:[%s7960_s26 + $0xa0] sm:$0xf] %vm5425_vm3, %v6280_v58  ;;  %v6281_v21 = vpack.c.bf16 %v4906_v32, %v4906_v32  ;;  %v4497_v59 = vmax.f32 %v8521_v7, %v8523_v8  ;;  %v8533_v4 = vpop.f32.mrb[87].mxu1  ;;  %v7328_v32 = vld [vmem:[%s7583_s10 + $0x340] sm:$0xff]  }
 0x1c3   : > { %5464 = vst.msk [vmem:[%s7960_s26 + $0x98] sm:$0xf] %vm5425_vm3, %v6278_v6  ;;  %v6279_v27 = vpack.c.bf16 %v4904_v38, %v4904_v38  ;;  %v4495_v3 = vmax.f32 %v8531_v24, %v8533_v4  ;;  %6777 = vmatmul.mubr.msk.bf16.gmra.mrb[192].mxu0 %vm1312_vm2, %v7314_v25  ;;  %v7329_v25 = vld [vmem:[%s7605_s29 + $0x340] sm:$0xff]  }
 0x1c4   : > { %5467 = vst.msk [vmem:[%s7960_s26 + $0xa4] sm:$0xf] %vm5425_vm3, %v6281_v21  ;;  %7005 = vmatmul.mubr.msk.bf16.gmra.mrb[192].mxu1 %vm1312_vm2, %v7315_v31  ;;  %6780 = vmatprep.mubr.msk.bf16.mxu0 %vm1312_vm2, %v7316_v60 }
 0x1c5   : > { %5465 = vst.msk [vmem:[%s7960_s26 + $0x9c] sm:$0xf] %vm5425_vm3, %v6279_v27  ;;  %7008 = vmatprep.mubr.msk.bf16.mxu1 %vm1312_vm2, %v7317_v62 }
 0x1c6   : > { %v8547_v9 = vpop.f32.mrb[88].mxu0 }
 0x1c7   : > { %v8549_v40 = vpop.f32.mrb[88].mxu1  ;;  %v8553_v56 = vpop.f32.mrb[89].mxu0 }
 0x1c8   : > { %v4500_v55 = vmax.f32 %v8547_v9, %v8549_v40  ;;  %v8555_v61 = vpop.f32.mrb[89].mxu1  ;;  %v8561_v43 = vpop.f32.mrb[90].mxu0 }
 0x1c9   : > { %v4498_v13 = vmax.f32 %v8553_v56, %v8555_v61  ;;  %v8563_v18 = vpop.f32.mrb[90].mxu1  ;;  %v8569_v15 = vpop.f32.mrb[91].mxu0 }
 0x1ca   : > { %v4501_v16 = vmax.f32 %v8561_v43, %v8563_v18  ;;  %v8571_v46 = vpop.f32.mrb[91].mxu1 }
 0x1cb   : > { %v4499_v47 = vmax.f32 %v8569_v15, %v8571_v46  ;;  %6781 = vmatmul.mubr.msk.bf16.gmra.mrb[196].mxu0 %vm1312_vm2, %v7318_v39 }
 0x1cc   : > { %7009 = vmatmul.mubr.msk.bf16.gmra.mrb[196].mxu1 %vm1312_vm2, %v7319_v57  ;;  %6784 = vmatprep.mubr.msk.bf16.mxu0 %vm1312_vm2, %v7320_v19 }
 0x1cd   : > { %7012 = vmatprep.mubr.msk.bf16.mxu1 %vm1312_vm2, %v7321_v22  ;;  %v7330_v22 = vld [vmem:[%s7583_s10 + $0x348] sm:$0xff]  }
 0x1ce   : > { %v8579_v1 = vpop.f32.mrb[92].mxu0 }
 0x1cf   : > { %v8581_v53 = vpop.f32.mrb[92].mxu1  ;;  %v8585_v0 = vpop.f32.mrb[93].mxu0 }
 0x1d0   : > { %v4504_v54 = vmax.f32 %v8579_v1, %v8581_v53  ;;  %v8587_v63 = vpop.f32.mrb[93].mxu1  ;;  %v8593_v14 = vpop.f32.mrb[94].mxu0 }
 0x1d1   : > { %v4502_v10 = vmax.f32 %v8585_v0, %v8587_v63  ;;  %v8595_v17 = vpop.f32.mrb[94].mxu1  ;;  %v8601_v34 = vpop.f32.mrb[95].mxu0 }
 0x1d2   : > { %v4505_v33 = vmax.f32 %v8593_v14, %v8595_v17  ;;  %v8603_v42 = vpop.f32.mrb[95].mxu1 }
 0x1d3   : > { %v4503_v41 = vmax.f32 %v8601_v34, %v8603_v42  ;;  %6785 = vmatmul.mubr.msk.bf16.gmra.mrb[200].mxu0 %vm1312_vm2, %v7322_v2  ;;  %v7331_v2 = vld [vmem:[%s7605_s29 + $0x348] sm:$0xff]  }
 0x1d4   : > { %7013 = vmatmul.mubr.msk.bf16.gmra.mrb[200].mxu1 %vm1312_vm2, %v7323_v49  ;;  %6788 = vmatprep.mubr.msk.bf16.mxu0 %vm1312_vm2, %v7324_v37 }
 0x1d5   : > { %7016 = vmatprep.mubr.msk.bf16.mxu1 %vm1312_vm2, %v7325_v52 }
 0x1d6   : > { %v6682_v26 = vpop.f32.mrb[96].mxu0 }
 0x1d7   : > { %v6910_v30 = vpop.f32.mrb[96].mxu1  ;;  %v8611_v45 = vpop.f32.mrb[97].mxu0 }
 0x1d8   : > { %v4508_v20 = vmax.f32 %v6682_v26, %v6910_v30  ;;  %v8613_v51 = vpop.f32.mrb[97].mxu1  ;;  %v6683_v5 = vpop.f32.mrb[98].mxu0  ;;  %v7332_v26 = vld [vmem:[%s7583_s10 + $0x350] sm:$0xff]  }
 0x1d9   : > { %v4506_v44 = vmax.f32 %v8611_v45, %v8613_v51  ;;  %v6911_v58 = vpop.f32.mrb[98].mxu1  ;;  %v8624_v38 = vpop.f32.mrb[99].mxu0  ;;  %v7333_v30 = vld [vmem:[%s7605_s29 + $0x350] sm:$0xff]  }
 0x1da   : > { %v4676_v31 = vmax.f32 %v4494_v23, %v4508_v20  ;;  %v4509_v6 = vmax.f32 %v6683_v5, %v6911_v58  ;;  %v8626_v60 = vpop.f32.mrb[99].mxu1 }
 0x1db   : > { %v4507_v62 = vmax.f32 %v8624_v38, %v8626_v60  ;;  %6789 = vmatmul.mubr.msk.bf16.gmra.mrb[204].mxu0 %vm1312_vm2, %v7326_v28 }
 0x1dc   : > { %v4795_v21 = vadd.f32 %v8471_v48, %v4676_v31  ;;  %v4677_v27 = vmax.f32 %v4495_v3, %v4509_v6  ;;  %7017 = vmatmul.mubr.msk.bf16.gmra.mrb[204].mxu1 %vm1312_vm2, %v7327_v29  ;;  %6792 = vmatprep.mubr.msk.bf16.mxu0 %vm1312_vm2, %v7328_v32 }
 0x1dd   : > { %7020 = vmatprep.mubr.msk.bf16.mxu1 %vm1312_vm2, %v7329_v25 }
 0x1de   : > { %v4907_v50 = vmax.f32 %v4795_v21, 0.0  ;;  %v4796_v11 = vadd.f32 %v8471_v48, %v4677_v27  ;;  %v6686_v23 = vpop.f32.mrb[100].mxu0  ;;  %v7334_v27 = vld [vmem:[%s7583_s10 + $0x358] sm:$0xff]  }
 0x1df   : > { %v6914_v39 = vpop.f32.mrb[100].mxu1  ;;  %v2090_v3 = vpop.f32.mrb[101].mxu0 }
 0x1e0   : > { %v6282_v57 = vpack.c.bf16 %v4907_v50, %v4907_v50  ;;  %v4908_v24 = vmax.f32 %v4796_v11, 0.0  ;;  %v4512_v4 = vmax.f32 %v6686_v23, %v6914_v39  ;;  %v3915_v19 = vpop.f32.mrb[101].mxu1  ;;  %v6687_v37 = vpop.f32.mrb[102].mxu0  ;;  %v7335_v50 = vld [vmem:[%s7605_s29 + $0x358] sm:$0xff]  }
 0x1e1   : > { %v4510_v49 = vmax.f32 %v2090_v3, %v3915_v19  ;;  %v6915_v52 = vpop.f32.mrb[102].mxu1  ;;  %v2093_v5 = vpop.f32.mrb[103].mxu0  ;;  %v7337_v3 = vld [vmem:[%s7605_s29 + $0x360] sm:$0xff]  }
 0x1e2   : > { %5468 = vst.msk [vmem:[%s7960_s26 + $0xa8] sm:$0xf] %vm5425_vm3, %v6282_v57  ;;  %v6283_v20 = vpack.c.bf16 %v4908_v24, %v4908_v24  ;;  %v4680_v28 = vmax.f32 %v4498_v13, %v4512_v4  ;;  %v4513_v29 = vmax.f32 %v6687_v37, %v6915_v52  ;;  %v3918_v58 = vpop.f32.mrb[103].mxu1  ;;  %v7336_v4 = vld [vmem:[%s7583_s10 + $0x360] sm:$0xff]  }
 0x1e3   : > { %v4678_v32 = vmax.f32 %v4496_v12, %v4510_v49  ;;  %v4511_v25 = vmax.f32 %v2093_v5, %v3918_v58  ;;  %6793 = vmatmul.mubr.msk.bf16.gmra.mrb[208].mxu0 %vm1312_vm2, %v7330_v22  ;;  %v7338_v5 = vld [vmem:[%s7583_s10 + $0x368] sm:$0xff]  }
 0x1e4   : > { %5469 = vst.msk [vmem:[%s7960_s26 + $0xac] sm:$0xf] %vm5425_vm3, %v6283_v20  ;;  %v4799_v31 = vadd.f32 %v8471_v48, %v4680_v28  ;;  %v4681_v6 = vmax.f32 %v4499_v47, %v4513_v29  ;;  %7021 = vmatmul.mubr.msk.bf16.gmra.mrb[208].mxu1 %vm1312_vm2, %v7331_v2  ;;  %6796 = vmatprep.mubr.msk.bf16.mxu0 %vm1312_vm2, %v7332_v26  ;;  %v7339_v58 = vld [vmem:[%s7605_s29 + $0x368] sm:$0xff]  }
 0x1e5   : > { %v4797_v56 = vadd.f32 %v8471_v48, %v4678_v32  ;;  %v4679_v36 = vmax.f32 %v4497_v59, %v4511_v25  ;;  %7024 = vmatprep.mubr.msk.bf16.mxu1 %vm1312_vm2, %v7333_v30 }
 0x1e6   : > { %v4911_v35 = vmax.f32 %v4799_v31, 0.0  ;;  %v4800_v12 = vadd.f32 %v8471_v48, %v4681_v6  ;;  %v6690_v15 = vpop.f32.mrb[104].mxu0 }
 0x1e7   : > { %v4909_v61 = vmax.f32 %v4797_v56, 0.0  ;;  %v4798_v13 = vadd.f32 %v8471_v48, %v4679_v36  ;;  %v6918_v46 = vpop.f32.mrb[104].mxu1  ;;  %v2106_v8 = vpop.f32.mrb[105].mxu0  ;;  %v7340_v36 = vld [vmem:[%s7583_s10 + $0x370] sm:$0xff]  }
 0x1e8   : > { %v6286_v47 = vpack.c.bf16 %v4911_v35, %v4911_v35  ;;  %v4912_v21 = vmax.f32 %v4800_v12, 0.0  ;;  %v4516_v7 = vmax.f32 %v6690_v15, %v6918_v46  ;;  %v3931_v59 = vpop.f32.mrb[105].mxu1  ;;  %v6691_v57 = vpop.f32.mrb[106].mxu0  ;;  %v7341_v35 = vld [vmem:[%s7605_s29 + $0x370] sm:$0xff]  }
 0x1e9   : > { %v6284_v11 = vpack.c.bf16 %v4909_v61, %v4909_v61  ;;  %v4910_v23 = vmax.f32 %v4798_v13, 0.0  ;;  %v4514_v39 = vmax.f32 %v2106_v8, %v3931_v59  ;;  %v6919_v24 = vpop.f32.mrb[106].mxu1  ;;  %v2109_v49 = vpop.f32.mrb[107].mxu0 }
 0x1ea   : > { %5472 = vst.msk [vmem:[%s7960_s26 + $0xb8] sm:$0xf] %vm5425_vm3, %v6286_v47  ;;  %v6287_v19 = vpack.c.bf16 %v4912_v21, %v4912_v21  ;;  %v4684_v22 = vmax.f32 %v4502_v10, %v4516_v7  ;;  %v4517_v2 = vmax.f32 %v6691_v57, %v6919_v24  ;;  %v3934_v37 = vpop.f32.mrb[107].mxu1 }
 0x1eb   : > { %5470 = vst.msk [vmem:[%s7960_s26 + $0xb0] sm:$0xf] %vm5425_vm3, %v6284_v11  ;;  %v6285_v52 = vpack.c.bf16 %v4910_v23, %v4910_v23  ;;  %v4682_v26 = vmax.f32 %v4500_v55, %v4514_v39  ;;  %v4515_v30 = vmax.f32 %v2109_v49, %v3934_v37  ;;  %6797 = vmatmul.mubr.msk.bf16.gmra.mrb[212].mxu0 %vm1312_vm2, %v7334_v27  ;;  %v7343_v11 = vld [vmem:[%s7605_s29 + $0x378] sm:$0xff]  }
 0x1ec   : > { %5473 = vst.msk [vmem:[%s7960_s26 + $0xbc] sm:$0xf] %vm5425_vm3, %v6287_v19  ;;  %v4803_v20 = vadd.f32 %v8471_v48, %v4684_v22  ;;  %v4685_v0 = vmax.f32 %v4503_v41, %v4517_v2  ;;  %7025 = vmatmul.mubr.msk.bf16.gmra.mrb[212].mxu1 %vm1312_vm2, %v7335_v50  ;;  %6800 = vmatprep.mubr.msk.bf16.mxu0 %vm1312_vm2, %v7336_v4  ;;  %v7342_v50 = vld [vmem:[%s7583_s10 + $0x378] sm:$0xff]  }
 0x1ed   : > { %5471 = vst.msk [vmem:[%s7960_s26 + $0xb4] sm:$0xf] %vm5425_vm3, %v6285_v52  ;;  %v4801_v63 = vadd.f32 %v8471_v48, %v4682_v26  ;;  %v4683_v9 = vmax.f32 %v4501_v16, %v4515_v30  ;;  %7028 = vmatprep.mubr.msk.bf16.mxu1 %vm1312_vm2, %v7337_v3 }
 0x1ee   : > { %v4915_v40 = vmax.f32 %v4803_v20, 0.0  ;;  %v4804_v55 = vadd.f32 %v8471_v48, %v4685_v0  ;;  %v6694_v42 = vpop.f32.mrb[108].mxu0 }
 0x1ef   : > { %v4913_v10 = vmax.f32 %v4801_v63, 0.0  ;;  %v4802_v34 = vadd.f32 %v8471_v48, %v4683_v9  ;;  %v6922_v41 = vpop.f32.mrb[108].mxu1  ;;  %v2122_v18 = vpop.f32.mrb[109].mxu0 }
 0x1f0   : > { %v6290_v28 = vpack.c.bf16 %v4915_v40, %v4915_v40  ;;  %v4916_v29 = vmax.f32 %v4804_v55, 0.0  ;;  %v4520_v43 = vmax.f32 %v6694_v42, %v6922_v41  ;;  %v3947_v16 = vpop.f32.mrb[109].mxu1  ;;  %v6695_v6 = vpop.f32.mrb[110].mxu0 }
 0x1f1   : > { %v6288_v32 = vpack.c.bf16 %v4913_v10, %v4913_v10  ;;  %v4914_v25 = vmax.f32 %v4802_v34, 0.0  ;;  %v4518_v31 = vmax.f32 %v2122_v18, %v3947_v16  ;;  %v6923_v56 = vpop.f32.mrb[110].mxu1  ;;  %v2125_v15 = vpop.f32.mrb[111].mxu0 }
 0x1f2   : > { %5476 = vst.msk [vmem:[%s7960_s26 + $0xc8] sm:$0xf] %vm5425_vm3, %v6290_v28  ;;  %v6291_v12 = vpack.c.bf16 %v4916_v29, %v4916_v29  ;;  %v4688_v61 = vmax.f32 %v4506_v44, %v4520_v43  ;;  %v4521_v13 = vmax.f32 %v6695_v6, %v6923_v56  ;;  %v3950_v46 = vpop.f32.mrb[111].mxu1 }
 0x1f3   : > { %5474 = vst.msk [vmem:[%s7960_s26 + $0xc0] sm:$0xf] %vm5425_vm3, %v6288_v32  ;;  %v6289_v47 = vpack.c.bf16 %v4914_v25, %v4914_v25  ;;  %v4686_v21 = vmax.f32 %v4504_v54, %v4518_v31  ;;  %v4519_v7 = vmax.f32 %v2125_v15, %v3950_v46  ;;  %6801 = vmatmul.mubr.msk.bf16.gmra.mrb[216].mxu0 %vm1312_vm2, %v7338_v5 }
 0x1f4   : > { %5477 = vst.msk [vmem:[%s7960_s26 + $0xcc] sm:$0xf] %vm5425_vm3, %v6291_v12  ;;  %v4807_v8 = vadd.f32 %v8471_v48, %v4688_v61  ;;  %v4689_v45 = vmax.f32 %v4507_v62, %v4521_v13  ;;  %7029 = vmatmul.mubr.msk.bf16.gmra.mrb[216].mxu1 %vm1312_vm2, %v7339_v58  ;;  %6804 = vmatprep.mubr.msk.bf16.mxu0 %vm1312_vm2, %v7340_v36 }
 0x1f5   : > { %5475 = vst.msk [vmem:[%s7960_s26 + $0xc4] sm:$0xf] %vm5425_vm3, %v6289_v47  ;;  %v4805_v51 = vadd.f32 %v8471_v48, %v4686_v21  ;;  %v4687_v1 = vmax.f32 %v4505_v33, %v4519_v7  ;;  %7032 = vmatprep.mubr.msk.bf16.mxu1 %vm1312_vm2, %v7341_v35 }
 0x1f6   : > { %v4919_v53 = vmax.f32 %v4807_v8, 0.0  ;;  %v4808_v54 = vadd.f32 %v8471_v48, %v4689_v45  ;;  %v8731_v60 = vpop.f32.mrb[112].mxu0 }
 0x1f7   : > { %v4917_v44 = vmax.f32 %v4805_v51, 0.0  ;;  %v4806_v38 = vadd.f32 %v8471_v48, %v4687_v1  ;;  %v8733_v62 = vpop.f32.mrb[112].mxu1  ;;  %v2138_v17 = vpop.f32.mrb[113].mxu0 }
 0x1f8   : > { %v6294_v59 = vpack.c.bf16 %v4919_v53, %v4919_v53  ;;  %v4920_v27 = vmax.f32 %v4808_v54, 0.0  ;;  %v4524_v14 = vmax.f32 %v8731_v60, %v8733_v62  ;;  %v3963_v33 = vpop.f32.mrb[113].mxu1  ;;  %v8739_v24 = vpop.f32.mrb[114].mxu0 }
 0x1f9   : > { %v6292_v23 = vpack.c.bf16 %v4917_v44, %v4917_v44  ;;  %v4918_v39 = vmax.f32 %v4806_v38, 0.0  ;;  %v4522_v57 = vmax.f32 %v2138_v17, %v3963_v33  ;;  %v8741_v4 = vpop.f32.mrb[114].mxu1  ;;  %v2141_v22 = vpop.f32.mrb[115].mxu0 }
 0x1fa   : > { %5480 = vst.msk [vmem:[%s7960_s26 + $0xd8] sm:$0xf] %vm5425_vm3, %v6294_v59  ;;  %v6295_v3 = vpack.c.bf16 %v4920_v27, %v4920_v27  ;;  %v4525_v19 = vmax.f32 %v8739_v24, %v8741_v4  ;;  %v3966_v2 = vpop.f32.mrb[115].mxu1 }
 0x1fb   : > { %5478 = vst.msk [vmem:[%s7960_s26 + $0xd0] sm:$0xf] %vm5425_vm3, %v6292_v23  ;;  %v6293_v49 = vpack.c.bf16 %v4918_v39, %v4918_v39  ;;  %v4523_v37 = vmax.f32 %v2141_v22, %v3966_v2  ;;  %6805 = vmatmul.mubr.msk.bf16.gmra.mrb[220].mxu0 %vm1312_vm2, %v7342_v50 }
 0x1fc   : > { %5481 = vst.msk [vmem:[%s7960_s26 + $0xdc] sm:$0xf] %vm5425_vm3, %v6295_v3  ;;  %7033 = vmatmul.mubr.msk.bf16.gmra.mrb[220].mxu1 %vm1312_vm2, %v7343_v11 }
 0x1fd   : > { %5479 = vst.msk [vmem:[%s7960_s26 + $0xd4] sm:$0xf] %vm5425_vm3, %v6293_v49 }
 0x1fe   : > { %v8755_v52 = vpop.f32.mrb[116].mxu0 }
 0x1ff   : > { %v8757_v26 = vpop.f32.mrb[116].mxu1  ;;  %v2154_v20 = vpop.f32.mrb[117].mxu0 }
 0x200   : > { %v4528_v30 = vmax.f32 %v8755_v52, %v8757_v26  ;;  %v3979_v0 = vpop.f32.mrb[117].mxu1  ;;  %v8761_v9 = vpop.f32.mrb[118].mxu0 }
 0x201   : > { %v4526_v63 = vmax.f32 %v2154_v20, %v3979_v0  ;;  %v8763_v40 = vpop.f32.mrb[118].mxu1  ;;  %v2157_v10 = vpop.f32.mrb[119].mxu0 }
 0x202   : > { %v4529_v55 = vmax.f32 %v8761_v9, %v8763_v40  ;;  %v3982_v34 = vpop.f32.mrb[119].mxu1 }
 0x203   : > { %v4527_v42 = vmax.f32 %v2157_v10, %v3982_v34 }
 0x206   : > { %v8767_v41 = vpop.f32.mrb[120].mxu0 }
 0x207   : > { %v8769_v28 = vpop.f32.mrb[120].mxu1  ;;  %v8773_v43 = vpop.f32.mrb[121].mxu0 }
 0x208   : > { %v4532_v29 = vmax.f32 %v8767_v41, %v8769_v28  ;;  %v8775_v18 = vpop.f32.mrb[121].mxu1  ;;  %v8779_v5 = vpop.f32.mrb[122].mxu0 }
 0x209   : > { %v4530_v16 = vmax.f32 %v8773_v43, %v8775_v18  ;;  %v8781_v58 = vpop.f32.mrb[122].mxu1  ;;  %v8785_v25 = vpop.f32.mrb[123].mxu0 }
 0x20a   : > { %v4533_v32 = vmax.f32 %v8779_v5, %v8781_v58  ;;  %v8787_v31 = vpop.f32.mrb[123].mxu1 }
 0x20b   : > { %v4531_v6 = vmax.f32 %v8785_v25, %v8787_v31 }
 0x20e   : > { %v6710_v56 = vpop.f32.mrb[124].mxu0 }
 0x20f   : > { %v6938_v36 = vpop.f32.mrb[124].mxu1  ;;  %v8791_v12 = vpop.f32.mrb[125].mxu0 }
 0x210   : > { %v4536_v35 = vmax.f32 %v6710_v56, %v6938_v36  ;;  %v8793_v61 = vpop.f32.mrb[125].mxu1  ;;  %v6711_v15 = vpop.f32.mrb[126].mxu0 }
 0x211   : > { %v4534_v13 = vmax.f32 %v8791_v12, %v8793_v61  ;;  %v6939_v46 = vpop.f32.mrb[126].mxu1  ;;  %v8797_v7 = vpop.f32.mrb[127].mxu0 }
 0x212   : > { %v4690_v47 = vmax.f32 %v4522_v57, %v4536_v35  ;;  %v4537_v21 = vmax.f32 %v6711_v15, %v6939_v46  ;;  %v8799_v8 = vpop.f32.mrb[127].mxu1 }
 0x213   : > { %v4535_v45 = vmax.f32 %v8797_v7, %v8799_v8 }
 0x214   : > { %v4809_v51 = vadd.f32 %v8471_v48, %v4690_v47  ;;  %v4691_v1 = vmax.f32 %v4523_v37, %v4537_v21 }
 0x216   : > { %v4921_v53 = vmax.f32 %v4809_v51, 0.0  ;;  %v4810_v54 = vadd.f32 %v8471_v48, %v4691_v1  ;;  %v6714_v44 = vpop.f32.mrb[128].mxu0 }
 0x217   : > { %v6942_v38 = vpop.f32.mrb[128].mxu1  ;;  %v2202_v33 = vpop.f32.mrb[129].mxu0 }
 0x218   : > { %v6296_v59 = vpack.c.bf16 %v4921_v53, %v4921_v53  ;;  %v4922_v27 = vmax.f32 %v4810_v54, 0.0  ;;  %v4540_v17 = vmax.f32 %v6714_v44, %v6942_v38  ;;  %v4027_v50 = vpop.f32.mrb[129].mxu1  ;;  %v6715_v23 = vpop.f32.mrb[130].mxu0 }
 0x219   : > { %v4538_v11 = vmax.f32 %v2202_v33, %v4027_v50  ;;  %v6943_v39 = vpop.f32.mrb[130].mxu1  ;;  %v2205_v2 = vpop.f32.mrb[131].mxu0 }
 0x21a   : > { %5482 = vst.msk [vmem:[%s7960_s26 + $0xe0] sm:$0xf] %vm5425_vm3, %v6296_v59  ;;  %v6297_v57 = vpack.c.bf16 %v4922_v27, %v4922_v27  ;;  %v4694_v3 = vmax.f32 %v4526_v63, %v4540_v17  ;;  %v4541_v22 = vmax.f32 %v6715_v23, %v6943_v39  ;;  %v4030_v49 = vpop.f32.mrb[131].mxu1 }
 0x21b   : > { %v4692_v37 = vmax.f32 %v4524_v14, %v4538_v11  ;;  %v4539_v20 = vmax.f32 %v2205_v2, %v4030_v49 }
 0x21c   : > { %5483 = vst.msk [vmem:[%s7960_s26 + $0xe4] sm:$0xf] %vm5425_vm3, %v6297_v57  ;;  %v4813_v0 = vadd.f32 %v8471_v48, %v4694_v3  ;;  %v4695_v10 = vmax.f32 %v4527_v42, %v4541_v22 }
 0x21d   : > { %v4811_v34 = vadd.f32 %v8471_v48, %v4692_v37  ;;  %v4693_v56 = vmax.f32 %v4525_v19, %v4539_v20 }
 0x21e   : > { %v4925_v63 = vmax.f32 %v4813_v0, 0.0  ;;  %v4814_v36 = vadd.f32 %v8471_v48, %v4695_v10  ;;  %v6718_v62 = vpop.f32.mrb[132].mxu0 }
 0x21f   : > { %v4923_v35 = vmax.f32 %v4811_v34, 0.0  ;;  %v4812_v60 = vadd.f32 %v8471_v48, %v4693_v56  ;;  %v6946_v14 = vpop.f32.mrb[132].mxu1  ;;  %v2218_v42 = vpop.f32.mrb[133].mxu0 }
 0x220   : > { %v6300_v15 = vpack.c.bf16 %v4925_v63, %v4925_v63  ;;  %v4926_v46 = vmax.f32 %v4814_v36, 0.0  ;;  %v4544_v47 = vmax.f32 %v6718_v62, %v6946_v14  ;;  %v4043_v21 = vpop.f32.mrb[133].mxu1  ;;  %v6719_v4 = vpop.f32.mrb[134].mxu0 }
 0x221   : > { %v6298_v51 = vpack.c.bf16 %v4923_v35, %v4923_v35  ;;  %v4924_v1 = vmax.f32 %v4812_v60, 0.0  ;;  %v4542_v24 = vmax.f32 %v2218_v42, %v4043_v21  ;;  %v6947_v19 = vpop.f32.mrb[134].mxu1  ;;  %v2221_v38 = vpop.f32.mrb[135].mxu0 }
 0x222   : > { %5486 = vst.msk [vmem:[%s7960_s26 + $0xf0] sm:$0xf] %vm5425_vm3, %v6300_v15  ;;  %v6301_v53 = vpack.c.bf16 %v4926_v46, %v4926_v46  ;;  %v4698_v54 = vmax.f32 %v4530_v16, %v4544_v47  ;;  %v4545_v44 = vmax.f32 %v6719_v4, %v6947_v19  ;;  %v4046_v59 = vpop.f32.mrb[135].mxu1 }
 0x223   : > { %5484 = vst.msk [vmem:[%s7960_s26 + $0xe8] sm:$0xf] %vm5425_vm3, %v6298_v51  ;;  %v6299_v27 = vpack.c.bf16 %v4924_v1, %v4924_v1  ;;  %v4696_v17 = vmax.f32 %v4528_v30, %v4542_v24  ;;  %v4543_v33 = vmax.f32 %v2221_v38, %v4046_v59 }
 0x224   : > { %5487 = vst.msk [vmem:[%s7960_s26 + $0xf4] sm:$0xf] %vm5425_vm3, %v6301_v53  ;;  %v4817_v50 = vadd.f32 %v8471_v48, %v4698_v54  ;;  %v4699_v43 = vmax.f32 %v4531_v6, %v4545_v44 }
 0x225   : > { %5485 = vst.msk [vmem:[%s7960_s26 + $0xec] sm:$0xf] %vm5425_vm3, %v6299_v27  ;;  %v4815_v18 = vadd.f32 %v8471_v48, %v4696_v17  ;;  %v4697_v16 = vmax.f32 %v4529_v55, %v4543_v33 }
 0x226   : > { %v4929_v11 = vmax.f32 %v4817_v50, 0.0  ;;  %v4818_v52 = vadd.f32 %v8471_v48, %v4699_v43  ;;  %v6722_v23 = vpop.f32.mrb[136].mxu0 }
 0x227   : > { %v4927_v26 = vmax.f32 %v4815_v18, 0.0  ;;  %v4816_v30 = vadd.f32 %v8471_v48, %v4697_v16  ;;  %v6950_v39 = vpop.f32.mrb[136].mxu1  ;;  %v2234_v6 = vpop.f32.mrb[137].mxu0 }
 0x228   : > { %v6304_v57 = vpack.c.bf16 %v4929_v11, %v4929_v11  ;;  %v4930_v25 = vmax.f32 %v4818_v52, 0.0  ;;  %v4548_v31 = vmax.f32 %v6722_v23, %v6950_v39  ;;  %v4059_v3 = vpop.f32.mrb[137].mxu1  ;;  %v6723_v40 = vpop.f32.mrb[138].mxu0 }
 0x229   : > { %v6302_v22 = vpack.c.bf16 %v4927_v26, %v4927_v26  ;;  %v4928_v2 = vmax.f32 %v4816_v30, 0.0  ;;  %v4546_v9 = vmax.f32 %v2234_v6, %v4059_v3  ;;  %v6951_v55 = vpop.f32.mrb[138].mxu1  ;;  %v2237_v0 = vpop.f32.mrb[139].mxu0 }
 0x22a   : > { %5490 = vst.msk [vmem:[%s7960_s26 + $0x100] sm:$0xf] %vm5425_vm3, %v6304_v57  ;;  %v6305_v49 = vpack.c.bf16 %v4930_v25, %v4930_v25  ;;  %v4702_v37 = vmax.f32 %v4534_v13, %v4548_v31  ;;  %v4549_v20 = vmax.f32 %v6723_v40, %v6951_v55  ;;  %v4062_v10 = vpop.f32.mrb[139].mxu1 }
 0x22b   : > { %5488 = vst.msk [vmem:[%s7960_s26 + $0xf8] sm:$0xf] %vm5425_vm3, %v6302_v22  ;;  %v6303_v34 = vpack.c.bf16 %v4928_v2, %v4928_v2  ;;  %v4700_v56 = vmax.f32 %v4532_v29, %v4546_v9  ;;  %v4547_v63 = vmax.f32 %v2237_v0, %v4062_v10 }
 0x22c   : > { %5491 = vst.msk [vmem:[%s7960_s26 + $0x104] sm:$0xf] %vm5425_vm3, %v6305_v49  ;;  %v4821_v36 = vadd.f32 %v8471_v48, %v4702_v37  ;;  %v4703_v12 = vmax.f32 %v4535_v45, %v4549_v20 }
 0x22d   : > { %5489 = vst.msk [vmem:[%s7960_s26 + $0xfc] sm:$0xf] %vm5425_vm3, %v6303_v34  ;;  %v4819_v61 = vadd.f32 %v8471_v48, %v4700_v56  ;;  %v4701_v13 = vmax.f32 %v4533_v32, %v4547_v63 }
 0x22e   : > { %v4933_v35 = vmax.f32 %v4821_v36, 0.0  ;;  %v4822_v41 = vadd.f32 %v8471_v48, %v4703_v12  ;;  %v8867_v60 = vpop.f32.mrb[140].mxu0 }
 0x22f   : > { %v4931_v28 = vmax.f32 %v4819_v61, 0.0  ;;  %v4820_v29 = vadd.f32 %v8471_v48, %v4701_v13  ;;  %v8869_v62 = vpop.f32.mrb[140].mxu1  ;;  %v2250_v5 = vpop.f32.mrb[141].mxu0 }
 0x230   : > { %v6308_v7 = vpack.c.bf16 %v4933_v35, %v4933_v35  ;;  %v4934_v8 = vmax.f32 %v4822_v41, 0.0  ;;  %v4552_v45 = vmax.f32 %v8867_v60, %v8869_v62  ;;  %v4075_v58 = vpop.f32.mrb[141].mxu1  ;;  %v8873_v46 = vpop.f32.mrb[142].mxu0 }
 0x231   : > { %v6306_v32 = vpack.c.bf16 %v4931_v28, %v4931_v28  ;;  %v4932_v14 = vmax.f32 %v4820_v29, 0.0  ;;  %v4550_v15 = vmax.f32 %v2250_v5, %v4075_v58  ;;  %v8875_v47 = vpop.f32.mrb[142].mxu1  ;;  %v2253_v51 = vpop.f32.mrb[143].mxu0 }
 0x232   : > { %5494 = vst.msk [vmem:[%s7960_s26 + $0x110] sm:$0xf] %vm5425_vm3, %v6308_v7  ;;  %v6309_v42 = vpack.c.bf16 %v4934_v8, %v4934_v8  ;;  %v4553_v21 = vmax.f32 %v8873_v46, %v8875_v47  ;;  %v4078_v1 = vpop.f32.mrb[143].mxu1 }
 0x233   : > { %5492 = vst.msk [vmem:[%s7960_s26 + $0x108] sm:$0xf] %vm5425_vm3, %v6306_v32  ;;  %v6307_v24 = vpack.c.bf16 %v4932_v14, %v4932_v14  ;;  %v4551_v4 = vmax.f32 %v2253_v51, %v4078_v1 }
 0x234   : > { %5495 = vst.msk [vmem:[%s7960_s26 + $0x114] sm:$0xf] %vm5425_vm3, %v6309_v42 }
 0x235   : > { %5493 = vst.msk [vmem:[%s7960_s26 + $0x10c] sm:$0xf] %vm5425_vm3, %v6307_v24 }
 0x236   : > { %v8887_v19 = vpop.f32.mrb[144].mxu0 }
 0x237   : > { %v8889_v53 = vpop.f32.mrb[144].mxu1  ;;  %v2266_v44 = vpop.f32.mrb[145].mxu0 }
 0x238   : > { %v4556_v54 = vmax.f32 %v8887_v19, %v8889_v53  ;;  %v4091_v38 = vpop.f32.mrb[145].mxu1  ;;  %v8893_v27 = vpop.f32.mrb[146].mxu0 }
 0x239   : > { %v4554_v59 = vmax.f32 %v2266_v44, %v4091_v38  ;;  %v8895_v17 = vpop.f32.mrb[146].mxu1  ;;  %v2269_v50 = vpop.f32.mrb[147].mxu0 }
 0x23a   : > { %v4557_v33 = vmax.f32 %v8893_v27, %v8895_v17  ;;  %v4094_v43 = vpop.f32.mrb[147].mxu1 }
 0x23b   : > { %v4555_v18 = vmax.f32 %v2269_v50, %v4094_v43 }
 0x23e   : > { %v8899_v16 = vpop.f32.mrb[148].mxu0 }
 0x23f   : > { %v8901_v11 = vpop.f32.mrb[148].mxu1  ;;  %v8905_v26 = vpop.f32.mrb[149].mxu0 }
 0x240   : > { %v4560_v52 = vmax.f32 %v8899_v16, %v8901_v11  ;;  %v8907_v30 = vpop.f32.mrb[149].mxu1  ;;  %v8911_v39 = vpop.f32.mrb[150].mxu0 }
 0x241   : > { %v4558_v23 = vmax.f32 %v8905_v26, %v8907_v30  ;;  %v8913_v57 = vpop.f32.mrb[150].mxu1  ;;  %v8917_v31 = vpop.f32.mrb[151].mxu0 }
 0x242   : > { %v4561_v25 = vmax.f32 %v8911_v39, %v8913_v57  ;;  %v8919_v6 = vpop.f32.mrb[151].mxu1 }
 0x243   : > { %v4559_v3 = vmax.f32 %v8917_v31, %v8919_v6 }
 0x246   : > { %v6738_v22 = vpop.f32.mrb[152].mxu0 }
 0x247   : > { %v6966_v2 = vpop.f32.mrb[152].mxu1  ;;  %v8923_v40 = vpop.f32.mrb[153].mxu0 }
 0x248   : > { %v4564_v9 = vmax.f32 %v6738_v22, %v6966_v2  ;;  %v8925_v55 = vpop.f32.mrb[153].mxu1  ;;  %v6739_v37 = vpop.f32.mrb[154].mxu0 }
 0x249   : > { %v4562_v49 = vmax.f32 %v8923_v40, %v8925_v55  ;;  %v6967_v20 = vpop.f32.mrb[154].mxu1  ;;  %v8929_v34 = vpop.f32.mrb[155].mxu0 }
 0x24a   : > { %v4704_v0 = vmax.f32 %v4550_v15, %v4564_v9  ;;  %v4565_v10 = vmax.f32 %v6739_v37, %v6967_v20  ;;  %v8931_v56 = vpop.f32.mrb[155].mxu1 }
 0x24b   : > { %v4563_v63 = vmax.f32 %v8929_v34, %v8931_v56 }
 0x24c   : > { %v4823_v36 = vadd.f32 %v8471_v48, %v4704_v0  ;;  %v4705_v12 = vmax.f32 %v4551_v4, %v4565_v10 }
 0x24e   : > { %v4935_v61 = vmax.f32 %v4823_v36, 0.0  ;;  %v4824_v13 = vadd.f32 %v8471_v48, %v4705_v12  ;;  %v6742_v35 = vpop.f32.mrb[156].mxu0 }
 0x24f   : > { %v6970_v41 = vpop.f32.mrb[156].mxu1  ;;  %v2314_v8 = vpop.f32.mrb[157].mxu0 }
 0x250   : > { %v6310_v28 = vpack.c.bf16 %v4935_v61, %v4935_v61  ;;  %v4936_v29 = vmax.f32 %v4824_v13, 0.0  ;;  %v4568_v7 = vmax.f32 %v6742_v35, %v6970_v41  ;;  %v4139_v5 = vpop.f32.mrb[157].mxu1  ;;  %v6743_v32 = vpop.f32.mrb[158].mxu0 }
 0x251   : > { %v4566_v58 = vmax.f32 %v2314_v8, %v4139_v5  ;;  %v6971_v14 = vpop.f32.mrb[158].mxu1  ;;  %v2317_v1 = vpop.f32.mrb[159].mxu0  ;;  %v8966_v8 = vld [vmem:[%s9303_s3] ss:$0 sm:$0xff] }
 0x252   : > { %5496 = vst.msk [vmem:[%s7960_s26 + $0x118] sm:$0xf] %vm5425_vm3, %v6310_v28  ;;  %v6311_v15 = vpack.c.bf16 %v4936_v29, %v4936_v29  ;;  %v4708_v42 = vmax.f32 %v4554_v59, %v4568_v7  ;;  %v4569_v51 = vmax.f32 %v6743_v32, %v6971_v14  ;;  %v4142_v24 = vpop.f32.mrb[159].mxu1 }
 0x253   : > { %v4706_v4 = vmax.f32 %v4552_v45, %v4566_v58  ;;  %v4567_v44 = vmax.f32 %v2317_v1, %v4142_v24 }
 0x254   : > { %5497 = vst.msk [vmem:[%s7960_s26 + $0x11c] sm:$0xf] %vm5425_vm3, %v6311_v15  ;;  %v4827_v38 = vadd.f32 %v8471_v48, %v4708_v42  ;;  %v4709_v50 = vmax.f32 %v4555_v18, %v4569_v51 }
 0x255   : > { %v4825_v43 = vadd.f32 %v8471_v48, %v4706_v4  ;;  %v4707_v22 = vmax.f32 %v4553_v21, %v4567_v44 }
 0x256   : > { %v4939_v59 = vmax.f32 %v4827_v38, 0.0  ;;  %v4828_v2 = vadd.f32 %v8471_v48, %v4709_v50  ;;  %v6746_v62 = vpop.f32.mrb[160].mxu0 }
 0x257   : > { %v4937_v9 = vmax.f32 %v4825_v43, 0.0  ;;  %v4826_v60 = vadd.f32 %v8471_v48, %v4707_v22  ;;  %v6974_v45 = vpop.f32.mrb[160].mxu1  ;;  %v2330_v18 = vpop.f32.mrb[161].mxu0 }
 0x258   : > { %v6314_v37 = vpack.c.bf16 %v4939_v59, %v4939_v59  ;;  %v4940_v20 = vmax.f32 %v4828_v2, 0.0  ;;  %v4572_v0 = vmax.f32 %v6746_v62, %v6974_v45  ;;  %v4155_v10 = vpop.f32.mrb[161].mxu1  ;;  %v6747_v47 = vpop.f32.mrb[162].mxu0 }
 0x259   : > { %v6312_v36 = vpack.c.bf16 %v4937_v9, %v4937_v9  ;;  %v4938_v12 = vmax.f32 %v4826_v60, 0.0  ;;  %v4570_v46 = vmax.f32 %v2330_v18, %v4155_v10  ;;  %v6975_v21 = vpop.f32.mrb[162].mxu1  ;;  %v2333_v35 = vpop.f32.mrb[163].mxu0 }
 0x25a   : > { %5500 = vst.msk [vmem:[%s7960_s26 + $0x128] sm:$0xf] %vm5425_vm3, %v6314_v37  ;;  %v6315_v61 = vpack.c.bf16 %v4940_v20, %v4940_v20  ;;  %v4712_v48 = vmax.f32 %v4558_v23, %v4572_v0  ;;  %v4573_v13 = vmax.f32 %v6747_v47, %v6975_v21  ;;  %v4158_v41 = vpop.f32.mrb[163].mxu1 }
 0x25b   : > { %5498 = vst.msk [vmem:[%s7960_s26 + $0x120] sm:$0xf] %vm5425_vm3, %v6312_v36  ;;  %v6313_v28 = vpack.c.bf16 %v4938_v12, %v4938_v12  ;;  %v4710_v29 = vmax.f32 %v4556_v54, %v4570_v46  ;;  %v4571_v7 = vmax.f32 %v2333_v35, %v4158_v41 }
 0x25c   : > { %5501 = vst.msk [vmem:[%s7960_s26 + $0x12c] sm:$0xf] %vm5425_vm3, %v6315_v61  ;;  %v4831_v26 = vadd.f32 %v8966_v8, %v4712_v48  ;;  %v4713_v30 = vmax.f32 %v4559_v3, %v4573_v13 }
 0x25d   : > { %5499 = vst.msk [vmem:[%s7960_s26 + $0x124] sm:$0xf] %vm5425_vm3, %v6313_v28  ;;  %v4829_v23 = vadd.f32 %v8966_v8, %v4710_v29  ;;  %v4711_v19 = vmax.f32 %v4557_v33, %v4571_v7 }
 0x25e   : > { %v4943_v53 = vmax.f32 %v4831_v26, 0.0  ;;  %v4832_v54 = vadd.f32 %v8966_v8, %v4713_v30  ;;  %v6750_v32 = vpop.f32.mrb[164].mxu0 }
 0x25f   : > { %v4941_v5 = vmax.f32 %v4829_v23, 0.0  ;;  %v4830_v58 = vadd.f32 %v8966_v8, %v4711_v19  ;;  %v6978_v14 = vpop.f32.mrb[164].mxu1  ;;  %v2346_v3 = vpop.f32.mrb[165].mxu0 }
 0x260   : > { %v6318_v15 = vpack.c.bf16 %v4943_v53, %v4943_v53  ;;  %v4944_v31 = vmax.f32 %v4832_v54, 0.0  ;;  %v4576_v6 = vmax.f32 %v6750_v32, %v6978_v14  ;;  %v4171_v42 = vpop.f32.mrb[165].mxu1  ;;  %v6751_v17 = vpop.f32.mrb[166].mxu0 }
 0x261   : > { %v6316_v51 = vpack.c.bf16 %v4941_v5, %v4941_v5  ;;  %v4942_v1 = vmax.f32 %v4830_v58, 0.0  ;;  %v4574_v27 = vmax.f32 %v2346_v3, %v4171_v42  ;;  %v6979_v33 = vpop.f32.mrb[166].mxu1  ;;  %v2349_v38 = vpop.f32.mrb[167].mxu0 }
 0x262   : > { %5504 = vst.msk [vmem:[%s7960_s26 + $0x138] sm:$0xf] %vm5425_vm3, %v6318_v15  ;;  %v6319_v24 = vpack.c.bf16 %v4944_v31, %v4944_v31  ;;  %v4716_v4 = vmax.f32 %v4562_v49, %v4576_v6  ;;  %v4577_v44 = vmax.f32 %v6751_v17, %v6979_v33  ;;  %v4174_v50 = vpop.f32.mrb[167].mxu1 }
 0x263   : > { %5502 = vst.msk [vmem:[%s7960_s26 + $0x130] sm:$0xf] %vm5425_vm3, %v6316_v51  ;;  %v6317_v43 = vpack.c.bf16 %v4942_v1, %v4942_v1  ;;  %v4714_v22 = vmax.f32 %v4560_v52, %v4574_v27  ;;  %v4575_v59 = vmax.f32 %v2349_v38, %v4174_v50 }
 0x264   : > { %5505 = vst.msk [vmem:[%s7960_s26 + $0x13c] sm:$0xf] %vm5425_vm3, %v6319_v24  ;;  %v4835_v2 = vadd.f32 %v8966_v8, %v4716_v4  ;;  %v4717_v40 = vmax.f32 %v4563_v63, %v4577_v44 }
 0x265   : > { %5503 = vst.msk [vmem:[%s7960_s26 + $0x134] sm:$0xf] %vm5425_vm3, %v6317_v43  ;;  %v4833_v55 = vadd.f32 %v8966_v8, %v4714_v22  ;;  %v4715_v49 = vmax.f32 %v4561_v25, %v4575_v59 }
 0x266   : > { %v4947_v9 = vmax.f32 %v4835_v2, 0.0  ;;  %v4836_v16 = vadd.f32 %v8966_v8, %v4717_v40  ;;  %v9004_v60 = vpop.f32.mrb[168].mxu0 }
 0x267   : > { %v4945_v11 = vmax.f32 %v4833_v55, 0.0  ;;  %v4834_v52 = vadd.f32 %v8966_v8, %v4715_v49  ;;  %v9006_v62 = vpop.f32.mrb[168].mxu1  ;;  %v2362_v39 = vpop.f32.mrb[169].mxu0 }
 0x268   : > { %v6322_v34 = vpack.c.bf16 %v4947_v9, %v4947_v9  ;;  %v4948_v56 = vmax.f32 %v4836_v16, 0.0  ;;  %v4580_v63 = vmax.f32 %v9004_v60, %v9006_v62  ;;  %v4187_v57 = vpop.f32.mrb[169].mxu1  ;;  %v9010_v20 = vpop.f32.mrb[170].mxu0 }
 0x269   : > { %v6320_v25 = vpack.c.bf16 %v4945_v11, %v4945_v11  ;;  %v4946_v45 = vmax.f32 %v4834_v52, 0.0  ;;  %v4578_v37 = vmax.f32 %v2362_v39, %v4187_v57  ;;  %v9012_v0 = vpop.f32.mrb[170].mxu1  ;;  %v2365_v36 = vpop.f32.mrb[171].mxu0 }
 0x26a   : > { %5508 = vst.msk [vmem:[%s7960_s26 + $0x148] sm:$0xf] %vm5425_vm3, %v6322_v34  ;;  %v6323_v18 = vpack.c.bf16 %v4948_v56, %v4948_v56  ;;  %v4581_v10 = vmax.f32 %v9010_v20, %v9012_v0  ;;  %v4190_v12 = vpop.f32.mrb[171].mxu1 }
 0x26b   : > { %5506 = vst.msk [vmem:[%s7960_s26 + $0x140] sm:$0xf] %vm5425_vm3, %v6320_v25  ;;  %v6321_v46 = vpack.c.bf16 %v4946_v45, %v4946_v45  ;;  %v4579_v47 = vmax.f32 %v2365_v36, %v4190_v12 }
 0x26c   : > { %5509 = vst.msk [vmem:[%s7960_s26 + $0x14c] sm:$0xf] %vm5425_vm3, %v6323_v18 }
 0x26d   : > { %5507 = vst.msk [vmem:[%s7960_s26 + $0x144] sm:$0xf] %vm5425_vm3, %v6321_v46 }
 0x26e   : > { %v9024_v21 = vpop.f32.mrb[172].mxu0 }
 0x26f   : > { %v9026_v61 = vpop.f32.mrb[172].mxu1  ;;  %v2378_v13 = vpop.f32.mrb[173].mxu0 }
 0x270   : > { %v4584_v48 = vmax.f32 %v9024_v21, %v9026_v61  ;;  %v4203_v35 = vpop.f32.mrb[173].mxu1  ;;  %v9030_v28 = vpop.f32.mrb[174].mxu0 }
 0x271   : > { %v4582_v41 = vmax.f32 %v2378_v13, %v4203_v35  ;;  %v9032_v29 = vpop.f32.mrb[174].mxu1  ;;  %v2381_v26 = vpop.f32.mrb[175].mxu0 }
 0x272   : > { %v4585_v7 = vmax.f32 %v9030_v28, %v9032_v29  ;;  %v4206_v30 = vpop.f32.mrb[175].mxu1 }
 0x273   : > { %v4583_v23 = vmax.f32 %v2381_v26, %v4206_v30 }
 0x276   : > { %v9036_v19 = vpop.f32.mrb[176].mxu0 }
 0x277   : > { %v9038_v53 = vpop.f32.mrb[176].mxu1  ;;  %v9042_v5 = vpop.f32.mrb[177].mxu0 }
 0x278   : > { %v4588_v54 = vmax.f32 %v9036_v19, %v9038_v53  ;;  %v9044_v58 = vpop.f32.mrb[177].mxu1  ;;  %v9048_v14 = vpop.f32.mrb[178].mxu0 }
 0x279   : > { %v4586_v32 = vmax.f32 %v9042_v5, %v9044_v58  ;;  %v9050_v15 = vpop.f32.mrb[178].mxu1  ;;  %v9054_v6 = vpop.f32.mrb[179].mxu0 }
 0x27a   : > { %v4589_v31 = vmax.f32 %v9048_v14, %v9050_v15  ;;  %v9056_v3 = vpop.f32.mrb[179].mxu1 }
 0x27b   : > { %v4587_v42 = vmax.f32 %v9054_v6, %v9056_v3 }
 0x27e   : > { %v6766_v51 = vpop.f32.mrb[180].mxu0 }
 0x27f   : > { %v6994_v1 = vpop.f32.mrb[180].mxu1  ;;  %v9060_v17 = vpop.f32.mrb[181].mxu0 }
 0x280   : > { %v4592_v27 = vmax.f32 %v6766_v51, %v6994_v1  ;;  %v9062_v33 = vpop.f32.mrb[181].mxu1  ;;  %v6767_v4 = vpop.f32.mrb[182].mxu0 }
 0x281   : > { %v4590_v24 = vmax.f32 %v9060_v17, %v9062_v33  ;;  %v6995_v44 = vpop.f32.mrb[182].mxu1  ;;  %v9066_v43 = vpop.f32.mrb[183].mxu0 }
 0x282   : > { %v4718_v38 = vmax.f32 %v4578_v37, %v4592_v27  ;;  %v4593_v50 = vmax.f32 %v6767_v4, %v6995_v44  ;;  %v9068_v22 = vpop.f32.mrb[183].mxu1 }
 0x283   : > { %v4591_v59 = vmax.f32 %v9066_v43, %v9068_v22 }
 0x284   : > { %v4837_v2 = vadd.f32 %v8966_v8, %v4718_v38  ;;  %v4719_v40 = vmax.f32 %v4579_v47, %v4593_v50 }
 0x286   : > { %v4949_v55 = vmax.f32 %v4837_v2, 0.0  ;;  %v4838_v49 = vadd.f32 %v8966_v8, %v4719_v40  ;;  %v6770_v9 = vpop.f32.mrb[184].mxu0 }
 0x287   : > { %v6998_v16 = vpop.f32.mrb[184].mxu1  ;;  %v2426_v56 = vpop.f32.mrb[185].mxu0 }
 0x288   : > { %v6324_v11 = vpack.c.bf16 %v4949_v55, %v4949_v55  ;;  %v4950_v52 = vmax.f32 %v4838_v49, 0.0  ;;  %v4596_v34 = vmax.f32 %v6770_v9, %v6998_v16  ;;  %v4251_v39 = vpop.f32.mrb[185].mxu1  ;;  %v6771_v25 = vpop.f32.mrb[186].mxu0 }
 0x289   : > { %v4594_v57 = vmax.f32 %v2426_v56, %v4251_v39  ;;  %v6999_v45 = vpop.f32.mrb[186].mxu1  ;;  %v2429_v12 = vpop.f32.mrb[187].mxu0 }
 0x28a   : > { %5510 = vst.msk [vmem:[%s7960_s26 + $0x150] sm:$0xf] %vm5425_vm3, %v6324_v11  ;;  %v6325_v37 = vpack.c.bf16 %v4950_v52, %v4950_v52  ;;  %v4722_v18 = vmax.f32 %v4582_v41, %v4596_v34  ;;  %v4597_v36 = vmax.f32 %v6771_v25, %v6999_v45  ;;  %v4254_v46 = vpop.f32.mrb[187].mxu1 }
 0x28b   : > { %v4720_v47 = vmax.f32 %v4580_v63, %v4594_v57  ;;  %v4595_v13 = vmax.f32 %v2429_v12, %v4254_v46 }
 0x28c   : > { %5511 = vst.msk [vmem:[%s7960_s26 + $0x154] sm:$0xf] %vm5425_vm3, %v6325_v37  ;;  %v4841_v35 = vadd.f32 %v8966_v8, %v4722_v18  ;;  %v4723_v26 = vmax.f32 %v4583_v23, %v4597_v36 }
 0x28d   : > { %v4839_v30 = vadd.f32 %v8966_v8, %v4720_v47  ;;  %v4721_v51 = vmax.f32 %v4581_v10, %v4595_v13 }
 0x28e   : > { %v4953_v41 = vmax.f32 %v4841_v35, 0.0  ;;  %v4842_v1 = vadd.f32 %v8966_v8, %v4723_v26  ;;  %v6774_v62 = vpop.f32.mrb[188].mxu0 }
 0x28f   : > { %v4951_v27 = vmax.f32 %v4839_v30, 0.0  ;;  %v4840_v60 = vadd.f32 %v8966_v8, %v4721_v51  ;;  %v7002_v63 = vpop.f32.mrb[188].mxu1  ;;  %v2442_v23 = vpop.f32.mrb[189].mxu0 }
 0x290   : > { %v6328_v4 = vpack.c.bf16 %v4953_v41, %v4953_v41  ;;  %v4954_v44 = vmax.f32 %v4842_v1, 0.0  ;;  %v4600_v38 = vmax.f32 %v6774_v62, %v7002_v63  ;;  %v4267_v50 = vpop.f32.mrb[189].mxu1  ;;  %v6775_v0 = vpop.f32.mrb[190].mxu0 }
 0x291   : > { %v6326_v2 = vpack.c.bf16 %v4951_v27, %v4951_v27  ;;  %v4952_v40 = vmax.f32 %v4840_v60, 0.0  ;;  %v4598_v20 = vmax.f32 %v2442_v23, %v4267_v50  ;;  %v7003_v10 = vpop.f32.mrb[190].mxu1  ;;  %v2445_v16 = vpop.f32.mrb[191].mxu0 }
 0x292   : > { %5514 = vst.msk [vmem:[%s7960_s26 + $0x160] sm:$0xf] %vm5425_vm3, %v6328_v4  ;;  %v6329_v55 = vpack.c.bf16 %v4954_v44, %v4954_v44  ;;  %v4726_v49 = vmax.f32 %v4586_v32, %v4600_v38  ;;  %v4601_v9 = vmax.f32 %v6775_v0, %v7003_v10  ;;  %v4270_v11 = vpop.f32.mrb[191].mxu1 }
 0x293   : > { %5512 = vst.msk [vmem:[%s7960_s26 + $0x158] sm:$0xf] %vm5425_vm3, %v6326_v2  ;;  %v6327_v52 = vpack.c.bf16 %v4952_v40, %v4952_v40  ;;  %v4724_v34 = vmax.f32 %v4584_v48, %v4598_v20  ;;  %v4599_v56 = vmax.f32 %v2445_v16, %v4270_v11 }
 0x294   : > { %5515 = vst.msk [vmem:[%s7960_s26 + $0x164] sm:$0xf] %vm5425_vm3, %v6329_v55  ;;  %v4845_v39 = vadd.f32 %v8966_v8, %v4726_v49  ;;  %v4727_v5 = vmax.f32 %v4587_v42, %v4601_v9 }
 0x295   : > { %5513 = vst.msk [vmem:[%s7960_s26 + $0x15c] sm:$0xf] %vm5425_vm3, %v6327_v52  ;;  %v4843_v58 = vadd.f32 %v8966_v8, %v4724_v34  ;;  %v4725_v32 = vmax.f32 %v4585_v7, %v4599_v56 }
 0x296   : > { %v4957_v57 = vmax.f32 %v4845_v39, 0.0  ;;  %v4846_v21 = vadd.f32 %v8966_v8, %v4727_v5  ;;  %v6778_v25 = vpop.f32.mrb[192].mxu0 }
 0x297   : > { %v4955_v61 = vmax.f32 %v4843_v58, 0.0  ;;  %v4844_v48 = vadd.f32 %v8966_v8, %v4725_v32  ;;  %v7006_v45 = vpop.f32.mrb[192].mxu1  ;;  %v2458_v42 = vpop.f32.mrb[193].mxu0 }
 0x298   : > { %v6332_v37 = vpack.c.bf16 %v4957_v57, %v4957_v57  ;;  %v4958_v6 = vmax.f32 %v4846_v21, 0.0  ;;  %v4604_v3 = vmax.f32 %v6778_v25, %v7006_v45  ;;  %v4283_v18 = vpop.f32.mrb[193].mxu1  ;;  %v6779_v29 = vpop.f32.mrb[194].mxu0 }
 0x299   : > { %v6330_v36 = vpack.c.bf16 %v4955_v61, %v4955_v61  ;;  %v4956_v12 = vmax.f32 %v4844_v48, 0.0  ;;  %v4602_v28 = vmax.f32 %v2458_v42, %v4283_v18  ;;  %v7007_v7 = vpop.f32.mrb[194].mxu1  ;;  %v2461_v35 = vpop.f32.mrb[195].mxu0 }
 0x29a   : > { %5518 = vst.msk [vmem:[%s7960_s26 + $0x170] sm:$0xf] %vm5425_vm3, %v6332_v37  ;;  %v6333_v46 = vpack.c.bf16 %v4958_v6, %v4958_v6  ;;  %v4730_v47 = vmax.f32 %v4590_v24, %v4604_v3  ;;  %v4605_v13 = vmax.f32 %v6779_v29, %v7007_v7  ;;  %v4286_v26 = vpop.f32.mrb[195].mxu1 }
 0x29b   : > { %5516 = vst.msk [vmem:[%s7960_s26 + $0x168] sm:$0xf] %vm5425_vm3, %v6330_v36  ;;  %v6331_v30 = vpack.c.bf16 %v4956_v12, %v4956_v12  ;;  %v4728_v51 = vmax.f32 %v4588_v54, %v4602_v28  ;;  %v4603_v41 = vmax.f32 %v2461_v35, %v4286_v26 }
 0x29c   : > { %5519 = vst.msk [vmem:[%s7960_s26 + $0x174] sm:$0xf] %vm5425_vm3, %v6333_v46  ;;  %v4849_v1 = vadd.f32 %v8966_v8, %v4730_v47  ;;  %v4731_v17 = vmax.f32 %v4591_v59, %v4605_v13 }
 0x29d   : > { %5517 = vst.msk [vmem:[%s7960_s26 + $0x16c] sm:$0xf] %vm5425_vm3, %v6331_v30  ;;  %v4847_v33 = vadd.f32 %v8966_v8, %v4728_v51  ;;  %v4729_v24 = vmax.f32 %v4589_v31, %v4603_v41 }
 0x29e   : > { %v4961_v27 = vmax.f32 %v4849_v1, 0.0  ;;  %v4850_v19 = vadd.f32 %v8966_v8, %v4731_v17  ;;  %v9136_v60 = vpop.f32.mrb[196].mxu0 }
 0x29f   : > { %v4959_v53 = vmax.f32 %v4847_v33, 0.0  ;;  %v4848_v54 = vadd.f32 %v8966_v8, %v4729_v24  ;;  %v9138_v62 = vpop.f32.mrb[196].mxu1  ;;  %v2474_v14 = vpop.f32.mrb[197].mxu0 }
 0x2a0   : > { %v6336_v43 = vpack.c.bf16 %v4961_v27, %v4961_v27  ;;  %v4962_v22 = vmax.f32 %v4850_v19, 0.0  ;;  %v4608_v59 = vmax.f32 %v9136_v60, %v9138_v62  ;;  %v4299_v15 = vpop.f32.mrb[197].mxu1  ;;  %v9142_v44 = vpop.f32.mrb[198].mxu0 }
 0x2a1   : > { %v6334_v31 = vpack.c.bf16 %v4959_v53, %v4959_v53  ;;  %v4960_v63 = vmax.f32 %v4848_v54, 0.0  ;;  %v4606_v4 = vmax.f32 %v2474_v14, %v4299_v15  ;;  %v9144_v38 = vpop.f32.mrb[198].mxu1  ;;  %v2477_v2 = vpop.f32.mrb[199].mxu0 }
 0x2a2   : > { %5522 = vst.msk [vmem:[%s7960_s26 + $0x180] sm:$0xf] %vm5425_vm3, %v6336_v43  ;;  %v6337_v23 = vpack.c.bf16 %v4962_v22, %v4962_v22  ;;  %v4609_v50 = vmax.f32 %v9142_v44, %v9144_v38  ;;  %v4302_v40 = vpop.f32.mrb[199].mxu1 }
 0x2a3   : > { %5520 = vst.msk [vmem:[%s7960_s26 + $0x178] sm:$0xf] %vm5425_vm3, %v6334_v31  ;;  %v6335_v20 = vpack.c.bf16 %v4960_v63, %v4960_v63  ;;  %v4607_v0 = vmax.f32 %v2477_v2, %v4302_v40 }
 0x2a4   : > { %5523 = vst.msk [vmem:[%s7960_s26 + $0x184] sm:$0xf] %vm5425_vm3, %v6337_v23 }
 0x2a5   : > { %5521 = vst.msk [vmem:[%s7960_s26 + $0x17c] sm:$0xf] %vm5425_vm3, %v6335_v20 }
 0x2a6   : > { %v9156_v10 = vpop.f32.mrb[200].mxu0 }
 0x2a7   : > { %v9158_v55 = vpop.f32.mrb[200].mxu1  ;;  %v2490_v9 = vpop.f32.mrb[201].mxu0 }
 0x2a8   : > { %v4612_v49 = vmax.f32 %v9156_v10, %v9158_v55  ;;  %v4315_v16 = vpop.f32.mrb[201].mxu1  ;;  %v9162_v52 = vpop.f32.mrb[202].mxu0 }
 0x2a9   : > { %v4610_v11 = vmax.f32 %v2490_v9, %v4315_v16  ;;  %v9164_v34 = vpop.f32.mrb[202].mxu1  ;;  %v2493_v39 = vpop.f32.mrb[203].mxu0 }
 0x2aa   : > { %v4613_v56 = vmax.f32 %v9162_v52, %v9164_v34  ;;  %v4318_v5 = vpop.f32.mrb[203].mxu1 }
 0x2ab   : > { %v4611_v58 = vmax.f32 %v2493_v39, %v4318_v5 }
 0x2ae   : > { %v9168_v32 = vpop.f32.mrb[204].mxu0 }
 0x2af   : > { %v9170_v57 = vpop.f32.mrb[204].mxu1  ;;  %v9174_v61 = vpop.f32.mrb[205].mxu0 }
 0x2b0   : > { %v4616_v21 = vmax.f32 %v9168_v32, %v9170_v57  ;;  %v9176_v48 = vpop.f32.mrb[205].mxu1  ;;  %v9180_v45 = vpop.f32.mrb[206].mxu0 }
 0x2b1   : > { %v4614_v25 = vmax.f32 %v9174_v61, %v9176_v48  ;;  %v9182_v37 = vpop.f32.mrb[206].mxu1  ;;  %v9186_v3 = vpop.f32.mrb[207].mxu0 }
 0x2b2   : > { %v4617_v6 = vmax.f32 %v9180_v45, %v9182_v37  ;;  %v9188_v42 = vpop.f32.mrb[207].mxu1 }
 0x2b3   : > { %v4615_v18 = vmax.f32 %v9186_v3, %v9188_v42 }
 0x2b6   : > { %v6794_v36 = vpop.f32.mrb[208].mxu0 }
 0x2b7   : > { %v7022_v12 = vpop.f32.mrb[208].mxu1  ;;  %v9192_v29 = vpop.f32.mrb[209].mxu0 }
 0x2b8   : > { %v4620_v28 = vmax.f32 %v6794_v36, %v7022_v12  ;;  %v9194_v7 = vpop.f32.mrb[209].mxu1  ;;  %v6795_v47 = vpop.f32.mrb[210].mxu0 }
 0x2b9   : > { %v4618_v46 = vmax.f32 %v9192_v29, %v9194_v7  ;;  %v7023_v13 = vpop.f32.mrb[210].mxu1  ;;  %v9198_v30 = vpop.f32.mrb[211].mxu0 }
 0x2ba   : > { %v4732_v35 = vmax.f32 %v4606_v4, %v4620_v28  ;;  %v4621_v26 = vmax.f32 %v6795_v47, %v7023_v13  ;;  %v9200_v51 = vpop.f32.mrb[211].mxu1 }
 0x2bb   : > { %v4619_v41 = vmax.f32 %v9198_v30, %v9200_v51 }
 0x2bc   : > { %v4851_v1 = vadd.f32 %v8966_v8, %v4732_v35  ;;  %v4733_v17 = vmax.f32 %v4607_v0, %v4621_v26 }
 0x2be   : > { %v4963_v33 = vmax.f32 %v4851_v1, 0.0  ;;  %v4852_v24 = vadd.f32 %v8966_v8, %v4733_v17  ;;  %v6798_v27 = vpop.f32.mrb[212].mxu0 }
 0x2bf   : > { %v7026_v19 = vpop.f32.mrb[212].mxu1  ;;  %v2538_v22 = vpop.f32.mrb[213].mxu0 }
 0x2c0   : > { %v6338_v53 = vpack.c.bf16 %v4963_v33, %v4963_v33  ;;  %v4964_v54 = vmax.f32 %v4852_v24, 0.0  ;;  %v4624_v43 = vmax.f32 %v6798_v27, %v7026_v19  ;;  %v4363_v14 = vpop.f32.mrb[213].mxu1  ;;  %v6799_v31 = vpop.f32.mrb[214].mxu0 }
 0x2c1   : > { %v4622_v15 = vmax.f32 %v2538_v22, %v4363_v14  ;;  %v7027_v63 = vpop.f32.mrb[214].mxu1  ;;  %v2541_v40 = vpop.f32.mrb[215].mxu0 }
 0x2c2   : > { %5524 = vst.msk [vmem:[%s7960_s26 + $0x188] sm:$0xf] %vm5425_vm3, %v6338_v53  ;;  %v6339_v4 = vpack.c.bf16 %v4964_v54, %v4964_v54  ;;  %v4736_v23 = vmax.f32 %v4610_v11, %v4624_v43  ;;  %v4625_v2 = vmax.f32 %v6799_v31, %v7027_v63  ;;  %v4366_v20 = vpop.f32.mrb[215].mxu1 }
 0x2c3   : > { %v4734_v0 = vmax.f32 %v4608_v59, %v4622_v15  ;;  %v4623_v9 = vmax.f32 %v2541_v40, %v4366_v20 }
 0x2c4   : > { %5525 = vst.msk [vmem:[%s7960_s26 + $0x18c] sm:$0xf] %vm5425_vm3, %v6339_v4  ;;  %v4855_v16 = vadd.f32 %v8966_v8, %v4736_v23  ;;  %v4737_v39 = vmax.f32 %v4611_v58, %v4625_v2 }
 0x2c5   : > { %v4853_v5 = vadd.f32 %v8966_v8, %v4734_v0  ;;  %v4735_v36 = vmax.f32 %v4609_v50, %v4623_v9 }
 0x2c6   : > { %v4967_v11 = vmax.f32 %v4855_v16, 0.0  ;;  %v4856_v12 = vadd.f32 %v8966_v8, %v4737_v39  ;;  %v6802_v62 = vpop.f32.mrb[216].mxu0 }
 0x2c7   : > { %v4965_v28 = vmax.f32 %v4853_v5, 0.0  ;;  %v4854_v60 = vadd.f32 %v8966_v8, %v4735_v36  ;;  %v7030_v59 = vpop.f32.mrb[216].mxu1  ;;  %v2554_v58 = vpop.f32.mrb[217].mxu0 }
 0x2c8   : > { %v6342_v47 = vpack.c.bf16 %v4967_v11, %v4967_v11  ;;  %v4968_v13 = vmax.f32 %v4856_v12, 0.0  ;;  %v4628_v35 = vmax.f32 %v6802_v62, %v7030_v59  ;;  %v4379_v26 = vpop.f32.mrb[217].mxu1  ;;  %v6803_v38 = vpop.f32.mrb[218].mxu0 }
 0x2c9   : > { %v6340_v1 = vpack.c.bf16 %v4965_v28, %v4965_v28  ;;  %v4966_v17 = vmax.f32 %v4854_v60, 0.0  ;;  %v4626_v44 = vmax.f32 %v2554_v58, %v4379_v26  ;;  %v7031_v50 = vpop.f32.mrb[218].mxu1  ;;  %v2557_v19 = vpop.f32.mrb[219].mxu0 }
 0x2ca   : > { %5528 = vst.msk [vmem:[%s7960_s26 + $0x198] sm:$0xf] %vm5425_vm3, %v6342_v47  ;;  %v6343_v33 = vpack.c.bf16 %v4968_v13, %v4968_v13  ;;  %v4740_v24 = vmax.f32 %v4614_v25, %v4628_v35  ;;  %v4629_v27 = vmax.f32 %v6803_v38, %v7031_v50  ;;  %v4382_v53 = vpop.f32.mrb[219].mxu1 }
 0x2cb   : > { %5526 = vst.msk [vmem:[%s7960_s26 + $0x190] sm:$0xf] %vm5425_vm3, %v6340_v1  ;;  %v6341_v54 = vpack.c.bf16 %v4966_v17, %v4966_v17  ;;  %v4738_v43 = vmax.f32 %v4612_v49, %v4626_v44  ;;  %v4627_v22 = vmax.f32 %v2557_v19, %v4382_v53 }
 0x2cc   : > { %5529 = vst.msk [vmem:[%s7960_s26 + $0x19c] sm:$0xf] %vm5425_vm3, %v6343_v33  ;;  %v4859_v14 = vadd.f32 %v8966_v8, %v4740_v24  ;;  %v4741_v61 = vmax.f32 %v4615_v18, %v4629_v27 }
 0x2cd   : > { %5527 = vst.msk [vmem:[%s7960_s26 + $0x194] sm:$0xf] %vm5425_vm3, %v6341_v54  ;;  %v4857_v48 = vadd.f32 %v8966_v8, %v4738_v43  ;;  %v4739_v25 = vmax.f32 %v4613_v56, %v4627_v22 }
 0x2ce   : > { %v4971_v15 = vmax.f32 %v4859_v14, 0.0  ;;  %v4860_v10 = vadd.f32 %v8966_v8, %v4741_v61  ;;  %v6806_v31 = vpop.f32.mrb[220].mxu0 }
 0x2cf   : > { %v4969_v55 = vmax.f32 %v4857_v48, 0.0  ;;  %v4858_v49 = vadd.f32 %v8966_v8, %v4739_v25  ;;  %v7034_v63 = vpop.f32.mrb[220].mxu1  ;;  %v2570_v18 = vpop.f32.mrb[221].mxu0 }
 0x2d0   : > { %v6346_v4 = vpack.c.bf16 %v4971_v15, %v4971_v15  ;;  %v4972_v3 = vmax.f32 %v4860_v10, 0.0  ;;  %v4632_v42 = vmax.f32 %v6806_v31, %v7034_v63  ;;  %v4395_v23 = vpop.f32.mrb[221].mxu1  ;;  %v6807_v34 = vpop.f32.mrb[222].mxu0 }
 0x2d1   : > { %v6344_v2 = vpack.c.bf16 %v4969_v55, %v4969_v55  ;;  %v4970_v40 = vmax.f32 %v4858_v49, 0.0  ;;  %v4630_v52 = vmax.f32 %v2570_v18, %v4395_v23  ;;  %v7035_v56 = vpop.f32.mrb[222].mxu1  ;;  %v2573_v16 = vpop.f32.mrb[223].mxu0 }
 0x2d2   : > { %5532 = vst.msk [vmem:[%s7960_s26 + $0x1a8] sm:$0xf] %vm5425_vm3, %v6346_v4  ;;  %v6347_v20 = vpack.c.bf16 %v4972_v3, %v4972_v3  ;;  %v4744_v0 = vmax.f32 %v4618_v46, %v4632_v42  ;;  %v4633_v9 = vmax.f32 %v6807_v34, %v7035_v56  ;;  %v4398_v39 = vpop.f32.mrb[223].mxu1 }
 0x2d3   : > { %5530 = vst.msk [vmem:[%s7960_s26 + $0x1a0] sm:$0xf] %vm5425_vm3, %v6344_v2  ;;  %v6345_v5 = vpack.c.bf16 %v4970_v40, %v4970_v40  ;;  %v4742_v36 = vmax.f32 %v4616_v21, %v4630_v52  ;;  %v4631_v11 = vmax.f32 %v2573_v16, %v4398_v39 }
 0x2d4   : > { %5533 = vst.msk [vmem:[%s7960_s26 + $0x1ac] sm:$0xf] %vm5425_vm3, %v6347_v20  ;;  %v4863_v12 = vadd.f32 %v8966_v8, %v4744_v0  ;;  %v4745_v29 = vmax.f32 %v4619_v41, %v4633_v9 }
 0x2d5   : > { %5531 = vst.msk [vmem:[%s7960_s26 + $0x1a4] sm:$0xf] %vm5425_vm3, %v6345_v5  ;;  %v4861_v7 = vadd.f32 %v8966_v8, %v4742_v36  ;;  %v4743_v32 = vmax.f32 %v4617_v6, %v4631_v11 }
 0x2d6   : > { %v4975_v57 = vmax.f32 %v4863_v12, 0.0  ;;  %v4864_v21 = vadd.f32 %v8966_v8, %v4745_v29 }
 0x2d7   : > { %v4973_v46 = vmax.f32 %v4861_v7, 0.0  ;;  %v4862_v28 = vadd.f32 %v8966_v8, %v4743_v32 }
 0x2d8   : > { %v6350_v60 = vpack.c.bf16 %v4975_v57, %v4975_v57  ;;  %v4976_v62 = vmax.f32 %v4864_v21, 0.0 }
 0x2d9   : > { %v6348_v30 = vpack.c.bf16 %v4973_v46, %v4973_v46  ;;  %v4974_v51 = vmax.f32 %v4862_v28, 0.0 }
 0x2da   : > { %5536 = vst.msk [vmem:[%s7960_s26 + $0x1b8] sm:$0xf] %vm5425_vm3, %v6350_v60  ;;  %v6351_v41 = vpack.c.bf16 %v4976_v62, %v4976_v62 }
 0x2db   : > { %5534 = vst.msk [vmem:[%s7960_s26 + $0x1b0] sm:$0xf] %vm5425_vm3, %v6348_v30  ;;  %v6349_v59 = vpack.c.bf16 %v4974_v51, %v4974_v51 }
 0x2dc   : > { %5537 = vst.msk [vmem:[%s7960_s26 + $0x1bc] sm:$0xf] %vm5425_vm3, %v6351_v41 }
 0x2dd   : > { %5535 = vst.msk [vmem:[%s7960_s26 + $0x1b4] sm:$0xf] %vm5425_vm3, %v6349_v59 }
 0x2de PF: > { %s17_s22 = sadd.s32 1, %s7442_s22   ;;  %s9308_s15 = smov %s7418_s16 }
 0x2df   : > { %p14_p6 = scmp.ge.s32.totalorder %s17_s22, 30   ;;  %s9309_s16 = smov %s7422_s17 }
 0x2e0   : > { %s9310_s17 = smov %s7539_s8  ;;  %s9311_s18 = smov %s7434_s20 }
 0x2e1   : > { %s9312_s19 = smov %s7438_s21  ;;  %s9313_s20 = smov %s9316_s24 }
 0x2e2   : > { %s9314_s21 = smov %s9320_s25  ;;  %16 = sbr.rel (!%p14_p6) target bundleno = 5 (0x5), region = 79 }
 0x2e9   :  { %5570 = vsyncpa [#allocation3], 1 }
 0x2ea   :  { %5572 = vsyncpa [#allocation3 + $0x1], 1 }

// kernel: simple_cnn_forward.5
= control target key start
LH: loop header
LB: loop body
LE: loop exit
PB: predicated region body
PF: predicated region fallthrough
CT: control target
= control target key end

     0   :  { %s18301_s15 = smov 0   ;;  %s18303_s16 = smov 0   ;;  %s20080_s0 = inlined_call_operand.vmem [shape: bf16[2,4,30,56,96], index: 0, kind: input, shape index: {}]   ;;  %s20081_s1 = inlined_call_operand.vmem [shape: bf16[2,4,30,56,96], index: 1, kind: input, shape index: {}]   ;;  %s20082_s2 = inlined_call_operand.vmem [shape: bf16[3,96,64], index: 2, kind: input, shape index: {}]   ;;  %s20083_s3 = inlined_call_operand.vmem [shape: f32[1,64], index: 3, kind: input, shape index: {}]   ;;  %s20084_s4 = inlined_call_operand.vmem [shape: bf16[2,56,56,64], index: 4, kind: output, shape index: {}]  }
   0x1   :  { %s18305_s17 = smov 0   ;;  %s18307_s18 = smov 0  }
   0x2   :  { %s18309_s19 = smov 0  }
   0x3 LB: > { %s23_s20 = sadd.s32 1, %s18266_s17  ;;  %s26_s21 = sadd.s32 1, %s18270_s18  ;;  %s18274_s19 = sphi %s18309_s19, %s14_s19   ;;  %s18270_s18 = sphi %s18307_s18, %s20089_s18   ;;  %s18266_s17 = sphi %s18305_s17, %s20088_s17   ;;  %s18262_s16 = sphi %s18303_s16, %s20087_s16   ;;  %s18258_s15 = sphi %s18301_s15, %s20086_s15  }
   0x4   : > { %p24_p0 = scmp.ge.s32.totalorder %s23_s20, 4  ;;  %p12723_p1 = scmp.ge.s32.totalorder %s18274_s19, 1 }
   0x5   : > { %p198_p2 = scmp.lt.s32.totalorder %s18274_s19, 9 }
   0x6   : > { %s20091_s20 = smov (%p24_p0, %s23_s20), 0  ;;  %s20093_s21 = smov (!%p24_p0, %s26_s21), %s18270_s18 }
   0x7   : > { %p199_p3 = pnand %p12723_p1, %p198_p2  ;;  %p28_p4 = scmp.ge.s32.totalorder %s20093_s21, 2 }
   0x8   : > { %v17628_v0 = vld [vmem:[%s20082_s2 + $0x30] sm:$0xff] (!%p199_p3)   ;;  %p242_p5 = scmp.lt.s32.totalorder (!%p199_p3), %s18262_s16, 1  ;;  %v17629_v1 = vld [vmem:[%s20082_s2 + $0x38] sm:$0xff] (!%p199_p3)   ;;  %p244_p6 = scmp.lt.s32.totalorder (!%p199_p3), %s18258_s15, 3  ;;  %v17630_v2 = vld [vmem:[%s20082_s2 + $0x40] sm:$0xff] (!%p199_p3)   ;;  %vm1609_vm0 = vcmask (!%p199_p3), 785408  }
   0x9   : > { %s20095_s21 = smov (%p28_p4, %s20093_s21), 0  ;;  %202 = sbr.rel (%p199_p3) target bundleno = 1428 (0x594), region = 36 }
   0xa   : > { %15552 = vmatprep.subr.bf16.mxu0 (!%p199_p3), %v17628_v0  ;;  %15968 = vmatprep.subr.bf16.mxu1 (!%p199_p3), %v17628_v0  ;;  %v17631_v3 = vld [vmem:[%s20082_s2 + $0x48] sm:$0xff] (!%p199_p3)   ;;  %v17632_v6 = vld [vmem:[%s20082_s2 + $0x50] sm:$0xff] (!%p199_p3)   ;;  %v17633_v7 = vld [vmem:[%s20082_s2 + $0x58] sm:$0xff] (!%p199_p3)   ;;  %s260_s7 = smul.u32 (!%p199_p3), 14, %s18258_s15  ;;  %vm12500_vm1 = vcmask (!%p199_p3), 519168  }
   0xb   : > { %15553 = vmatpush3.bf16.msra.mxu0 (!%p199_p3), %v17628_v0  ;;  %15969 = vmatpush3.bf16.msra.mxu1 (!%p199_p3), %v17628_v0  ;;  %v17637_v8 = vld [vmem:[%s20082_s2] sm:$0xff] (!%p199_p3)   ;;  %v17671_v13 = vld [vmem:[%s20082_s2 + $0x8] sm:$0xff] (!%p199_p3)   ;;  %v17704_v41 = vld [vmem:[%s20082_s2 + $0x10] sm:$0xff] (!%p199_p3)  }
   0xc   : > { %15554 = vmatprep.subr.bf16.mxu0 (!%p199_p3), %v17629_v1  ;;  %15970 = vmatprep.subr.bf16.mxu1 (!%p199_p3), %v17629_v1  ;;  %v17737_v58 = vld [vmem:[%s20082_s2 + $0x18] sm:$0xff] (!%p199_p3)   ;;  %p19417_p7 = scmp.lt.s32.totalorder (!%p199_p3), %s260_s7, 55 }
   0xf   : > { %15555 = vmatpush3.bf16.msra.mxu0 (!%p199_p3), %v17629_v1  ;;  %15971 = vmatpush3.bf16.msra.mxu1 (!%p199_p3), %v17629_v1 }
  0x10   : > { %s20097_s16 = smov (!%p242_p5, %s18262_s16), 1  ;;  %15556 = vmatprep.subr.bf16.mxu0 %v17630_v2  ;;  %15972 = vmatprep.subr.bf16.mxu1 %v17630_v2  ;;  %s20099_s7 = smov (!%p19417_p7, %s260_s7), 55 }
  0x11   : > { %s245_s26 = scalar_select %p244_p6, %s18258_s15, 3 }
  0x12   : > { %s17585_s29 = smul.u32 840, %s20097_s16 }
  0x13   : > { %s17584_s30 = smul.u32 210, %s245_s26  ;;  %15557 = vmatpush3.bf16.msra.mxu0 %v17630_v2  ;;  %15973 = vmatpush3.bf16.msra.mxu1 %v17630_v2 }
  0x14   : > { %15558 = vmatprep.subr.bf16.mxu0 %v17631_v3  ;;  %15974 = vmatprep.subr.bf16.mxu1 %v17631_v3  ;;  %s17587_s15 = smul.u32 392, %s20097_s16 }
  0x15   : > { %s248_s5 = sadd.s32 %s17585_s29, %s17584_s30  ;;  %s17586_s9 = smul.u32 7, %s20099_s7 }
  0x16   : > { %s12724_s8 = sshll.u32 %s248_s5, 2 }
  0x17   : > { %s18353_s11 = scalar_lea.vmem %s20080_s0, %s12724_s8  ;;  %s18358_s14 = scalar_lea.vmem %s20081_s1, %s12724_s8  ;;  %15559 = vmatpush3.bf16.msra.mxu0 %v17631_v3  ;;  %15975 = vmatpush3.bf16.msra.mxu1 %v17631_v3 }
  0x18   : > { %v17634_v4 = vld [vmem:[%s18353_s11 + $0x1c] sm:$0xff]   ;;  %15560 = vmatprep.subr.bf16.mxu0 %v17632_v6  ;;  %15976 = vmatprep.subr.bf16.mxu1 %v17632_v6  ;;  %v17636_v9 = vld [vmem:[%s18353_s11 + $0x24] sm:$0xff]   ;;  %v17639_v11 = vld [vmem:[%s18353_s11 + $0x2c] sm:$0xff]   ;;  %s267_s16 = sadd.s32 %s17587_s15, %s17586_s9 }
  0x19   : > { %v17635_v5 = vld [vmem:[%s18358_s14 + $0x1c] sm:$0xff]   ;;  %15564 = vmatprep.mubr.msk.bf16.mxu0 %vm1609_vm0, %v17634_v4  ;;  %v17638_v10 = vld [vmem:[%s18358_s14 + $0x24] sm:$0xff]   ;;  %v17640_v12 = vld [vmem:[%s18358_s14 + $0x2c] sm:$0xff]   ;;  %s12726_s13 = sshll.u32 %s267_s16, 2 }
  0x1a   : > { %15980 = vmatprep.mubr.msk.bf16.mxu1 %vm1609_vm0, %v17635_v5  ;;  %v17641_v14 = vld [vmem:[%s18353_s11 + $0x34] sm:$0xff]   ;;  %v17643_v16 = vld [vmem:[%s18353_s11 + $0x3c] sm:$0xff]   ;;  %v17645_v18 = vld [vmem:[%s18353_s11 + $0x44] sm:$0xff]   ;;  %s19465_s24 = scalar_lea.vmem %s20084_s4, %s12726_s13 }
  0x1b   : > { %15561 = vmatpush3.bf16.msra.mxu0 %v17632_v6  ;;  %15977 = vmatpush3.bf16.msra.mxu1 %v17632_v6  ;;  %v17642_v15 = vld [vmem:[%s18358_s14 + $0x34] sm:$0xff]   ;;  %v17644_v17 = vld [vmem:[%s18358_s14 + $0x3c] sm:$0xff]   ;;  %v17646_v19 = vld [vmem:[%s18358_s14 + $0x44] sm:$0xff]  }
  0x1c   : > { %15562 = vmatprep.subr.bf16.mxu0 %v17633_v7  ;;  %15978 = vmatprep.subr.bf16.mxu1 %v17633_v7  ;;  %v17647_v20 = vld [vmem:[%s18353_s11 + $0x4c] sm:$0xff]   ;;  %v17649_v22 = vld [vmem:[%s18353_s11 + $0x54] sm:$0xff]   ;;  %v17651_v24 = vld [vmem:[%s18353_s11 + $0x5c] sm:$0xff]  }
  0x1d   : > { %v17648_v21 = vld [vmem:[%s18358_s14 + $0x4c] sm:$0xff]   ;;  %v17650_v23 = vld [vmem:[%s18358_s14 + $0x54] sm:$0xff]   ;;  %v17652_v25 = vld [vmem:[%s18358_s14 + $0x5c] sm:$0xff]  }
  0x1e   : > { %v17653_v26 = vld [vmem:[%s18353_s11 + $0x64] sm:$0xff]   ;;  %v17655_v28 = vld [vmem:[%s18353_s11 + $0x6c] sm:$0xff]   ;;  %v17657_v30 = vld [vmem:[%s18353_s11 + $0x74] sm:$0xff]  }
  0x1f   : > { %15563 = vmatpush3.bf16.msra.mxu0 %v17633_v7  ;;  %15979 = vmatpush3.bf16.msra.mxu1 %v17633_v7  ;;  %v17654_v27 = vld [vmem:[%s18358_s14 + $0x64] sm:$0xff]   ;;  %v17656_v29 = vld [vmem:[%s18358_s14 + $0x6c] sm:$0xff]   ;;  %v17658_v31 = vld [vmem:[%s18358_s14 + $0x74] sm:$0xff]  }
  0x20   : > { %15760 = vmatprep.subr.bf16.mxu0 %v17637_v8  ;;  %16176 = vmatprep.subr.bf16.mxu1 %v17637_v8  ;;  %v17659_v32 = vld [vmem:[%s18353_s11 + $0x7c] sm:$0xff]   ;;  %v17661_v34 = vld [vmem:[%s18353_s11 + $0x84] sm:$0xff]   ;;  %v17663_v36 = vld [vmem:[%s18353_s11 + $0x8c] sm:$0xff]  }
  0x21   : > { %v17660_v33 = vld [vmem:[%s18358_s14 + $0x7c] sm:$0xff]   ;;  %v17662_v35 = vld [vmem:[%s18358_s14 + $0x84] sm:$0xff]   ;;  %v17664_v37 = vld [vmem:[%s18358_s14 + $0x8c] sm:$0xff]  }
  0x22   : > { %15565 = vmatmul.mubr.msk.bf16.vlgmr.msra.gmra.mrb[0].mxu0 %vm1609_vm0, %v17636_v9  ;;  %15981 = vmatmul.mubr.msk.bf16.vlgmr.msra.gmra.mrb[0].mxu1 %vm1609_vm0, %v17638_v10  ;;  %v17665_v38 = vld [vmem:[%s18353_s11 + $0x94] sm:$0xff]   ;;  %v17667_v40 = vld [vmem:[%s18353_s11 + $0x9c] sm:$0xff]   ;;  %v17669_v43 = vld [vmem:[%s18353_s11 + $0xa4] sm:$0xff]  }
  0x23   : > { %15761 = vmatpush3.bf16.msra.mxu0 %v17637_v8  ;;  %16177 = vmatpush3.bf16.msra.mxu1 %v17637_v8  ;;  %v17666_v39 = vld [vmem:[%s18358_s14 + $0x94] sm:$0xff]   ;;  %v17668_v42 = vld [vmem:[%s18358_s14 + $0x9c] sm:$0xff]   ;;  %v17670_v44 = vld [vmem:[%s18358_s14 + $0xa4] sm:$0xff]  }
  0x24   : > { %15568 = vmatprep.mubr.msk.bf16.mxu0 %vm1609_vm0, %v17639_v11  ;;  %15984 = vmatprep.mubr.msk.bf16.mxu1 %vm1609_vm0, %v17640_v12  ;;  %v17672_v45 = vld [vmem:[%s18353_s11 + $0xac] sm:$0xff]   ;;  %v17674_v47 = vld [vmem:[%s18353_s11 + $0xb4] sm:$0xff]   ;;  %v17676_v49 = vld [vmem:[%s18353_s11 + $0xbc] sm:$0xff]  }
  0x25   : > { %15762 = vmatprep.subr.bf16.mxu0 %v17671_v13  ;;  %16178 = vmatprep.subr.bf16.mxu1 %v17671_v13  ;;  %v17673_v46 = vld [vmem:[%s18358_s14 + $0xac] sm:$0xff]   ;;  %v17675_v48 = vld [vmem:[%s18358_s14 + $0xb4] sm:$0xff]   ;;  %v17677_v50 = vld [vmem:[%s18358_s14 + $0xbc] sm:$0xff]  }
  0x26   : > { %v17678_v51 = vld [vmem:[%s18353_s11 + $0xc4] sm:$0xff]   ;;  %v17680_v53 = vld [vmem:[%s18353_s11 + $0xcc] sm:$0xff]   ;;  %v17682_v55 = vld [vmem:[%s18353_s11 + $0xd4] sm:$0xff]  }
  0x27   : > { %15763 = vmatpush3.bf16.msra.mxu0 %v17671_v13  ;;  %16179 = vmatpush3.bf16.msra.mxu1 %v17671_v13  ;;  %v17679_v52 = vld [vmem:[%s18358_s14 + $0xc4] sm:$0xff]   ;;  %v17681_v54 = vld [vmem:[%s18358_s14 + $0xcc] sm:$0xff]   ;;  %v17683_v56 = vld [vmem:[%s18358_s14 + $0xd4] sm:$0xff]  }
  0x28   : > { %15764 = vmatprep.subr.bf16.mxu0 %v17704_v41  ;;  %16180 = vmatprep.subr.bf16.mxu1 %v17704_v41  ;;  %v17684_v57 = vld [vmem:[%s18353_s11 + $0xdc] sm:$0xff]   ;;  %v17686_v60 = vld [vmem:[%s18353_s11 + $0xe4] sm:$0xff]   ;;  %v17688_v62 = vld [vmem:[%s18353_s11 + $0xec] sm:$0xff]  }
  0x29   : > { %v17685_v59 = vld [vmem:[%s18358_s14 + $0xdc] sm:$0xff]   ;;  %v17687_v61 = vld [vmem:[%s18358_s14 + $0xe4] sm:$0xff]   ;;  %v17689_v63 = vld [vmem:[%s18358_s14 + $0xec] sm:$0xff]  }
  0x2a   : > { %15569 = vmatmul.mubr.msk.bf16.gmra.mrb[4].mxu0 %vm1609_vm0, %v17641_v14  ;;  %15985 = vmatmul.mubr.msk.bf16.gmra.mrb[4].mxu1 %vm1609_vm0, %v17642_v15  ;;  %v17690_v0 = vld [vmem:[%s18353_s11 + $0xf4] sm:$0xff]   ;;  %v17692_v2 = vld [vmem:[%s18353_s11 + $0xfc] sm:$0xff]   ;;  %v17694_v4 = vld [vmem:[%s18353_s11 + $0x104] sm:$0xff]  }
  0x2b   : > { %15572 = vmatprep.mubr.msk.bf16.mxu0 %vm1609_vm0, %v17643_v16  ;;  %15988 = vmatprep.mubr.msk.bf16.mxu1 %vm1609_vm0, %v17644_v17  ;;  %v17691_v1 = vld [vmem:[%s18358_s14 + $0xf4] sm:$0xff]   ;;  %v17693_v3 = vld [vmem:[%s18358_s14 + $0xfc] sm:$0xff]   ;;  %v17695_v5 = vld [vmem:[%s18358_s14 + $0x104] sm:$0xff]  }
  0x2c   : > { %15765 = vmatpush3.bf16.msra.mxu0 %v17704_v41  ;;  %16181 = vmatpush3.bf16.msra.mxu1 %v17704_v41  ;;  %v17696_v6 = vld [vmem:[%s18353_s11 + $0x10c] sm:$0xff]   ;;  %v17698_v8 = vld [vmem:[%s18353_s11 + $0x114] sm:$0xff]   ;;  %v17700_v10 = vld [vmem:[%s18353_s11 + $0x11c] sm:$0xff]  }
  0x2d   : > { %15766 = vmatprep.subr.bf16.mxu0 %v17737_v58  ;;  %16182 = vmatprep.subr.bf16.mxu1 %v17737_v58  ;;  %v17697_v7 = vld [vmem:[%s18358_s14 + $0x10c] sm:$0xff]   ;;  %v17699_v9 = vld [vmem:[%s18358_s14 + $0x114] sm:$0xff]   ;;  %v17701_v11 = vld [vmem:[%s18358_s14 + $0x11c] sm:$0xff]  }
  0x2e   : > { %v17702_v12 = vld [vmem:[%s18353_s11 + $0x124] sm:$0xff]   ;;  %v17705_v14 = vld [vmem:[%s18353_s11 + $0x12c] sm:$0xff]   ;;  %v17707_v17 = vld [vmem:[%s18353_s11 + $0x134] sm:$0xff]  }
  0x2f   : > { %v17703_v13 = vld [vmem:[%s18358_s14 + $0x124] sm:$0xff]   ;;  %v17706_v15 = vld [vmem:[%s18358_s14 + $0x12c] sm:$0xff]   ;;  %v17731_v41 = vld [vmem:[%s18353_s11 + $0x194] sm:$0xff]  }
  0x30   : > { %15767 = vmatpush3.bf16.msra.mxu0 %v17737_v58  ;;  %16183 = vmatpush3.bf16.msra.mxu1 %v17737_v58  ;;  %v17770_v16 = vld [vmem:[%s20082_s2 + $0x20] sm:$0xff]   ;;  %v17748_v58 = vld [vmem:[%s18353_s11 + $0x1d4] sm:$0xff]  }
  0x31   : > { %15768 = vmatprep.subr.bf16.mxu0 %v17770_v16  ;;  %16184 = vmatprep.subr.bf16.mxu1 %v17770_v16 }
  0x32   : > { %15573 = vmatmul.mubr.msk.bf16.gmra.mrb[8].mxu0 %vm1609_vm0, %v17645_v18  ;;  %15989 = vmatmul.mubr.msk.bf16.gmra.mrb[8].mxu1 %vm1609_vm0, %v17646_v19  ;;  %v17708_v18 = vld [vmem:[%s18358_s14 + $0x134] sm:$0xff]   ;;  %v17709_v19 = vld [vmem:[%s18353_s11 + $0x13c] sm:$0xff]  }
  0x33   : > { %15576 = vmatprep.mubr.msk.bf16.mxu0 %vm1609_vm0, %v17647_v20  ;;  %15992 = vmatprep.mubr.msk.bf16.mxu1 %vm1609_vm0, %v17648_v21  ;;  %v17710_v20 = vld [vmem:[%s18358_s14 + $0x13c] sm:$0xff]   ;;  %v17711_v21 = vld [vmem:[%s18353_s11 + $0x144] sm:$0xff]  }
  0x34   : > { %15769 = vmatpush3.bf16.msra.mxu0 %v17770_v16  ;;  %16185 = vmatpush3.bf16.msra.mxu1 %v17770_v16  ;;  %v17771_v16 = vld [vmem:[%s18353_s11 + $0x22c] sm:$0xff]  }
  0x3a   : > { %15577 = vmatmul.mubr.msk.bf16.gmra.mrb[12].mxu0 %vm1609_vm0, %v17649_v22  ;;  %15993 = vmatmul.mubr.msk.bf16.gmra.mrb[12].mxu1 %vm1609_vm0, %v17650_v23  ;;  %v17712_v22 = vld [vmem:[%s18358_s14 + $0x144] sm:$0xff]   ;;  %v17713_v23 = vld [vmem:[%s18353_s11 + $0x14c] sm:$0xff]  }
  0x3b   : > { %15580 = vmatprep.mubr.msk.bf16.mxu0 %vm1609_vm0, %v17651_v24  ;;  %15996 = vmatprep.mubr.msk.bf16.mxu1 %vm1609_vm0, %v17652_v25  ;;  %v17714_v24 = vld [vmem:[%s18358_s14 + $0x14c] sm:$0xff]   ;;  %v17715_v25 = vld [vmem:[%s18353_s11 + $0x154] sm:$0xff]  }
  0x42   : > { %15581 = vmatmul.mubr.msk.bf16.gmra.mrb[16].mxu0 %vm1609_vm0, %v17653_v26  ;;  %15997 = vmatmul.mubr.msk.bf16.gmra.mrb[16].mxu1 %vm1609_vm0, %v17654_v27  ;;  %v17716_v26 = vld [vmem:[%s18358_s14 + $0x154] sm:$0xff]   ;;  %v17717_v27 = vld [vmem:[%s18353_s11 + $0x15c] sm:$0xff]  }
  0x43   : > { %15584 = vmatprep.mubr.msk.bf16.mxu0 %vm1609_vm0, %v17655_v28  ;;  %16000 = vmatprep.mubr.msk.bf16.mxu1 %vm1609_vm0, %v17656_v29  ;;  %v17718_v28 = vld [vmem:[%s18358_s14 + $0x15c] sm:$0xff]   ;;  %v17719_v29 = vld [vmem:[%s18353_s11 + $0x164] sm:$0xff]  }
  0x4a   : > { %15585 = vmatmul.mubr.msk.bf16.gmra.mrb[20].mxu0 %vm1609_vm0, %v17657_v30  ;;  %16001 = vmatmul.mubr.msk.bf16.gmra.mrb[20].mxu1 %vm1609_vm0, %v17658_v31  ;;  %v17720_v30 = vld [vmem:[%s18358_s14 + $0x164] sm:$0xff]   ;;  %v17721_v31 = vld [vmem:[%s18353_s11 + $0x16c] sm:$0xff]  }
  0x4b   : > { %15588 = vmatprep.mubr.msk.bf16.mxu0 %vm1609_vm0, %v17659_v32  ;;  %16004 = vmatprep.mubr.msk.bf16.mxu1 %vm1609_vm0, %v17660_v33  ;;  %v17722_v32 = vld [vmem:[%s18358_s14 + $0x16c] sm:$0xff]   ;;  %v17723_v33 = vld [vmem:[%s18353_s11 + $0x174] sm:$0xff]  }
  0x52   : > { %15589 = vmatmul.mubr.msk.bf16.gmra.mrb[24].mxu0 %vm1609_vm0, %v17661_v34  ;;  %16005 = vmatmul.mubr.msk.bf16.gmra.mrb[24].mxu1 %vm1609_vm0, %v17662_v35  ;;  %v17724_v34 = vld [vmem:[%s18358_s14 + $0x174] sm:$0xff]   ;;  %v17725_v35 = vld [vmem:[%s18353_s11 + $0x17c] sm:$0xff]  }
  0x53   : > { %15592 = vmatprep.mubr.msk.bf16.mxu0 %vm1609_vm0, %v17663_v36  ;;  %16008 = vmatprep.mubr.msk.bf16.mxu1 %vm1609_vm0, %v17664_v37  ;;  %v17726_v36 = vld [vmem:[%s18358_s14 + $0x17c] sm:$0xff]   ;;  %v17727_v37 = vld [vmem:[%s18353_s11 + $0x184] sm:$0xff]  }
  0x5a   : > { %15593 = vmatmul.mubr.msk.bf16.gmra.mrb[28].mxu0 %vm1609_vm0, %v17665_v38  ;;  %16009 = vmatmul.mubr.msk.bf16.gmra.mrb[28].mxu1 %vm1609_vm0, %v17666_v39  ;;  %v17728_v38 = vld [vmem:[%s18358_s14 + $0x184] sm:$0xff]   ;;  %v17729_v39 = vld [vmem:[%s18353_s11 + $0x18c] sm:$0xff]  }
  0x5b   : > { %15596 = vmatprep.mubr.msk.bf16.mxu0 %vm1609_vm0, %v17667_v40  ;;  %16012 = vmatprep.mubr.msk.bf16.mxu1 %vm1609_vm0, %v17668_v42  ;;  %v17730_v40 = vld [vmem:[%s18358_s14 + $0x18c] sm:$0xff]   ;;  %v17732_v42 = vld [vmem:[%s18358_s14 + $0x194] sm:$0xff]  }
  0x62   : > { %15597 = vmatmul.mubr.msk.bf16.gmra.mrb[32].mxu0 %vm1609_vm0, %v17669_v43  ;;  %16013 = vmatmul.mubr.msk.bf16.gmra.mrb[32].mxu1 %vm1609_vm0, %v17670_v44  ;;  %v17733_v43 = vld [vmem:[%s18353_s11 + $0x19c] sm:$0xff]  }
  0x63   : > { %15600 = vmatprep.mubr.msk.bf16.mxu0 %vm1609_vm0, %v17672_v45  ;;  %16016 = vmatprep.mubr.msk.bf16.mxu1 %vm1609_vm0, %v17673_v46  ;;  %v17734_v44 = vld [vmem:[%s18358_s14 + $0x19c] sm:$0xff]   ;;  %v17735_v45 = vld [vmem:[%s18353_s11 + $0x1a4] sm:$0xff]  }
  0x64   : > { %v17736_v46 = vld [vmem:[%s18358_s14 + $0x1a4] sm:$0xff]  }
  0x6a   : > { %15601 = vmatmul.mubr.msk.bf16.gmra.mrb[36].mxu0 %vm1609_vm0, %v17674_v47  ;;  %16017 = vmatmul.mubr.msk.bf16.gmra.mrb[36].mxu1 %vm1609_vm0, %v17675_v48  ;;  %v17738_v47 = vld [vmem:[%s18353_s11 + $0x1ac] sm:$0xff]  }
  0x6b   : > { %15604 = vmatprep.mubr.msk.bf16.mxu0 %vm1609_vm0, %v17676_v49  ;;  %16020 = vmatprep.mubr.msk.bf16.mxu1 %vm1609_vm0, %v17677_v50  ;;  %v17739_v48 = vld [vmem:[%s18358_s14 + $0x1ac] sm:$0xff]   ;;  %v17740_v50 = vld [vmem:[%s18353_s11 + $0x1b4] sm:$0xff]  }
  0x6c   : > { %v17804_v49 = vld [vmem:[%s20082_s2 + $0x28] sm:$0xff]  }
  0x6d   : > { %15770 = vmatprep.subr.bf16.mxu0 %v17804_v49  ;;  %16186 = vmatprep.subr.bf16.mxu1 %v17804_v49 }
  0x6e   : > { %15771 = vmatpush3.bf16.msra.mxu0 %v17804_v49  ;;  %16187 = vmatpush3.bf16.msra.mxu1 %v17804_v49  ;;  %v17803_v49 = vld [vmem:[%s18353_s11 + $0x2ac] sm:$0xff]  }
  0x72   : > { %15605 = vmatmul.mubr.msk.bf16.gmra.mrb[40].mxu0 %vm1609_vm0, %v17678_v51  ;;  %16021 = vmatmul.mubr.msk.bf16.gmra.mrb[40].mxu1 %vm1609_vm0, %v17679_v52  ;;  %v17741_v51 = vld [vmem:[%s18358_s14 + $0x1b4] sm:$0xff]   ;;  %v17742_v52 = vld [vmem:[%s18353_s11 + $0x1bc] sm:$0xff]  }
  0x73   : > { %15608 = vmatprep.mubr.msk.bf16.mxu0 %vm1609_vm0, %v17680_v53  ;;  %16024 = vmatprep.mubr.msk.bf16.mxu1 %vm1609_vm0, %v17681_v54  ;;  %v17743_v53 = vld [vmem:[%s18358_s14 + $0x1bc] sm:$0xff]   ;;  %v17744_v54 = vld [vmem:[%s18353_s11 + $0x1c4] sm:$0xff]  }
  0x7a   : > { %15609 = vmatmul.mubr.msk.bf16.gmra.mrb[44].mxu0 %vm1609_vm0, %v17682_v55  ;;  %16025 = vmatmul.mubr.msk.bf16.gmra.mrb[44].mxu1 %vm1609_vm0, %v17683_v56  ;;  %v17745_v55 = vld [vmem:[%s18358_s14 + $0x1c4] sm:$0xff]   ;;  %v17746_v56 = vld [vmem:[%s18353_s11 + $0x1cc] sm:$0xff]  }
  0x7b   : > { %15612 = vmatprep.mubr.msk.bf16.mxu0 %vm1609_vm0, %v17684_v57  ;;  %16028 = vmatprep.mubr.msk.bf16.mxu1 %vm1609_vm0, %v17685_v59  ;;  %v17747_v57 = vld [vmem:[%s18358_s14 + $0x1cc] sm:$0xff]   ;;  %v17749_v59 = vld [vmem:[%s18358_s14 + $0x1d4] sm:$0xff]  }
  0x82   : > { %15613 = vmatmul.mubr.msk.bf16.gmra.mrb[48].mxu0 %vm1609_vm0, %v17686_v60  ;;  %16029 = vmatmul.mubr.msk.bf16.gmra.mrb[48].mxu1 %vm1609_vm0, %v17687_v61  ;;  %v17750_v60 = vld [vmem:[%s18353_s11 + $0x1dc] sm:$0xff]  }
  0x83   : > { %15616 = vmatprep.mubr.msk.bf16.mxu0 %vm1609_vm0, %v17688_v62  ;;  %16032 = vmatprep.mubr.msk.bf16.mxu1 %vm1609_vm0, %v17689_v63  ;;  %v17751_v61 = vld [vmem:[%s18358_s14 + $0x1dc] sm:$0xff]   ;;  %v17752_v62 = vld [vmem:[%s18353_s11 + $0x1e4] sm:$0xff]  }
  0x84   : > { %v17753_v63 = vld [vmem:[%s18358_s14 + $0x1e4] sm:$0xff]  }
  0x8a   : > { %15617 = vmatmul.mubr.msk.bf16.gmra.mrb[52].mxu0 %vm1609_vm0, %v17690_v0  ;;  %16033 = vmatmul.mubr.msk.bf16.gmra.mrb[52].mxu1 %vm1609_vm0, %v17691_v1  ;;  %v17754_v0 = vld [vmem:[%s18353_s11 + $0x1ec] sm:$0xff]  }
  0x8b   : > { %15620 = vmatprep.mubr.msk.bf16.mxu0 %vm1609_vm0, %v17692_v2  ;;  %16036 = vmatprep.mubr.msk.bf16.mxu1 %vm1609_vm0, %v17693_v3  ;;  %v17755_v1 = vld [vmem:[%s18358_s14 + $0x1ec] sm:$0xff]   ;;  %v17756_v2 = vld [vmem:[%s18353_s11 + $0x1f4] sm:$0xff]  }
  0x8c   : > { %v17757_v3 = vld [vmem:[%s18358_s14 + $0x1f4] sm:$0xff]  }
  0x92   : > { %15621 = vmatmul.mubr.msk.bf16.gmra.mrb[56].mxu0 %vm1609_vm0, %v17694_v4  ;;  %16037 = vmatmul.mubr.msk.bf16.gmra.mrb[56].mxu1 %vm1609_vm0, %v17695_v5  ;;  %v17758_v4 = vld [vmem:[%s18353_s11 + $0x1fc] sm:$0xff]  }
  0x93   : > { %15624 = vmatprep.mubr.msk.bf16.mxu0 %vm1609_vm0, %v17696_v6  ;;  %16040 = vmatprep.mubr.msk.bf16.mxu1 %vm1609_vm0, %v17697_v7  ;;  %v17759_v5 = vld [vmem:[%s18358_s14 + $0x1fc] sm:$0xff]   ;;  %v17760_v6 = vld [vmem:[%s18353_s11 + $0x204] sm:$0xff]  }
  0x94   : > { %v17761_v7 = vld [vmem:[%s18358_s14 + $0x204] sm:$0xff]  }
  0x9a   : > { %15625 = vmatmul.mubr.msk.bf16.gmra.mrb[60].mxu0 %vm1609_vm0, %v17698_v8  ;;  %16041 = vmatmul.mubr.msk.bf16.gmra.mrb[60].mxu1 %vm1609_vm0, %v17699_v9  ;;  %v17762_v8 = vld [vmem:[%s18353_s11 + $0x20c] sm:$0xff]  }
  0x9b   : > { %15628 = vmatprep.mubr.msk.bf16.mxu0 %vm1609_vm0, %v17700_v10  ;;  %16044 = vmatprep.mubr.msk.bf16.mxu1 %vm1609_vm0, %v17701_v11  ;;  %v17763_v9 = vld [vmem:[%s18358_s14 + $0x20c] sm:$0xff]   ;;  %v17764_v10 = vld [vmem:[%s18353_s11 + $0x214] sm:$0xff]  }
  0x9c   : > { %v17765_v11 = vld [vmem:[%s18358_s14 + $0x214] sm:$0xff]  }
  0xa2   : > { %15629 = vmatmul.mubr.msk.bf16.gmra.mrb[64].mxu0 %vm1609_vm0, %v17702_v12  ;;  %16045 = vmatmul.mubr.msk.bf16.gmra.mrb[64].mxu1 %vm1609_vm0, %v17703_v13  ;;  %v17766_v12 = vld [vmem:[%s18353_s11 + $0x21c] sm:$0xff]  }
  0xa3   : > { %15632 = vmatprep.mubr.msk.bf16.mxu0 %vm1609_vm0, %v17705_v14  ;;  %16048 = vmatprep.mubr.msk.bf16.mxu1 %vm1609_vm0, %v17706_v15  ;;  %v17767_v13 = vld [vmem:[%s18358_s14 + $0x21c] sm:$0xff]   ;;  %v17768_v14 = vld [vmem:[%s18353_s11 + $0x224] sm:$0xff]  }
  0xa4   : > { %v17769_v15 = vld [vmem:[%s18358_s14 + $0x224] sm:$0xff]  }
  0xaa   : > { %15633 = vmatmul.mubr.msk.bf16.gmra.mrb[68].mxu0 %vm1609_vm0, %v17707_v17  ;;  %16049 = vmatmul.mubr.msk.bf16.gmra.mrb[68].mxu1 %vm1609_vm0, %v17708_v18  ;;  %v17772_v17 = vld [vmem:[%s18358_s14 + $0x22c] sm:$0xff]   ;;  %v17773_v18 = vld [vmem:[%s18353_s11 + $0x234] sm:$0xff]  }
  0xab   : > { %15636 = vmatprep.mubr.msk.bf16.mxu0 %vm1609_vm0, %v17709_v19  ;;  %16052 = vmatprep.mubr.msk.bf16.mxu1 %vm1609_vm0, %v17710_v20  ;;  %v17774_v19 = vld [vmem:[%s18358_s14 + $0x234] sm:$0xff]   ;;  %v17775_v20 = vld [vmem:[%s18353_s11 + $0x23c] sm:$0xff]  }
  0xb2   : > { %15637 = vmatmul.mubr.msk.bf16.gmra.mrb[72].mxu0 %vm1609_vm0, %v17711_v21  ;;  %16053 = vmatmul.mubr.msk.bf16.gmra.mrb[72].mxu1 %vm1609_vm0, %v17712_v22  ;;  %v17776_v21 = vld [vmem:[%s18358_s14 + $0x23c] sm:$0xff]  }
  0xb3   : > { %15640 = vmatprep.mubr.msk.bf16.mxu0 %vm1609_vm0, %v17713_v23  ;;  %16056 = vmatprep.mubr.msk.bf16.mxu1 %vm1609_vm0, %v17714_v24  ;;  %v18661_v22 = vld [vmem:[%s20082_s2 + $0x60] sm:$0xff]  }
  0xb4   : > { %v17777_v23 = vld [vmem:[%s18353_s11 + $0x244] sm:$0xff]   ;;  %16384 = vmatprep.subr.bf16.mxu0 %v18661_v22  ;;  %16592 = vmatprep.subr.bf16.mxu1 %v18661_v22 }
  0xb5   : > { %v17778_v24 = vld [vmem:[%s18358_s14 + $0x244] sm:$0xff]  }
  0xba   : > { %15641 = vmatmul.mubr.msk.bf16.gmra.mrb[76].mxu0 %vm1609_vm0, %v17715_v25  ;;  %16057 = vmatmul.mubr.msk.bf16.gmra.mrb[76].mxu1 %vm1609_vm0, %v17716_v26  ;;  %v17779_v25 = vld [vmem:[%s18353_s11 + $0x24c] sm:$0xff]  }
  0xbb   : > { %15644 = vmatprep.mubr.msk.bf16.mxu0 %vm1609_vm0, %v17717_v27  ;;  %16060 = vmatprep.mubr.msk.bf16.mxu1 %vm1609_vm0, %v17718_v28  ;;  %v17780_v26 = vld [vmem:[%s18358_s14 + $0x24c] sm:$0xff]   ;;  %v17781_v27 = vld [vmem:[%s18353_s11 + $0x254] sm:$0xff]  }
  0xbc   : > { %v17782_v28 = vld [vmem:[%s18358_s14 + $0x254] sm:$0xff]  }
  0xc2   : > { %15645 = vmatmul.mubr.msk.bf16.gmra.mrb[80].mxu0 %vm1609_vm0, %v17719_v29  ;;  %16061 = vmatmul.mubr.msk.bf16.gmra.mrb[80].mxu1 %vm1609_vm0, %v17720_v30  ;;  %v17783_v29 = vld [vmem:[%s18353_s11 + $0x25c] sm:$0xff]  }
  0xc3   : > { %15648 = vmatprep.mubr.msk.bf16.mxu0 %vm1609_vm0, %v17721_v31  ;;  %16064 = vmatprep.mubr.msk.bf16.mxu1 %vm1609_vm0, %v17722_v32  ;;  %v17784_v30 = vld [vmem:[%s18358_s14 + $0x25c] sm:$0xff]   ;;  %v17785_v31 = vld [vmem:[%s18353_s11 + $0x264] sm:$0xff]  }
  0xc4   : > { %v17786_v32 = vld [vmem:[%s18358_s14 + $0x264] sm:$0xff]  }
  0xca   : > { %15649 = vmatmul.mubr.msk.bf16.gmra.mrb[84].mxu0 %vm1609_vm0, %v17723_v33  ;;  %16065 = vmatmul.mubr.msk.bf16.gmra.mrb[84].mxu1 %vm1609_vm0, %v17724_v34  ;;  %v17787_v33 = vld [vmem:[%s18353_s11 + $0x26c] sm:$0xff]  }
  0xcb   : > { %15652 = vmatprep.mubr.msk.bf16.mxu0 %vm1609_vm0, %v17725_v35  ;;  %16068 = vmatprep.mubr.msk.bf16.mxu1 %vm1609_vm0, %v17726_v36  ;;  %v17788_v34 = vld [vmem:[%s18358_s14 + $0x26c] sm:$0xff]   ;;  %v17789_v35 = vld [vmem:[%s18353_s11 + $0x274] sm:$0xff]  }
  0xcc   : > { %v17790_v36 = vld [vmem:[%s18358_s14 + $0x274] sm:$0xff]  }
  0xd2   : > { %15653 = vmatmul.mubr.msk.bf16.gmra.mrb[88].mxu0 %vm1609_vm0, %v17727_v37  ;;  %16069 = vmatmul.mubr.msk.bf16.gmra.mrb[88].mxu1 %vm1609_vm0, %v17728_v38  ;;  %v17791_v37 = vld [vmem:[%s18353_s11 + $0x27c] sm:$0xff]  }
  0xd3   : > { %15656 = vmatprep.mubr.msk.bf16.mxu0 %vm1609_vm0, %v17729_v39  ;;  %16072 = vmatprep.mubr.msk.bf16.mxu1 %vm1609_vm0, %v17730_v40  ;;  %v17792_v38 = vld [vmem:[%s18358_s14 + $0x27c] sm:$0xff]   ;;  %v17793_v39 = vld [vmem:[%s18353_s11 + $0x284] sm:$0xff]  }
  0xd4   : > { %v17794_v40 = vld [vmem:[%s18358_s14 + $0x284] sm:$0xff]  }
  0xda   : > { %15657 = vmatmul.mubr.msk.bf16.gmra.mrb[92].mxu0 %vm1609_vm0, %v17731_v41  ;;  %16073 = vmatmul.mubr.msk.bf16.gmra.mrb[92].mxu1 %vm1609_vm0, %v17732_v42  ;;  %v17795_v41 = vld [vmem:[%s18353_s11 + $0x28c] sm:$0xff]  }
  0xdb   : > { %15660 = vmatprep.mubr.msk.bf16.mxu0 %vm1609_vm0, %v17733_v43  ;;  %16076 = vmatprep.mubr.msk.bf16.mxu1 %vm1609_vm0, %v17734_v44  ;;  %v17796_v42 = vld [vmem:[%s18358_s14 + $0x28c] sm:$0xff]   ;;  %v17797_v43 = vld [vmem:[%s18353_s11 + $0x294] sm:$0xff]  }
  0xdc   : > { %v17798_v44 = vld [vmem:[%s18358_s14 + $0x294] sm:$0xff]  }
  0xe2   : > { %15661 = vmatmul.mubr.msk.bf16.gmra.mrb[96].mxu0 %vm1609_vm0, %v17735_v45  ;;  %16077 = vmatmul.mubr.msk.bf16.gmra.mrb[96].mxu1 %vm1609_vm0, %v17736_v46  ;;  %v17799_v45 = vld [vmem:[%s18353_s11 + $0x29c] sm:$0xff]  }
  0xe3   : > { %15664 = vmatprep.mubr.msk.bf16.mxu0 %vm1609_vm0, %v17738_v47  ;;  %16080 = vmatprep.mubr.msk.bf16.mxu1 %vm1609_vm0, %v17739_v48  ;;  %v17800_v46 = vld [vmem:[%s18358_s14 + $0x29c] sm:$0xff]   ;;  %v17801_v47 = vld [vmem:[%s18353_s11 + $0x2a4] sm:$0xff]  }
  0xe4   : > { %v17802_v48 = vld [vmem:[%s18358_s14 + $0x2a4] sm:$0xff]  }
  0xea   : > { %15665 = vmatmul.mubr.msk.bf16.gmra.mrb[100].mxu0 %vm1609_vm0, %v17740_v50  ;;  %16081 = vmatmul.mubr.msk.bf16.gmra.mrb[100].mxu1 %vm1609_vm0, %v17741_v51  ;;  %v17805_v50 = vld [vmem:[%s18358_s14 + $0x2ac] sm:$0xff]   ;;  %v17806_v51 = vld [vmem:[%s18353_s11 + $0x2b4] sm:$0xff]  }
  0xeb   : > { %15668 = vmatprep.mubr.msk.bf16.mxu0 %vm1609_vm0, %v17742_v52  ;;  %16084 = vmatprep.mubr.msk.bf16.mxu1 %vm1609_vm0, %v17743_v53  ;;  %v17807_v52 = vld [vmem:[%s18358_s14 + $0x2b4] sm:$0xff]   ;;  %v17808_v53 = vld [vmem:[%s18353_s11 + $0x2bc] sm:$0xff]  }
  0xf2   : > { %15669 = vmatmul.mubr.msk.bf16.gmra.mrb[104].mxu0 %vm1609_vm0, %v17744_v54  ;;  %16085 = vmatmul.mubr.msk.bf16.gmra.mrb[104].mxu1 %vm1609_vm0, %v17745_v55  ;;  %v17809_v54 = vld [vmem:[%s18358_s14 + $0x2bc] sm:$0xff]   ;;  %v17810_v55 = vld [vmem:[%s18353_s11 + $0x2c4] sm:$0xff]  }
  0xf3   : > { %15672 = vmatprep.mubr.msk.bf16.mxu0 %vm1609_vm0, %v17746_v56  ;;  %16088 = vmatprep.mubr.msk.bf16.mxu1 %vm1609_vm0, %v17747_v57  ;;  %v17811_v56 = vld [vmem:[%s18358_s14 + $0x2c4] sm:$0xff]   ;;  %v17812_v57 = vld [vmem:[%s18353_s11 + $0x2cc] sm:$0xff]  }
  0xfa   : > { %15673 = vmatmul.mubr.msk.bf16.gmra.mrb[108].mxu0 %vm1609_vm0, %v17748_v58  ;;  %16089 = vmatmul.mubr.msk.bf16.gmra.mrb[108].mxu1 %vm1609_vm0, %v17749_v59  ;;  %v17813_v58 = vld [vmem:[%s18358_s14 + $0x2cc] sm:$0xff]   ;;  %v17814_v59 = vld [vmem:[%s18353_s11 + $0x2d4] sm:$0xff]  }
  0xfb   : > { %15676 = vmatprep.mubr.msk.bf16.mxu0 %vm1609_vm0, %v17750_v60  ;;  %16092 = vmatprep.mubr.msk.bf16.mxu1 %vm1609_vm0, %v17751_v61  ;;  %v17815_v60 = vld [vmem:[%s18358_s14 + $0x2d4] sm:$0xff]   ;;  %v17816_v61 = vld [vmem:[%s18353_s11 + $0x2dc] sm:$0xff]  }
 0x102   : > { %15677 = vmatmul.mubr.msk.bf16.gmra.mrb[112].mxu0 %vm1609_vm0, %v17752_v62  ;;  %16093 = vmatmul.mubr.msk.bf16.gmra.mrb[112].mxu1 %vm1609_vm0, %v17753_v63  ;;  %v17817_v62 = vld [vmem:[%s18358_s14 + $0x2dc] sm:$0xff]   ;;  %v17818_v63 = vld [vmem:[%s18353_s11 + $0x2e4] sm:$0xff]  }
 0x103   : > { %15680 = vmatprep.mubr.msk.bf16.mxu0 %vm1609_vm0, %v17754_v0  ;;  %16096 = vmatprep.mubr.msk.bf16.mxu1 %vm1609_vm0, %v17755_v1  ;;  %v17819_v0 = vld [vmem:[%s18358_s14 + $0x2e4] sm:$0xff]   ;;  %v17820_v1 = vld [vmem:[%s18353_s11 + $0x2ec] sm:$0xff]  }
 0x10a   : > { %15681 = vmatmul.mubr.msk.bf16.gmra.mrb[116].mxu0 %vm1609_vm0, %v17756_v2  ;;  %16097 = vmatmul.mubr.msk.bf16.gmra.mrb[116].mxu1 %vm1609_vm0, %v17757_v3  ;;  %v17821_v2 = vld [vmem:[%s18358_s14 + $0x2ec] sm:$0xff]   ;;  %v17822_v3 = vld [vmem:[%s18353_s11 + $0x2f4] sm:$0xff]  }
 0x10b   : > { %15684 = vmatprep.mubr.msk.bf16.mxu0 %vm1609_vm0, %v17758_v4  ;;  %16100 = vmatprep.mubr.msk.bf16.mxu1 %vm1609_vm0, %v17759_v5  ;;  %v17823_v4 = vld [vmem:[%s18358_s14 + $0x2f4] sm:$0xff]   ;;  %v17824_v5 = vld [vmem:[%s18353_s11 + $0x2fc] sm:$0xff]  }
 0x112   : > { %15685 = vmatmul.mubr.msk.bf16.gmra.mrb[120].mxu0 %vm1609_vm0, %v17760_v6  ;;  %16101 = vmatmul.mubr.msk.bf16.gmra.mrb[120].mxu1 %vm1609_vm0, %v17761_v7  ;;  %v17825_v6 = vld [vmem:[%s18358_s14 + $0x2fc] sm:$0xff]   ;;  %v17826_v7 = vld [vmem:[%s18353_s11 + $0x304] sm:$0xff]  }
 0x113   : > { %15688 = vmatprep.mubr.msk.bf16.mxu0 %vm1609_vm0, %v17762_v8  ;;  %16104 = vmatprep.mubr.msk.bf16.mxu1 %vm1609_vm0, %v17763_v9  ;;  %v17827_v8 = vld [vmem:[%s18358_s14 + $0x304] sm:$0xff]   ;;  %v17828_v9 = vld [vmem:[%s18353_s11 + $0x30c] sm:$0xff]  }
 0x11a   : > { %15689 = vmatmul.mubr.msk.bf16.gmra.mrb[124].mxu0 %vm1609_vm0, %v17764_v10  ;;  %16105 = vmatmul.mubr.msk.bf16.gmra.mrb[124].mxu1 %vm1609_vm0, %v17765_v11  ;;  %v17829_v10 = vld [vmem:[%s18358_s14 + $0x30c] sm:$0xff]   ;;  %v17830_v11 = vld [vmem:[%s18353_s11 + $0x314] sm:$0xff]  }
 0x11b   : > { %15692 = vmatprep.mubr.msk.bf16.mxu0 %vm1609_vm0, %v17766_v12  ;;  %16108 = vmatprep.mubr.msk.bf16.mxu1 %vm1609_vm0, %v17767_v13  ;;  %v17831_v12 = vld [vmem:[%s18358_s14 + $0x314] sm:$0xff]   ;;  %v17832_v13 = vld [vmem:[%s18353_s11 + $0x31c] sm:$0xff]  }
 0x122   : > { %15693 = vmatmul.mubr.msk.bf16.gmra.mrb[128].mxu0 %vm1609_vm0, %v17768_v14  ;;  %16109 = vmatmul.mubr.msk.bf16.gmra.mrb[128].mxu1 %vm1609_vm0, %v17769_v15  ;;  %v17833_v14 = vld [vmem:[%s18358_s14 + $0x31c] sm:$0xff]   ;;  %v17834_v15 = vld [vmem:[%s18353_s11 + $0x324] sm:$0xff]  }
 0x123   : > { %15696 = vmatprep.mubr.msk.bf16.mxu0 %vm1609_vm0, %v17771_v16  ;;  %16112 = vmatprep.mubr.msk.bf16.mxu1 %vm1609_vm0, %v17772_v17  ;;  %v17835_v16 = vld [vmem:[%s18358_s14 + $0x324] sm:$0xff]  }
 0x124   : > { %v17836_v17 = vld [vmem:[%s18353_s11] sm:$0xff]  }
 0x12a   : > { %15697 = vmatmul.mubr.msk.bf16.gmra.mrb[132].mxu0 %vm1609_vm0, %v17773_v18  ;;  %16113 = vmatmul.mubr.msk.bf16.gmra.mrb[132].mxu1 %vm1609_vm0, %v17774_v19  ;;  %v17837_v18 = vld [vmem:[%s18358_s14] sm:$0xff]   ;;  %v17838_v19 = vld [vmem:[%s18353_s11 + $0x8] sm:$0xff]  }
 0x12b   : > { %15700 = vmatprep.mubr.msk.bf16.mxu0 %vm1609_vm0, %v17775_v20  ;;  %16116 = vmatprep.mubr.msk.bf16.mxu1 %vm1609_vm0, %v17776_v21  ;;  %v17839_v20 = vld [vmem:[%s18358_s14 + $0x8] sm:$0xff]   ;;  %v17841_v21 = vld [vmem:[%s18353_s11 + $0x10] sm:$0xff]  }
 0x132   : > { %15701 = vmatmul.mubr.msk.bf16.gmra.mrb[136].mxu0 %vm1609_vm0, %v17777_v23  ;;  %16117 = vmatmul.mubr.msk.bf16.gmra.mrb[136].mxu1 %vm1609_vm0, %v17778_v24  ;;  %v17842_v23 = vld [vmem:[%s18358_s14 + $0x10] sm:$0xff]   ;;  %v17873_v24 = vld [vmem:[%s20082_s2 + $0x68] sm:$0xff]  }
 0x133   : > { %15704 = vmatprep.mubr.msk.bf16.mxu0 %vm1609_vm0, %v17779_v25  ;;  %16120 = vmatprep.mubr.msk.bf16.mxu1 %vm1609_vm0, %v17780_v26  ;;  %v17906_v25 = vld [vmem:[%s20082_s2 + $0x70] sm:$0xff]   ;;  %v17843_v26 = vld [vmem:[%s18353_s11 + $0x18] sm:$0xff]  }
 0x13a   : > { %15705 = vmatmul.mubr.msk.bf16.gmra.mrb[140].mxu0 %vm1609_vm0, %v17781_v27  ;;  %16121 = vmatmul.mubr.msk.bf16.gmra.mrb[140].mxu1 %vm1609_vm0, %v17782_v28  ;;  %v17844_v27 = vld [vmem:[%s18358_s14 + $0x18] sm:$0xff]   ;;  %v17845_v28 = vld [vmem:[%s18353_s11 + $0x20] sm:$0xff]  }
 0x13b   : > { %15708 = vmatprep.mubr.msk.bf16.mxu0 %vm1609_vm0, %v17783_v29  ;;  %16124 = vmatprep.mubr.msk.bf16.mxu1 %vm1609_vm0, %v17784_v30  ;;  %v17846_v29 = vld [vmem:[%s18358_s14 + $0x20] sm:$0xff]   ;;  %v17848_v30 = vld [vmem:[%s18358_s14 + $0x28] sm:$0xff]  }
 0x142   : > { %15709 = vmatmul.mubr.msk.bf16.gmra.mrb[144].mxu0 %vm1609_vm0, %v17785_v31  ;;  %16125 = vmatmul.mubr.msk.bf16.gmra.mrb[144].mxu1 %vm1609_vm0, %v17786_v32  ;;  %v17849_v31 = vld [vmem:[%s18353_s11 + $0x30] sm:$0xff]  }
 0x143   : > { %15712 = vmatprep.mubr.msk.bf16.mxu0 %vm1609_vm0, %v17787_v33  ;;  %16128 = vmatprep.mubr.msk.bf16.mxu1 %vm1609_vm0, %v17788_v34  ;;  %v17850_v32 = vld [vmem:[%s18358_s14 + $0x30] sm:$0xff]   ;;  %v17851_v33 = vld [vmem:[%s18353_s11 + $0x38] sm:$0xff]  }
 0x144   : > { %v17852_v34 = vld [vmem:[%s18358_s14 + $0x38] sm:$0xff]  }
 0x14a   : > { %15713 = vmatmul.mubr.msk.bf16.gmra.mrb[148].mxu0 %vm1609_vm0, %v17789_v35  ;;  %16129 = vmatmul.mubr.msk.bf16.gmra.mrb[148].mxu1 %vm1609_vm0, %v17790_v36  ;;  %v17853_v35 = vld [vmem:[%s18353_s11 + $0x40] sm:$0xff]  }
 0x14b   : > { %15716 = vmatprep.mubr.msk.bf16.mxu0 %vm1609_vm0, %v17791_v37  ;;  %16132 = vmatprep.mubr.msk.bf16.mxu1 %vm1609_vm0, %v17792_v38  ;;  %v17854_v36 = vld [vmem:[%s18358_s14 + $0x40] sm:$0xff]   ;;  %v17855_v37 = vld [vmem:[%s18353_s11 + $0x48] sm:$0xff]  }
 0x14c   : > { %v17856_v38 = vld [vmem:[%s18358_s14 + $0x48] sm:$0xff]  }
 0x152   : > { %15717 = vmatmul.mubr.msk.bf16.gmra.mrb[152].mxu0 %vm1609_vm0, %v17793_v39  ;;  %16133 = vmatmul.mubr.msk.bf16.gmra.mrb[152].mxu1 %vm1609_vm0, %v17794_v40  ;;  %v17857_v39 = vld [vmem:[%s18353_s11 + $0x50] sm:$0xff]  }
 0x153   : > { %15720 = vmatprep.mubr.msk.bf16.mxu0 %vm1609_vm0, %v17795_v41  ;;  %16136 = vmatprep.mubr.msk.bf16.mxu1 %vm1609_vm0, %v17796_v42  ;;  %v17858_v40 = vld [vmem:[%s18358_s14 + $0x50] sm:$0xff]   ;;  %v17859_v41 = vld [vmem:[%s18353_s11 + $0x58] sm:$0xff]  }
 0x154   : > { %v17860_v42 = vld [vmem:[%s18358_s14 + $0x58] sm:$0xff]  }
 0x15a   : > { %15721 = vmatmul.mubr.msk.bf16.gmra.mrb[156].mxu0 %vm1609_vm0, %v17797_v43  ;;  %16137 = vmatmul.mubr.msk.bf16.gmra.mrb[156].mxu1 %vm1609_vm0, %v17798_v44  ;;  %v17861_v43 = vld [vmem:[%s18353_s11 + $0x60] sm:$0xff]  }
 0x15b   : > { %15724 = vmatprep.mubr.msk.bf16.mxu0 %vm1609_vm0, %v17799_v45  ;;  %16140 = vmatprep.mubr.msk.bf16.mxu1 %vm1609_vm0, %v17800_v46  ;;  %v17862_v44 = vld [vmem:[%s18358_s14 + $0x60] sm:$0xff]   ;;  %v17863_v45 = vld [vmem:[%s18353_s11 + $0x68] sm:$0xff]  }
 0x15c   : > { %v17864_v46 = vld [vmem:[%s18358_s14 + $0x68] sm:$0xff]  }
 0x162   : > { %15725 = vmatmul.mubr.msk.bf16.gmra.mrb[160].mxu0 %vm1609_vm0, %v17801_v47  ;;  %16141 = vmatmul.mubr.msk.bf16.gmra.mrb[160].mxu1 %vm1609_vm0, %v17802_v48  ;;  %v17865_v47 = vld [vmem:[%s18353_s11 + $0x70] sm:$0xff]  }
 0x163   : > { %15728 = vmatprep.mubr.msk.bf16.mxu0 %vm1609_vm0, %v17803_v49  ;;  %16144 = vmatprep.mubr.msk.bf16.mxu1 %vm1609_vm0, %v17805_v50  ;;  %v17866_v48 = vld [vmem:[%s18358_s14 + $0x70] sm:$0xff]   ;;  %v17867_v49 = vld [vmem:[%s18353_s11 + $0x78] sm:$0xff]  }
 0x164   : > { %v17868_v50 = vld [vmem:[%s18358_s14 + $0x78] sm:$0xff]  }
 0x16a   : > { %15729 = vmatmul.mubr.msk.bf16.gmra.mrb[164].mxu0 %vm1609_vm0, %v17806_v51  ;;  %16145 = vmatmul.mubr.msk.bf16.gmra.mrb[164].mxu1 %vm1609_vm0, %v17807_v52  ;;  %v17869_v51 = vld [vmem:[%s18353_s11 + $0x80] sm:$0xff]  }
 0x16b   : > { %15732 = vmatprep.mubr.msk.bf16.mxu0 %vm1609_vm0, %v17808_v53  ;;  %16148 = vmatprep.mubr.msk.bf16.mxu1 %vm1609_vm0, %v17809_v54  ;;  %v17870_v52 = vld [vmem:[%s18358_s14 + $0x80] sm:$0xff]   ;;  %v17871_v53 = vld [vmem:[%s18353_s11 + $0x88] sm:$0xff]  }
 0x16c   : > { %v17872_v54 = vld [vmem:[%s18358_s14 + $0x88] sm:$0xff]  }
 0x172   : > { %15733 = vmatmul.mubr.msk.bf16.gmra.mrb[168].mxu0 %vm1609_vm0, %v17810_v55  ;;  %16149 = vmatmul.mubr.msk.bf16.gmra.mrb[168].mxu1 %vm1609_vm0, %v17811_v56  ;;  %v17874_v55 = vld [vmem:[%s18353_s11 + $0x90] sm:$0xff]  }
 0x173   : > { %15736 = vmatprep.mubr.msk.bf16.mxu0 %vm1609_vm0, %v17812_v57  ;;  %16152 = vmatprep.mubr.msk.bf16.mxu1 %vm1609_vm0, %v17813_v58  ;;  %v17875_v56 = vld [vmem:[%s18358_s14 + $0x90] sm:$0xff]   ;;  %v17939_v57 = vld [vmem:[%s20082_s2 + $0x78] sm:$0xff]  }
 0x174   : > { %v17876_v58 = vld [vmem:[%s18353_s11 + $0x98] sm:$0xff]  }
 0x17a   : > { %15737 = vmatmul.mubr.msk.bf16.gmra.mrb[172].mxu0 %vm1609_vm0, %v17814_v59  ;;  %16153 = vmatmul.mubr.msk.bf16.gmra.mrb[172].mxu1 %vm1609_vm0, %v17815_v60  ;;  %v17877_v59 = vld [vmem:[%s18358_s14 + $0x98] sm:$0xff]   ;;  %v17878_v60 = vld [vmem:[%s18353_s11 + $0xa0] sm:$0xff]  }
 0x17b   : > { %15740 = vmatprep.mubr.msk.bf16.mxu0 %vm1609_vm0, %v17816_v61  ;;  %16156 = vmatprep.mubr.msk.bf16.mxu1 %vm1609_vm0, %v17817_v62  ;;  %v17879_v61 = vld [vmem:[%s18358_s14 + $0xa0] sm:$0xff]   ;;  %v17880_v62 = vld [vmem:[%s18353_s11 + $0xa8] sm:$0xff]  }
 0x182   : > { %15741 = vmatmul.mubr.msk.bf16.gmra.mrb[176].mxu0 %vm1609_vm0, %v17818_v63  ;;  %16157 = vmatmul.mubr.msk.bf16.gmra.mrb[176].mxu1 %vm1609_vm0, %v17819_v0  ;;  %v17881_v63 = vld [vmem:[%s18358_s14 + $0xa8] sm:$0xff]   ;;  %v17882_v0 = vld [vmem:[%s18353_s11 + $0xb0] sm:$0xff]  }
 0x183   : > { %15744 = vmatprep.mubr.msk.bf16.mxu0 %vm1609_vm0, %v17820_v1  ;;  %16160 = vmatprep.mubr.msk.bf16.mxu1 %vm1609_vm0, %v17821_v2  ;;  %v17883_v1 = vld [vmem:[%s18358_s14 + $0xb0] sm:$0xff]   ;;  %v17884_v2 = vld [vmem:[%s18353_s11 + $0xb8] sm:$0xff]  }
 0x18a   : > { %15745 = vmatmul.mubr.msk.bf16.gmra.mrb[180].mxu0 %vm1609_vm0, %v17822_v3  ;;  %16161 = vmatmul.mubr.msk.bf16.gmra.mrb[180].mxu1 %vm1609_vm0, %v17823_v4  ;;  %v17885_v3 = vld [vmem:[%s18358_s14 + $0xb8] sm:$0xff]   ;;  %v17886_v4 = vld [vmem:[%s18353_s11 + $0xc0] sm:$0xff]  }
 0x18b   : > { %15748 = vmatprep.mubr.msk.bf16.mxu0 %vm1609_vm0, %v17824_v5  ;;  %16164 = vmatprep.mubr.msk.bf16.mxu1 %vm1609_vm0, %v17825_v6  ;;  %v17887_v5 = vld [vmem:[%s18358_s14 + $0xc0] sm:$0xff]   ;;  %v17888_v6 = vld [vmem:[%s18353_s11 + $0xc8] sm:$0xff]  }
 0x192   : > { %15749 = vmatmul.mubr.msk.bf16.gmra.mrb[184].mxu0 %vm1609_vm0, %v17826_v7  ;;  %16165 = vmatmul.mubr.msk.bf16.gmra.mrb[184].mxu1 %vm1609_vm0, %v17827_v8  ;;  %v17889_v7 = vld [vmem:[%s18358_s14 + $0xc8] sm:$0xff]   ;;  %v17890_v8 = vld [vmem:[%s18353_s11 + $0xd0] sm:$0xff]  }
 0x193   : > { %15752 = vmatprep.mubr.msk.bf16.mxu0 %vm1609_vm0, %v17828_v9  ;;  %16168 = vmatprep.mubr.msk.bf16.mxu1 %vm1609_vm0, %v17829_v10  ;;  %v17891_v9 = vld [vmem:[%s18358_s14 + $0xd0] sm:$0xff]   ;;  %v17892_v10 = vld [vmem:[%s18353_s11 + $0xd8] sm:$0xff]  }
 0x19a   : > { %15753 = vmatmul.mubr.msk.bf16.gmra.mrb[188].mxu0 %vm1609_vm0, %v17830_v11  ;;  %16169 = vmatmul.mubr.msk.bf16.gmra.mrb[188].mxu1 %vm1609_vm0, %v17831_v12  ;;  %v17893_v11 = vld [vmem:[%s18358_s14 + $0xd8] sm:$0xff]   ;;  %v17894_v12 = vld [vmem:[%s18353_s11 + $0xe0] sm:$0xff]  }
 0x19b   : > { %15756 = vmatprep.mubr.msk.bf16.mxu0 %vm1609_vm0, %v17832_v13  ;;  %16172 = vmatprep.mubr.msk.bf16.mxu1 %vm1609_vm0, %v17833_v14  ;;  %v17895_v13 = vld [vmem:[%s18358_s14 + $0xe0] sm:$0xff]   ;;  %v17896_v14 = vld [vmem:[%s18353_s11 + $0xe8] sm:$0xff]  }
 0x1a2   : > { %15757 = vmatmul.mubr.msk.bf16.gmra.mrb[192].mxu0 %vm1609_vm0, %v17834_v15  ;;  %16173 = vmatmul.mubr.msk.bf16.gmra.mrb[192].mxu1 %vm1609_vm0, %v17835_v16  ;;  %v17897_v15 = vld [vmem:[%s18358_s14 + $0xe8] sm:$0xff]   ;;  %v17898_v16 = vld [vmem:[%s18353_s11 + $0xf0] sm:$0xff]  }
 0x1a3   : > { %15772 = vmatprep.mubr.msk.bf16.mxu0 %vm1609_vm0, %v17836_v17  ;;  %16188 = vmatprep.mubr.msk.bf16.mxu1 %vm1609_vm0, %v17837_v18  ;;  %v17899_v17 = vld [vmem:[%s18358_s14 + $0xf0] sm:$0xff]   ;;  %v17900_v18 = vld [vmem:[%s18353_s11 + $0xf8] sm:$0xff]  }
 0x1aa   : > { %15773 = vmatmul.mubr.msk.bf16.vlgmr.msra.gmra.mrb[0].mxu0 %vm1609_vm0, %v17838_v19  ;;  %16189 = vmatmul.mubr.msk.bf16.vlgmr.msra.gmra.mrb[0].mxu1 %vm1609_vm0, %v17839_v20  ;;  %v17901_v19 = vld [vmem:[%s18358_s14 + $0xf8] sm:$0xff]   ;;  %v17902_v20 = vld [vmem:[%s18353_s11 + $0x100] sm:$0xff]  }
 0x1ab   : > { %16385 = vmatpush3.bf16.msra.mxu0 %v18661_v22  ;;  %16593 = vmatpush3.bf16.msra.mxu1 %v18661_v22  ;;  %v17847_v22 = vld [vmem:[%s18353_s11 + $0x28] sm:$0xff]  }
 0x1ac   : > { %15776 = vmatprep.mubr.msk.bf16.mxu0 %vm1609_vm0, %v17841_v21  ;;  %16192 = vmatprep.mubr.msk.bf16.mxu1 %vm1609_vm0, %v17842_v23  ;;  %v17903_v21 = vld [vmem:[%s18358_s14 + $0x100] sm:$0xff]   ;;  %v17904_v23 = vld [vmem:[%s18353_s11 + $0x108] sm:$0xff]  }
 0x1ad   : > { %16386 = vmatprep.subr.bf16.mxu0 %v17873_v24  ;;  %16594 = vmatprep.subr.bf16.mxu1 %v17873_v24 }
 0x1af   : > { %16387 = vmatpush3.bf16.msra.mxu0 %v17873_v24  ;;  %16595 = vmatpush3.bf16.msra.mxu1 %v17873_v24  ;;  %v17905_v24 = vld [vmem:[%s18358_s14 + $0x108] sm:$0xff]  }
 0x1b0   : > { %16388 = vmatprep.subr.bf16.mxu0 %v17906_v25  ;;  %16596 = vmatprep.subr.bf16.mxu1 %v17906_v25 }
 0x1b2   : > { %15777 = vmatmul.mubr.msk.bf16.gmra.mrb[4].mxu0 %vm1609_vm0, %v17843_v26  ;;  %16193 = vmatmul.mubr.msk.bf16.gmra.mrb[4].mxu1 %vm1609_vm0, %v17844_v27  ;;  %v17908_v26 = vld [vmem:[%s18358_s14 + $0x110] sm:$0xff]   ;;  %v17972_v27 = vld [vmem:[%s20082_s2 + $0x80] sm:$0xff]  }
 0x1b3   : > { %15780 = vmatprep.mubr.msk.bf16.mxu0 %vm1609_vm0, %v17845_v28  ;;  %16196 = vmatprep.mubr.msk.bf16.mxu1 %vm1609_vm0, %v17846_v29  ;;  %v17909_v28 = vld [vmem:[%s18353_s11 + $0x118] sm:$0xff]  }
 0x1b4   : > { %16389 = vmatpush3.bf16.msra.mxu0 %v17906_v25  ;;  %16597 = vmatpush3.bf16.msra.mxu1 %v17906_v25  ;;  %v17907_v25 = vld [vmem:[%s18353_s11 + $0x110] sm:$0xff]   ;;  %v17910_v29 = vld [vmem:[%s18358_s14 + $0x118] sm:$0xff]  }
 0x1b5   : > { %16390 = vmatprep.subr.bf16.mxu0 %v17939_v57  ;;  %16598 = vmatprep.subr.bf16.mxu1 %v17939_v57 }
 0x1b8   : > { %16391 = vmatpush3.bf16.msra.mxu0 %v17939_v57  ;;  %16599 = vmatpush3.bf16.msra.mxu1 %v17939_v57  ;;  %v17940_v57 = vld [vmem:[%s18353_s11 + $0x190] sm:$0xff]  }
 0x1b9   : > { %16392 = vmatprep.subr.bf16.mxu0 %v17972_v27  ;;  %16600 = vmatprep.subr.bf16.mxu1 %v17972_v27 }
 0x1ba   : > { %15781 = vmatmul.mubr.msk.bf16.gmra.mrb[8].mxu0 %vm1609_vm0, %v17847_v22  ;;  %16197 = vmatmul.mubr.msk.bf16.gmra.mrb[8].mxu1 %vm1609_vm0, %v17848_v30  ;;  %v17911_v22 = vld [vmem:[%s18353_s11 + $0x120] sm:$0xff]  }
 0x1bb   : > { %15784 = vmatprep.mubr.msk.bf16.mxu0 %vm1609_vm0, %v17849_v31  ;;  %16200 = vmatprep.mubr.msk.bf16.mxu1 %vm1609_vm0, %v17850_v32  ;;  %v17912_v30 = vld [vmem:[%s18358_s14 + $0x120] sm:$0xff]   ;;  %v17913_v31 = vld [vmem:[%s18353_s11 + $0x128] sm:$0xff]  }
 0x1bc   : > { %16393 = vmatpush3.bf16.msra.mxu0 %v17972_v27  ;;  %16601 = vmatpush3.bf16.msra.mxu1 %v17972_v27  ;;  %v17914_v32 = vld [vmem:[%s18358_s14 + $0x128] sm:$0xff]   ;;  %v17973_v27 = vld [vmem:[%s18353_s11 + $0x210] sm:$0xff]  }
 0x1c2   : > { %15785 = vmatmul.mubr.msk.bf16.gmra.mrb[12].mxu0 %vm1609_vm0, %v17851_v33  ;;  %16201 = vmatmul.mubr.msk.bf16.gmra.mrb[12].mxu1 %vm1609_vm0, %v17852_v34  ;;  %v17915_v33 = vld [vmem:[%s18353_s11 + $0x130] sm:$0xff]  }
 0x1c3   : > { %15788 = vmatprep.mubr.msk.bf16.mxu0 %vm1609_vm0, %v17853_v35  ;;  %16204 = vmatprep.mubr.msk.bf16.mxu1 %vm1609_vm0, %v17854_v36  ;;  %v17916_v34 = vld [vmem:[%s18358_s14 + $0x130] sm:$0xff]   ;;  %v17917_v35 = vld [vmem:[%s18353_s11 + $0x138] sm:$0xff]  }
 0x1c4   : > { %v17918_v36 = vld [vmem:[%s18358_s14 + $0x138] sm:$0xff]  }
 0x1ca   : > { %15789 = vmatmul.mubr.msk.bf16.gmra.mrb[16].mxu0 %vm1609_vm0, %v17855_v37  ;;  %16205 = vmatmul.mubr.msk.bf16.gmra.mrb[16].mxu1 %vm1609_vm0, %v17856_v38  ;;  %v17919_v37 = vld [vmem:[%s18353_s11 + $0x140] sm:$0xff]  }
 0x1cb   : > { %15792 = vmatprep.mubr.msk.bf16.mxu0 %vm1609_vm0, %v17857_v39  ;;  %16208 = vmatprep.mubr.msk.bf16.mxu1 %vm1609_vm0, %v17858_v40  ;;  %v17920_v38 = vld [vmem:[%s18358_s14 + $0x140] sm:$0xff]   ;;  %v17921_v39 = vld [vmem:[%s18353_s11 + $0x148] sm:$0xff]  }
 0x1cc   : > { %v17922_v40 = vld [vmem:[%s18358_s14 + $0x148] sm:$0xff]  }
 0x1d2   : > { %15793 = vmatmul.mubr.msk.bf16.gmra.mrb[20].mxu0 %vm1609_vm0, %v17859_v41  ;;  %16209 = vmatmul.mubr.msk.bf16.gmra.mrb[20].mxu1 %vm1609_vm0, %v17860_v42  ;;  %v17923_v41 = vld [vmem:[%s18353_s11 + $0x150] sm:$0xff]  }
 0x1d3   : > { %15796 = vmatprep.mubr.msk.bf16.mxu0 %vm1609_vm0, %v17861_v43  ;;  %16212 = vmatprep.mubr.msk.bf16.mxu1 %vm1609_vm0, %v17862_v44  ;;  %v17924_v42 = vld [vmem:[%s18358_s14 + $0x150] sm:$0xff]   ;;  %v17925_v43 = vld [vmem:[%s18353_s11 + $0x158] sm:$0xff]  }
 0x1d4   : > { %v17926_v44 = vld [vmem:[%s18358_s14 + $0x158] sm:$0xff]  }
 0x1da   : > { %15797 = vmatmul.mubr.msk.bf16.gmra.mrb[24].mxu0 %vm1609_vm0, %v17863_v45  ;;  %16213 = vmatmul.mubr.msk.bf16.gmra.mrb[24].mxu1 %vm1609_vm0, %v17864_v46  ;;  %v17927_v45 = vld [vmem:[%s18353_s11 + $0x160] sm:$0xff]  }
 0x1db   : > { %15800 = vmatprep.mubr.msk.bf16.mxu0 %vm1609_vm0, %v17865_v47  ;;  %16216 = vmatprep.mubr.msk.bf16.mxu1 %vm1609_vm0, %v17866_v48  ;;  %v17928_v46 = vld [vmem:[%s18358_s14 + $0x160] sm:$0xff]   ;;  %v17929_v47 = vld [vmem:[%s18353_s11 + $0x168] sm:$0xff]  }
 0x1dc   : > { %v17930_v48 = vld [vmem:[%s18358_s14 + $0x168] sm:$0xff]  }
 0x1e2   : > { %15801 = vmatmul.mubr.msk.bf16.gmra.mrb[28].mxu0 %vm1609_vm0, %v17867_v49  ;;  %16217 = vmatmul.mubr.msk.bf16.gmra.mrb[28].mxu1 %vm1609_vm0, %v17868_v50  ;;  %v17931_v49 = vld [vmem:[%s18353_s11 + $0x170] sm:$0xff]  }
 0x1e3   : > { %15804 = vmatprep.mubr.msk.bf16.mxu0 %vm1609_vm0, %v17869_v51  ;;  %16220 = vmatprep.mubr.msk.bf16.mxu1 %vm1609_vm0, %v17870_v52  ;;  %v17932_v50 = vld [vmem:[%s18358_s14 + $0x170] sm:$0xff]   ;;  %v17933_v51 = vld [vmem:[%s18353_s11 + $0x178] sm:$0xff]  }
 0x1e4   : > { %v17934_v52 = vld [vmem:[%s18358_s14 + $0x178] sm:$0xff]  }
 0x1ea   : > { %15805 = vmatmul.mubr.msk.bf16.gmra.mrb[32].mxu0 %vm1609_vm0, %v17871_v53  ;;  %16221 = vmatmul.mubr.msk.bf16.gmra.mrb[32].mxu1 %vm1609_vm0, %v17872_v54  ;;  %v17935_v53 = vld [vmem:[%s18353_s11 + $0x180] sm:$0xff]  }
 0x1eb   : > { %15808 = vmatprep.mubr.msk.bf16.mxu0 %vm1609_vm0, %v17874_v55  ;;  %16224 = vmatprep.mubr.msk.bf16.mxu1 %vm1609_vm0, %v17875_v56  ;;  %v17936_v54 = vld [vmem:[%s18358_s14 + $0x180] sm:$0xff]   ;;  %v17937_v55 = vld [vmem:[%s18353_s11 + $0x188] sm:$0xff]  }
 0x1ec   : > { %v17938_v56 = vld [vmem:[%s18358_s14 + $0x188] sm:$0xff]  }
 0x1f2   : > { %15809 = vmatmul.mubr.msk.bf16.gmra.mrb[36].mxu0 %vm1609_vm0, %v17876_v58  ;;  %16225 = vmatmul.mubr.msk.bf16.gmra.mrb[36].mxu1 %vm1609_vm0, %v17877_v59  ;;  %v17941_v58 = vld [vmem:[%s18358_s14 + $0x190] sm:$0xff]   ;;  %v18007_v59 = vld [vmem:[%s20082_s2 + $0x88] sm:$0xff]  }
 0x1f3   : > { %15812 = vmatprep.mubr.msk.bf16.mxu0 %vm1609_vm0, %v17878_v60  ;;  %16228 = vmatprep.mubr.msk.bf16.mxu1 %vm1609_vm0, %v17879_v61  ;;  %v17942_v60 = vld [vmem:[%s18353_s11 + $0x198] sm:$0xff]  }
 0x1f4   : > { %16394 = vmatprep.subr.bf16.mxu0 %v18007_v59  ;;  %16602 = vmatprep.subr.bf16.mxu1 %v18007_v59  ;;  %v17943_v61 = vld [vmem:[%s18358_s14 + $0x198] sm:$0xff]  }
 0x1f5   : > { %16395 = vmatpush3.bf16.msra.mxu0 %v18007_v59  ;;  %16603 = vmatpush3.bf16.msra.mxu1 %v18007_v59  ;;  %v18006_v59 = vld [vmem:[%s18358_s14 + $0x290] sm:$0xff]  }
 0x1fa   : > { %15813 = vmatmul.mubr.msk.bf16.gmra.mrb[40].mxu0 %vm1609_vm0, %v17880_v62  ;;  %16229 = vmatmul.mubr.msk.bf16.gmra.mrb[40].mxu1 %vm1609_vm0, %v17881_v63  ;;  %v17944_v62 = vld [vmem:[%s18353_s11 + $0x1a0] sm:$0xff]  }
 0x1fb   : > { %15816 = vmatprep.mubr.msk.bf16.mxu0 %vm1609_vm0, %v17882_v0  ;;  %16232 = vmatprep.mubr.msk.bf16.mxu1 %vm1609_vm0, %v17883_v1  ;;  %v17945_v63 = vld [vmem:[%s18358_s14 + $0x1a0] sm:$0xff]   ;;  %v17946_v0 = vld [vmem:[%s18353_s11 + $0x1a8] sm:$0xff]  }
 0x1fc   : > { %v17947_v1 = vld [vmem:[%s18358_s14 + $0x1a8] sm:$0xff]  }
 0x202   : > { %15817 = vmatmul.mubr.msk.bf16.gmra.mrb[44].mxu0 %vm1609_vm0, %v17884_v2  ;;  %16233 = vmatmul.mubr.msk.bf16.gmra.mrb[44].mxu1 %vm1609_vm0, %v17885_v3  ;;  %v17948_v2 = vld [vmem:[%s18353_s11 + $0x1b0] sm:$0xff]  }
 0x203   : > { %15820 = vmatprep.mubr.msk.bf16.mxu0 %vm1609_vm0, %v17886_v4  ;;  %16236 = vmatprep.mubr.msk.bf16.mxu1 %vm1609_vm0, %v17887_v5  ;;  %v17949_v3 = vld [vmem:[%s18358_s14 + $0x1b0] sm:$0xff]   ;;  %v17950_v4 = vld [vmem:[%s18353_s11 + $0x1b8] sm:$0xff]  }
 0x204   : > { %v17951_v5 = vld [vmem:[%s18358_s14 + $0x1b8] sm:$0xff]  }
 0x20a   : > { %15821 = vmatmul.mubr.msk.bf16.gmra.mrb[48].mxu0 %vm1609_vm0, %v17888_v6  ;;  %16237 = vmatmul.mubr.msk.bf16.gmra.mrb[48].mxu1 %vm1609_vm0, %v17889_v7  ;;  %v17952_v6 = vld [vmem:[%s18353_s11 + $0x1c0] sm:$0xff]  }
 0x20b   : > { %15824 = vmatprep.mubr.msk.bf16.mxu0 %vm1609_vm0, %v17890_v8  ;;  %16240 = vmatprep.mubr.msk.bf16.mxu1 %vm1609_vm0, %v17891_v9  ;;  %v17953_v7 = vld [vmem:[%s18358_s14 + $0x1c0] sm:$0xff]   ;;  %v17954_v8 = vld [vmem:[%s18353_s11 + $0x1c8] sm:$0xff]  }
 0x20c   : > { %v17955_v9 = vld [vmem:[%s18358_s14 + $0x1c8] sm:$0xff]  }
 0x212   : > { %15825 = vmatmul.mubr.msk.bf16.gmra.mrb[52].mxu0 %vm1609_vm0, %v17892_v10  ;;  %16241 = vmatmul.mubr.msk.bf16.gmra.mrb[52].mxu1 %vm1609_vm0, %v17893_v11  ;;  %v17956_v10 = vld [vmem:[%s18353_s11 + $0x1d0] sm:$0xff]  }
 0x213   : > { %15828 = vmatprep.mubr.msk.bf16.mxu0 %vm1609_vm0, %v17894_v12  ;;  %16244 = vmatprep.mubr.msk.bf16.mxu1 %vm1609_vm0, %v17895_v13  ;;  %v17957_v11 = vld [vmem:[%s18358_s14 + $0x1d0] sm:$0xff]   ;;  %v17958_v12 = vld [vmem:[%s18353_s11 + $0x1d8] sm:$0xff]  }
 0x214   : > { %v17959_v13 = vld [vmem:[%s18358_s14 + $0x1d8] sm:$0xff]  }
 0x21a   : > { %15829 = vmatmul.mubr.msk.bf16.gmra.mrb[56].mxu0 %vm1609_vm0, %v17896_v14  ;;  %16245 = vmatmul.mubr.msk.bf16.gmra.mrb[56].mxu1 %vm1609_vm0, %v17897_v15  ;;  %v17960_v14 = vld [vmem:[%s18353_s11 + $0x1e0] sm:$0xff]  }
 0x21b   : > { %15832 = vmatprep.mubr.msk.bf16.mxu0 %vm1609_vm0, %v17898_v16  ;;  %16248 = vmatprep.mubr.msk.bf16.mxu1 %vm1609_vm0, %v17899_v17  ;;  %v17961_v15 = vld [vmem:[%s18358_s14 + $0x1e0] sm:$0xff]   ;;  %v17962_v16 = vld [vmem:[%s18353_s11 + $0x1e8] sm:$0xff]  }
 0x21c   : > { %v17963_v17 = vld [vmem:[%s18358_s14 + $0x1e8] sm:$0xff]  }
 0x222   : > { %15833 = vmatmul.mubr.msk.bf16.gmra.mrb[60].mxu0 %vm1609_vm0, %v17900_v18  ;;  %16249 = vmatmul.mubr.msk.bf16.gmra.mrb[60].mxu1 %vm1609_vm0, %v17901_v19  ;;  %v17964_v18 = vld [vmem:[%s18353_s11 + $0x1f0] sm:$0xff]  }
 0x223   : > { %15836 = vmatprep.mubr.msk.bf16.mxu0 %vm1609_vm0, %v17902_v20  ;;  %16252 = vmatprep.mubr.msk.bf16.mxu1 %vm1609_vm0, %v17903_v21  ;;  %v17965_v19 = vld [vmem:[%s18358_s14 + $0x1f0] sm:$0xff]   ;;  %v17966_v20 = vld [vmem:[%s18353_s11 + $0x1f8] sm:$0xff]  }
 0x224   : > { %v17967_v21 = vld [vmem:[%s18358_s14 + $0x1f8] sm:$0xff]  }
 0x22a   : > { %15837 = vmatmul.mubr.msk.bf16.gmra.mrb[64].mxu0 %vm1609_vm0, %v17904_v23  ;;  %16253 = vmatmul.mubr.msk.bf16.gmra.mrb[64].mxu1 %vm1609_vm0, %v17905_v24  ;;  %v17968_v23 = vld [vmem:[%s18353_s11 + $0x200] sm:$0xff]  }
 0x22b   : > { %15840 = vmatprep.mubr.msk.bf16.mxu0 %vm1609_vm0, %v17907_v25  ;;  %16256 = vmatprep.mubr.msk.bf16.mxu1 %vm1609_vm0, %v17908_v26  ;;  %v17969_v24 = vld [vmem:[%s18358_s14 + $0x200] sm:$0xff]   ;;  %v17970_v25 = vld [vmem:[%s18353_s11 + $0x208] sm:$0xff]  }
 0x22c   : > { %v17971_v26 = vld [vmem:[%s18358_s14 + $0x208] sm:$0xff]  }
 0x232   : > { %15841 = vmatmul.mubr.msk.bf16.gmra.mrb[68].mxu0 %vm1609_vm0, %v17909_v28  ;;  %16257 = vmatmul.mubr.msk.bf16.gmra.mrb[68].mxu1 %vm1609_vm0, %v17910_v29  ;;  %v17974_v28 = vld [vmem:[%s18358_s14 + $0x210] sm:$0xff]   ;;  %v17975_v29 = vld [vmem:[%s18353_s11 + $0x218] sm:$0xff]  }
 0x233   : > { %15844 = vmatprep.mubr.msk.bf16.mxu0 %vm1609_vm0, %v17911_v22  ;;  %16260 = vmatprep.mubr.msk.bf16.mxu1 %vm1609_vm0, %v17912_v30  ;;  %v17976_v22 = vld [vmem:[%s18358_s14 + $0x218] sm:$0xff]   ;;  %v17977_v30 = vld [vmem:[%s18353_s11 + $0x220] sm:$0xff]  }
 0x23a   : > { %15845 = vmatmul.mubr.msk.bf16.gmra.mrb[72].mxu0 %vm1609_vm0, %v17913_v31  ;;  %16261 = vmatmul.mubr.msk.bf16.gmra.mrb[72].mxu1 %vm1609_vm0, %v17914_v32  ;;  %v17978_v31 = vld [vmem:[%s18358_s14 + $0x220] sm:$0xff]   ;;  %v17979_v32 = vld [vmem:[%s18353_s11 + $0x228] sm:$0xff]  }
 0x23b   : > { %15848 = vmatprep.mubr.msk.bf16.mxu0 %vm1609_vm0, %v17915_v33  ;;  %16264 = vmatprep.mubr.msk.bf16.mxu1 %vm1609_vm0, %v17916_v34  ;;  %v17980_v33 = vld [vmem:[%s18358_s14 + $0x228] sm:$0xff]   ;;  %v17981_v34 = vld [vmem:[%s18353_s11 + $0x230] sm:$0xff]  }
 0x242   : > { %15849 = vmatmul.mubr.msk.bf16.gmra.mrb[76].mxu0 %vm1609_vm0, %v17917_v35  ;;  %16265 = vmatmul.mubr.msk.bf16.gmra.mrb[76].mxu1 %vm1609_vm0, %v17918_v36  ;;  %v17982_v35 = vld [vmem:[%s18358_s14 + $0x230] sm:$0xff]   ;;  %v17983_v36 = vld [vmem:[%s18353_s11 + $0x238] sm:$0xff]  }
 0x243   : > { %15852 = vmatprep.mubr.msk.bf16.mxu0 %vm1609_vm0, %v17919_v37  ;;  %16268 = vmatprep.mubr.msk.bf16.mxu1 %vm1609_vm0, %v17920_v38  ;;  %v17984_v37 = vld [vmem:[%s18358_s14 + $0x238] sm:$0xff]   ;;  %v17985_v38 = vld [vmem:[%s18353_s11 + $0x240] sm:$0xff]  }
 0x24a   : > { %15853 = vmatmul.mubr.msk.bf16.gmra.mrb[80].mxu0 %vm1609_vm0, %v17921_v39  ;;  %16269 = vmatmul.mubr.msk.bf16.gmra.mrb[80].mxu1 %vm1609_vm0, %v17922_v40  ;;  %v17986_v39 = vld [vmem:[%s18358_s14 + $0x240] sm:$0xff]   ;;  %v17987_v40 = vld [vmem:[%s18353_s11 + $0x248] sm:$0xff]  }
 0x24b   : > { %15856 = vmatprep.mubr.msk.bf16.mxu0 %vm1609_vm0, %v17923_v41  ;;  %16272 = vmatprep.mubr.msk.bf16.mxu1 %vm1609_vm0, %v17924_v42  ;;  %v17988_v41 = vld [vmem:[%s18358_s14 + $0x248] sm:$0xff]   ;;  %v17989_v42 = vld [vmem:[%s18353_s11 + $0x250] sm:$0xff]  }
 0x252   : > { %15857 = vmatmul.mubr.msk.bf16.gmra.mrb[84].mxu0 %vm1609_vm0, %v17925_v43  ;;  %16273 = vmatmul.mubr.msk.bf16.gmra.mrb[84].mxu1 %vm1609_vm0, %v17926_v44  ;;  %v17990_v43 = vld [vmem:[%s18358_s14 + $0x250] sm:$0xff]   ;;  %v17991_v44 = vld [vmem:[%s18353_s11 + $0x258] sm:$0xff]  }
 0x253   : > { %15860 = vmatprep.mubr.msk.bf16.mxu0 %vm1609_vm0, %v17927_v45  ;;  %16276 = vmatprep.mubr.msk.bf16.mxu1 %vm1609_vm0, %v17928_v46  ;;  %v17992_v45 = vld [vmem:[%s18358_s14 + $0x258] sm:$0xff]   ;;  %v17993_v46 = vld [vmem:[%s18353_s11 + $0x260] sm:$0xff]  }
 0x25a   : > { %15861 = vmatmul.mubr.msk.bf16.gmra.mrb[88].mxu0 %vm1609_vm0, %v17929_v47  ;;  %16277 = vmatmul.mubr.msk.bf16.gmra.mrb[88].mxu1 %vm1609_vm0, %v17930_v48  ;;  %v17994_v47 = vld [vmem:[%s18358_s14 + $0x260] sm:$0xff]   ;;  %v17995_v48 = vld [vmem:[%s18353_s11 + $0x268] sm:$0xff]  }
 0x25b   : > { %15864 = vmatprep.mubr.msk.bf16.mxu0 %vm1609_vm0, %v17931_v49  ;;  %16280 = vmatprep.mubr.msk.bf16.mxu1 %vm1609_vm0, %v17932_v50  ;;  %v17996_v49 = vld [vmem:[%s18358_s14 + $0x268] sm:$0xff]   ;;  %v17997_v50 = vld [vmem:[%s18353_s11 + $0x270] sm:$0xff]  }
 0x262   : > { %15865 = vmatmul.mubr.msk.bf16.gmra.mrb[92].mxu0 %vm1609_vm0, %v17933_v51  ;;  %16281 = vmatmul.mubr.msk.bf16.gmra.mrb[92].mxu1 %vm1609_vm0, %v17934_v52  ;;  %v17998_v51 = vld [vmem:[%s18358_s14 + $0x270] sm:$0xff]   ;;  %v17999_v52 = vld [vmem:[%s18353_s11 + $0x278] sm:$0xff]  }
 0x263   : > { %15868 = vmatprep.mubr.msk.bf16.mxu0 %vm1609_vm0, %v17935_v53  ;;  %16284 = vmatprep.mubr.msk.bf16.mxu1 %vm1609_vm0, %v17936_v54  ;;  %v18000_v53 = vld [vmem:[%s18358_s14 + $0x278] sm:$0xff]   ;;  %v18001_v54 = vld [vmem:[%s18353_s11 + $0x280] sm:$0xff]  }
 0x26a   : > { %15869 = vmatmul.mubr.msk.bf16.gmra.mrb[96].mxu0 %vm1609_vm0, %v17937_v55  ;;  %16285 = vmatmul.mubr.msk.bf16.gmra.mrb[96].mxu1 %vm1609_vm0, %v17938_v56  ;;  %v18002_v55 = vld [vmem:[%s18358_s14 + $0x280] sm:$0xff]   ;;  %v18003_v56 = vld [vmem:[%s18353_s11 + $0x288] sm:$0xff]  }
 0x26b   : > { %15872 = vmatprep.mubr.msk.bf16.mxu0 %vm1609_vm0, %v17940_v57  ;;  %16288 = vmatprep.mubr.msk.bf16.mxu1 %vm1609_vm0, %v17941_v58  ;;  %v18004_v57 = vld [vmem:[%s18358_s14 + $0x288] sm:$0xff]   ;;  %v18005_v58 = vld [vmem:[%s18353_s11 + $0x290] sm:$0xff]  }
 0x272   : > { %15873 = vmatmul.mubr.msk.bf16.gmra.mrb[100].mxu0 %vm1609_vm0, %v17942_v60  ;;  %16289 = vmatmul.mubr.msk.bf16.gmra.mrb[100].mxu1 %vm1609_vm0, %v17943_v61  ;;  %v18008_v60 = vld [vmem:[%s18353_s11 + $0x298] sm:$0xff]  }
 0x273   : > { %15876 = vmatprep.mubr.msk.bf16.mxu0 %vm1609_vm0, %v17944_v62  ;;  %16292 = vmatprep.mubr.msk.bf16.mxu1 %vm1609_vm0, %v17945_v63  ;;  %v18009_v61 = vld [vmem:[%s18358_s14 + $0x298] sm:$0xff]   ;;  %v18010_v62 = vld [vmem:[%s18353_s11 + $0x2a0] sm:$0xff]  }
 0x274   : > { %v18011_v63 = vld [vmem:[%s18358_s14 + $0x2a0] sm:$0xff]  }
 0x27a   : > { %15877 = vmatmul.mubr.msk.bf16.gmra.mrb[104].mxu0 %vm1609_vm0, %v17946_v0  ;;  %16293 = vmatmul.mubr.msk.bf16.gmra.mrb[104].mxu1 %vm1609_vm0, %v17947_v1  ;;  %v18012_v0 = vld [vmem:[%s18353_s11 + $0x2a8] sm:$0xff]  }
 0x27b   : > { %15880 = vmatprep.mubr.msk.bf16.mxu0 %vm1609_vm0, %v17948_v2  ;;  %16296 = vmatprep.mubr.msk.bf16.mxu1 %vm1609_vm0, %v17949_v3  ;;  %v18013_v1 = vld [vmem:[%s18358_s14 + $0x2a8] sm:$0xff]   ;;  %v18014_v2 = vld [vmem:[%s18353_s11 + $0x2b0] sm:$0xff]  }
 0x27c   : > { %v18015_v3 = vld [vmem:[%s18358_s14 + $0x2b0] sm:$0xff]  }
 0x282   : > { %15881 = vmatmul.mubr.msk.bf16.gmra.mrb[108].mxu0 %vm1609_vm0, %v17950_v4  ;;  %16297 = vmatmul.mubr.msk.bf16.gmra.mrb[108].mxu1 %vm1609_vm0, %v17951_v5  ;;  %v18016_v4 = vld [vmem:[%s18353_s11 + $0x2b8] sm:$0xff]  }
 0x283   : > { %15884 = vmatprep.mubr.msk.bf16.mxu0 %vm1609_vm0, %v17952_v6  ;;  %16300 = vmatprep.mubr.msk.bf16.mxu1 %vm1609_vm0, %v17953_v7  ;;  %v18017_v5 = vld [vmem:[%s18358_s14 + $0x2b8] sm:$0xff]   ;;  %v18018_v6 = vld [vmem:[%s18353_s11 + $0x2c0] sm:$0xff]  }
 0x284   : > { %v18019_v7 = vld [vmem:[%s18358_s14 + $0x2c0] sm:$0xff]  }
 0x28a   : > { %15885 = vmatmul.mubr.msk.bf16.gmra.mrb[112].mxu0 %vm1609_vm0, %v17954_v8  ;;  %16301 = vmatmul.mubr.msk.bf16.gmra.mrb[112].mxu1 %vm1609_vm0, %v17955_v9  ;;  %v18020_v8 = vld [vmem:[%s18353_s11 + $0x2c8] sm:$0xff]  }
 0x28b   : > { %15888 = vmatprep.mubr.msk.bf16.mxu0 %vm1609_vm0, %v17956_v10  ;;  %16304 = vmatprep.mubr.msk.bf16.mxu1 %vm1609_vm0, %v17957_v11  ;;  %v18021_v9 = vld [vmem:[%s18358_s14 + $0x2c8] sm:$0xff]   ;;  %v18022_v10 = vld [vmem:[%s18353_s11 + $0x2d0] sm:$0xff]  }
 0x28c   : > { %v18023_v11 = vld [vmem:[%s18358_s14 + $0x2d0] sm:$0xff]  }
 0x292   : > { %15889 = vmatmul.mubr.msk.bf16.gmra.mrb[116].mxu0 %vm1609_vm0, %v17958_v12  ;;  %16305 = vmatmul.mubr.msk.bf16.gmra.mrb[116].mxu1 %vm1609_vm0, %v17959_v13  ;;  %v18024_v12 = vld [vmem:[%s18353_s11 + $0x2d8] sm:$0xff]  }
 0x293   : > { %15892 = vmatprep.mubr.msk.bf16.mxu0 %vm1609_vm0, %v17960_v14  ;;  %16308 = vmatprep.mubr.msk.bf16.mxu1 %vm1609_vm0, %v17961_v15  ;;  %v18025_v13 = vld [vmem:[%s18358_s14 + $0x2d8] sm:$0xff]   ;;  %v18026_v14 = vld [vmem:[%s18353_s11 + $0x2e0] sm:$0xff]  }
 0x294   : > { %v18027_v15 = vld [vmem:[%s18358_s14 + $0x2e0] sm:$0xff]  }
 0x29a   : > { %15893 = vmatmul.mubr.msk.bf16.gmra.mrb[120].mxu0 %vm1609_vm0, %v17962_v16  ;;  %16309 = vmatmul.mubr.msk.bf16.gmra.mrb[120].mxu1 %vm1609_vm0, %v17963_v17  ;;  %v18028_v16 = vld [vmem:[%s18353_s11 + $0x2e8] sm:$0xff]  }
 0x29b   : > { %15896 = vmatprep.mubr.msk.bf16.mxu0 %vm1609_vm0, %v17964_v18  ;;  %16312 = vmatprep.mubr.msk.bf16.mxu1 %vm1609_vm0, %v17965_v19  ;;  %v18029_v17 = vld [vmem:[%s18358_s14 + $0x2e8] sm:$0xff]   ;;  %v18030_v18 = vld [vmem:[%s18353_s11 + $0x2f0] sm:$0xff]  }
 0x29c   : > { %v18031_v19 = vld [vmem:[%s18358_s14 + $0x2f0] sm:$0xff]  }
 0x2a2   : > { %15897 = vmatmul.mubr.msk.bf16.gmra.mrb[124].mxu0 %vm1609_vm0, %v17966_v20  ;;  %16313 = vmatmul.mubr.msk.bf16.gmra.mrb[124].mxu1 %vm1609_vm0, %v17967_v21  ;;  %v18032_v20 = vld [vmem:[%s18353_s11 + $0x2f8] sm:$0xff]  }
 0x2a3   : > { %15900 = vmatprep.mubr.msk.bf16.mxu0 %vm1609_vm0, %v17968_v23  ;;  %16316 = vmatprep.mubr.msk.bf16.mxu1 %vm1609_vm0, %v17969_v24  ;;  %v18033_v21 = vld [vmem:[%s18358_s14 + $0x2f8] sm:$0xff]   ;;  %v18034_v23 = vld [vmem:[%s18353_s11 + $0x300] sm:$0xff]  }
 0x2a4   : > { %v18035_v24 = vld [vmem:[%s18358_s14 + $0x300] sm:$0xff]  }
 0x2aa   : > { %15901 = vmatmul.mubr.msk.bf16.gmra.mrb[128].mxu0 %vm1609_vm0, %v17970_v25  ;;  %16317 = vmatmul.mubr.msk.bf16.gmra.mrb[128].mxu1 %vm1609_vm0, %v17971_v26  ;;  %v18036_v25 = vld [vmem:[%s18353_s11 + $0x308] sm:$0xff]  }
 0x2ab   : > { %15904 = vmatprep.mubr.msk.bf16.mxu0 %vm1609_vm0, %v17973_v27  ;;  %16320 = vmatprep.mubr.msk.bf16.mxu1 %vm1609_vm0, %v17974_v28  ;;  %v18037_v26 = vld [vmem:[%s18358_s14 + $0x308] sm:$0xff]   ;;  %v18038_v27 = vld [vmem:[%s18353_s11 + $0x38] sm:$0xff]  }
 0x2ac   : > { %v18039_v28 = vld [vmem:[%s18358_s14 + $0x38] sm:$0xff]  }
 0x2b2   : > { %15905 = vmatmul.mubr.msk.bf16.gmra.mrb[132].mxu0 %vm1609_vm0, %v17975_v29  ;;  %16321 = vmatmul.mubr.msk.bf16.gmra.mrb[132].mxu1 %vm1609_vm0, %v17976_v22  ;;  %v18040_v29 = vld [vmem:[%s18353_s11 + $0x40] sm:$0xff]  }
 0x2b3   : > { %15908 = vmatprep.mubr.msk.bf16.mxu0 %vm1609_vm0, %v17977_v30  ;;  %16324 = vmatprep.mubr.msk.bf16.mxu1 %vm1609_vm0, %v17978_v31  ;;  %v18041_v22 = vld [vmem:[%s18358_s14 + $0x40] sm:$0xff]   ;;  %v18042_v30 = vld [vmem:[%s18353_s11 + $0x48] sm:$0xff]  }
 0x2b4   : > { %v18043_v31 = vld [vmem:[%s18358_s14 + $0x48] sm:$0xff]  }
 0x2ba   : > { %15909 = vmatmul.mubr.msk.bf16.gmra.mrb[136].mxu0 %vm1609_vm0, %v17979_v32  ;;  %16325 = vmatmul.mubr.msk.bf16.gmra.mrb[136].mxu1 %vm1609_vm0, %v17980_v33  ;;  %v18044_v32 = vld [vmem:[%s18353_s11 + $0x50] sm:$0xff]  }
 0x2bb   : > { %15912 = vmatprep.mubr.msk.bf16.mxu0 %vm1609_vm0, %v17981_v34  ;;  %16328 = vmatprep.mubr.msk.bf16.mxu1 %vm1609_vm0, %v17982_v35  ;;  %v18045_v33 = vld [vmem:[%s18358_s14 + $0x50] sm:$0xff]   ;;  %v18046_v34 = vld [vmem:[%s18353_s11 + $0x58] sm:$0xff]  }
 0x2bc   : > { %v18047_v35 = vld [vmem:[%s18358_s14 + $0x58] sm:$0xff]  }
 0x2c2   : > { %15913 = vmatmul.mubr.msk.bf16.gmra.mrb[140].mxu0 %vm1609_vm0, %v17983_v36  ;;  %16329 = vmatmul.mubr.msk.bf16.gmra.mrb[140].mxu1 %vm1609_vm0, %v17984_v37  ;;  %v18048_v36 = vld [vmem:[%s18353_s11 + $0x60] sm:$0xff]  }
 0x2c3   : > { %15916 = vmatprep.mubr.msk.bf16.mxu0 %vm1609_vm0, %v17985_v38  ;;  %16332 = vmatprep.mubr.msk.bf16.mxu1 %vm1609_vm0, %v17986_v39  ;;  %v18049_v37 = vld [vmem:[%s18358_s14 + $0x60] sm:$0xff]   ;;  %v18050_v38 = vld [vmem:[%s18353_s11 + $0x68] sm:$0xff]  }
 0x2c4   : > { %v18051_v39 = vld [vmem:[%s18358_s14 + $0x68] sm:$0xff]  }
 0x2ca   : > { %15917 = vmatmul.mubr.msk.bf16.gmra.mrb[144].mxu0 %vm1609_vm0, %v17987_v40  ;;  %16333 = vmatmul.mubr.msk.bf16.gmra.mrb[144].mxu1 %vm1609_vm0, %v17988_v41  ;;  %v18052_v40 = vld [vmem:[%s18353_s11 + $0x70] sm:$0xff]  }
 0x2cb   : > { %15920 = vmatprep.mubr.msk.bf16.mxu0 %vm1609_vm0, %v17989_v42  ;;  %16336 = vmatprep.mubr.msk.bf16.mxu1 %vm1609_vm0, %v17990_v43  ;;  %v18053_v41 = vld [vmem:[%s18358_s14 + $0x70] sm:$0xff]   ;;  %v18054_v42 = vld [vmem:[%s18353_s11 + $0x78] sm:$0xff]  }
 0x2cc   : > { %v18055_v43 = vld [vmem:[%s18358_s14 + $0x78] sm:$0xff]  }
 0x2d2   : > { %15921 = vmatmul.mubr.msk.bf16.gmra.mrb[148].mxu0 %vm1609_vm0, %v17991_v44  ;;  %16337 = vmatmul.mubr.msk.bf16.gmra.mrb[148].mxu1 %vm1609_vm0, %v17992_v45  ;;  %v18056_v44 = vld [vmem:[%s18353_s11 + $0x80] sm:$0xff]  }
 0x2d3   : > { %15924 = vmatprep.mubr.msk.bf16.mxu0 %vm1609_vm0, %v17993_v46  ;;  %16340 = vmatprep.mubr.msk.bf16.mxu1 %vm1609_vm0, %v17994_v47  ;;  %v18057_v45 = vld [vmem:[%s18358_s14 + $0x80] sm:$0xff]   ;;  %v18058_v46 = vld [vmem:[%s18353_s11 + $0x88] sm:$0xff]  }
 0x2d4   : > { %v18059_v47 = vld [vmem:[%s18358_s14 + $0x88] sm:$0xff]  }
 0x2da   : > { %15925 = vmatmul.mubr.msk.bf16.gmra.mrb[152].mxu0 %vm1609_vm0, %v17995_v48  ;;  %16341 = vmatmul.mubr.msk.bf16.gmra.mrb[152].mxu1 %vm1609_vm0, %v17996_v49  ;;  %v18060_v48 = vld [vmem:[%s18353_s11 + $0x90] sm:$0xff]  }
 0x2db   : > { %15928 = vmatprep.mubr.msk.bf16.mxu0 %vm1609_vm0, %v17997_v50  ;;  %16344 = vmatprep.mubr.msk.bf16.mxu1 %vm1609_vm0, %v17998_v51  ;;  %v18061_v49 = vld [vmem:[%s18358_s14 + $0x90] sm:$0xff]   ;;  %v18062_v50 = vld [vmem:[%s18353_s11 + $0x98] sm:$0xff]  }
 0x2dc   : > { %v18063_v51 = vld [vmem:[%s18358_s14 + $0x98] sm:$0xff]  }
 0x2e2   : > { %15929 = vmatmul.mubr.msk.bf16.gmra.mrb[156].mxu0 %vm1609_vm0, %v17999_v52  ;;  %16345 = vmatmul.mubr.msk.bf16.gmra.mrb[156].mxu1 %vm1609_vm0, %v18000_v53  ;;  %v18064_v52 = vld [vmem:[%s18353_s11 + $0xa0] sm:$0xff]  }
 0x2e3   : > { %15932 = vmatprep.mubr.msk.bf16.mxu0 %vm1609_vm0, %v18001_v54  ;;  %16348 = vmatprep.mubr.msk.bf16.mxu1 %vm1609_vm0, %v18002_v55  ;;  %v18065_v53 = vld [vmem:[%s18358_s14 + $0xa0] sm:$0xff]   ;;  %v18066_v54 = vld [vmem:[%s18353_s11 + $0xa8] sm:$0xff]  }
 0x2e4   : > { %v18067_v55 = vld [vmem:[%s18358_s14 + $0xa8] sm:$0xff]  }
 0x2ea   : > { %15933 = vmatmul.mubr.msk.bf16.gmra.mrb[160].mxu0 %vm1609_vm0, %v18003_v56  ;;  %16349 = vmatmul.mubr.msk.bf16.gmra.mrb[160].mxu1 %vm1609_vm0, %v18004_v57  ;;  %v18068_v56 = vld [vmem:[%s18353_s11 + $0xb0] sm:$0xff]  }
 0x2eb   : > { %15936 = vmatprep.mubr.msk.bf16.mxu0 %vm1609_vm0, %v18005_v58  ;;  %16352 = vmatprep.mubr.msk.bf16.mxu1 %vm1609_vm0, %v18006_v59  ;;  %v18069_v57 = vld [vmem:[%s18358_s14 + $0xb0] sm:$0xff]   ;;  %v18070_v58 = vld [vmem:[%s18353_s11 + $0xb8] sm:$0xff]  }
 0x2ec   : > { %v18071_v59 = vld [vmem:[%s18358_s14 + $0xb8] sm:$0xff]  }
 0x2f2   : > { %15937 = vmatmul.mubr.msk.bf16.gmra.mrb[164].mxu0 %vm1609_vm0, %v18008_v60  ;;  %16353 = vmatmul.mubr.msk.bf16.gmra.mrb[164].mxu1 %vm1609_vm0, %v18009_v61  ;;  %v18072_v60 = vld [vmem:[%s18353_s11 + $0xc0] sm:$0xff]  }
 0x2f3   : > { %15940 = vmatprep.mubr.msk.bf16.mxu0 %vm1609_vm0, %v18010_v62  ;;  %16356 = vmatprep.mubr.msk.bf16.mxu1 %vm1609_vm0, %v18011_v63  ;;  %v18073_v61 = vld [vmem:[%s18358_s14 + $0xc0] sm:$0xff]   ;;  %v18074_v62 = vld [vmem:[%s18353_s11 + $0xc8] sm:$0xff]  }
 0x2f4   : > { %v18075_v63 = vld [vmem:[%s18358_s14 + $0xc8] sm:$0xff]  }
 0x2fa   : > { %15941 = vmatmul.mubr.msk.bf16.gmra.mrb[168].mxu0 %vm1609_vm0, %v18012_v0  ;;  %16357 = vmatmul.mubr.msk.bf16.gmra.mrb[168].mxu1 %vm1609_vm0, %v18013_v1  ;;  %v18076_v0 = vld [vmem:[%s18353_s11 + $0xd0] sm:$0xff]  }
 0x2fb   : > { %15944 = vmatprep.mubr.msk.bf16.mxu0 %vm1609_vm0, %v18014_v2  ;;  %16360 = vmatprep.mubr.msk.bf16.mxu1 %vm1609_vm0, %v18015_v3  ;;  %v18077_v1 = vld [vmem:[%s18358_s14 + $0xd0] sm:$0xff]   ;;  %v18078_v2 = vld [vmem:[%s18353_s11 + $0xd8] sm:$0xff]  }
 0x2fc   : > { %v18079_v3 = vld [vmem:[%s18358_s14 + $0xd8] sm:$0xff]  }
 0x302   : > { %15945 = vmatmul.mubr.msk.bf16.gmra.mrb[172].mxu0 %vm1609_vm0, %v18016_v4  ;;  %16361 = vmatmul.mubr.msk.bf16.gmra.mrb[172].mxu1 %vm1609_vm0, %v18017_v5  ;;  %v18080_v4 = vld [vmem:[%s18353_s11 + $0xe0] sm:$0xff]  }
 0x303   : > { %15948 = vmatprep.mubr.msk.bf16.mxu0 %vm1609_vm0, %v18018_v6  ;;  %16364 = vmatprep.mubr.msk.bf16.mxu1 %vm1609_vm0, %v18019_v7  ;;  %v18081_v5 = vld [vmem:[%s18358_s14 + $0xe0] sm:$0xff]   ;;  %v18082_v6 = vld [vmem:[%s18353_s11 + $0xe8] sm:$0xff]  }
 0x304   : > { %v18083_v7 = vld [vmem:[%s18358_s14 + $0xe8] sm:$0xff]  }
 0x30a   : > { %15949 = vmatmul.mubr.msk.bf16.gmra.mrb[176].mxu0 %vm1609_vm0, %v18020_v8  ;;  %16365 = vmatmul.mubr.msk.bf16.gmra.mrb[176].mxu1 %vm1609_vm0, %v18021_v9  ;;  %v18084_v8 = vld [vmem:[%s18353_s11 + $0xf0] sm:$0xff]  }
 0x30b   : > { %15952 = vmatprep.mubr.msk.bf16.mxu0 %vm1609_vm0, %v18022_v10  ;;  %16368 = vmatprep.mubr.msk.bf16.mxu1 %vm1609_vm0, %v18023_v11  ;;  %v18085_v9 = vld [vmem:[%s18358_s14 + $0xf0] sm:$0xff]   ;;  %v18086_v10 = vld [vmem:[%s18353_s11 + $0xf8] sm:$0xff]  }
 0x30c   : > { %v18087_v11 = vld [vmem:[%s18358_s14 + $0xf8] sm:$0xff]  }
 0x312   : > { %15953 = vmatmul.mubr.msk.bf16.gmra.mrb[180].mxu0 %vm1609_vm0, %v18024_v12  ;;  %16369 = vmatmul.mubr.msk.bf16.gmra.mrb[180].mxu1 %vm1609_vm0, %v18025_v13  ;;  %v18088_v12 = vld [vmem:[%s18353_s11 + $0x100] sm:$0xff]  }
 0x313   : > { %15956 = vmatprep.mubr.msk.bf16.mxu0 %vm1609_vm0, %v18026_v14  ;;  %16372 = vmatprep.mubr.msk.bf16.mxu1 %vm1609_vm0, %v18027_v15  ;;  %v18089_v13 = vld [vmem:[%s18358_s14 + $0x100] sm:$0xff]   ;;  %v18090_v14 = vld [vmem:[%s18353_s11 + $0x108] sm:$0xff]  }
 0x314   : > { %v18091_v15 = vld [vmem:[%s18358_s14 + $0x108] sm:$0xff]  }
 0x31a   : > { %15957 = vmatmul.mubr.msk.bf16.gmra.mrb[184].mxu0 %vm1609_vm0, %v18028_v16  ;;  %16373 = vmatmul.mubr.msk.bf16.gmra.mrb[184].mxu1 %vm1609_vm0, %v18029_v17  ;;  %v18092_v16 = vld [vmem:[%s18353_s11 + $0x110] sm:$0xff]  }
 0x31b   : > { %15960 = vmatprep.mubr.msk.bf16.mxu0 %vm1609_vm0, %v18030_v18  ;;  %16376 = vmatprep.mubr.msk.bf16.mxu1 %vm1609_vm0, %v18031_v19  ;;  %v18093_v17 = vld [vmem:[%s18358_s14 + $0x110] sm:$0xff]   ;;  %v18094_v18 = vld [vmem:[%s18353_s11 + $0x118] sm:$0xff]  }
 0x31c   : > { %v18095_v19 = vld [vmem:[%s18358_s14 + $0x118] sm:$0xff]  }
 0x322   : > { %15961 = vmatmul.mubr.msk.bf16.gmra.mrb[188].mxu0 %vm1609_vm0, %v18032_v20  ;;  %16377 = vmatmul.mubr.msk.bf16.gmra.mrb[188].mxu1 %vm1609_vm0, %v18033_v21  ;;  %v18096_v20 = vld [vmem:[%s18353_s11 + $0x120] sm:$0xff]  }
 0x323   : > { %15964 = vmatprep.mubr.msk.bf16.mxu0 %vm1609_vm0, %v18034_v23  ;;  %16380 = vmatprep.mubr.msk.bf16.mxu1 %vm1609_vm0, %v18035_v24  ;;  %v18097_v21 = vld [vmem:[%s18358_s14 + $0x120] sm:$0xff]   ;;  %v18098_v23 = vld [vmem:[%s18353_s11 + $0x128] sm:$0xff]  }
 0x324   : > { %v18099_v24 = vld [vmem:[%s18358_s14 + $0x128] sm:$0xff]  }
 0x32a   : > { %15965 = vmatmul.mubr.msk.bf16.gmra.mrb[192].mxu0 %vm1609_vm0, %v18036_v25  ;;  %16381 = vmatmul.mubr.msk.bf16.gmra.mrb[192].mxu1 %vm1609_vm0, %v18037_v26  ;;  %v18100_v25 = vld [vmem:[%s18353_s11 + $0x130] sm:$0xff]  }
 0x32b   : > { %16396 = vmatprep.mubr.msk.bf16.mxu0 %vm1609_vm0, %v18038_v27  ;;  %16604 = vmatprep.mubr.msk.bf16.mxu1 %vm1609_vm0, %v18039_v28  ;;  %v18101_v26 = vld [vmem:[%s18358_s14 + $0x130] sm:$0xff]   ;;  %v18102_v27 = vld [vmem:[%s18353_s11 + $0x138] sm:$0xff]  }
 0x32c   : > { %v18103_v28 = vld [vmem:[%s18358_s14 + $0x138] sm:$0xff]  }
 0x332   : > { %16397 = vmatmul.mubr.msk.bf16.vlgmr.msra.gmra.mrb[0].mxu0 %vm1609_vm0, %v18040_v29  ;;  %16605 = vmatmul.mubr.msk.bf16.vlgmr.msra.gmra.mrb[0].mxu1 %vm1609_vm0, %v18041_v22  ;;  %v18104_v29 = vld [vmem:[%s18353_s11 + $0x140] sm:$0xff]  }
 0x333   : > { %16400 = vmatprep.mubr.msk.bf16.mxu0 %vm1609_vm0, %v18042_v30  ;;  %16608 = vmatprep.mubr.msk.bf16.mxu1 %vm1609_vm0, %v18043_v31  ;;  %v18105_v22 = vld [vmem:[%s18358_s14 + $0x140] sm:$0xff]   ;;  %v18106_v30 = vld [vmem:[%s18353_s11 + $0x148] sm:$0xff]  }
 0x334   : > { %v18107_v31 = vld [vmem:[%s18358_s14 + $0x148] sm:$0xff]  }
 0x33a   : > { %16401 = vmatmul.mubr.msk.bf16.gmra.mrb[4].mxu0 %vm1609_vm0, %v18044_v32  ;;  %16609 = vmatmul.mubr.msk.bf16.gmra.mrb[4].mxu1 %vm1609_vm0, %v18045_v33  ;;  %v18108_v32 = vld [vmem:[%s18353_s11 + $0x150] sm:$0xff]  }
 0x33b   : > { %16404 = vmatprep.mubr.msk.bf16.mxu0 %vm1609_vm0, %v18046_v34  ;;  %16612 = vmatprep.mubr.msk.bf16.mxu1 %vm1609_vm0, %v18047_v35  ;;  %v18109_v33 = vld [vmem:[%s18358_s14 + $0x150] sm:$0xff]   ;;  %v18110_v34 = vld [vmem:[%s18353_s11 + $0x158] sm:$0xff]  }
 0x33c   : > { %v18111_v35 = vld [vmem:[%s18358_s14 + $0x158] sm:$0xff]  }
 0x342   : > { %16405 = vmatmul.mubr.msk.bf16.gmra.mrb[8].mxu0 %vm1609_vm0, %v18048_v36  ;;  %16613 = vmatmul.mubr.msk.bf16.gmra.mrb[8].mxu1 %vm1609_vm0, %v18049_v37  ;;  %v18112_v36 = vld [vmem:[%s18353_s11 + $0x160] sm:$0xff]  }
 0x343   : > { %16408 = vmatprep.mubr.msk.bf16.mxu0 %vm1609_vm0, %v18050_v38  ;;  %16616 = vmatprep.mubr.msk.bf16.mxu1 %vm1609_vm0, %v18051_v39  ;;  %v18113_v37 = vld [vmem:[%s18358_s14 + $0x160] sm:$0xff]   ;;  %v18114_v38 = vld [vmem:[%s18353_s11 + $0x168] sm:$0xff]  }
 0x344   : > { %v18115_v39 = vld [vmem:[%s18358_s14 + $0x168] sm:$0xff]  }
 0x34a   : > { %16409 = vmatmul.mubr.msk.bf16.gmra.mrb[12].mxu0 %vm1609_vm0, %v18052_v40  ;;  %16617 = vmatmul.mubr.msk.bf16.gmra.mrb[12].mxu1 %vm1609_vm0, %v18053_v41  ;;  %v18116_v40 = vld [vmem:[%s18353_s11 + $0x170] sm:$0xff]  }
 0x34b   : > { %16412 = vmatprep.mubr.msk.bf16.mxu0 %vm1609_vm0, %v18054_v42  ;;  %16620 = vmatprep.mubr.msk.bf16.mxu1 %vm1609_vm0, %v18055_v43  ;;  %v18117_v41 = vld [vmem:[%s18358_s14 + $0x170] sm:$0xff]   ;;  %v18118_v42 = vld [vmem:[%s18353_s11 + $0x178] sm:$0xff]  }
 0x34c   : > { %v18119_v43 = vld [vmem:[%s18358_s14 + $0x178] sm:$0xff]  }
 0x352   : > { %16413 = vmatmul.mubr.msk.bf16.gmra.mrb[16].mxu0 %vm1609_vm0, %v18056_v44  ;;  %16621 = vmatmul.mubr.msk.bf16.gmra.mrb[16].mxu1 %vm1609_vm0, %v18057_v45  ;;  %v18120_v44 = vld [vmem:[%s18353_s11 + $0x180] sm:$0xff]  }
 0x353   : > { %16416 = vmatprep.mubr.msk.bf16.mxu0 %vm1609_vm0, %v18058_v46  ;;  %16624 = vmatprep.mubr.msk.bf16.mxu1 %vm1609_vm0, %v18059_v47  ;;  %v18121_v45 = vld [vmem:[%s18358_s14 + $0x180] sm:$0xff]   ;;  %v18122_v46 = vld [vmem:[%s18353_s11 + $0x188] sm:$0xff]  }
 0x354   : > { %v18123_v47 = vld [vmem:[%s18358_s14 + $0x188] sm:$0xff]  }
 0x35a   : > { %16417 = vmatmul.mubr.msk.bf16.gmra.mrb[20].mxu0 %vm1609_vm0, %v18060_v48  ;;  %16625 = vmatmul.mubr.msk.bf16.gmra.mrb[20].mxu1 %vm1609_vm0, %v18061_v49  ;;  %v18124_v48 = vld [vmem:[%s18353_s11 + $0x190] sm:$0xff]  }
 0x35b   : > { %16420 = vmatprep.mubr.msk.bf16.mxu0 %vm1609_vm0, %v18062_v50  ;;  %16628 = vmatprep.mubr.msk.bf16.mxu1 %vm1609_vm0, %v18063_v51  ;;  %v18125_v49 = vld [vmem:[%s18358_s14 + $0x190] sm:$0xff]   ;;  %v18126_v50 = vld [vmem:[%s18353_s11 + $0x198] sm:$0xff]  }
 0x35c   : > { %v18127_v51 = vld [vmem:[%s18358_s14 + $0x198] sm:$0xff]  }
 0x362   : > { %16421 = vmatmul.mubr.msk.bf16.gmra.mrb[24].mxu0 %vm1609_vm0, %v18064_v52  ;;  %16629 = vmatmul.mubr.msk.bf16.gmra.mrb[24].mxu1 %vm1609_vm0, %v18065_v53  ;;  %v18128_v52 = vld [vmem:[%s18353_s11 + $0x1a0] sm:$0xff]  }
 0x363   : > { %16424 = vmatprep.mubr.msk.bf16.mxu0 %vm1609_vm0, %v18066_v54  ;;  %16632 = vmatprep.mubr.msk.bf16.mxu1 %vm1609_vm0, %v18067_v55  ;;  %v18129_v53 = vld [vmem:[%s18358_s14 + $0x1a0] sm:$0xff]   ;;  %v18130_v54 = vld [vmem:[%s18353_s11 + $0x1a8] sm:$0xff]  }
 0x364   : > { %v18131_v55 = vld [vmem:[%s18358_s14 + $0x1a8] sm:$0xff]  }
 0x36a   : > { %16425 = vmatmul.mubr.msk.bf16.gmra.mrb[28].mxu0 %vm1609_vm0, %v18068_v56  ;;  %16633 = vmatmul.mubr.msk.bf16.gmra.mrb[28].mxu1 %vm1609_vm0, %v18069_v57  ;;  %v18132_v56 = vld [vmem:[%s18353_s11 + $0x1b0] sm:$0xff]  }
 0x36b   : > { %16428 = vmatprep.mubr.msk.bf16.mxu0 %vm1609_vm0, %v18070_v58  ;;  %16636 = vmatprep.mubr.msk.bf16.mxu1 %vm1609_vm0, %v18071_v59  ;;  %v18133_v57 = vld [vmem:[%s18358_s14 + $0x1b0] sm:$0xff]   ;;  %v18134_v58 = vld [vmem:[%s18353_s11 + $0x1b8] sm:$0xff]  }
 0x36c   : > { %v18135_v59 = vld [vmem:[%s18358_s14 + $0x1b8] sm:$0xff]  }
 0x372   : > { %16429 = vmatmul.mubr.msk.bf16.gmra.mrb[32].mxu0 %vm1609_vm0, %v18072_v60  ;;  %16637 = vmatmul.mubr.msk.bf16.gmra.mrb[32].mxu1 %vm1609_vm0, %v18073_v61  ;;  %v18136_v60 = vld [vmem:[%s18353_s11 + $0x1c0] sm:$0xff]  }
 0x373   : > { %16432 = vmatprep.mubr.msk.bf16.mxu0 %vm1609_vm0, %v18074_v62  ;;  %16640 = vmatprep.mubr.msk.bf16.mxu1 %vm1609_vm0, %v18075_v63  ;;  %v18137_v61 = vld [vmem:[%s18358_s14 + $0x1c0] sm:$0xff]   ;;  %v18138_v62 = vld [vmem:[%s18353_s11 + $0x1c8] sm:$0xff]  }
 0x374   : > { %v18139_v63 = vld [vmem:[%s18358_s14 + $0x1c8] sm:$0xff]  }
 0x37a   : > { %16433 = vmatmul.mubr.msk.bf16.gmra.mrb[36].mxu0 %vm1609_vm0, %v18076_v0  ;;  %16641 = vmatmul.mubr.msk.bf16.gmra.mrb[36].mxu1 %vm1609_vm0, %v18077_v1  ;;  %v18140_v0 = vld [vmem:[%s18353_s11 + $0x1d0] sm:$0xff]  }
 0x37b   : > { %16436 = vmatprep.mubr.msk.bf16.mxu0 %vm1609_vm0, %v18078_v2  ;;  %16644 = vmatprep.mubr.msk.bf16.mxu1 %vm1609_vm0, %v18079_v3  ;;  %v18141_v1 = vld [vmem:[%s18358_s14 + $0x1d0] sm:$0xff]   ;;  %v18142_v2 = vld [vmem:[%s18353_s11 + $0x1d8] sm:$0xff]  }
 0x37c   : > { %v18143_v3 = vld [vmem:[%s18358_s14 + $0x1d8] sm:$0xff]  }
 0x382   : > { %16437 = vmatmul.mubr.msk.bf16.gmra.mrb[40].mxu0 %vm1609_vm0, %v18080_v4  ;;  %16645 = vmatmul.mubr.msk.bf16.gmra.mrb[40].mxu1 %vm1609_vm0, %v18081_v5  ;;  %v18144_v4 = vld [vmem:[%s18353_s11 + $0x1e0] sm:$0xff]  }
 0x383   : > { %16440 = vmatprep.mubr.msk.bf16.mxu0 %vm1609_vm0, %v18082_v6  ;;  %16648 = vmatprep.mubr.msk.bf16.mxu1 %vm1609_vm0, %v18083_v7  ;;  %v18145_v5 = vld [vmem:[%s18358_s14 + $0x1e0] sm:$0xff]   ;;  %v18146_v6 = vld [vmem:[%s18353_s11 + $0x1e8] sm:$0xff]  }
 0x384   : > { %v18147_v7 = vld [vmem:[%s18358_s14 + $0x1e8] sm:$0xff]  }
 0x38a   : > { %16441 = vmatmul.mubr.msk.bf16.gmra.mrb[44].mxu0 %vm1609_vm0, %v18084_v8  ;;  %16649 = vmatmul.mubr.msk.bf16.gmra.mrb[44].mxu1 %vm1609_vm0, %v18085_v9 }
 0x38b   : > { %16444 = vmatprep.mubr.msk.bf16.mxu0 %vm1609_vm0, %v18086_v10  ;;  %16652 = vmatprep.mubr.msk.bf16.mxu1 %vm1609_vm0, %v18087_v11 }
 0x392   : > { %16445 = vmatmul.mubr.msk.bf16.gmra.mrb[48].mxu0 %vm1609_vm0, %v18088_v12  ;;  %16653 = vmatmul.mubr.msk.bf16.gmra.mrb[48].mxu1 %vm1609_vm0, %v18089_v13  ;;  %v18148_v13 = vld [vmem:[%s18353_s11 + $0x1f0] sm:$0xff]  }
 0x393   : > { %16448 = vmatprep.mubr.msk.bf16.mxu0 %vm1609_vm0, %v18090_v14  ;;  %16656 = vmatprep.mubr.msk.bf16.mxu1 %vm1609_vm0, %v18091_v15  ;;  %v18149_v14 = vld [vmem:[%s18358_s14 + $0x1f0] sm:$0xff]  }
 0x39a   : > { %16449 = vmatmul.mubr.msk.bf16.gmra.mrb[52].mxu0 %vm1609_vm0, %v18092_v16  ;;  %16657 = vmatmul.mubr.msk.bf16.gmra.mrb[52].mxu1 %vm1609_vm0, %v18093_v17 }
 0x39b   : > { %16452 = vmatprep.mubr.msk.bf16.mxu0 %vm1609_vm0, %v18094_v18  ;;  %16660 = vmatprep.mubr.msk.bf16.mxu1 %vm1609_vm0, %v18095_v19  ;;  %v18150_v18 = vld [vmem:[%s18353_s11 + $0x1f8] sm:$0xff]  }
 0x39c   : > { %v18151_v19 = vld [vmem:[%s18358_s14 + $0x1f8] sm:$0xff]  }
 0x3a2   : > { %16453 = vmatmul.mubr.msk.bf16.gmra.mrb[56].mxu0 %vm1609_vm0, %v18096_v20  ;;  %16661 = vmatmul.mubr.msk.bf16.gmra.mrb[56].mxu1 %vm1609_vm0, %v18097_v21 }
 0x3a3   : > { %16456 = vmatprep.mubr.msk.bf16.mxu0 %vm1609_vm0, %v18098_v23  ;;  %16664 = vmatprep.mubr.msk.bf16.mxu1 %vm1609_vm0, %v18099_v24 }
 0x3aa   : > { %16457 = vmatmul.mubr.msk.bf16.gmra.mrb[60].mxu0 %vm1609_vm0, %v18100_v25  ;;  %16665 = vmatmul.mubr.msk.bf16.gmra.mrb[60].mxu1 %vm1609_vm0, %v18101_v26 }
 0x3ab   : > { %16460 = vmatprep.mubr.msk.bf16.mxu0 %vm1609_vm0, %v18102_v27  ;;  %16668 = vmatprep.mubr.msk.bf16.mxu1 %vm1609_vm0, %v18103_v28 }
 0x3b2   : > { %16461 = vmatmul.mubr.msk.bf16.gmra.mrb[64].mxu0 %vm1609_vm0, %v18104_v29  ;;  %16669 = vmatmul.mubr.msk.bf16.gmra.mrb[64].mxu1 %vm1609_vm0, %v18105_v22  ;;  %v18152_v22 = vld [vmem:[%s18353_s11 + $0x200] sm:$0xff]  }
 0x3b3   : > { %16464 = vmatprep.mubr.msk.bf16.mxu0 %vm1609_vm0, %v18106_v30  ;;  %16672 = vmatprep.mubr.msk.bf16.mxu1 %vm1609_vm0, %v18107_v31  ;;  %v18153_v30 = vld [vmem:[%s18358_s14 + $0x200] sm:$0xff]  }
 0x3ba   : > { %16465 = vmatmul.mubr.msk.bf16.gmra.mrb[68].mxu0 %vm1609_vm0, %v18108_v32  ;;  %16673 = vmatmul.mubr.msk.bf16.gmra.mrb[68].mxu1 %vm1609_vm0, %v18109_v33 }
 0x3bb   : > { %16468 = vmatprep.mubr.msk.bf16.mxu0 %vm1609_vm0, %v18110_v34  ;;  %16676 = vmatprep.mubr.msk.bf16.mxu1 %vm1609_vm0, %v18111_v35  ;;  %v18154_v34 = vld [vmem:[%s18353_s11 + $0x208] sm:$0xff]  }
 0x3bc   : > { %v18155_v35 = vld [vmem:[%s18358_s14 + $0x208] sm:$0xff]  }
 0x3c2   : > { %16469 = vmatmul.mubr.msk.bf16.gmra.mrb[72].mxu0 %vm1609_vm0, %v18112_v36  ;;  %16677 = vmatmul.mubr.msk.bf16.gmra.mrb[72].mxu1 %vm1609_vm0, %v18113_v37 }
 0x3c3   : > { %16472 = vmatprep.mubr.msk.bf16.mxu0 %vm1609_vm0, %v18114_v38  ;;  %16680 = vmatprep.mubr.msk.bf16.mxu1 %vm1609_vm0, %v18115_v39  ;;  %v19451_v39 = vld [vmem:[%s20083_s3] ss:$0 sm:$0xff] }
 0x3ca   : > { %16473 = vmatmul.mubr.msk.bf16.gmra.mrb[76].mxu0 %vm1609_vm0, %v18116_v40  ;;  %16681 = vmatmul.mubr.msk.bf16.gmra.mrb[76].mxu1 %vm1609_vm0, %v18117_v41 }
 0x3cb   : > { %16476 = vmatprep.mubr.msk.bf16.mxu0 %vm1609_vm0, %v18118_v42  ;;  %16684 = vmatprep.mubr.msk.bf16.mxu1 %vm1609_vm0, %v18119_v43 }
 0x3d2   : > { %16477 = vmatmul.mubr.msk.bf16.gmra.mrb[80].mxu0 %vm1609_vm0, %v18120_v44  ;;  %16685 = vmatmul.mubr.msk.bf16.gmra.mrb[80].mxu1 %vm1609_vm0, %v18121_v45 }
 0x3d3   : > { %16480 = vmatprep.mubr.msk.bf16.mxu0 %vm1609_vm0, %v18122_v46  ;;  %16688 = vmatprep.mubr.msk.bf16.mxu1 %vm1609_vm0, %v18123_v47 }
 0x3da   : > { %16481 = vmatmul.mubr.msk.bf16.gmra.mrb[84].mxu0 %vm1609_vm0, %v18124_v48  ;;  %16689 = vmatmul.mubr.msk.bf16.gmra.mrb[84].mxu1 %vm1609_vm0, %v18125_v49  ;;  %v18156_v49 = vld [vmem:[%s18353_s11 + $0x210] sm:$0xff]  }
 0x3db   : > { %16484 = vmatprep.mubr.msk.bf16.mxu0 %vm1609_vm0, %v18126_v50  ;;  %16692 = vmatprep.mubr.msk.bf16.mxu1 %vm1609_vm0, %v18127_v51  ;;  %v18157_v50 = vld [vmem:[%s18358_s14 + $0x210] sm:$0xff]  }
 0x3e2   : > { %16485 = vmatmul.mubr.msk.bf16.gmra.mrb[88].mxu0 %vm1609_vm0, %v18128_v52  ;;  %16693 = vmatmul.mubr.msk.bf16.gmra.mrb[88].mxu1 %vm1609_vm0, %v18129_v53 }
 0x3e3   : > { %16488 = vmatprep.mubr.msk.bf16.mxu0 %vm1609_vm0, %v18130_v54  ;;  %16696 = vmatprep.mubr.msk.bf16.mxu1 %vm1609_vm0, %v18131_v55  ;;  %v18158_v54 = vld [vmem:[%s18353_s11 + $0x218] sm:$0xff]  }
 0x3e4   : > { %v18159_v55 = vld [vmem:[%s18358_s14 + $0x218] sm:$0xff]  }
 0x3ea   : > { %16489 = vmatmul.mubr.msk.bf16.gmra.mrb[92].mxu0 %vm1609_vm0, %v18132_v56  ;;  %16697 = vmatmul.mubr.msk.bf16.gmra.mrb[92].mxu1 %vm1609_vm0, %v18133_v57 }
 0x3eb   : > { %16492 = vmatprep.mubr.msk.bf16.mxu0 %vm1609_vm0, %v18134_v58  ;;  %16700 = vmatprep.mubr.msk.bf16.mxu1 %vm1609_vm0, %v18135_v59 }
 0x3f2   : > { %16493 = vmatmul.mubr.msk.bf16.gmra.mrb[96].mxu0 %vm1609_vm0, %v18136_v60  ;;  %16701 = vmatmul.mubr.msk.bf16.gmra.mrb[96].mxu1 %vm1609_vm0, %v18137_v61 }
 0x3f3   : > { %16496 = vmatprep.mubr.msk.bf16.mxu0 %vm1609_vm0, %v18138_v62  ;;  %16704 = vmatprep.mubr.msk.bf16.mxu1 %vm1609_vm0, %v18139_v63 }
 0x3fa   : > { %16497 = vmatmul.mubr.msk.bf16.gmra.mrb[100].mxu0 %vm1609_vm0, %v18140_v0  ;;  %16705 = vmatmul.mubr.msk.bf16.gmra.mrb[100].mxu1 %vm1609_vm0, %v18141_v1 }
 0x3fb   : > { %16500 = vmatprep.mubr.msk.bf16.mxu0 %vm1609_vm0, %v18142_v2  ;;  %16708 = vmatprep.mubr.msk.bf16.mxu1 %vm1609_vm0, %v18143_v3 }
 0x402   : > { %16501 = vmatmul.mubr.msk.bf16.gmra.mrb[104].mxu0 %vm1609_vm0, %v18144_v4  ;;  %16709 = vmatmul.mubr.msk.bf16.gmra.mrb[104].mxu1 %vm1609_vm0, %v18145_v5 }
 0x403   : > { %16504 = vmatprep.mubr.msk.bf16.mxu0 %vm1609_vm0, %v18146_v6  ;;  %16712 = vmatprep.mubr.msk.bf16.mxu1 %vm1609_vm0, %v18147_v7 }
 0x405   : > { %v19413_v8 = vpop.f32.mrb[0].mxu0  ;;  %v19415_v9 = vpop.f32.mrb[0].mxu1 }
 0x406   : > { %v11599_v10 = vmax.f32 %v19413_v8, %v19415_v9  ;;  %v8821_v11 = vpop.f32.mrb[1].mxu0  ;;  %v10618_v12 = vpop.f32.mrb[1].mxu1 }
 0x407   : > { %v11597_v15 = vmax.f32 %v8821_v11, %v10618_v12  ;;  %v16399_v16 = vpop.f32.mrb[2].mxu0  ;;  %v16607_v17 = vpop.f32.mrb[2].mxu1 }
 0x408   : > { %v11600_v20 = vmax.f32 %v16399_v16, %v16607_v17  ;;  %v8824_v21 = vpop.f32.mrb[3].mxu0  ;;  %v10621_v23 = vpop.f32.mrb[3].mxu1 }
 0x409   : > { %v11598_v24 = vmax.f32 %v8824_v21, %v10621_v23  ;;  %v18162_v21 = vld [vmem:[%s18353_s11 + $0x228] sm:$0xff]  }
 0x40a   : > { %16505 = vmatmul.mubr.msk.bf16.gmra.mrb[108].mxu0 %vm1609_vm0, %v18148_v13  ;;  %16713 = vmatmul.mubr.msk.bf16.gmra.mrb[108].mxu1 %vm1609_vm0, %v18149_v14  ;;  %v18160_v14 = vld [vmem:[%s18353_s11 + $0x220] sm:$0xff]   ;;  %v18163_v23 = vld [vmem:[%s18358_s14 + $0x228] sm:$0xff]  }
 0x40b   : > { %16508 = vmatprep.mubr.msk.bf16.mxu0 %vm1609_vm0, %v18150_v18  ;;  %16716 = vmatprep.mubr.msk.bf16.mxu1 %vm1609_vm0, %v18151_v19 }
 0x40d   : > { %v19434_v25 = vpop.f32.mrb[4].mxu0  ;;  %v19436_v26 = vpop.f32.mrb[4].mxu1 }
 0x40e   : > { %v11603_v27 = vmax.f32 %v19434_v25, %v19436_v26  ;;  %v8837_v28 = vpop.f32.mrb[5].mxu0  ;;  %v10634_v29 = vpop.f32.mrb[5].mxu1  ;;  %v18164_v26 = vld [vmem:[%s18353_s11 + $0x230] sm:$0xff]  }
 0x40f   : > { %v11601_v31 = vmax.f32 %v8837_v28, %v10634_v29  ;;  %v16403_v32 = vpop.f32.mrb[6].mxu0  ;;  %v16611_v33 = vpop.f32.mrb[6].mxu1 }
 0x410   : > { %v11604_v36 = vmax.f32 %v16403_v32, %v16611_v33  ;;  %v19444_v37 = vpop.f32.mrb[7].mxu0  ;;  %v19446_v38 = vpop.f32.mrb[7].mxu1 }
 0x411   : > { %v11602_v40 = vmax.f32 %v19444_v37, %v19446_v38 }
 0x412   : > { %v11793_v41 = vmax.f32 %v11597_v15, %v11604_v36  ;;  %16509 = vmatmul.mubr.msk.bf16.gmra.mrb[112].mxu0 %vm1609_vm0, %v18152_v22  ;;  %16717 = vmatmul.mubr.msk.bf16.gmra.mrb[112].mxu1 %vm1609_vm0, %v18153_v30  ;;  %v18161_v15 = vld [vmem:[%s18358_s14 + $0x220] sm:$0xff]  }
 0x413   : > { %16512 = vmatprep.mubr.msk.bf16.mxu0 %vm1609_vm0, %v18154_v34  ;;  %16720 = vmatprep.mubr.msk.bf16.mxu1 %vm1609_vm0, %v18155_v35 }
 0x414   : > { %v11898_v42 = vadd.f32 %v19451_v39, %v11793_v41 }
 0x415   : > { %v16406_v43 = vpop.f32.mrb[8].mxu0  ;;  %v16614_v44 = vpop.f32.mrb[8].mxu1 }
 0x416   : > { %v11996_v45 = vmax.f32 %v11898_v42, 0.0  ;;  %v11607_v46 = vmax.f32 %v16406_v43, %v16614_v44  ;;  %v8853_v47 = vpop.f32.mrb[9].mxu0  ;;  %v10650_v48 = vpop.f32.mrb[9].mxu1 }
 0x417   : > { %v11605_v51 = vmax.f32 %v8853_v47, %v10650_v48  ;;  %v16407_v52 = vpop.f32.mrb[10].mxu0  ;;  %v16615_v53 = vpop.f32.mrb[10].mxu1  ;;  %v18166_v47 = vld [vmem:[%s18353_s11 + $0x238] sm:$0xff]  }
 0x418   : > { %v14830_v56 = vpack.c.bf16 %v11996_v45, %v11996_v45  ;;  %v11796_v57 = vmax.f32 %v11600_v20, %v11607_v46  ;;  %v11608_v58 = vmax.f32 %v16407_v52, %v16615_v53  ;;  %v8856_v59 = vpop.f32.mrb[11].mxu0  ;;  %v10653_v60 = vpop.f32.mrb[11].mxu1  ;;  %v18167_v48 = vld [vmem:[%s18358_s14 + $0x238] sm:$0xff]  }
 0x419   : > { %v11794_v61 = vmax.f32 %v11598_v24, %v11605_v51  ;;  %v11606_v62 = vmax.f32 %v8856_v59, %v10653_v60  ;;  %v18168_v59 = vld [vmem:[%s18353_s11 + $0x240] sm:$0xff]  }
 0x41a   : > { %12501 = vst.msk [vmem:[%s19465_s24] sm:$0xf] %vm12500_vm1, %v14830_v56  ;;  %v11901_v63 = vadd.f32 %v19451_v39, %v11796_v57  ;;  %v11797_v0 = vmax.f32 %v11601_v31, %v11608_v58  ;;  %16513 = vmatmul.mubr.msk.bf16.gmra.mrb[116].mxu0 %vm1609_vm0, %v18156_v49  ;;  %16721 = vmatmul.mubr.msk.bf16.gmra.mrb[116].mxu1 %vm1609_vm0, %v18157_v50  ;;  %v18169_v60 = vld [vmem:[%s18358_s14 + $0x240] sm:$0xff]  }
 0x41b   : > { %v11899_v1 = vadd.f32 %v19451_v39, %v11794_v61  ;;  %v11795_v2 = vmax.f32 %v11599_v10, %v11606_v62  ;;  %16516 = vmatprep.mubr.msk.bf16.mxu0 %vm1609_vm0, %v18158_v54  ;;  %16724 = vmatprep.mubr.msk.bf16.mxu1 %vm1609_vm0, %v18159_v55 }
 0x41c   : > { %v11999_v3 = vmax.f32 %v11901_v63, 0.0  ;;  %v11902_v4 = vadd.f32 %v19451_v39, %v11797_v0  ;;  %v18170_v0 = vld [vmem:[%s18353_s11 + $0x248] sm:$0xff]  }
 0x41d   : > { %v11997_v5 = vmax.f32 %v11899_v1, 0.0  ;;  %v11900_v6 = vadd.f32 %v19451_v39, %v11795_v2  ;;  %v19482_v7 = vpop.f32.mrb[12].mxu0  ;;  %v19484_v11 = vpop.f32.mrb[12].mxu1  ;;  %v18171_v1 = vld [vmem:[%s18358_s14 + $0x248] sm:$0xff]  }
 0x41e   : > { %v14833_v8 = vpack.c.bf16 %v11999_v3, %v11999_v3  ;;  %v12000_v9 = vmax.f32 %v11902_v4, 0.0  ;;  %v11611_v10 = vmax.f32 %v19482_v7, %v19484_v11  ;;  %v8869_v12 = vpop.f32.mrb[13].mxu0  ;;  %v10666_v13 = vpop.f32.mrb[13].mxu1  ;;  %v18172_v11 = vld [vmem:[%s18353_s11 + $0x250] sm:$0xff]  }
 0x41f   : > { %v14831_v16 = vpack.c.bf16 %v11997_v5, %v11997_v5  ;;  %v11998_v17 = vmax.f32 %v11900_v6, 0.0  ;;  %v11609_v18 = vmax.f32 %v8869_v12, %v10666_v13  ;;  %v16411_v19 = vpop.f32.mrb[14].mxu0  ;;  %v16619_v20 = vpop.f32.mrb[14].mxu1 }
 0x420   : > { %12504 = vst.msk [vmem:[%s19465_s24 + $0xc] sm:$0xf] %vm12500_vm1, %v14833_v8  ;;  %v14834_v24 = vpack.c.bf16 %v12000_v9, %v12000_v9  ;;  %v11612_v28 = vmax.f32 %v16411_v19, %v16619_v20  ;;  %v8872_v29 = vpop.f32.mrb[15].mxu0  ;;  %v10669_v22 = vpop.f32.mrb[15].mxu1 }
 0x421   : > { %12502 = vst.msk [vmem:[%s19465_s24 + $0x4] sm:$0xf] %vm12500_vm1, %v14831_v16  ;;  %v14832_v30 = vpack.c.bf16 %v11998_v17, %v11998_v17  ;;  %v11798_v31 = vmax.f32 %v11602_v40, %v11609_v18  ;;  %v11610_v32 = vmax.f32 %v8872_v29, %v10669_v22  ;;  %v18174_v22 = vld [vmem:[%s18353_s11 + $0x258] sm:$0xff]  }
 0x422   : > { %12505 = vst.msk [vmem:[%s19465_s24 + $0x10] sm:$0xf] %vm12500_vm1, %v14834_v24  ;;  %16517 = vmatmul.mubr.msk.bf16.gmra.mrb[120].mxu0 %vm1609_vm0, %v18160_v14  ;;  %16725 = vmatmul.mubr.msk.bf16.gmra.mrb[120].mxu1 %vm1609_vm0, %v18161_v15 }
 0x423   : > { %12503 = vst.msk [vmem:[%s19465_s24 + $0x8] sm:$0xf] %vm12500_vm1, %v14832_v30  ;;  %v11903_v33 = vadd.f32 %v19451_v39, %v11798_v31  ;;  %v11799_v34 = vmax.f32 %v11603_v27, %v11610_v32  ;;  %16520 = vmatprep.mubr.msk.bf16.mxu0 %vm1609_vm0, %v18162_v21  ;;  %16728 = vmatprep.mubr.msk.bf16.mxu1 %vm1609_vm0, %v18163_v23  ;;  %v18165_v27 = vld [vmem:[%s18358_s14 + $0x230] sm:$0xff]   ;;  %v18175_v30 = vld [vmem:[%s18358_s14 + $0x258] sm:$0xff]  }
 0x425   : > { %v12001_v35 = vmax.f32 %v11903_v33, 0.0  ;;  %v11904_v36 = vadd.f32 %v19451_v39, %v11799_v34  ;;  %v19512_v37 = vpop.f32.mrb[16].mxu0  ;;  %v19514_v38 = vpop.f32.mrb[16].mxu1 }
 0x426   : > { %v11615_v40 = vmax.f32 %v19512_v37, %v19514_v38  ;;  %v8885_v41 = vpop.f32.mrb[17].mxu0  ;;  %v10682_v25 = vpop.f32.mrb[17].mxu1 }
 0x427   : > { %v14835_v42 = vpack.c.bf16 %v12001_v35, %v12001_v35  ;;  %v12002_v43 = vmax.f32 %v11904_v36, 0.0  ;;  %v11613_v44 = vmax.f32 %v8885_v41, %v10682_v25  ;;  %v16415_v45 = vpop.f32.mrb[18].mxu0  ;;  %v16623_v46 = vpop.f32.mrb[18].mxu1 }
 0x428   : > { %v11616_v49 = vmax.f32 %v16415_v45, %v16623_v46  ;;  %v8888_v50 = vpop.f32.mrb[19].mxu0  ;;  %v10685_v51 = vpop.f32.mrb[19].mxu1 }
 0x429   : > { %12506 = vst.msk [vmem:[%s19465_s24 + $0x14] sm:$0xf] %vm12500_vm1, %v14835_v42  ;;  %v14836_v52 = vpack.c.bf16 %v12002_v43, %v12002_v43  ;;  %v11614_v53 = vmax.f32 %v8888_v50, %v10685_v51 }
 0x42a   : > { %16521 = vmatmul.mubr.msk.bf16.gmra.mrb[124].mxu0 %vm1609_vm0, %v18164_v26  ;;  %16729 = vmatmul.mubr.msk.bf16.gmra.mrb[124].mxu1 %vm1609_vm0, %v18165_v27 }
 0x42b   : > { %12507 = vst.msk [vmem:[%s19465_s24 + $0x18] sm:$0xf] %vm12500_vm1, %v14836_v52  ;;  %16524 = vmatprep.mubr.msk.bf16.mxu0 %vm1609_vm0, %v18166_v47  ;;  %16732 = vmatprep.mubr.msk.bf16.mxu1 %vm1609_vm0, %v18167_v48  ;;  %v18176_v52 = vld [vmem:[%s18353_s11 + $0x260] sm:$0xff]  }
 0x42d   : > { %v16418_v54 = vpop.f32.mrb[20].mxu0  ;;  %v16626_v55 = vpop.f32.mrb[20].mxu1 }
 0x42e   : > { %v11619_v56 = vmax.f32 %v16418_v54, %v16626_v55  ;;  %v8901_v57 = vpop.f32.mrb[21].mxu0  ;;  %v10698_v58 = vpop.f32.mrb[21].mxu1 }
 0x42f   : > { %v11617_v61 = vmax.f32 %v8901_v57, %v10698_v58  ;;  %v16419_v62 = vpop.f32.mrb[22].mxu0  ;;  %v16627_v63 = vpop.f32.mrb[22].mxu1 }
 0x430   : > { %v11801_v2 = vmax.f32 %v11612_v28, %v11619_v56  ;;  %v11620_v3 = vmax.f32 %v16419_v62, %v16627_v63  ;;  %v8904_v4 = vpop.f32.mrb[23].mxu0  ;;  %v10701_v5 = vpop.f32.mrb[23].mxu1 }
 0x431   : > { %v11618_v6 = vmax.f32 %v8904_v4, %v10701_v5 }
 0x432   : > { %v11906_v8 = vadd.f32 %v19451_v39, %v11801_v2  ;;  %v11802_v9 = vmax.f32 %v11613_v44, %v11620_v3  ;;  %16525 = vmatmul.mubr.msk.bf16.gmra.mrb[128].mxu0 %vm1609_vm0, %v18168_v59  ;;  %16733 = vmatmul.mubr.msk.bf16.gmra.mrb[128].mxu1 %vm1609_vm0, %v18169_v60  ;;  %v18178_v59 = vld [vmem:[%s18353_s11 + $0x268] sm:$0xff]  }
 0x433   : > { %v11800_v12 = vmax.f32 %v11611_v10, %v11618_v6  ;;  %16528 = vmatprep.mubr.msk.bf16.mxu0 %vm1609_vm0, %v18170_v0  ;;  %16736 = vmatprep.mubr.msk.bf16.mxu1 %vm1609_vm0, %v18171_v1  ;;  %v18173_v10 = vld [vmem:[%s18358_s14 + $0x250] sm:$0xff]   ;;  %v18179_v60 = vld [vmem:[%s18358_s14 + $0x268] sm:$0xff]  }
 0x434   : > { %v12004_v13 = vmax.f32 %v11906_v8, 0.0  ;;  %v11907_v14 = vadd.f32 %v19451_v39, %v11802_v9  ;;  %v18180_v9 = vld [vmem:[%s18353_s11 + $0x270] sm:$0xff]  }
 0x435   : > { %v11905_v15 = vadd.f32 %v19451_v39, %v11800_v12  ;;  %v16422_v16 = vpop.f32.mrb[24].mxu0  ;;  %v16630_v17 = vpop.f32.mrb[24].mxu1  ;;  %v18181_v12 = vld [vmem:[%s18358_s14 + $0x270] sm:$0xff]  }
 0x436   : > { %v14838_v18 = vpack.c.bf16 %v12004_v13, %v12004_v13  ;;  %v12005_v19 = vmax.f32 %v11907_v14, 0.0  ;;  %v11623_v20 = vmax.f32 %v16422_v16, %v16630_v17  ;;  %v8917_v21 = vpop.f32.mrb[25].mxu0  ;;  %v10714_v7 = vpop.f32.mrb[25].mxu1  ;;  %v18182_v16 = vld [vmem:[%s18353_s11 + $0x278] sm:$0xff]  }
 0x437   : > { %v12003_v23 = vmax.f32 %v11905_v15, 0.0  ;;  %v11621_v24 = vmax.f32 %v8917_v21, %v10714_v7  ;;  %v16423_v28 = vpop.f32.mrb[26].mxu0  ;;  %v16631_v29 = vpop.f32.mrb[26].mxu1  ;;  %v18183_v17 = vld [vmem:[%s18358_s14 + $0x278] sm:$0xff]  }
 0x438   : > { %12509 = vst.msk [vmem:[%s19465_s24 + $0x20] sm:$0xf] %vm12500_vm1, %v14838_v18  ;;  %v14839_v31 = vpack.c.bf16 %v12005_v19, %v12005_v19  ;;  %v11805_v32 = vmax.f32 %v11616_v49, %v11623_v20  ;;  %v11624_v33 = vmax.f32 %v16423_v28, %v16631_v29  ;;  %v8920_v34 = vpop.f32.mrb[27].mxu0  ;;  %v10717_v35 = vpop.f32.mrb[27].mxu1 }
 0x439   : > { %v14837_v36 = vpack.c.bf16 %v12003_v23, %v12003_v23  ;;  %v11803_v41 = vmax.f32 %v11614_v53, %v11621_v24  ;;  %v11622_v25 = vmax.f32 %v8920_v34, %v10717_v35  ;;  %v18177_v53 = vld [vmem:[%s18358_s14 + $0x260] sm:$0xff]   ;;  %v18186_v35 = vld [vmem:[%s18353_s11 + $0x288] sm:$0xff]  }
 0x43a   : > { %12510 = vst.msk [vmem:[%s19465_s24 + $0x24] sm:$0xf] %vm12500_vm1, %v14839_v31  ;;  %v11910_v26 = vadd.f32 %v19451_v39, %v11805_v32  ;;  %v11806_v27 = vmax.f32 %v11617_v61, %v11624_v33  ;;  %16529 = vmatmul.mubr.msk.bf16.gmra.mrb[132].mxu0 %vm1609_vm0, %v18172_v11  ;;  %16737 = vmatmul.mubr.msk.bf16.gmra.mrb[132].mxu1 %vm1609_vm0, %v18173_v10  ;;  %v18185_v31 = vld [vmem:[%s18358_s14 + $0x280] sm:$0xff]  }
 0x43b   : > { %12508 = vst.msk [vmem:[%s19465_s24 + $0x1c] sm:$0xf] %vm12500_vm1, %v14837_v36  ;;  %v11908_v42 = vadd.f32 %v19451_v39, %v11803_v41  ;;  %v11804_v43 = vmax.f32 %v11615_v40, %v11622_v25  ;;  %16532 = vmatprep.mubr.msk.bf16.mxu0 %vm1609_vm0, %v18174_v22  ;;  %16740 = vmatprep.mubr.msk.bf16.mxu1 %vm1609_vm0, %v18175_v30  ;;  %v18184_v30 = vld [vmem:[%s18353_s11 + $0x280] sm:$0xff]   ;;  %v18187_v36 = vld [vmem:[%s18358_s14 + $0x288] sm:$0xff]  }
 0x43c   : > { %v12008_v44 = vmax.f32 %v11910_v26, 0.0  ;;  %v11911_v45 = vadd.f32 %v19451_v39, %v11806_v27 }
 0x43d   : > { %v12006_v46 = vmax.f32 %v11908_v42, 0.0  ;;  %v11909_v47 = vadd.f32 %v19451_v39, %v11804_v43  ;;  %v19565_v48 = vpop.f32.mrb[28].mxu0  ;;  %v19567_v49 = vpop.f32.mrb[28].mxu1 }
 0x43e   : > { %v14842_v37 = vpack.c.bf16 %v12008_v44, %v12008_v44  ;;  %v12009_v38 = vmax.f32 %v11911_v45, 0.0  ;;  %v11627_v40 = vmax.f32 %v19565_v48, %v19567_v49  ;;  %v8933_v50 = vpop.f32.mrb[29].mxu0  ;;  %v10730_v51 = vpop.f32.mrb[29].mxu1 }
 0x43f   : > { %v14840_v54 = vpack.c.bf16 %v12006_v46, %v12006_v46  ;;  %v12007_v55 = vmax.f32 %v11909_v47, 0.0  ;;  %v11625_v56 = vmax.f32 %v8933_v50, %v10730_v51  ;;  %v16427_v57 = vpop.f32.mrb[30].mxu0  ;;  %v16635_v58 = vpop.f32.mrb[30].mxu1 }
 0x440   : > { %12513 = vst.msk [vmem:[%s19465_s24 + $0x30] sm:$0xf] %vm12500_vm1, %v14842_v37  ;;  %v14843_v61 = vpack.c.bf16 %v12009_v38, %v12009_v38  ;;  %v11628_v62 = vmax.f32 %v16427_v57, %v16635_v58  ;;  %v8936_v63 = vpop.f32.mrb[31].mxu0  ;;  %v10733_v0 = vpop.f32.mrb[31].mxu1  ;;  %v18188_v57 = vld [vmem:[%s18353_s11 + $0x290] sm:$0xff]  }
 0x441   : > { %12511 = vst.msk [vmem:[%s19465_s24 + $0x28] sm:$0xf] %vm12500_vm1, %v14840_v54  ;;  %v14841_v1 = vpack.c.bf16 %v12007_v55, %v12007_v55  ;;  %v11626_v2 = vmax.f32 %v8936_v63, %v10733_v0  ;;  %v18189_v58 = vld [vmem:[%s18358_s14 + $0x290] sm:$0xff]   ;;  %v18190_v0 = vld [vmem:[%s18353_s11 + $0x298] sm:$0xff]  }
 0x442   : > { %12514 = vst.msk [vmem:[%s19465_s24 + $0x34] sm:$0xf] %vm12500_vm1, %v14843_v61  ;;  %16533 = vmatmul.mubr.msk.bf16.gmra.mrb[136].mxu0 %vm1609_vm0, %v18176_v52  ;;  %16741 = vmatmul.mubr.msk.bf16.gmra.mrb[136].mxu1 %vm1609_vm0, %v18177_v53 }
 0x443   : > { %12512 = vst.msk [vmem:[%s19465_s24 + $0x2c] sm:$0xf] %vm12500_vm1, %v14841_v1  ;;  %16536 = vmatprep.mubr.msk.bf16.mxu0 %vm1609_vm0, %v18178_v59  ;;  %16744 = vmatprep.mubr.msk.bf16.mxu1 %vm1609_vm0, %v18179_v60  ;;  %v18191_v1 = vld [vmem:[%s18358_s14 + $0x298] sm:$0xff]  }
 0x445   : > { %v19587_v3 = vpop.f32.mrb[32].mxu0  ;;  %v19589_v4 = vpop.f32.mrb[32].mxu1 }
 0x446   : > { %v11631_v5 = vmax.f32 %v19587_v3, %v19589_v4  ;;  %v8949_v6 = vpop.f32.mrb[33].mxu0  ;;  %v10746_v8 = vpop.f32.mrb[33].mxu1  ;;  %v18192_v4 = vld [vmem:[%s18353_s11 + $0x2a0] sm:$0xff]  }
 0x447   : > { %v11629_v13 = vmax.f32 %v8949_v6, %v10746_v8  ;;  %v16431_v14 = vpop.f32.mrb[34].mxu0  ;;  %v16639_v15 = vpop.f32.mrb[34].mxu1 }
 0x448   : > { %v11632_v18 = vmax.f32 %v16431_v14, %v16639_v15  ;;  %v19597_v19 = vpop.f32.mrb[35].mxu0  ;;  %v19599_v20 = vpop.f32.mrb[35].mxu1 }
 0x449   : > { %v11630_v21 = vmax.f32 %v19597_v19, %v19599_v20 }
 0x44a   : > { %v11807_v7 = vmax.f32 %v11625_v56, %v11632_v18  ;;  %16537 = vmatmul.mubr.msk.bf16.gmra.mrb[140].mxu0 %vm1609_vm0, %v18180_v9  ;;  %16745 = vmatmul.mubr.msk.bf16.gmra.mrb[140].mxu1 %vm1609_vm0, %v18181_v12 }
 0x44b   : > { %16540 = vmatprep.mubr.msk.bf16.mxu0 %vm1609_vm0, %v18182_v16  ;;  %16748 = vmatprep.mubr.msk.bf16.mxu1 %vm1609_vm0, %v18183_v17 }
 0x44c   : > { %v11912_v11 = vadd.f32 %v19451_v39, %v11807_v7 }
 0x44d   : > { %v16434_v10 = vpop.f32.mrb[36].mxu0  ;;  %v16642_v23 = vpop.f32.mrb[36].mxu1 }
 0x44e   : > { %v12010_v24 = vmax.f32 %v11912_v11, 0.0  ;;  %v11635_v28 = vmax.f32 %v16434_v10, %v16642_v23  ;;  %v8965_v29 = vpop.f32.mrb[37].mxu0  ;;  %v10762_v22 = vpop.f32.mrb[37].mxu1 }
 0x44f   : > { %v11633_v32 = vmax.f32 %v8965_v29, %v10762_v22  ;;  %v16435_v33 = vpop.f32.mrb[38].mxu0  ;;  %v16643_v34 = vpop.f32.mrb[38].mxu1  ;;  %v18194_v29 = vld [vmem:[%s18353_s11 + $0x2a8] sm:$0xff]  }
 0x450   : > { %v14844_v41 = vpack.c.bf16 %v12010_v24, %v12010_v24  ;;  %v11810_v25 = vmax.f32 %v11628_v62, %v11635_v28  ;;  %v11636_v26 = vmax.f32 %v16435_v33, %v16643_v34  ;;  %v8968_v27 = vpop.f32.mrb[39].mxu0  ;;  %v10765_v42 = vpop.f32.mrb[39].mxu1  ;;  %v18195_v22 = vld [vmem:[%s18358_s14 + $0x2a8] sm:$0xff]  }
 0x451   : > { %v11808_v43 = vmax.f32 %v11626_v2, %v11633_v32  ;;  %v11634_v44 = vmax.f32 %v8968_v27, %v10765_v42  ;;  %v18196_v27 = vld [vmem:[%s18353_s11 + $0x2b0] sm:$0xff]  }
 0x452   : > { %12515 = vst.msk [vmem:[%s19465_s24 + $0x38] sm:$0xf] %vm12500_vm1, %v14844_v41  ;;  %v11915_v45 = vadd.f32 %v19451_v39, %v11810_v25  ;;  %v11811_v46 = vmax.f32 %v11629_v13, %v11636_v26  ;;  %16541 = vmatmul.mubr.msk.bf16.gmra.mrb[144].mxu0 %vm1609_vm0, %v18184_v30  ;;  %16749 = vmatmul.mubr.msk.bf16.gmra.mrb[144].mxu1 %vm1609_vm0, %v18185_v31  ;;  %v18197_v42 = vld [vmem:[%s18358_s14 + $0x2b0] sm:$0xff]  }
 0x453   : > { %v11913_v47 = vadd.f32 %v19451_v39, %v11808_v43  ;;  %v11809_v37 = vmax.f32 %v11627_v40, %v11634_v44  ;;  %16544 = vmatprep.mubr.msk.bf16.mxu0 %vm1609_vm0, %v18186_v35  ;;  %16752 = vmatprep.mubr.msk.bf16.mxu1 %vm1609_vm0, %v18187_v36 }
 0x454   : > { %v12013_v38 = vmax.f32 %v11915_v45, 0.0  ;;  %v11916_v50 = vadd.f32 %v19451_v39, %v11811_v46  ;;  %v18198_v46 = vld [vmem:[%s18353_s11 + $0x2b8] sm:$0xff]  }
 0x455   : > { %v12011_v51 = vmax.f32 %v11913_v47, 0.0  ;;  %v11914_v52 = vadd.f32 %v19451_v39, %v11809_v37  ;;  %v19625_v53 = vpop.f32.mrb[40].mxu0  ;;  %v19627_v54 = vpop.f32.mrb[40].mxu1  ;;  %v18199_v47 = vld [vmem:[%s18358_s14 + $0x2b8] sm:$0xff]  }
 0x456   : > { %v14847_v48 = vpack.c.bf16 %v12013_v38, %v12013_v38  ;;  %v12014_v49 = vmax.f32 %v11916_v50, 0.0  ;;  %v11639_v40 = vmax.f32 %v19625_v53, %v19627_v54  ;;  %v8981_v55 = vpop.f32.mrb[41].mxu0  ;;  %v10778_v56 = vpop.f32.mrb[41].mxu1  ;;  %v18200_v54 = vld [vmem:[%s18353_s11 + $0x2c0] sm:$0xff]  }
 0x457   : > { %v14845_v59 = vpack.c.bf16 %v12011_v51, %v12011_v51  ;;  %v12012_v60 = vmax.f32 %v11914_v52, 0.0  ;;  %v11637_v61 = vmax.f32 %v8981_v55, %v10778_v56  ;;  %v16439_v62 = vpop.f32.mrb[42].mxu0  ;;  %v16647_v63 = vpop.f32.mrb[42].mxu1 }
 0x458   : > { %12518 = vst.msk [vmem:[%s19465_s24 + $0x44] sm:$0xf] %vm12500_vm1, %v14847_v48  ;;  %v14848_v2 = vpack.c.bf16 %v12014_v49, %v12014_v49  ;;  %v11640_v6 = vmax.f32 %v16439_v62, %v16647_v63  ;;  %v8984_v8 = vpop.f32.mrb[43].mxu0  ;;  %v10781_v9 = vpop.f32.mrb[43].mxu1 }
 0x459   : > { %12516 = vst.msk [vmem:[%s19465_s24 + $0x3c] sm:$0xf] %vm12500_vm1, %v14845_v59  ;;  %v14846_v12 = vpack.c.bf16 %v12012_v60, %v12012_v60  ;;  %v11812_v13 = vmax.f32 %v11630_v21, %v11637_v61  ;;  %v11638_v14 = vmax.f32 %v8984_v8, %v10781_v9  ;;  %v18202_v9 = vld [vmem:[%s18353_s11 + $0x2c8] sm:$0xff]  }
 0x45a   : > { %12519 = vst.msk [vmem:[%s19465_s24 + $0x48] sm:$0xf] %vm12500_vm1, %v14848_v2  ;;  %16545 = vmatmul.mubr.msk.bf16.gmra.mrb[148].mxu0 %vm1609_vm0, %v18188_v57  ;;  %16753 = vmatmul.mubr.msk.bf16.gmra.mrb[148].mxu1 %vm1609_vm0, %v18189_v58 }
 0x45b   : > { %12517 = vst.msk [vmem:[%s19465_s24 + $0x40] sm:$0xf] %vm12500_vm1, %v14846_v12  ;;  %v11917_v15 = vadd.f32 %v19451_v39, %v11812_v13  ;;  %v11813_v16 = vmax.f32 %v11631_v5, %v11638_v14  ;;  %16548 = vmatprep.mubr.msk.bf16.mxu0 %vm1609_vm0, %v18190_v0  ;;  %16756 = vmatprep.mubr.msk.bf16.mxu1 %vm1609_vm0, %v18191_v1  ;;  %v18193_v5 = vld [vmem:[%s18358_s14 + $0x2a0] sm:$0xff]   ;;  %v18203_v12 = vld [vmem:[%s18358_s14 + $0x2c8] sm:$0xff]  }
 0x45d   : > { %v12015_v17 = vmax.f32 %v11917_v15, 0.0  ;;  %v11918_v18 = vadd.f32 %v19451_v39, %v11813_v16  ;;  %v19655_v19 = vpop.f32.mrb[44].mxu0  ;;  %v19657_v20 = vpop.f32.mrb[44].mxu1 }
 0x45e   : > { %v11643_v21 = vmax.f32 %v19655_v19, %v19657_v20  ;;  %v8997_v7 = vpop.f32.mrb[45].mxu0  ;;  %v10794_v3 = vpop.f32.mrb[45].mxu1 }
 0x45f   : > { %v14849_v11 = vpack.c.bf16 %v12015_v17, %v12015_v17  ;;  %v12016_v10 = vmax.f32 %v11918_v18, 0.0  ;;  %v11641_v23 = vmax.f32 %v8997_v7, %v10794_v3  ;;  %v16443_v24 = vpop.f32.mrb[46].mxu0  ;;  %v16651_v28 = vpop.f32.mrb[46].mxu1 }
 0x460   : > { %v11644_v30 = vmax.f32 %v16443_v24, %v16651_v28  ;;  %v9000_v31 = vpop.f32.mrb[47].mxu0  ;;  %v10797_v32 = vpop.f32.mrb[47].mxu1 }
 0x461   : > { %12520 = vst.msk [vmem:[%s19465_s24 + $0x4c] sm:$0xf] %vm12500_vm1, %v14849_v11  ;;  %v14850_v33 = vpack.c.bf16 %v12016_v10, %v12016_v10  ;;  %v11642_v34 = vmax.f32 %v9000_v31, %v10797_v32 }
 0x462   : > { %16549 = vmatmul.mubr.msk.bf16.gmra.mrb[152].mxu0 %vm1609_vm0, %v18192_v4  ;;  %16757 = vmatmul.mubr.msk.bf16.gmra.mrb[152].mxu1 %vm1609_vm0, %v18193_v5 }
 0x463   : > { %12521 = vst.msk [vmem:[%s19465_s24 + $0x50] sm:$0xf] %vm12500_vm1, %v14850_v33  ;;  %16552 = vmatprep.mubr.msk.bf16.mxu0 %vm1609_vm0, %v18194_v29  ;;  %16760 = vmatprep.mubr.msk.bf16.mxu1 %vm1609_vm0, %v18195_v22  ;;  %v18204_v33 = vld [vmem:[%s18353_s11 + $0x2d0] sm:$0xff]  }
 0x465   : > { %v16446_v35 = vpop.f32.mrb[48].mxu0  ;;  %v16654_v36 = vpop.f32.mrb[48].mxu1 }
 0x466   : > { %v11647_v41 = vmax.f32 %v16446_v35, %v16654_v36  ;;  %v9013_v25 = vpop.f32.mrb[49].mxu0  ;;  %v10810_v26 = vpop.f32.mrb[49].mxu1 }
 0x467   : > { %v11645_v43 = vmax.f32 %v9013_v25, %v10810_v26  ;;  %v16447_v44 = vpop.f32.mrb[50].mxu0  ;;  %v16655_v45 = vpop.f32.mrb[50].mxu1 }
 0x468   : > { %v11815_v37 = vmax.f32 %v11640_v6, %v11647_v41  ;;  %v11648_v38 = vmax.f32 %v16447_v44, %v16655_v45  ;;  %v9016_v50 = vpop.f32.mrb[51].mxu0  ;;  %v10813_v51 = vpop.f32.mrb[51].mxu1 }
 0x469   : > { %v11646_v52 = vmax.f32 %v9016_v50, %v10813_v51 }
 0x46a   : > { %v11920_v48 = vadd.f32 %v19451_v39, %v11815_v37  ;;  %v11816_v49 = vmax.f32 %v11641_v23, %v11648_v38  ;;  %16553 = vmatmul.mubr.msk.bf16.gmra.mrb[156].mxu0 %vm1609_vm0, %v18196_v27  ;;  %16761 = vmatmul.mubr.msk.bf16.gmra.mrb[156].mxu1 %vm1609_vm0, %v18197_v42  ;;  %v18206_v27 = vld [vmem:[%s18353_s11 + $0x2d8] sm:$0xff]  }
 0x46b   : > { %v11814_v55 = vmax.f32 %v11639_v40, %v11646_v52  ;;  %16556 = vmatprep.mubr.msk.bf16.mxu0 %vm1609_vm0, %v18198_v46  ;;  %16764 = vmatprep.mubr.msk.bf16.mxu1 %vm1609_vm0, %v18199_v47  ;;  %v18201_v40 = vld [vmem:[%s18358_s14 + $0x2c0] sm:$0xff]   ;;  %v18207_v42 = vld [vmem:[%s18358_s14 + $0x2d8] sm:$0xff]  }
 0x46c   : > { %v12018_v56 = vmax.f32 %v11920_v48, 0.0  ;;  %v11921_v57 = vadd.f32 %v19451_v39, %v11816_v49  ;;  %v18208_v49 = vld [vmem:[%s18353_s11 + $0x2e0] sm:$0xff]  }
 0x46d   : > { %v11919_v58 = vadd.f32 %v19451_v39, %v11814_v55  ;;  %v16450_v59 = vpop.f32.mrb[52].mxu0  ;;  %v16658_v60 = vpop.f32.mrb[52].mxu1  ;;  %v18209_v55 = vld [vmem:[%s18358_s14 + $0x2e0] sm:$0xff]  }
 0x46e   : > { %v14852_v61 = vpack.c.bf16 %v12018_v56, %v12018_v56  ;;  %v12019_v62 = vmax.f32 %v11921_v57, 0.0  ;;  %v11651_v63 = vmax.f32 %v16450_v59, %v16658_v60  ;;  %v9029_v0 = vpop.f32.mrb[53].mxu0  ;;  %v10826_v53 = vpop.f32.mrb[53].mxu1  ;;  %v18210_v59 = vld [vmem:[%s18353_s11 + $0x2e8] sm:$0xff]  }
 0x46f   : > { %v12017_v1 = vmax.f32 %v11919_v58, 0.0  ;;  %v11649_v2 = vmax.f32 %v9029_v0, %v10826_v53  ;;  %v16451_v6 = vpop.f32.mrb[54].mxu0  ;;  %v16659_v8 = vpop.f32.mrb[54].mxu1  ;;  %v18211_v60 = vld [vmem:[%s18358_s14 + $0x2e8] sm:$0xff]  }
 0x470   : > { %12523 = vst.msk [vmem:[%s19465_s24 + $0x58] sm:$0xf] %vm12500_vm1, %v14852_v61  ;;  %v14853_v13 = vpack.c.bf16 %v12019_v62, %v12019_v62  ;;  %v11819_v14 = vmax.f32 %v11644_v30, %v11651_v63  ;;  %v11652_v15 = vmax.f32 %v16451_v6, %v16659_v8  ;;  %v9032_v16 = vpop.f32.mrb[55].mxu0  ;;  %v10829_v17 = vpop.f32.mrb[55].mxu1 }
 0x471   : > { %v14851_v18 = vpack.c.bf16 %v12017_v1, %v12017_v1  ;;  %v11817_v7 = vmax.f32 %v11642_v34, %v11649_v2  ;;  %v11650_v3 = vmax.f32 %v9032_v16, %v10829_v17  ;;  %v18205_v34 = vld [vmem:[%s18358_s14 + $0x2d0] sm:$0xff]   ;;  %v18214_v17 = vld [vmem:[%s18353_s11 + $0x2f8] sm:$0xff]  }
 0x472   : > { %12524 = vst.msk [vmem:[%s19465_s24 + $0x5c] sm:$0xf] %vm12500_vm1, %v14853_v13  ;;  %v11924_v4 = vadd.f32 %v19451_v39, %v11819_v14  ;;  %v11820_v5 = vmax.f32 %v11645_v43, %v11652_v15  ;;  %16557 = vmatmul.mubr.msk.bf16.gmra.mrb[160].mxu0 %vm1609_vm0, %v18200_v54  ;;  %16765 = vmatmul.mubr.msk.bf16.gmra.mrb[160].mxu1 %vm1609_vm0, %v18201_v40  ;;  %v18213_v13 = vld [vmem:[%s18358_s14 + $0x2f0] sm:$0xff]  }
 0x473   : > { %12522 = vst.msk [vmem:[%s19465_s24 + $0x54] sm:$0xf] %vm12500_vm1, %v14851_v18  ;;  %v11922_v11 = vadd.f32 %v19451_v39, %v11817_v7  ;;  %v11818_v10 = vmax.f32 %v11643_v21, %v11650_v3  ;;  %16560 = vmatprep.mubr.msk.bf16.mxu0 %vm1609_vm0, %v18202_v9  ;;  %16768 = vmatprep.mubr.msk.bf16.mxu1 %vm1609_vm0, %v18203_v12  ;;  %v18212_v12 = vld [vmem:[%s18353_s11 + $0x2f0] sm:$0xff]   ;;  %v18215_v18 = vld [vmem:[%s18358_s14 + $0x2f8] sm:$0xff]  }
 0x474   : > { %v12022_v23 = vmax.f32 %v11924_v4, 0.0  ;;  %v11925_v24 = vadd.f32 %v19451_v39, %v11820_v5 }
 0x475   : > { %v12020_v28 = vmax.f32 %v11922_v11, 0.0  ;;  %v11923_v29 = vadd.f32 %v19451_v39, %v11818_v10  ;;  %v19708_v22 = vpop.f32.mrb[56].mxu0  ;;  %v19710_v30 = vpop.f32.mrb[56].mxu1 }
 0x476   : > { %v14856_v19 = vpack.c.bf16 %v12022_v23, %v12022_v23  ;;  %v12023_v20 = vmax.f32 %v11925_v24, 0.0  ;;  %v11655_v21 = vmax.f32 %v19708_v22, %v19710_v30  ;;  %v9045_v31 = vpop.f32.mrb[57].mxu0  ;;  %v10842_v32 = vpop.f32.mrb[57].mxu1 }
 0x477   : > { %v14854_v35 = vpack.c.bf16 %v12020_v28, %v12020_v28  ;;  %v12021_v36 = vmax.f32 %v11923_v29, 0.0  ;;  %v11653_v41 = vmax.f32 %v9045_v31, %v10842_v32  ;;  %v16455_v25 = vpop.f32.mrb[58].mxu0  ;;  %v16663_v26 = vpop.f32.mrb[58].mxu1 }
 0x478   : > { %12527 = vst.msk [vmem:[%s19465_s24 + $0x68] sm:$0xf] %vm12500_vm1, %v14856_v19  ;;  %v14857_v43 = vpack.c.bf16 %v12023_v20, %v12023_v20  ;;  %v11656_v44 = vmax.f32 %v16455_v25, %v16663_v26  ;;  %v9048_v45 = vpop.f32.mrb[59].mxu0  ;;  %v10845_v46 = vpop.f32.mrb[59].mxu1  ;;  %v18216_v25 = vld [vmem:[%s18353_s11 + $0x300] sm:$0xff]  }
 0x479   : > { %12525 = vst.msk [vmem:[%s19465_s24 + $0x60] sm:$0xf] %vm12500_vm1, %v14854_v35  ;;  %v14855_v47 = vpack.c.bf16 %v12021_v36, %v12021_v36  ;;  %v11654_v37 = vmax.f32 %v9048_v45, %v10845_v46  ;;  %v18217_v26 = vld [vmem:[%s18358_s14 + $0x300] sm:$0xff]   ;;  %v18218_v46 = vld [vmem:[%s18353_s11 + $0x308] sm:$0xff]  }
 0x47a   : > { %12528 = vst.msk [vmem:[%s19465_s24 + $0x6c] sm:$0xf] %vm12500_vm1, %v14857_v43  ;;  %16561 = vmatmul.mubr.msk.bf16.gmra.mrb[164].mxu0 %vm1609_vm0, %v18204_v33  ;;  %16769 = vmatmul.mubr.msk.bf16.gmra.mrb[164].mxu1 %vm1609_vm0, %v18205_v34 }
 0x47b   : > { %12526 = vst.msk [vmem:[%s19465_s24 + $0x64] sm:$0xf] %vm12500_vm1, %v14855_v47  ;;  %16564 = vmatprep.mubr.msk.bf16.mxu0 %vm1609_vm0, %v18206_v27  ;;  %16772 = vmatprep.mubr.msk.bf16.mxu1 %vm1609_vm0, %v18207_v42  ;;  %v18219_v47 = vld [vmem:[%s18358_s14 + $0x308] sm:$0xff]  }
 0x47d   : > { %v19730_v38 = vpop.f32.mrb[60].mxu0  ;;  %v19732_v50 = vpop.f32.mrb[60].mxu1 }
 0x47e   : > { %v11659_v51 = vmax.f32 %v19730_v38, %v19732_v50  ;;  %v9061_v52 = vpop.f32.mrb[61].mxu0  ;;  %v10858_v48 = vpop.f32.mrb[61].mxu1  ;;  %v18220_v50 = vld [vmem:[%s18353_s11 + $0x310] sm:$0xff]  }
 0x47f   : > { %v11657_v56 = vmax.f32 %v9061_v52, %v10858_v48  ;;  %v16459_v57 = vpop.f32.mrb[62].mxu0  ;;  %v16667_v58 = vpop.f32.mrb[62].mxu1 }
 0x480   : > { %v11660_v61 = vmax.f32 %v16459_v57, %v16667_v58  ;;  %v19740_v62 = vpop.f32.mrb[63].mxu0  ;;  %v19742_v63 = vpop.f32.mrb[63].mxu1 }
 0x481   : > { %v11658_v0 = vmax.f32 %v19740_v62, %v19742_v63 }
 0x482   : > { %v11821_v53 = vmax.f32 %v11653_v41, %v11660_v61  ;;  %16565 = vmatmul.mubr.msk.bf16.gmra.mrb[168].mxu0 %vm1609_vm0, %v18208_v49  ;;  %16773 = vmatmul.mubr.msk.bf16.gmra.mrb[168].mxu1 %vm1609_vm0, %v18209_v55 }
 0x483   : > { %16568 = vmatprep.mubr.msk.bf16.mxu0 %vm1609_vm0, %v18210_v59  ;;  %16776 = vmatprep.mubr.msk.bf16.mxu1 %vm1609_vm0, %v18211_v60 }
 0x484   : > { %v11926_v54 = vadd.f32 %v19451_v39, %v11821_v53 }
 0x485   : > { %v16462_v40 = vpop.f32.mrb[64].mxu0  ;;  %v16670_v1 = vpop.f32.mrb[64].mxu1 }
 0x486   : > { %v12024_v2 = vmax.f32 %v11926_v54, 0.0  ;;  %v11663_v6 = vmax.f32 %v16462_v40, %v16670_v1  ;;  %v9077_v8 = vpop.f32.mrb[65].mxu0  ;;  %v10874_v9 = vpop.f32.mrb[65].mxu1 }
 0x487   : > { %v11661_v14 = vmax.f32 %v9077_v8, %v10874_v9  ;;  %v16463_v15 = vpop.f32.mrb[66].mxu0  ;;  %v16671_v16 = vpop.f32.mrb[66].mxu1  ;;  %v18222_v8 = vld [vmem:[%s18353_s11 + $0x318] sm:$0xff]  }
 0x488   : > { %v14858_v7 = vpack.c.bf16 %v12024_v2, %v12024_v2  ;;  %v11824_v3 = vmax.f32 %v11656_v44, %v11663_v6  ;;  %v11664_v4 = vmax.f32 %v16463_v15, %v16671_v16  ;;  %v9080_v5 = vpop.f32.mrb[67].mxu0  ;;  %v10877_v11 = vpop.f32.mrb[67].mxu1 }
 0x489   : > { %v11822_v10 = vmax.f32 %v11654_v37, %v11661_v14  ;;  %v11662_v23 = vmax.f32 %v9080_v5, %v10877_v11  ;;  %v18225_v5 = vld [vmem:[%s18358_s14 + $0x320] sm:$0xff]  }
 0x48a   : > { %12529 = vst.msk [vmem:[%s19465_s24 + $0x70] sm:$0xf] %vm12500_vm1, %v14858_v7  ;;  %v11929_v24 = vadd.f32 %v19451_v39, %v11824_v3  ;;  %v11825_v28 = vmax.f32 %v11657_v56, %v11664_v4  ;;  %16569 = vmatmul.mubr.msk.bf16.gmra.mrb[172].mxu0 %vm1609_vm0, %v18212_v12  ;;  %16777 = vmatmul.mubr.msk.bf16.gmra.mrb[172].mxu1 %vm1609_vm0, %v18213_v13  ;;  %v18224_v4 = vld [vmem:[%s18353_s11 + $0x320] sm:$0xff]  }
 0x48b   : > { %v11927_v29 = vadd.f32 %v19451_v39, %v11822_v10  ;;  %v11823_v19 = vmax.f32 %v11655_v21, %v11662_v23  ;;  %16572 = vmatprep.mubr.msk.bf16.mxu0 %vm1609_vm0, %v18214_v17  ;;  %16780 = vmatprep.mubr.msk.bf16.mxu1 %vm1609_vm0, %v18215_v18 }
 0x48c   : > { %v12027_v20 = vmax.f32 %v11929_v24, 0.0  ;;  %v11930_v31 = vadd.f32 %v19451_v39, %v11825_v28  ;;  %v18226_v24 = vld [vmem:[%s18353_s11 + $0x328] sm:$0xff]  }
 0x48d   : > { %v12025_v32 = vmax.f32 %v11927_v29, 0.0  ;;  %v11928_v33 = vadd.f32 %v19451_v39, %v11823_v19  ;;  %v19768_v34 = vpop.f32.mrb[68].mxu0  ;;  %v19770_v35 = vpop.f32.mrb[68].mxu1  ;;  %v18227_v28 = vld [vmem:[%s18358_s14 + $0x328] sm:$0xff]  }
 0x48e   : > { %v14861_v22 = vpack.c.bf16 %v12027_v20, %v12027_v20  ;;  %v12028_v30 = vmax.f32 %v11930_v31, 0.0  ;;  %v11667_v21 = vmax.f32 %v19768_v34, %v19770_v35  ;;  %v9093_v36 = vpop.f32.mrb[69].mxu0  ;;  %v10890_v41 = vpop.f32.mrb[69].mxu1  ;;  %v18228_v35 = vld [vmem:[%s18353_s11 + $0x330] sm:$0xff]  }
 0x48f   : > { %v14859_v27 = vpack.c.bf16 %v12025_v32, %v12025_v32  ;;  %v12026_v42 = vmax.f32 %v11928_v33, 0.0  ;;  %v11665_v43 = vmax.f32 %v9093_v36, %v10890_v41  ;;  %v16467_v44 = vpop.f32.mrb[70].mxu0  ;;  %v16675_v45 = vpop.f32.mrb[70].mxu1  ;;  %v19823_v33 = vld [vmem:[%s20083_s3] ss:$0 sm:$0xff] }
 0x490   : > { %12532 = vst.msk [vmem:[%s19465_s24 + $0x7c] sm:$0xf] %vm12500_vm1, %v14861_v22  ;;  %v14862_v37 = vpack.c.bf16 %v12028_v30, %v12028_v30  ;;  %v11668_v52 = vmax.f32 %v16467_v44, %v16675_v45  ;;  %v9096_v48 = vpop.f32.mrb[71].mxu0  ;;  %v10893_v49 = vpop.f32.mrb[71].mxu1 }
 0x491   : > { %12530 = vst.msk [vmem:[%s19465_s24 + $0x74] sm:$0xf] %vm12500_vm1, %v14859_v27  ;;  %v14860_v55 = vpack.c.bf16 %v12026_v42, %v12026_v42  ;;  %v11826_v56 = vmax.f32 %v11658_v0, %v11665_v43  ;;  %v11666_v57 = vmax.f32 %v9096_v48, %v10893_v49  ;;  %v18230_v49 = vld [vmem:[%s18353_s11 + $0x338] sm:$0xff]  }
 0x492   : > { %12533 = vst.msk [vmem:[%s19465_s24 + $0x80] sm:$0xf] %vm12500_vm1, %v14862_v37  ;;  %16573 = vmatmul.mubr.msk.bf16.gmra.mrb[176].mxu0 %vm1609_vm0, %v18216_v25  ;;  %16781 = vmatmul.mubr.msk.bf16.gmra.mrb[176].mxu1 %vm1609_vm0, %v18217_v26 }
 0x493   : > { %12531 = vst.msk [vmem:[%s19465_s24 + $0x78] sm:$0xf] %vm12500_vm1, %v14860_v55  ;;  %v11931_v58 = vadd.f32 %v19451_v39, %v11826_v56  ;;  %v11827_v59 = vmax.f32 %v11659_v51, %v11666_v57  ;;  %16576 = vmatprep.mubr.msk.bf16.mxu0 %vm1609_vm0, %v18218_v46  ;;  %16784 = vmatprep.mubr.msk.bf16.mxu1 %vm1609_vm0, %v18219_v47  ;;  %v18221_v51 = vld [vmem:[%s18358_s14 + $0x310] sm:$0xff]   ;;  %v18231_v55 = vld [vmem:[%s18358_s14 + $0x338] sm:$0xff]  }
 0x495   : > { %v12029_v60 = vmax.f32 %v11931_v58, 0.0  ;;  %v11932_v61 = vadd.f32 %v19451_v39, %v11827_v59  ;;  %v19798_v62 = vpop.f32.mrb[72].mxu0  ;;  %v19800_v63 = vpop.f32.mrb[72].mxu1  ;;  %v18223_v39 = vld [vmem:[%s18358_s14 + $0x318] sm:$0xff]  }
 0x496   : > { %v11671_v0 = vmax.f32 %v19798_v62, %v19800_v63  ;;  %v9109_v53 = vpop.f32.mrb[73].mxu0  ;;  %v10906_v38 = vpop.f32.mrb[73].mxu1 }
 0x497   : > { %v14863_v54 = vpack.c.bf16 %v12029_v60, %v12029_v60  ;;  %v12030_v40 = vmax.f32 %v11932_v61, 0.0  ;;  %v11669_v1 = vmax.f32 %v9109_v53, %v10906_v38  ;;  %v16471_v2 = vpop.f32.mrb[74].mxu0  ;;  %v16679_v6 = vpop.f32.mrb[74].mxu1 }
 0x498   : > { %v11672_v9 = vmax.f32 %v16471_v2, %v16679_v6  ;;  %v9112_v12 = vpop.f32.mrb[75].mxu0  ;;  %v10909_v13 = vpop.f32.mrb[75].mxu1 }
 0x499   : > { %12534 = vst.msk [vmem:[%s19465_s24 + $0x84] sm:$0xf] %vm12500_vm1, %v14863_v54  ;;  %v14864_v14 = vpack.c.bf16 %v12030_v40, %v12030_v40  ;;  %v11670_v15 = vmax.f32 %v9112_v12, %v10909_v13 }
 0x49a   : > { %16577 = vmatmul.mubr.msk.bf16.gmra.mrb[180].mxu0 %vm1609_vm0, %v18220_v50  ;;  %16785 = vmatmul.mubr.msk.bf16.gmra.mrb[180].mxu1 %vm1609_vm0, %v18221_v51 }
 0x49b   : > { %12535 = vst.msk [vmem:[%s19465_s24 + $0x88] sm:$0xf] %vm12500_vm1, %v14864_v14  ;;  %16580 = vmatprep.mubr.msk.bf16.mxu0 %vm1609_vm0, %v18222_v8  ;;  %16788 = vmatprep.mubr.msk.bf16.mxu1 %vm1609_vm0, %v18223_v39 }
 0x49d   : > { %v16474_v16 = vpop.f32.mrb[76].mxu0  ;;  %v16682_v17 = vpop.f32.mrb[76].mxu1 }
 0x49e   : > { %v11675_v18 = vmax.f32 %v16474_v16, %v16682_v17  ;;  %v9125_v7 = vpop.f32.mrb[77].mxu0  ;;  %v10922_v3 = vpop.f32.mrb[77].mxu1 }
 0x49f   : > { %v11673_v11 = vmax.f32 %v9125_v7, %v10922_v3  ;;  %v16475_v10 = vpop.f32.mrb[78].mxu0  ;;  %v16683_v23 = vpop.f32.mrb[78].mxu1 }
 0x4a0   : > { %v11829_v29 = vmax.f32 %v11668_v52, %v11675_v18  ;;  %v11676_v19 = vmax.f32 %v16475_v10, %v16683_v23  ;;  %v9128_v20 = vpop.f32.mrb[79].mxu0  ;;  %v10925_v31 = vpop.f32.mrb[79].mxu1 }
 0x4a1   : > { %v11674_v32 = vmax.f32 %v9128_v20, %v10925_v31 }
 0x4a2   : > { %v11934_v22 = vadd.f32 %v19823_v33, %v11829_v29  ;;  %v11830_v30 = vmax.f32 %v11669_v1, %v11676_v19  ;;  %16581 = vmatmul.mubr.msk.bf16.gmra.mrb[184].mxu0 %vm1609_vm0, %v18224_v4  ;;  %16789 = vmatmul.mubr.msk.bf16.gmra.mrb[184].mxu1 %vm1609_vm0, %v18225_v5 }
 0x4a3   : > { %v11828_v36 = vmax.f32 %v11667_v21, %v11674_v32  ;;  %16584 = vmatprep.mubr.msk.bf16.mxu0 %vm1609_vm0, %v18226_v24  ;;  %16792 = vmatprep.mubr.msk.bf16.mxu1 %vm1609_vm0, %v18227_v28  ;;  %v18229_v21 = vld [vmem:[%s18358_s14 + $0x330] sm:$0xff]  }
 0x4a4   : > { %v12032_v41 = vmax.f32 %v11934_v22, 0.0  ;;  %v11935_v25 = vadd.f32 %v19823_v33, %v11830_v30 }
 0x4a5   : > { %v11933_v26 = vadd.f32 %v19823_v33, %v11828_v36  ;;  %v16478_v27 = vpop.f32.mrb[80].mxu0  ;;  %v16686_v42 = vpop.f32.mrb[80].mxu1 }
 0x4a6   : > { %v14866_v43 = vpack.c.bf16 %v12032_v41, %v12032_v41  ;;  %v12033_v44 = vmax.f32 %v11935_v25, 0.0  ;;  %v11679_v45 = vmax.f32 %v16478_v27, %v16686_v42  ;;  %v9141_v46 = vpop.f32.mrb[81].mxu0  ;;  %v10938_v34 = vpop.f32.mrb[81].mxu1 }
 0x4a7   : > { %v12031_v47 = vmax.f32 %v11933_v26, 0.0  ;;  %v11677_v37 = vmax.f32 %v9141_v46, %v10938_v34  ;;  %v16479_v52 = vpop.f32.mrb[82].mxu0  ;;  %v16687_v48 = vpop.f32.mrb[82].mxu1 }
 0x4a8   : > { %12537 = vst.msk [vmem:[%s19465_s24 + $0x90] sm:$0xf] %vm12500_vm1, %v14866_v43  ;;  %v14867_v56 = vpack.c.bf16 %v12033_v44, %v12033_v44  ;;  %v11833_v57 = vmax.f32 %v11672_v9, %v11679_v45  ;;  %v11680_v58 = vmax.f32 %v16479_v52, %v16687_v48  ;;  %v9144_v59 = vpop.f32.mrb[83].mxu0  ;;  %v10941_v60 = vpop.f32.mrb[83].mxu1 }
 0x4a9   : > { %v14865_v61 = vpack.c.bf16 %v12031_v47, %v12031_v47  ;;  %v11831_v53 = vmax.f32 %v11670_v15, %v11677_v37  ;;  %v11678_v38 = vmax.f32 %v9144_v59, %v10941_v60  ;;  %v18233_v15 = vld [vmem:[%s18358_s14 + $0x340] sm:$0xff]  }
 0x4aa   : > { %12538 = vst.msk [vmem:[%s19465_s24 + $0x94] sm:$0xf] %vm12500_vm1, %v14867_v56  ;;  %v11938_v50 = vadd.f32 %v19823_v33, %v11833_v57  ;;  %v11834_v51 = vmax.f32 %v11673_v11, %v11680_v58  ;;  %16585 = vmatmul.mubr.msk.bf16.gmra.mrb[188].mxu0 %vm1609_vm0, %v18228_v35  ;;  %16793 = vmatmul.mubr.msk.bf16.gmra.mrb[188].mxu1 %vm1609_vm0, %v18229_v21 }
 0x4ab   : > { %12536 = vst.msk [vmem:[%s19465_s24 + $0x8c] sm:$0xf] %vm12500_vm1, %v14865_v61  ;;  %v11936_v54 = vadd.f32 %v19823_v33, %v11831_v53  ;;  %v11832_v40 = vmax.f32 %v11671_v0, %v11678_v38  ;;  %16588 = vmatprep.mubr.msk.bf16.mxu0 %vm1609_vm0, %v18230_v49  ;;  %16796 = vmatprep.mubr.msk.bf16.mxu1 %vm1609_vm0, %v18231_v55  ;;  %v18232_v0 = vld [vmem:[%s18353_s11 + $0x340] sm:$0xff]  }
 0x4ac   : > { %v12036_v1 = vmax.f32 %v11938_v50, 0.0  ;;  %v11939_v2 = vadd.f32 %v19823_v33, %v11834_v51 }
 0x4ad   : > { %v12034_v6 = vmax.f32 %v11936_v54, 0.0  ;;  %v11937_v8 = vadd.f32 %v19823_v33, %v11832_v40  ;;  %v16482_v39 = vpop.f32.mrb[84].mxu0  ;;  %v16690_v9 = vpop.f32.mrb[84].mxu1 }
 0x4ae   : > { %v14870_v12 = vpack.c.bf16 %v12036_v1, %v12036_v1  ;;  %v12037_v13 = vmax.f32 %v11939_v2, 0.0  ;;  %v11683_v14 = vmax.f32 %v16482_v39, %v16690_v9  ;;  %v9157_v62 = vpop.f32.mrb[85].mxu0  ;;  %v10954_v63 = vpop.f32.mrb[85].mxu1 }
 0x4af   : > { %v14868_v16 = vpack.c.bf16 %v12034_v6, %v12034_v6  ;;  %v12035_v17 = vmax.f32 %v11937_v8, 0.0  ;;  %v11681_v18 = vmax.f32 %v9157_v62, %v10954_v63  ;;  %v16483_v7 = vpop.f32.mrb[86].mxu0  ;;  %v16691_v3 = vpop.f32.mrb[86].mxu1 }
 0x4b0   : > { %12541 = vst.msk [vmem:[%s19465_s24 + $0xa0] sm:$0xf] %vm12500_vm1, %v14870_v12  ;;  %v14871_v4 = vpack.c.bf16 %v12037_v13, %v12037_v13  ;;  %v11684_v5 = vmax.f32 %v16483_v7, %v16691_v3  ;;  %v9160_v11 = vpop.f32.mrb[87].mxu0  ;;  %v10957_v10 = vpop.f32.mrb[87].mxu1 }
 0x4b1   : > { %12539 = vst.msk [vmem:[%s19465_s24 + $0x98] sm:$0xf] %vm12500_vm1, %v14868_v16  ;;  %v14869_v23 = vpack.c.bf16 %v12035_v17, %v12035_v17  ;;  %v11682_v24 = vmax.f32 %v9160_v11, %v10957_v10 }
 0x4b2   : > { %12542 = vst.msk [vmem:[%s19465_s24 + $0xa4] sm:$0xf] %vm12500_vm1, %v14871_v4  ;;  %16589 = vmatmul.mubr.msk.bf16.gmra.mrb[192].mxu0 %vm1609_vm0, %v18232_v0  ;;  %16797 = vmatmul.mubr.msk.bf16.gmra.mrb[192].mxu1 %vm1609_vm0, %v18233_v15 }
 0x4b3   : > { %12540 = vst.msk [vmem:[%s19465_s24 + $0x9c] sm:$0xf] %vm12500_vm1, %v14869_v23 }
 0x4b5   : > { %v19868_v28 = vpop.f32.mrb[88].mxu0  ;;  %v19870_v29 = vpop.f32.mrb[88].mxu1 }
 0x4b6   : > { %v11687_v19 = vmax.f32 %v19868_v28, %v19870_v29  ;;  %v9173_v20 = vpop.f32.mrb[89].mxu0  ;;  %v10970_v31 = vpop.f32.mrb[89].mxu1 }
 0x4b7   : > { %v11685_v32 = vmax.f32 %v9173_v20, %v10970_v31  ;;  %v16487_v22 = vpop.f32.mrb[90].mxu0  ;;  %v16695_v30 = vpop.f32.mrb[90].mxu1 }
 0x4b8   : > { %v11688_v36 = vmax.f32 %v16487_v22, %v16695_v30  ;;  %v9176_v41 = vpop.f32.mrb[91].mxu0  ;;  %v10973_v25 = vpop.f32.mrb[91].mxu1 }
 0x4b9   : > { %v11686_v26 = vmax.f32 %v9176_v41, %v10973_v25 }
 0x4ba   : > { %v11835_v27 = vmax.f32 %v11681_v18, %v11688_v36 }
 0x4bc   : > { %v11940_v42 = vadd.f32 %v19823_v33, %v11835_v27 }
 0x4bd   : > { %v16490_v43 = vpop.f32.mrb[92].mxu0  ;;  %v16698_v44 = vpop.f32.mrb[92].mxu1 }
 0x4be   : > { %v12038_v45 = vmax.f32 %v11940_v42, 0.0  ;;  %v11691_v46 = vmax.f32 %v16490_v43, %v16698_v44  ;;  %v9189_v34 = vpop.f32.mrb[93].mxu0  ;;  %v10986_v35 = vpop.f32.mrb[93].mxu1 }
 0x4bf   : > { %v11689_v21 = vmax.f32 %v9189_v34, %v10986_v35  ;;  %v16491_v47 = vpop.f32.mrb[94].mxu0  ;;  %v16699_v37 = vpop.f32.mrb[94].mxu1 }
 0x4c0   : > { %v14872_v52 = vpack.c.bf16 %v12038_v45, %v12038_v45  ;;  %v11838_v48 = vmax.f32 %v11684_v5, %v11691_v46  ;;  %v11692_v49 = vmax.f32 %v16491_v47, %v16699_v37  ;;  %v9192_v55 = vpop.f32.mrb[95].mxu0  ;;  %v10989_v56 = vpop.f32.mrb[95].mxu1 }
 0x4c1   : > { %v11836_v57 = vmax.f32 %v11682_v24, %v11689_v21  ;;  %v11690_v58 = vmax.f32 %v9192_v55, %v10989_v56 }
 0x4c2   : > { %12543 = vst.msk [vmem:[%s19465_s24 + $0xa8] sm:$0xf] %vm12500_vm1, %v14872_v52  ;;  %v11943_v59 = vadd.f32 %v19823_v33, %v11838_v48  ;;  %v11839_v60 = vmax.f32 %v11685_v32, %v11692_v49 }
 0x4c3   : > { %v11941_v61 = vadd.f32 %v19823_v33, %v11836_v57  ;;  %v11837_v53 = vmax.f32 %v11683_v14, %v11690_v58 }
 0x4c4   : > { %v12041_v38 = vmax.f32 %v11943_v59, 0.0  ;;  %v11944_v50 = vadd.f32 %v19823_v33, %v11839_v60 }
 0x4c5   : > { %v12039_v51 = vmax.f32 %v11941_v61, 0.0  ;;  %v11942_v54 = vadd.f32 %v19823_v33, %v11837_v53  ;;  %v16494_v40 = vpop.f32.mrb[96].mxu0  ;;  %v16702_v1 = vpop.f32.mrb[96].mxu1 }
 0x4c6   : > { %v14875_v2 = vpack.c.bf16 %v12041_v38, %v12041_v38  ;;  %v12042_v6 = vmax.f32 %v11944_v50, 0.0  ;;  %v11695_v8 = vmax.f32 %v16494_v40, %v16702_v1  ;;  %v9205_v39 = vpop.f32.mrb[97].mxu0  ;;  %v11002_v9 = vpop.f32.mrb[97].mxu1 }
 0x4c7   : > { %v14873_v12 = vpack.c.bf16 %v12039_v51, %v12039_v51  ;;  %v12040_v13 = vmax.f32 %v11942_v54, 0.0  ;;  %v11693_v14 = vmax.f32 %v9205_v39, %v11002_v9  ;;  %v16495_v62 = vpop.f32.mrb[98].mxu0  ;;  %v16703_v63 = vpop.f32.mrb[98].mxu1 }
 0x4c8   : > { %12546 = vst.msk [vmem:[%s19465_s24 + $0xb4] sm:$0xf] %vm12500_vm1, %v14875_v2  ;;  %v14876_v0 = vpack.c.bf16 %v12042_v6, %v12042_v6  ;;  %v11696_v15 = vmax.f32 %v16495_v62, %v16703_v63  ;;  %v9208_v16 = vpop.f32.mrb[99].mxu0  ;;  %v11005_v17 = vpop.f32.mrb[99].mxu1 }
 0x4c9   : > { %12544 = vst.msk [vmem:[%s19465_s24 + $0xac] sm:$0xf] %vm12500_vm1, %v14873_v12  ;;  %v14874_v18 = vpack.c.bf16 %v12040_v13, %v12040_v13  ;;  %v11840_v7 = vmax.f32 %v11686_v26, %v11693_v14  ;;  %v11694_v3 = vmax.f32 %v9208_v16, %v11005_v17 }
 0x4ca   : > { %12547 = vst.msk [vmem:[%s19465_s24 + $0xb8] sm:$0xf] %vm12500_vm1, %v14876_v0 }
 0x4cb   : > { %12545 = vst.msk [vmem:[%s19465_s24 + $0xb0] sm:$0xf] %vm12500_vm1, %v14874_v18  ;;  %v11945_v4 = vadd.f32 %v19823_v33, %v11840_v7  ;;  %v11841_v5 = vmax.f32 %v11687_v19, %v11694_v3 }
 0x4cd   : > { %v12043_v11 = vmax.f32 %v11945_v4, 0.0  ;;  %v11946_v10 = vadd.f32 %v19823_v33, %v11841_v5  ;;  %v16498_v23 = vpop.f32.mrb[100].mxu0  ;;  %v16706_v24 = vpop.f32.mrb[100].mxu1 }
 0x4ce   : > { %v11699_v28 = vmax.f32 %v16498_v23, %v16706_v24  ;;  %v9221_v29 = vpop.f32.mrb[101].mxu0  ;;  %v11018_v20 = vpop.f32.mrb[101].mxu1 }
 0x4cf   : > { %v14877_v31 = vpack.c.bf16 %v12043_v11, %v12043_v11  ;;  %v12044_v32 = vmax.f32 %v11946_v10, 0.0  ;;  %v11697_v22 = vmax.f32 %v9221_v29, %v11018_v20  ;;  %v16499_v30 = vpop.f32.mrb[102].mxu0  ;;  %v16707_v36 = vpop.f32.mrb[102].mxu1 }
 0x4d0   : > { %v11700_v41 = vmax.f32 %v16499_v30, %v16707_v36  ;;  %v9224_v25 = vpop.f32.mrb[103].mxu0  ;;  %v11021_v26 = vpop.f32.mrb[103].mxu1 }
 0x4d1   : > { %12548 = vst.msk [vmem:[%s19465_s24 + $0xbc] sm:$0xf] %vm12500_vm1, %v14877_v31  ;;  %v14878_v19 = vpack.c.bf16 %v12044_v32, %v12044_v32  ;;  %v11698_v27 = vmax.f32 %v9224_v25, %v11021_v26 }
 0x4d3   : > { %12549 = vst.msk [vmem:[%s19465_s24 + $0xc0] sm:$0xf] %vm12500_vm1, %v14878_v19 }
 0x4d5   : > { %v16502_v42 = vpop.f32.mrb[104].mxu0  ;;  %v16710_v43 = vpop.f32.mrb[104].mxu1 }
 0x4d6   : > { %v11703_v44 = vmax.f32 %v16502_v42, %v16710_v43  ;;  %v9237_v45 = vpop.f32.mrb[105].mxu0  ;;  %v11034_v46 = vpop.f32.mrb[105].mxu1 }
 0x4d7   : > { %v11701_v34 = vmax.f32 %v9237_v45, %v11034_v46  ;;  %v16503_v35 = vpop.f32.mrb[106].mxu0  ;;  %v16711_v21 = vpop.f32.mrb[106].mxu1 }
 0x4d8   : > { %v11843_v47 = vmax.f32 %v11696_v15, %v11703_v44  ;;  %v11704_v37 = vmax.f32 %v16503_v35, %v16711_v21  ;;  %v9240_v52 = vpop.f32.mrb[107].mxu0  ;;  %v11037_v48 = vpop.f32.mrb[107].mxu1 }
 0x4d9   : > { %v11702_v49 = vmax.f32 %v9240_v52, %v11037_v48 }
 0x4da   : > { %v11948_v55 = vadd.f32 %v19823_v33, %v11843_v47  ;;  %v11844_v56 = vmax.f32 %v11697_v22, %v11704_v37 }
 0x4db   : > { %v11842_v57 = vmax.f32 %v11695_v8, %v11702_v49 }
 0x4dc   : > { %v12046_v58 = vmax.f32 %v11948_v55, 0.0  ;;  %v11949_v59 = vadd.f32 %v19823_v33, %v11844_v56 }
 0x4dd   : > { %v11947_v60 = vadd.f32 %v19823_v33, %v11842_v57  ;;  %v16506_v61 = vpop.f32.mrb[108].mxu0  ;;  %v16714_v53 = vpop.f32.mrb[108].mxu1 }
 0x4de   : > { %v14880_v38 = vpack.c.bf16 %v12046_v58, %v12046_v58  ;;  %v12047_v50 = vmax.f32 %v11949_v59, 0.0  ;;  %v11707_v51 = vmax.f32 %v16506_v61, %v16714_v53  ;;  %v9253_v54 = vpop.f32.mrb[109].mxu0  ;;  %v11050_v40 = vpop.f32.mrb[109].mxu1 }
 0x4df   : > { %v12045_v1 = vmax.f32 %v11947_v60, 0.0  ;;  %v11705_v2 = vmax.f32 %v9253_v54, %v11050_v40  ;;  %v16507_v6 = vpop.f32.mrb[110].mxu0  ;;  %v16715_v39 = vpop.f32.mrb[110].mxu1 }
 0x4e0   : > { %12551 = vst.msk [vmem:[%s19465_s24 + $0xc8] sm:$0xf] %vm12500_vm1, %v14880_v38  ;;  %v14881_v8 = vpack.c.bf16 %v12047_v50, %v12047_v50  ;;  %v11847_v9 = vmax.f32 %v11700_v41, %v11707_v51  ;;  %v11708_v12 = vmax.f32 %v16507_v6, %v16715_v39  ;;  %v9256_v13 = vpop.f32.mrb[111].mxu0  ;;  %v11053_v14 = vpop.f32.mrb[111].mxu1 }
 0x4e1   : > { %v14879_v62 = vpack.c.bf16 %v12045_v1, %v12045_v1  ;;  %v11845_v63 = vmax.f32 %v11698_v27, %v11705_v2  ;;  %v11706_v0 = vmax.f32 %v9256_v13, %v11053_v14 }
 0x4e2   : > { %12552 = vst.msk [vmem:[%s19465_s24 + $0xcc] sm:$0xf] %vm12500_vm1, %v14881_v8  ;;  %v11952_v15 = vadd.f32 %v19823_v33, %v11847_v9  ;;  %v11848_v16 = vmax.f32 %v11701_v34, %v11708_v12 }
 0x4e3   : > { %12550 = vst.msk [vmem:[%s19465_s24 + $0xc4] sm:$0xf] %vm12500_vm1, %v14879_v62  ;;  %v11950_v17 = vadd.f32 %v19823_v33, %v11845_v63  ;;  %v11846_v18 = vmax.f32 %v11699_v28, %v11706_v0 }
 0x4e4   : > { %v12050_v7 = vmax.f32 %v11952_v15, 0.0  ;;  %v11953_v3 = vadd.f32 %v19823_v33, %v11848_v16 }
 0x4e5   : > { %v12048_v4 = vmax.f32 %v11950_v17, 0.0  ;;  %v11951_v5 = vadd.f32 %v19823_v33, %v11846_v18  ;;  %v16510_v11 = vpop.f32.mrb[112].mxu0  ;;  %v16718_v10 = vpop.f32.mrb[112].mxu1 }
 0x4e6   : > { %v14884_v23 = vpack.c.bf16 %v12050_v7, %v12050_v7  ;;  %v12051_v24 = vmax.f32 %v11953_v3, 0.0  ;;  %v11711_v29 = vmax.f32 %v16510_v11, %v16718_v10  ;;  %v9269_v20 = vpop.f32.mrb[113].mxu0  ;;  %v11066_v31 = vpop.f32.mrb[113].mxu1 }
 0x4e7   : > { %v14882_v32 = vpack.c.bf16 %v12048_v4, %v12048_v4  ;;  %v12049_v22 = vmax.f32 %v11951_v5, 0.0  ;;  %v11709_v28 = vmax.f32 %v9269_v20, %v11066_v31  ;;  %v16511_v30 = vpop.f32.mrb[114].mxu0  ;;  %v16719_v36 = vpop.f32.mrb[114].mxu1 }
 0x4e8   : > { %12555 = vst.msk [vmem:[%s19465_s24 + $0xd8] sm:$0xf] %vm12500_vm1, %v14884_v23  ;;  %v14885_v41 = vpack.c.bf16 %v12051_v24, %v12051_v24  ;;  %v11712_v25 = vmax.f32 %v16511_v30, %v16719_v36  ;;  %v9272_v26 = vpop.f32.mrb[115].mxu0  ;;  %v11069_v19 = vpop.f32.mrb[115].mxu1 }
 0x4e9   : > { %12553 = vst.msk [vmem:[%s19465_s24 + $0xd0] sm:$0xf] %vm12500_vm1, %v14882_v32  ;;  %v14883_v27 = vpack.c.bf16 %v12049_v22, %v12049_v22  ;;  %v11710_v42 = vmax.f32 %v9272_v26, %v11069_v19 }
 0x4ea   : > { %12556 = vst.msk [vmem:[%s19465_s24 + $0xdc] sm:$0xf] %vm12500_vm1, %v14885_v41 }
 0x4eb   : > { %12554 = vst.msk [vmem:[%s19465_s24 + $0xd4] sm:$0xf] %vm12500_vm1, %v14883_v27 }
 0x4ed   : > { %v19916_v43 = vpop.f32.mrb[116].mxu0  ;;  %v19918_v44 = vpop.f32.mrb[116].mxu1 }
 0x4ee   : > { %v11715_v45 = vmax.f32 %v19916_v43, %v19918_v44  ;;  %v9285_v46 = vpop.f32.mrb[117].mxu0  ;;  %v11082_v34 = vpop.f32.mrb[117].mxu1 }
 0x4ef   : > { %v11713_v35 = vmax.f32 %v9285_v46, %v11082_v34  ;;  %v16515_v21 = vpop.f32.mrb[118].mxu0  ;;  %v16723_v47 = vpop.f32.mrb[118].mxu1 }
 0x4f0   : > { %v11716_v37 = vmax.f32 %v16515_v21, %v16723_v47  ;;  %v9288_v52 = vpop.f32.mrb[119].mxu0  ;;  %v11085_v48 = vpop.f32.mrb[119].mxu1 }
 0x4f1   : > { %v11714_v49 = vmax.f32 %v9288_v52, %v11085_v48 }
 0x4f2   : > { %v11849_v55 = vmax.f32 %v11709_v28, %v11716_v37 }
 0x4f4   : > { %v11954_v56 = vadd.f32 %v19823_v33, %v11849_v55 }
 0x4f5   : > { %v16518_v57 = vpop.f32.mrb[120].mxu0  ;;  %v16726_v58 = vpop.f32.mrb[120].mxu1 }
 0x4f6   : > { %v12052_v59 = vmax.f32 %v11954_v56, 0.0  ;;  %v11719_v60 = vmax.f32 %v16518_v57, %v16726_v58  ;;  %v9301_v61 = vpop.f32.mrb[121].mxu0  ;;  %v11098_v53 = vpop.f32.mrb[121].mxu1 }
 0x4f7   : > { %v11717_v38 = vmax.f32 %v9301_v61, %v11098_v53  ;;  %v16519_v50 = vpop.f32.mrb[122].mxu0  ;;  %v16727_v51 = vpop.f32.mrb[122].mxu1 }
 0x4f8   : > { %v14886_v54 = vpack.c.bf16 %v12052_v59, %v12052_v59  ;;  %v11852_v40 = vmax.f32 %v11712_v25, %v11719_v60  ;;  %v11720_v1 = vmax.f32 %v16519_v50, %v16727_v51  ;;  %v9304_v2 = vpop.f32.mrb[123].mxu0  ;;  %v11101_v6 = vpop.f32.mrb[123].mxu1 }
 0x4f9   : > { %v11850_v39 = vmax.f32 %v11710_v42, %v11717_v38  ;;  %v11718_v8 = vmax.f32 %v9304_v2, %v11101_v6 }
 0x4fa   : > { %12557 = vst.msk [vmem:[%s19465_s24 + $0xe0] sm:$0xf] %vm12500_vm1, %v14886_v54  ;;  %v11957_v9 = vadd.f32 %v19823_v33, %v11852_v40  ;;  %v11853_v12 = vmax.f32 %v11713_v35, %v11720_v1 }
 0x4fb   : > { %v11955_v13 = vadd.f32 %v19823_v33, %v11850_v39  ;;  %v11851_v14 = vmax.f32 %v11711_v29, %v11718_v8 }
 0x4fc   : > { %v12055_v62 = vmax.f32 %v11957_v9, 0.0  ;;  %v11958_v63 = vadd.f32 %v19823_v33, %v11853_v12 }
 0x4fd   : > { %v12053_v0 = vmax.f32 %v11955_v13, 0.0  ;;  %v11956_v15 = vadd.f32 %v19823_v33, %v11851_v14  ;;  %v16522_v16 = vpop.f32.mrb[124].mxu0  ;;  %v16730_v17 = vpop.f32.mrb[124].mxu1 }
 0x4fe   : > { %v14889_v18 = vpack.c.bf16 %v12055_v62, %v12055_v62  ;;  %v12056_v7 = vmax.f32 %v11958_v63, 0.0  ;;  %v11723_v3 = vmax.f32 %v16522_v16, %v16730_v17  ;;  %v9317_v4 = vpop.f32.mrb[125].mxu0  ;;  %v11114_v5 = vpop.f32.mrb[125].mxu1 }
 0x4ff   : > { %v14887_v11 = vpack.c.bf16 %v12053_v0, %v12053_v0  ;;  %v12054_v10 = vmax.f32 %v11956_v15, 0.0  ;;  %v11721_v23 = vmax.f32 %v9317_v4, %v11114_v5  ;;  %v16523_v24 = vpop.f32.mrb[126].mxu0  ;;  %v16731_v29 = vpop.f32.mrb[126].mxu1 }
 0x500   : > { %12560 = vst.msk [vmem:[%s19465_s24 + $0xec] sm:$0xf] %vm12500_vm1, %v14889_v18  ;;  %v14890_v20 = vpack.c.bf16 %v12056_v7, %v12056_v7  ;;  %v11724_v31 = vmax.f32 %v16523_v24, %v16731_v29  ;;  %v9320_v32 = vpop.f32.mrb[127].mxu0  ;;  %v11117_v22 = vpop.f32.mrb[127].mxu1 }
 0x501   : > { %12558 = vst.msk [vmem:[%s19465_s24 + $0xe4] sm:$0xf] %vm12500_vm1, %v14887_v11  ;;  %v14888_v28 = vpack.c.bf16 %v12054_v10, %v12054_v10  ;;  %v11854_v30 = vmax.f32 %v11714_v49, %v11721_v23  ;;  %v11722_v36 = vmax.f32 %v9320_v32, %v11117_v22 }
 0x502   : > { %12561 = vst.msk [vmem:[%s19465_s24 + $0xf0] sm:$0xf] %vm12500_vm1, %v14890_v20 }
 0x503   : > { %12559 = vst.msk [vmem:[%s19465_s24 + $0xe8] sm:$0xf] %vm12500_vm1, %v14888_v28  ;;  %v11959_v41 = vadd.f32 %v19823_v33, %v11854_v30  ;;  %v11855_v25 = vmax.f32 %v11715_v45, %v11722_v36 }
 0x505   : > { %v12057_v26 = vmax.f32 %v11959_v41, 0.0  ;;  %v11960_v19 = vadd.f32 %v19823_v33, %v11855_v25  ;;  %v16526_v27 = vpop.f32.mrb[128].mxu0  ;;  %v16734_v42 = vpop.f32.mrb[128].mxu1 }
 0x506   : > { %v11727_v43 = vmax.f32 %v16526_v27, %v16734_v42  ;;  %v9333_v44 = vpop.f32.mrb[129].mxu0  ;;  %v11130_v46 = vpop.f32.mrb[129].mxu1 }
 0x507   : > { %v14891_v34 = vpack.c.bf16 %v12057_v26, %v12057_v26  ;;  %v12058_v35 = vmax.f32 %v11960_v19, 0.0  ;;  %v11725_v21 = vmax.f32 %v9333_v44, %v11130_v46  ;;  %v16527_v47 = vpop.f32.mrb[130].mxu0  ;;  %v16735_v37 = vpop.f32.mrb[130].mxu1 }
 0x508   : > { %v11728_v52 = vmax.f32 %v16527_v47, %v16735_v37  ;;  %v9336_v48 = vpop.f32.mrb[131].mxu0  ;;  %v11133_v49 = vpop.f32.mrb[131].mxu1 }
 0x509   : > { %12562 = vst.msk [vmem:[%s19465_s24 + $0xf4] sm:$0xf] %vm12500_vm1, %v14891_v34  ;;  %v14892_v45 = vpack.c.bf16 %v12058_v35, %v12058_v35  ;;  %v11726_v55 = vmax.f32 %v9336_v48, %v11133_v49 }
 0x50b   : > { %12563 = vst.msk [vmem:[%s19465_s24 + $0xf8] sm:$0xf] %vm12500_vm1, %v14892_v45 }
 0x50d   : > { %v16530_v56 = vpop.f32.mrb[132].mxu0  ;;  %v16738_v57 = vpop.f32.mrb[132].mxu1 }
 0x50e   : > { %v11731_v58 = vmax.f32 %v16530_v56, %v16738_v57  ;;  %v9349_v59 = vpop.f32.mrb[133].mxu0  ;;  %v11146_v60 = vpop.f32.mrb[133].mxu1 }
 0x50f   : > { %v11729_v61 = vmax.f32 %v9349_v59, %v11146_v60  ;;  %v16531_v53 = vpop.f32.mrb[134].mxu0  ;;  %v16739_v38 = vpop.f32.mrb[134].mxu1 }
 0x510   : > { %v11857_v50 = vmax.f32 %v11724_v31, %v11731_v58  ;;  %v11732_v51 = vmax.f32 %v16531_v53, %v16739_v38  ;;  %v9352_v54 = vpop.f32.mrb[135].mxu0  ;;  %v11149_v40 = vpop.f32.mrb[135].mxu1 }
 0x511   : > { %v11730_v1 = vmax.f32 %v9352_v54, %v11149_v40 }
 0x512   : > { %v11962_v2 = vadd.f32 %v19823_v33, %v11857_v50  ;;  %v11858_v6 = vmax.f32 %v11725_v21, %v11732_v51 }
 0x513   : > { %v11856_v39 = vmax.f32 %v11723_v3, %v11730_v1 }
 0x514   : > { %v12060_v8 = vmax.f32 %v11962_v2, 0.0  ;;  %v11963_v9 = vadd.f32 %v19823_v33, %v11858_v6 }
 0x515   : > { %v11961_v12 = vadd.f32 %v19823_v33, %v11856_v39  ;;  %v16534_v13 = vpop.f32.mrb[136].mxu0  ;;  %v16742_v14 = vpop.f32.mrb[136].mxu1 }
 0x516   : > { %v14894_v62 = vpack.c.bf16 %v12060_v8, %v12060_v8  ;;  %v12061_v63 = vmax.f32 %v11963_v9, 0.0  ;;  %v11735_v0 = vmax.f32 %v16534_v13, %v16742_v14  ;;  %v9365_v15 = vpop.f32.mrb[137].mxu0  ;;  %v11162_v16 = vpop.f32.mrb[137].mxu1 }
 0x517   : > { %v12059_v17 = vmax.f32 %v11961_v12, 0.0  ;;  %v11733_v18 = vmax.f32 %v9365_v15, %v11162_v16  ;;  %v16535_v7 = vpop.f32.mrb[138].mxu0  ;;  %v16743_v4 = vpop.f32.mrb[138].mxu1 }
 0x518   : > { %12565 = vst.msk [vmem:[%s19465_s24 + $0x100] sm:$0xf] %vm12500_vm1, %v14894_v62  ;;  %v14895_v3 = vpack.c.bf16 %v12061_v63, %v12061_v63  ;;  %v11861_v5 = vmax.f32 %v11728_v52, %v11735_v0  ;;  %v11736_v11 = vmax.f32 %v16535_v7, %v16743_v4  ;;  %v9368_v10 = vpop.f32.mrb[139].mxu0  ;;  %v11165_v23 = vpop.f32.mrb[139].mxu1 }
 0x519   : > { %v14893_v24 = vpack.c.bf16 %v12059_v17, %v12059_v17  ;;  %v11859_v29 = vmax.f32 %v11726_v55, %v11733_v18  ;;  %v11734_v20 = vmax.f32 %v9368_v10, %v11165_v23 }
 0x51a   : > { %12566 = vst.msk [vmem:[%s19465_s24 + $0x104] sm:$0xf] %vm12500_vm1, %v14895_v3  ;;  %v11966_v31 = vadd.f32 %v19823_v33, %v11861_v5  ;;  %v11862_v32 = vmax.f32 %v11729_v61, %v11736_v11 }
 0x51b   : > { %12564 = vst.msk [vmem:[%s19465_s24 + $0xfc] sm:$0xf] %vm12500_vm1, %v14893_v24  ;;  %v11964_v22 = vadd.f32 %v19823_v33, %v11859_v29  ;;  %v11860_v28 = vmax.f32 %v11727_v43, %v11734_v20 }
 0x51c   : > { %v12064_v30 = vmax.f32 %v11966_v31, 0.0  ;;  %v11967_v36 = vadd.f32 %v19823_v33, %v11862_v32 }
 0x51d   : > { %v12062_v41 = vmax.f32 %v11964_v22, 0.0  ;;  %v11965_v25 = vadd.f32 %v19823_v33, %v11860_v28  ;;  %v16538_v26 = vpop.f32.mrb[140].mxu0  ;;  %v16746_v19 = vpop.f32.mrb[140].mxu1 }
 0x51e   : > { %v14898_v27 = vpack.c.bf16 %v12064_v30, %v12064_v30  ;;  %v12065_v42 = vmax.f32 %v11967_v36, 0.0  ;;  %v11739_v44 = vmax.f32 %v16538_v26, %v16746_v19  ;;  %v9381_v46 = vpop.f32.mrb[141].mxu0  ;;  %v11178_v34 = vpop.f32.mrb[141].mxu1 }
 0x51f   : > { %v14896_v35 = vpack.c.bf16 %v12062_v41, %v12062_v41  ;;  %v12063_v21 = vmax.f32 %v11965_v25, 0.0  ;;  %v11737_v43 = vmax.f32 %v9381_v46, %v11178_v34  ;;  %v16539_v47 = vpop.f32.mrb[142].mxu0  ;;  %v16747_v37 = vpop.f32.mrb[142].mxu1 }
 0x520   : > { %12569 = vst.msk [vmem:[%s19465_s24 + $0x110] sm:$0xf] %vm12500_vm1, %v14898_v27  ;;  %v14899_v52 = vpack.c.bf16 %v12065_v42, %v12065_v42  ;;  %v11740_v48 = vmax.f32 %v16539_v47, %v16747_v37  ;;  %v9384_v49 = vpop.f32.mrb[143].mxu0  ;;  %v11181_v45 = vpop.f32.mrb[143].mxu1 }
 0x521   : > { %12567 = vst.msk [vmem:[%s19465_s24 + $0x108] sm:$0xf] %vm12500_vm1, %v14896_v35  ;;  %v14897_v55 = vpack.c.bf16 %v12063_v21, %v12063_v21  ;;  %v11738_v56 = vmax.f32 %v9384_v49, %v11181_v45 }
 0x522   : > { %12570 = vst.msk [vmem:[%s19465_s24 + $0x114] sm:$0xf] %vm12500_vm1, %v14899_v52 }
 0x523   : > { %12568 = vst.msk [vmem:[%s19465_s24 + $0x10c] sm:$0xf] %vm12500_vm1, %v14897_v55 }
 0x525   : > { %v19964_v57 = vpop.f32.mrb[144].mxu0  ;;  %v19966_v58 = vpop.f32.mrb[144].mxu1 }
 0x526   : > { %v11743_v59 = vmax.f32 %v19964_v57, %v19966_v58  ;;  %v9397_v60 = vpop.f32.mrb[145].mxu0  ;;  %v11194_v61 = vpop.f32.mrb[145].mxu1 }
 0x527   : > { %v11741_v53 = vmax.f32 %v9397_v60, %v11194_v61  ;;  %v16543_v38 = vpop.f32.mrb[146].mxu0  ;;  %v16751_v50 = vpop.f32.mrb[146].mxu1 }
 0x528   : > { %v11744_v51 = vmax.f32 %v16543_v38, %v16751_v50  ;;  %v9400_v54 = vpop.f32.mrb[147].mxu0  ;;  %v11197_v40 = vpop.f32.mrb[147].mxu1 }
 0x529   : > { %v11742_v1 = vmax.f32 %v9400_v54, %v11197_v40 }
 0x52a   : > { %v11863_v2 = vmax.f32 %v11737_v43, %v11744_v51 }
 0x52c   : > { %v11968_v6 = vadd.f32 %v19823_v33, %v11863_v2 }
 0x52d   : > { %v16546_v39 = vpop.f32.mrb[148].mxu0  ;;  %v16754_v8 = vpop.f32.mrb[148].mxu1 }
 0x52e   : > { %v12066_v9 = vmax.f32 %v11968_v6, 0.0  ;;  %v11747_v12 = vmax.f32 %v16546_v39, %v16754_v8  ;;  %v9413_v13 = vpop.f32.mrb[149].mxu0  ;;  %v11210_v14 = vpop.f32.mrb[149].mxu1 }
 0x52f   : > { %v11745_v62 = vmax.f32 %v9413_v13, %v11210_v14  ;;  %v16547_v63 = vpop.f32.mrb[150].mxu0  ;;  %v16755_v0 = vpop.f32.mrb[150].mxu1 }
 0x530   : > { %v14900_v15 = vpack.c.bf16 %v12066_v9, %v12066_v9  ;;  %v11866_v16 = vmax.f32 %v11740_v48, %v11747_v12  ;;  %v11748_v17 = vmax.f32 %v16547_v63, %v16755_v0  ;;  %v9416_v18 = vpop.f32.mrb[151].mxu0  ;;  %v11213_v7 = vpop.f32.mrb[151].mxu1 }
 0x531   : > { %v11864_v4 = vmax.f32 %v11738_v56, %v11745_v62  ;;  %v11746_v3 = vmax.f32 %v9416_v18, %v11213_v7 }
 0x532   : > { %12571 = vst.msk [vmem:[%s19465_s24 + $0x118] sm:$0xf] %vm12500_vm1, %v14900_v15  ;;  %v11971_v5 = vadd.f32 %v19823_v33, %v11866_v16  ;;  %v11867_v11 = vmax.f32 %v11741_v53, %v11748_v17 }
 0x533   : > { %v11969_v10 = vadd.f32 %v19823_v33, %v11864_v4  ;;  %v11865_v23 = vmax.f32 %v11739_v44, %v11746_v3 }
 0x534   : > { %v12069_v24 = vmax.f32 %v11971_v5, 0.0  ;;  %v11972_v29 = vadd.f32 %v19823_v33, %v11867_v11 }
 0x535   : > { %v12067_v20 = vmax.f32 %v11969_v10, 0.0  ;;  %v11970_v31 = vadd.f32 %v19823_v33, %v11865_v23  ;;  %v16550_v32 = vpop.f32.mrb[152].mxu0  ;;  %v16758_v22 = vpop.f32.mrb[152].mxu1 }
 0x536   : > { %v14903_v28 = vpack.c.bf16 %v12069_v24, %v12069_v24  ;;  %v12070_v30 = vmax.f32 %v11972_v29, 0.0  ;;  %v11751_v36 = vmax.f32 %v16550_v32, %v16758_v22  ;;  %v9429_v41 = vpop.f32.mrb[153].mxu0  ;;  %v11226_v25 = vpop.f32.mrb[153].mxu1 }
 0x537   : > { %v14901_v26 = vpack.c.bf16 %v12067_v20, %v12067_v20  ;;  %v12068_v19 = vmax.f32 %v11970_v31, 0.0  ;;  %v11749_v27 = vmax.f32 %v9429_v41, %v11226_v25  ;;  %v16551_v42 = vpop.f32.mrb[154].mxu0  ;;  %v16759_v44 = vpop.f32.mrb[154].mxu1 }
 0x538   : > { %12574 = vst.msk [vmem:[%s19465_s24 + $0x124] sm:$0xf] %vm12500_vm1, %v14903_v28  ;;  %v14904_v46 = vpack.c.bf16 %v12070_v30, %v12070_v30  ;;  %v11752_v34 = vmax.f32 %v16551_v42, %v16759_v44  ;;  %v9432_v35 = vpop.f32.mrb[155].mxu0  ;;  %v11229_v21 = vpop.f32.mrb[155].mxu1 }
 0x539   : > { %12572 = vst.msk [vmem:[%s19465_s24 + $0x11c] sm:$0xf] %vm12500_vm1, %v14901_v26  ;;  %v14902_v43 = vpack.c.bf16 %v12068_v19, %v12068_v19  ;;  %v11868_v47 = vmax.f32 %v11742_v1, %v11749_v27  ;;  %v11750_v37 = vmax.f32 %v9432_v35, %v11229_v21 }
 0x53a   : > { %12575 = vst.msk [vmem:[%s19465_s24 + $0x128] sm:$0xf] %vm12500_vm1, %v14904_v46 }
 0x53b   : > { %12573 = vst.msk [vmem:[%s19465_s24 + $0x120] sm:$0xf] %vm12500_vm1, %v14902_v43  ;;  %v11973_v52 = vadd.f32 %v19823_v33, %v11868_v47  ;;  %v11869_v48 = vmax.f32 %v11743_v59, %v11750_v37 }
 0x53d   : > { %v12071_v49 = vmax.f32 %v11973_v52, 0.0  ;;  %v11974_v45 = vadd.f32 %v19823_v33, %v11869_v48  ;;  %v16554_v55 = vpop.f32.mrb[156].mxu0  ;;  %v16762_v56 = vpop.f32.mrb[156].mxu1  ;;  %v20006_v48 = vld [vmem:[%s20083_s3] ss:$0 sm:$0xff] }
 0x53e   : > { %v11755_v57 = vmax.f32 %v16554_v55, %v16762_v56  ;;  %v9445_v58 = vpop.f32.mrb[157].mxu0  ;;  %v11242_v60 = vpop.f32.mrb[157].mxu1 }
 0x53f   : > { %v14905_v61 = vpack.c.bf16 %v12071_v49, %v12071_v49  ;;  %v12072_v53 = vmax.f32 %v11974_v45, 0.0  ;;  %v11753_v38 = vmax.f32 %v9445_v58, %v11242_v60  ;;  %v16555_v50 = vpop.f32.mrb[158].mxu0  ;;  %v16763_v51 = vpop.f32.mrb[158].mxu1 }
 0x540   : > { %v11756_v54 = vmax.f32 %v16555_v50, %v16763_v51  ;;  %v9448_v40 = vpop.f32.mrb[159].mxu0  ;;  %v11245_v1 = vpop.f32.mrb[159].mxu1 }
 0x541   : > { %12576 = vst.msk [vmem:[%s19465_s24 + $0x12c] sm:$0xf] %vm12500_vm1, %v14905_v61  ;;  %v14906_v59 = vpack.c.bf16 %v12072_v53, %v12072_v53  ;;  %v11754_v2 = vmax.f32 %v9448_v40, %v11245_v1 }
 0x543   : > { %12577 = vst.msk [vmem:[%s19465_s24 + $0x130] sm:$0xf] %vm12500_vm1, %v14906_v59 }
 0x545   : > { %v16558_v6 = vpop.f32.mrb[160].mxu0  ;;  %v16766_v39 = vpop.f32.mrb[160].mxu1 }
 0x546   : > { %v11759_v8 = vmax.f32 %v16558_v6, %v16766_v39  ;;  %v9461_v9 = vpop.f32.mrb[161].mxu0  ;;  %v11258_v12 = vpop.f32.mrb[161].mxu1 }
 0x547   : > { %v11757_v13 = vmax.f32 %v9461_v9, %v11258_v12  ;;  %v16559_v14 = vpop.f32.mrb[162].mxu0  ;;  %v16767_v62 = vpop.f32.mrb[162].mxu1 }
 0x548   : > { %v11871_v63 = vmax.f32 %v11752_v34, %v11759_v8  ;;  %v11760_v0 = vmax.f32 %v16559_v14, %v16767_v62  ;;  %v9464_v15 = vpop.f32.mrb[163].mxu0  ;;  %v11261_v16 = vpop.f32.mrb[163].mxu1 }
 0x549   : > { %v11758_v17 = vmax.f32 %v9464_v15, %v11261_v16 }
 0x54a   : > { %v11976_v18 = vadd.f32 %v19823_v33, %v11871_v63  ;;  %v11872_v7 = vmax.f32 %v11753_v38, %v11760_v0 }
 0x54b   : > { %v11870_v4 = vmax.f32 %v11751_v36, %v11758_v17 }
 0x54c   : > { %v12074_v3 = vmax.f32 %v11976_v18, 0.0  ;;  %v11977_v5 = vadd.f32 %v19823_v33, %v11872_v7 }
 0x54d   : > { %v11975_v11 = vadd.f32 %v19823_v33, %v11870_v4  ;;  %v16562_v10 = vpop.f32.mrb[164].mxu0  ;;  %v16770_v23 = vpop.f32.mrb[164].mxu1 }
 0x54e   : > { %v14908_v24 = vpack.c.bf16 %v12074_v3, %v12074_v3  ;;  %v12075_v29 = vmax.f32 %v11977_v5, 0.0  ;;  %v11763_v20 = vmax.f32 %v16562_v10, %v16770_v23  ;;  %v9477_v31 = vpop.f32.mrb[165].mxu0  ;;  %v11274_v32 = vpop.f32.mrb[165].mxu1 }
 0x54f   : > { %v12073_v22 = vmax.f32 %v11975_v11, 0.0  ;;  %v11761_v28 = vmax.f32 %v9477_v31, %v11274_v32  ;;  %v16563_v30 = vpop.f32.mrb[166].mxu0  ;;  %v16771_v41 = vpop.f32.mrb[166].mxu1 }
 0x550   : > { %12579 = vst.msk [vmem:[%s19465_s24 + $0x138] sm:$0xf] %vm12500_vm1, %v14908_v24  ;;  %v14909_v36 = vpack.c.bf16 %v12075_v29, %v12075_v29  ;;  %v11875_v25 = vmax.f32 %v11756_v54, %v11763_v20  ;;  %v11764_v26 = vmax.f32 %v16563_v30, %v16771_v41  ;;  %v9480_v19 = vpop.f32.mrb[167].mxu0  ;;  %v11277_v27 = vpop.f32.mrb[167].mxu1 }
 0x551   : > { %v14907_v42 = vpack.c.bf16 %v12073_v22, %v12073_v22  ;;  %v11873_v44 = vmax.f32 %v11754_v2, %v11761_v28  ;;  %v11762_v46 = vmax.f32 %v9480_v19, %v11277_v27 }
 0x552   : > { %12580 = vst.msk [vmem:[%s19465_s24 + $0x13c] sm:$0xf] %vm12500_vm1, %v14909_v36  ;;  %v11980_v34 = vadd.f32 %v19823_v33, %v11875_v25  ;;  %v11876_v35 = vmax.f32 %v11757_v13, %v11764_v26 }
 0x553   : > { %12578 = vst.msk [vmem:[%s19465_s24 + $0x134] sm:$0xf] %vm12500_vm1, %v14907_v42  ;;  %v11978_v21 = vadd.f32 %v19823_v33, %v11873_v44  ;;  %v11874_v43 = vmax.f32 %v11755_v57, %v11762_v46 }
 0x554   : > { %v12078_v47 = vmax.f32 %v11980_v34, 0.0  ;;  %v11981_v37 = vadd.f32 %v19823_v33, %v11876_v35 }
 0x555   : > { %v12076_v52 = vmax.f32 %v11978_v21, 0.0  ;;  %v11979_v49 = vadd.f32 %v20006_v48, %v11874_v43  ;;  %v16566_v45 = vpop.f32.mrb[168].mxu0  ;;  %v16774_v55 = vpop.f32.mrb[168].mxu1 }
 0x556   : > { %v14912_v56 = vpack.c.bf16 %v12078_v47, %v12078_v47  ;;  %v12079_v58 = vmax.f32 %v11981_v37, 0.0  ;;  %v11767_v60 = vmax.f32 %v16566_v45, %v16774_v55  ;;  %v9493_v57 = vpop.f32.mrb[169].mxu0  ;;  %v11290_v61 = vpop.f32.mrb[169].mxu1 }
 0x557   : > { %v14910_v33 = vpack.c.bf16 %v12076_v52, %v12076_v52  ;;  %v12077_v53 = vmax.f32 %v11979_v49, 0.0  ;;  %v11765_v38 = vmax.f32 %v9493_v57, %v11290_v61  ;;  %v16567_v50 = vpop.f32.mrb[170].mxu0  ;;  %v16775_v51 = vpop.f32.mrb[170].mxu1 }
 0x558   : > { %12583 = vst.msk [vmem:[%s19465_s24 + $0x148] sm:$0xf] %vm12500_vm1, %v14912_v56  ;;  %v14913_v54 = vpack.c.bf16 %v12079_v58, %v12079_v58  ;;  %v11768_v40 = vmax.f32 %v16567_v50, %v16775_v51  ;;  %v9496_v1 = vpop.f32.mrb[171].mxu0  ;;  %v11293_v59 = vpop.f32.mrb[171].mxu1 }
 0x559   : > { %12581 = vst.msk [vmem:[%s19465_s24 + $0x140] sm:$0xf] %vm12500_vm1, %v14910_v33  ;;  %v14911_v2 = vpack.c.bf16 %v12077_v53, %v12077_v53  ;;  %v11766_v6 = vmax.f32 %v9496_v1, %v11293_v59 }
 0x55a   : > { %12584 = vst.msk [vmem:[%s19465_s24 + $0x14c] sm:$0xf] %vm12500_vm1, %v14913_v54 }
 0x55b   : > { %12582 = vst.msk [vmem:[%s19465_s24 + $0x144] sm:$0xf] %vm12500_vm1, %v14911_v2 }
 0x55d   : > { %v20017_v39 = vpop.f32.mrb[172].mxu0  ;;  %v20019_v8 = vpop.f32.mrb[172].mxu1 }
 0x55e   : > { %v11771_v9 = vmax.f32 %v20017_v39, %v20019_v8  ;;  %v9509_v12 = vpop.f32.mrb[173].mxu0  ;;  %v11306_v13 = vpop.f32.mrb[173].mxu1 }
 0x55f   : > { %v11769_v14 = vmax.f32 %v9509_v12, %v11306_v13  ;;  %v16571_v62 = vpop.f32.mrb[174].mxu0  ;;  %v16779_v63 = vpop.f32.mrb[174].mxu1 }
 0x560   : > { %v11772_v0 = vmax.f32 %v16571_v62, %v16779_v63  ;;  %v9512_v15 = vpop.f32.mrb[175].mxu0  ;;  %v11309_v16 = vpop.f32.mrb[175].mxu1 }
 0x561   : > { %v11770_v17 = vmax.f32 %v9512_v15, %v11309_v16 }
 0x562   : > { %v11877_v18 = vmax.f32 %v11765_v38, %v11772_v0 }
 0x564   : > { %v11982_v7 = vadd.f32 %v20006_v48, %v11877_v18 }
 0x565   : > { %v16574_v4 = vpop.f32.mrb[176].mxu0  ;;  %v16782_v3 = vpop.f32.mrb[176].mxu1 }
 0x566   : > { %v12080_v5 = vmax.f32 %v11982_v7, 0.0  ;;  %v11775_v11 = vmax.f32 %v16574_v4, %v16782_v3  ;;  %v9525_v10 = vpop.f32.mrb[177].mxu0  ;;  %v11322_v23 = vpop.f32.mrb[177].mxu1 }
 0x567   : > { %v11773_v24 = vmax.f32 %v9525_v10, %v11322_v23  ;;  %v16575_v29 = vpop.f32.mrb[178].mxu0  ;;  %v16783_v20 = vpop.f32.mrb[178].mxu1 }
 0x568   : > { %v14914_v31 = vpack.c.bf16 %v12080_v5, %v12080_v5  ;;  %v11880_v32 = vmax.f32 %v11768_v40, %v11775_v11  ;;  %v11776_v22 = vmax.f32 %v16575_v29, %v16783_v20  ;;  %v9528_v28 = vpop.f32.mrb[179].mxu0  ;;  %v11325_v30 = vpop.f32.mrb[179].mxu1 }
 0x569   : > { %v11878_v41 = vmax.f32 %v11766_v6, %v11773_v24  ;;  %v11774_v36 = vmax.f32 %v9528_v28, %v11325_v30 }
 0x56a   : > { %12585 = vst.msk [vmem:[%s19465_s24 + $0x150] sm:$0xf] %vm12500_vm1, %v14914_v31  ;;  %v11985_v25 = vadd.f32 %v20006_v48, %v11880_v32  ;;  %v11881_v26 = vmax.f32 %v11769_v14, %v11776_v22 }
 0x56b   : > { %v11983_v19 = vadd.f32 %v20006_v48, %v11878_v41  ;;  %v11879_v27 = vmax.f32 %v11767_v60, %v11774_v36 }
 0x56c   : > { %v12083_v42 = vmax.f32 %v11985_v25, 0.0  ;;  %v11986_v44 = vadd.f32 %v20006_v48, %v11881_v26 }
 0x56d   : > { %v12081_v46 = vmax.f32 %v11983_v19, 0.0  ;;  %v11984_v34 = vadd.f32 %v20006_v48, %v11879_v27  ;;  %v16578_v35 = vpop.f32.mrb[180].mxu0  ;;  %v16786_v21 = vpop.f32.mrb[180].mxu1 }
 0x56e   : > { %v14917_v43 = vpack.c.bf16 %v12083_v42, %v12083_v42  ;;  %v12084_v47 = vmax.f32 %v11986_v44, 0.0  ;;  %v11779_v37 = vmax.f32 %v16578_v35, %v16786_v21  ;;  %v9541_v52 = vpop.f32.mrb[181].mxu0  ;;  %v11338_v49 = vpop.f32.mrb[181].mxu1 }
 0x56f   : > { %v14915_v45 = vpack.c.bf16 %v12081_v46, %v12081_v46  ;;  %v12082_v55 = vmax.f32 %v11984_v34, 0.0  ;;  %v11777_v56 = vmax.f32 %v9541_v52, %v11338_v49  ;;  %v16579_v58 = vpop.f32.mrb[182].mxu0  ;;  %v16787_v60 = vpop.f32.mrb[182].mxu1 }
 0x570   : > { %12588 = vst.msk [vmem:[%s19465_s24 + $0x15c] sm:$0xf] %vm12500_vm1, %v14917_v43  ;;  %v14918_v57 = vpack.c.bf16 %v12084_v47, %v12084_v47  ;;  %v11780_v61 = vmax.f32 %v16579_v58, %v16787_v60  ;;  %v9544_v33 = vpop.f32.mrb[183].mxu0  ;;  %v11341_v53 = vpop.f32.mrb[183].mxu1 }
 0x571   : > { %12586 = vst.msk [vmem:[%s19465_s24 + $0x154] sm:$0xf] %vm12500_vm1, %v14915_v45  ;;  %v14916_v38 = vpack.c.bf16 %v12082_v55, %v12082_v55  ;;  %v11882_v50 = vmax.f32 %v11770_v17, %v11777_v56  ;;  %v11778_v51 = vmax.f32 %v9544_v33, %v11341_v53 }
 0x572   : > { %12589 = vst.msk [vmem:[%s19465_s24 + $0x160] sm:$0xf] %vm12500_vm1, %v14918_v57 }
 0x573   : > { %12587 = vst.msk [vmem:[%s19465_s24 + $0x158] sm:$0xf] %vm12500_vm1, %v14916_v38  ;;  %v11987_v54 = vadd.f32 %v20006_v48, %v11882_v50  ;;  %v11883_v40 = vmax.f32 %v11771_v9, %v11778_v51 }
 0x575   : > { %v12085_v1 = vmax.f32 %v11987_v54, 0.0  ;;  %v11988_v59 = vadd.f32 %v20006_v48, %v11883_v40  ;;  %v16582_v2 = vpop.f32.mrb[184].mxu0  ;;  %v16790_v6 = vpop.f32.mrb[184].mxu1 }
 0x576   : > { %v11783_v39 = vmax.f32 %v16582_v2, %v16790_v6  ;;  %v9557_v8 = vpop.f32.mrb[185].mxu0  ;;  %v11354_v12 = vpop.f32.mrb[185].mxu1 }
 0x577   : > { %v14919_v13 = vpack.c.bf16 %v12085_v1, %v12085_v1  ;;  %v12086_v14 = vmax.f32 %v11988_v59, 0.0  ;;  %v11781_v62 = vmax.f32 %v9557_v8, %v11354_v12  ;;  %v16583_v63 = vpop.f32.mrb[186].mxu0  ;;  %v16791_v0 = vpop.f32.mrb[186].mxu1 }
 0x578   : > { %v11784_v15 = vmax.f32 %v16583_v63, %v16791_v0  ;;  %v9560_v16 = vpop.f32.mrb[187].mxu0  ;;  %v11357_v17 = vpop.f32.mrb[187].mxu1 }
 0x579   : > { %12590 = vst.msk [vmem:[%s19465_s24 + $0x164] sm:$0xf] %vm12500_vm1, %v14919_v13  ;;  %v14920_v9 = vpack.c.bf16 %v12086_v14, %v12086_v14  ;;  %v11782_v18 = vmax.f32 %v9560_v16, %v11357_v17 }
 0x57b   : > { %12591 = vst.msk [vmem:[%s19465_s24 + $0x168] sm:$0xf] %vm12500_vm1, %v14920_v9 }
 0x57d   : > { %v16586_v7 = vpop.f32.mrb[188].mxu0  ;;  %v16794_v4 = vpop.f32.mrb[188].mxu1 }
 0x57e   : > { %v11787_v3 = vmax.f32 %v16586_v7, %v16794_v4  ;;  %v9573_v5 = vpop.f32.mrb[189].mxu0  ;;  %v11370_v11 = vpop.f32.mrb[189].mxu1 }
 0x57f   : > { %v11785_v10 = vmax.f32 %v9573_v5, %v11370_v11  ;;  %v16587_v23 = vpop.f32.mrb[190].mxu0  ;;  %v16795_v24 = vpop.f32.mrb[190].mxu1 }
 0x580   : > { %v11885_v29 = vmax.f32 %v11780_v61, %v11787_v3  ;;  %v11788_v20 = vmax.f32 %v16587_v23, %v16795_v24  ;;  %v9576_v31 = vpop.f32.mrb[191].mxu0  ;;  %v11373_v32 = vpop.f32.mrb[191].mxu1 }
 0x581   : > { %v11786_v22 = vmax.f32 %v9576_v31, %v11373_v32 }
 0x582   : > { %v11990_v28 = vadd.f32 %v20006_v48, %v11885_v29  ;;  %v11886_v30 = vmax.f32 %v11781_v62, %v11788_v20 }
 0x583   : > { %v11884_v41 = vmax.f32 %v11779_v37, %v11786_v22 }
 0x584   : > { %v12088_v36 = vmax.f32 %v11990_v28, 0.0  ;;  %v11991_v25 = vadd.f32 %v20006_v48, %v11886_v30 }
 0x585   : > { %v11989_v26 = vadd.f32 %v20006_v48, %v11884_v41  ;;  %v16590_v19 = vpop.f32.mrb[192].mxu0  ;;  %v16798_v27 = vpop.f32.mrb[192].mxu1 }
 0x586   : > { %v14922_v42 = vpack.c.bf16 %v12088_v36, %v12088_v36  ;;  %v12089_v44 = vmax.f32 %v11991_v25, 0.0  ;;  %v11791_v46 = vmax.f32 %v16590_v19, %v16798_v27  ;;  %v9589_v34 = vpop.f32.mrb[193].mxu0  ;;  %v11386_v35 = vpop.f32.mrb[193].mxu1 }
 0x587   : > { %v12087_v21 = vmax.f32 %v11989_v26, 0.0  ;;  %v11789_v43 = vmax.f32 %v9589_v34, %v11386_v35  ;;  %v16591_v47 = vpop.f32.mrb[194].mxu0  ;;  %v16799_v52 = vpop.f32.mrb[194].mxu1 }
 0x588   : > { %12593 = vst.msk [vmem:[%s19465_s24 + $0x170] sm:$0xf] %vm12500_vm1, %v14922_v42  ;;  %v14923_v37 = vpack.c.bf16 %v12089_v44, %v12089_v44  ;;  %v11889_v49 = vmax.f32 %v11784_v15, %v11791_v46  ;;  %v11792_v45 = vmax.f32 %v16591_v47, %v16799_v52  ;;  %v9592_v55 = vpop.f32.mrb[195].mxu0  ;;  %v11389_v56 = vpop.f32.mrb[195].mxu1 }
 0x589   : > { %v14921_v58 = vpack.c.bf16 %v12087_v21, %v12087_v21  ;;  %v11887_v60 = vmax.f32 %v11782_v18, %v11789_v43  ;;  %v11790_v57 = vmax.f32 %v9592_v55, %v11389_v56 }
 0x58a   : > { %12594 = vst.msk [vmem:[%s19465_s24 + $0x174] sm:$0xf] %vm12500_vm1, %v14923_v37  ;;  %v11994_v61 = vadd.f32 %v20006_v48, %v11889_v49  ;;  %v11890_v33 = vmax.f32 %v11785_v10, %v11792_v45 }
 0x58b   : > { %12592 = vst.msk [vmem:[%s19465_s24 + $0x16c] sm:$0xf] %vm12500_vm1, %v14921_v58  ;;  %v11992_v53 = vadd.f32 %v20006_v48, %v11887_v60  ;;  %v11888_v38 = vmax.f32 %v11783_v39, %v11790_v57 }
 0x58c   : > { %v12092_v50 = vmax.f32 %v11994_v61, 0.0  ;;  %v11995_v51 = vadd.f32 %v20006_v48, %v11890_v33 }
 0x58d   : > { %v12090_v54 = vmax.f32 %v11992_v53, 0.0  ;;  %v11993_v40 = vadd.f32 %v20006_v48, %v11888_v38 }
 0x58e   : > { %v14926_v1 = vpack.c.bf16 %v12092_v50, %v12092_v50  ;;  %v12093_v59 = vmax.f32 %v11995_v51, 0.0 }
 0x58f   : > { %v14924_v2 = vpack.c.bf16 %v12090_v54, %v12090_v54  ;;  %v12091_v6 = vmax.f32 %v11993_v40, 0.0 }
 0x590   : > { %12597 = vst.msk [vmem:[%s19465_s24 + $0x180] sm:$0xf] %vm12500_vm1, %v14926_v1  ;;  %v14927_v8 = vpack.c.bf16 %v12093_v59, %v12093_v59 }
 0x591   : > { %12595 = vst.msk [vmem:[%s19465_s24 + $0x178] sm:$0xf] %vm12500_vm1, %v14924_v2  ;;  %v14925_v12 = vpack.c.bf16 %v12091_v6, %v12091_v6 }
 0x592   : > { %12598 = vst.msk [vmem:[%s19465_s24 + $0x184] sm:$0xf] %vm12500_vm1, %v14927_v8 }
 0x593   : > { %12596 = vst.msk [vmem:[%s19465_s24 + $0x17c] sm:$0xf] %vm12500_vm1, %v14925_v12 }
 0x594 PF: > { %s14_s19 = sadd.s32 1, %s18274_s19   ;;  %s20086_s15 = smov %s18266_s17 }
 0x595   : > { %p11_p8 = scmp.ge.s32.totalorder %s14_s19, 10   ;;  %s20087_s16 = smov %s18270_s18 }
 0x596   : > { %s20088_s17 = smov %s20091_s20  ;;  %s20089_s18 = smov %s20095_s21 }
 0x597   :  { %13 = sbr.rel (!%p11_p8) target bundleno = 3 (0x3), region = 75 }

// kernel: simple_cnn_forward.6
= control target key start
LH: loop header
LB: loop body
LE: loop exit
PB: predicated region body
PF: predicated region fallthrough
CT: control target
= control target key end

     0   :  { %7 = vsyncpa [#allocation4], 0  ;;  %s15076_s0 = inlined_call_operand.vmem [shape: bf16[2,200704], index: 0, kind: input, shape index: {}]   ;;  %s15077_s1 = inlined_call_operand.hbm [shape: bf16[200704,128], index: 1, kind: input, shape index: {}]   ;;  %s15078_s2 = inlined_call_operand.vmem [shape: f32[2,2,128], index: 2, kind: output, shape index: {}]  }
   0x1   :  { %9 = vsyncpa [#allocation4 + $0x1], 0  ;;  %s13797_s9 = smov 0   ;;  %s13799_s10 = smov 0  }
   0x2   :  { %s13801_s11 = smov 0   ;;  %s13803_s12 = smov 0  }
   0x3   :  { %s13805_s13 = smov 0   ;;  %s13807_s14 = smov 0  }
   0x4   :  { %s13809_s15 = smov 0   ;;  %s13811_s16 = smov 0  }
   0x5 LB: > { %s10552_s17 = sadd.s32 4294967295, %s13775_s16   ;;  %s24_s18 = sadd.s32 1, %s13767_s14  ;;  %s13775_s16 = sphi %s13811_s16, %s15_s16   ;;  %s13771_s15 = sphi %s13809_s15, %s15087_s15   ;;  %s13767_s14 = sphi %s13807_s14, %s15086_s14   ;;  %s13763_s13 = sphi %s13805_s13, %s15085_s13   ;;  %s13759_s12 = sphi %s13803_s12, %s15084_s12   ;;  %s13755_s11 = sphi %s13801_s11, %s15083_s11   ;;  %s13751_s10 = sphi %s13799_s10, %s15082_s10   ;;  %s13747_s9 = sphi %s13797_s9, %s15081_s9  }
   0x6   : > { %p25_p0 = scmp.ge.s32.totalorder %s24_s18, 7  ;;  %s27_s19 = sadd.s32 1, %s13771_s15 }
   0x7   : > { %s61_s20 = smul.u32 7, %s13771_s15  ;;  %s68_s21 = sadd.s32 1, %s13755_s11 }
   0x8   : > { %s15089_s18 = smov (%p25_p0, %s24_s18), 0  ;;  %s15091_s19 = smov (!%p25_p0, %s27_s19), %s13771_s15 }
   0x9   : > { %s62_s22 = sadd.s32 %s13767_s14, %s61_s20  ;;  %p75_p1 = scmp.ne.s32.totalorder %s13755_s11, %s13751_s10 }
   0xa   : > { %p29_p2 = scmp.ge.s32.totalorder %s15091_s19, 2  ;;  %p76_p3 = scmp.eq.s32.totalorder %s13775_s16, 0 }
   0xb   : > { %p81_p4 = scmp.ne.s32.totalorder %s13751_s10, %s13747_s9  ;;  %p82_p5 = scmp.eq.s32.totalorder %s10552_s17, 0 }
   0xc   : > { %s15093_s19 = smov (%p29_p2, %s15091_s19), 0  ;;  %p77_p6 = por %p76_p3, %p75_p1 }
   0xd   : > { %p13850_p7 = por %p82_p5, %p81_p4  ;;  %s63_s24 = smul.u32 7, %s15093_s19 }
   0xe   : > { %p12700_p8 = scmp.lt.s32.totalorder %s13775_s16, 14  ;;  %s143_s25 = sand.u32 1, %s13755_s11  }
   0xf   : > { %s64_s26 = sadd.s32 %s63_s24, %s15089_s18  ;;  %s12692_s28 = smul.u32 7168, %s143_s25 }
  0x10   : > { %s65_s27 = ssub.s32 %s62_s22, %s64_s26  ;;  %s11459_s29 = smul.u32 114688, %s62_s22 }
  0x11   : > { %p66_p9 = scmp.eq.s32.totalorder %s65_s27, 0  ;;  %p13858_p10 = pnand %p12700_p8, %p77_p6 }
  0x12   : > { %s13868_s6 = scalar_lea.hbm %s15077_s1, %s11459_s29  ;;  %s147_s7 = scalar_lea.vmem [#allocation3], %s12692_s28 }
  0x13   : > { %s13863_s3 = scalar_select %p66_p9, %s13755_s11, %s68_s21  }
  0x14   : > { %s156_s8 = sshll.u32 %s147_s7, 4  ;;  %s13872_s9 = scalar_lea.sflag [#allocation4], %s143_s25  ;;  %s13870_s8 = int_to_ptr.vmem [resolvable:$true] %s156_s8 }
  0x15   : > { %s13679_s17 = scalar_lea.hbm %s13868_s6, 114688  ;;  %p13681_p12 = pneg %p13858_p10 }
  0x16   : > { %p13680_p11 = scmp.ne.s32.totalorder %s13868_s6, %s13679_s17  ;;  %s13684_s22 = scalar_lea.hbm %s15077_s1, 1605632 }
  0x17   : > { %p13685_p1 = scmp.lt.u32.totalorder %s13868_s6, %s15077_s1  ;;  %p13686_p2 = scmp.lt.u32.totalorder %s13684_s22, %s13679_s17 }
  0x18   : > { %p13682_p13 = pnand %p13681_p12, %p13680_p11  ;;  %p13688_p4 = scmp.lt.u32.totalorder %s13679_s17, %s13868_s6 }
  0x19   : > { %p13687_p3 = por %p13686_p2, %p13685_p1 }
  0x1a   : > { %p13683_p0 = pneg %p13682_p13 }
  0x1b   : > { %p13689_p5 = por %p13688_p4, %p13687_p3 }
  0x1d   : > { %p13690_p6 = pnand %p13689_p5, %p13683_p0 }
  0x1f   : > { %13693 = shalt.err (!%p13690_p6)
}
  0x20   : > { %s13694_s25 = scalar_lea.vmem %s13870_s8, 114688  ;;  %s13777_s27 = smov [#allocation3]  }
  0x21   : > { %p13695_p8 = scmp.ne.s32.totalorder %s13870_s8, %s13694_s25  ;;  %s13699_s28 = sshll.u32 %s13777_s27, 4  ;;  %s13700_s28 = int_to_ptr.vmem [resolvable:$false] %s13699_s28 }
  0x22   : > { %s13701_s29 = scalar_lea.vmem %s13700_s28, 229376  ;;  %p13702_p13 = scmp.lt.s32.totalorder %s13870_s8, %s13700_s28 }
  0x23   : > { %p13697_p9 = pnand %p13695_p8, %p13681_p12  ;;  %p13703_p1 = scmp.lt.s32.totalorder %s13701_s29, %s13694_s25 }
  0x25   : > { %p13698_p11 = pneg %p13697_p9  ;;  %p13704_p2 = por %p13703_p1, %p13702_p13 }
  0x27   : > { %p13705_p3 = pnand %p13704_p2, %p13698_p11 }
  0x29   : > { %13708 = shalt.err (!%p13705_p3)
}
  0x2a   : > { %s13778_s4 = smov 64   ;;  %s13779_s5 = smov 4  }
  0x2b   : > { %12699 = dma.hbm_to_vmem [thread:$0]  (!%p13858_p10), %s13868_s6, 114688, %s13870_s8, %s13872_s9, %s13778_s4, %s13778_s4, %s13779_s5  }
  0x2c   : > { %p10557_p12 = scmp.ge.s32.totalorder %s13775_s16, 1  ;;  %p164_p0 = scmp.lt.s32.totalorder %s13775_s16, 15 }
  0x2e   : > { %p165_p4 = pnand %p10557_p12, %p164_p0 }
  0x2f   : > { %s170_s7 = sand.u32 (!%p165_p4), 1, %s13751_s10  }
  0x30   : > { %168 = sbr.rel (%p165_p4) target bundleno = 1195 (0x4ab), region = 28  ;;  %s171_s20 = scalar_lea.sflag (!%p165_p4), [#allocation4], %s170_s7 }
  0x31   : > { %s12693_s17 = smul.u32 (!%p165_p4), 7168, %s170_s7 }
  0x33   : > { %s13903_s21 = scalar_lea.vmem (!%p165_p4), [#allocation3], %s12693_s17 }
  0x37   : > { %13742 = dma.done.wait (%p13850_p7), %s171_s20, 114688  }
  0x38   : > { %13744 = vsyncadd (%p13850_p7), %s171_s20, 4294852608  ;;  %s200_s30 = smul.u32 7, %s13763_s13  ;;  %p212_p10 = scmp.lt.s32.totalorder %s13763_s13, 1 }
  0x39   : > { %p10559_p7 = scmp.ne.s32.totalorder %s13759_s12, 0 }
  0x3a   : > { %s201_s6 = sadd.s32 %s13759_s12, %s200_s30  ;;  %s15095_s13 = smov (!%p212_p10, %s13763_s13), 1  ;;  %v13780_v0 = vmov (!%p10559_p7), 0.0  }
  0x3b   : > { %s202_s8 = smul.u32 112, %s201_s6  ;;  %s10558_s9 = sshll.u32 %s15095_s13, 1  ;;  %221 = vst [vmem:[#allocation2] sm:$0x3] (!%p10559_p7), %v13780_v0 }
  0x3c   : > { %s13916_s26 = scalar_lea.vmem %s15078_s2, %s10558_s9  ;;  %220 = sbr.rel (%p10559_p7) target bundleno = 67 (0x43), region = 36 }
  0x3d   : > { %p203_p5 = scmp.lt.s32.totalorder %s202_s8, 1567 }
  0x3f   : > { %s15097_s8 = smov (!%p203_p5, %s202_s8), 1567 }
  0x40   : > { %s13921_s27 = scalar_lea.vmem %s15076_s0, %s15097_s8 }
  0x43 PF: > { %v12769_v1 = vld [vmem:[%s13903_s21 + $0x40] sm:$0xff]   ;;  %v12773_v5 = vld [vmem:[%s13903_s21 + $0x48] sm:$0xff]   ;;  %v12777_v9 = vld [vmem:[%s13903_s21 + $0x50] sm:$0xff]   ;;  %v2047_v29 = vlaneseq  ;;  %v13781_v37 = vmov 1966171168   ;;  %p11456_p6 = scmp.ne.s32.totalorder %s13759_s12, 6 }
  0x44   : > { %v12770_v2 = vld [vmem:[%s13903_s21 + $0xc0] sm:$0xff]   ;;  %11460 = vmatprep.subr.bf16.mxu0 %v12769_v1  ;;  %v12774_v6 = vld [vmem:[%s13903_s21 + $0xc8] sm:$0xff]   ;;  %v12778_v10 = vld [vmem:[%s13903_s21 + $0xd0] sm:$0xff]   ;;  %v2045_v38 = vunpack.c.l.s4 %v13781_v37 }
  0x45   : > { %v12771_v3 = vld [vmem:[%s13903_s21] sm:$0xff]   ;;  %11482 = vmatprep.subr.bf16.mxu1 %v12770_v2  ;;  %v12775_v7 = vld [vmem:[%s13903_s21 + $0x8] sm:$0xff]   ;;  %v12779_v11 = vld [vmem:[%s13903_s21 + $0x10] sm:$0xff]   ;;  %v2048_v34 = vshrl.u32 %v2047_v29, 7 }
  0x46   : > { %v12772_v4 = vld [vmem:[%s13903_s21 + $0x80] sm:$0xff]   ;;  %11461 = vmatpush3.bf16.msra.mxu0 %v12771_v3  ;;  %v12776_v8 = vld [vmem:[%s13903_s21 + $0x88] sm:$0xff]   ;;  %v12780_v12 = vld [vmem:[%s13903_s21 + $0x90] sm:$0xff]   ;;  %v2046_v41 = vunpack.c.0.s8 %v2045_v38 }
  0x47   : > { %11483 = vmatpush3.bf16.msra.mxu1 %v12772_v4  ;;  %11462 = vmatprep.subr.bf16.mxu0 %v12773_v5  ;;  %v12781_v13 = vld [vmem:[%s13903_s21 + $0x58] sm:$0xff]   ;;  %v12785_v17 = vld [vmem:[%s13903_s21 + $0x60] sm:$0xff]   ;;  %v12789_v21 = vld [vmem:[%s13903_s21 + $0x68] sm:$0xff]  }
  0x48   : > { %11484 = vmatprep.subr.bf16.mxu1 %v12774_v6  ;;  %v12782_v14 = vld [vmem:[%s13903_s21 + $0xd8] sm:$0xff]   ;;  %v12786_v18 = vld [vmem:[%s13903_s21 + $0xe0] sm:$0xff]   ;;  %v12790_v22 = vld [vmem:[%s13903_s21 + $0xe8] sm:$0xff]   ;;  %v13959_v42 = vsub.s32 %v2046_v41, %v2048_v34 }
  0x49   : > { %v12783_v15 = vld [vmem:[%s13903_s21 + $0x18] sm:$0xff]   ;;  %v12787_v19 = vld [vmem:[%s13903_s21 + $0x20] sm:$0xff]   ;;  %v12791_v23 = vld [vmem:[%s13903_s21 + $0x28] sm:$0xff]  }
  0x4a   : > { %11463 = vmatpush3.bf16.msra.mxu0 %v12775_v7  ;;  %v12784_v16 = vld [vmem:[%s13903_s21 + $0x98] sm:$0xff]   ;;  %v12788_v20 = vld [vmem:[%s13903_s21 + $0xa0] sm:$0xff]   ;;  %v12792_v24 = vld [vmem:[%s13903_s21 + $0xa8] sm:$0xff]  }
  0x4b   : > { %11485 = vmatpush3.bf16.msra.mxu1 %v12776_v8  ;;  %11464 = vmatprep.subr.bf16.mxu0 %v12777_v9  ;;  %v12793_v25 = vld [vmem:[%s13903_s21 + $0x70] sm:$0xff]   ;;  %v12797_v30 = vld [vmem:[%s13903_s21 + $0x78] sm:$0xff]   ;;  %v12802_v36 = vld [vmem:[%s13903_s21 + $0x140] sm:$0xff]  }
  0x4c   : > { %11486 = vmatprep.subr.bf16.mxu1 %v12778_v10  ;;  %v12794_v26 = vld [vmem:[%s13903_s21 + $0xf0] sm:$0xff]   ;;  %v12798_v31 = vld [vmem:[%s13903_s21 + $0xf8] sm:$0xff]   ;;  %v12803_v39 = vld [vmem:[%s13903_s21 + $0x1c0] sm:$0xff]  }
  0x4d   : > { %v12795_v27 = vld [vmem:[%s13903_s21 + $0x30] sm:$0xff]   ;;  %v12799_v32 = vld [vmem:[%s13903_s21 + $0x38] sm:$0xff]   ;;  %v12804_v48 = vld [vmem:[%s13903_s21 + $0x100] sm:$0xff]  }
  0x4e   : > { %11465 = vmatpush3.bf16.msra.mxu0 %v12779_v11  ;;  %v12796_v28 = vld [vmem:[%s13903_s21 + $0xb0] sm:$0xff]   ;;  %v12800_v33 = vld [vmem:[%s13903_s21 + $0xb8] sm:$0xff]   ;;  %v12805_v50 = vld [vmem:[%s13903_s21 + $0x180] sm:$0xff]  }
  0x4f   : > { %11487 = vmatpush3.bf16.msra.mxu1 %v12780_v12  ;;  %11466 = vmatprep.subr.bf16.mxu0 %v12781_v13  ;;  %v223_v35 = vld [vmem:[%s13921_s27] sm:$0xff]  ;;  %v12806_v53 = vld [vmem:[%s13903_s21 + $0x148] sm:$0xff]   ;;  %v12810_v59 = vld [vmem:[%s13903_s21 + $0x150] sm:$0xff]  }
  0x50   : > { %11488 = vmatprep.subr.bf16.mxu1 %v12782_v14  ;;  %v2043_v40 = vcombine.high %v223_v35, %v223_v35  ;;  %v2050_v43 = vrot.slane %v223_v35, %v13959_v42  ;;  %v12807_v55 = vld [vmem:[%s13903_s21 + $0x1c8] sm:$0xff]   ;;  %v12811_v60 = vld [vmem:[%s13903_s21 + $0x1d0] sm:$0xff]   ;;  %v12814_v63 = vld [vmem:[%s13903_s21 + $0x158] sm:$0xff]  }
  0x51   : > { %v12808_v56 = vld [vmem:[%s13903_s21 + $0x108] sm:$0xff]   ;;  %v12812_v61 = vld [vmem:[%s13903_s21 + $0x110] sm:$0xff]   ;;  %v12815_v0 = vld [vmem:[%s13903_s21 + $0x1d8] sm:$0xff]  }
  0x52   : > { %11467 = vmatpush3.bf16.msra.mxu0 %v12783_v15  ;;  %v13963_v44 = vrot.slane %v2043_v40, %v13959_v42  ;;  %v2058_v45 = vcombine.high %v2050_v43, %v2050_v43  ;;  %v2066_v46 = vrot.slane %v2050_v43, %v13959_v42  ;;  %v12809_v58 = vld [vmem:[%s13903_s21 + $0x188] sm:$0xff]   ;;  %v12813_v62 = vld [vmem:[%s13903_s21 + $0x190] sm:$0xff]   ;;  %v12816_v1 = vld [vmem:[%s13903_s21 + $0x118] sm:$0xff]  }
  0x53   : > { %11489 = vmatpush3.bf16.msra.mxu1 %v12784_v16  ;;  %11468 = vmatprep.subr.bf16.mxu0 %v12785_v17  ;;  %v12817_v2 = vld [vmem:[%s13903_s21 + $0x198] sm:$0xff]   ;;  %v12818_v3 = vld [vmem:[%s13903_s21 + $0x160] sm:$0xff]   ;;  %v12822_v7 = vld [vmem:[%s13903_s21 + $0x168] sm:$0xff]  }
  0x54   : > { %11490 = vmatprep.subr.bf16.mxu1 %v12786_v18  ;;  %v2059_v47 = vcombine.high %v13963_v44, %v13963_v44  ;;  %v2080_v49 = vrot.slane %v2058_v45, %v13959_v42  ;;  %v2088_v52 = vcombine.high %v2066_v46, %v2066_v46  ;;  %v12819_v4 = vld [vmem:[%s13903_s21 + $0x1e0] sm:$0xff]   ;;  %v12823_v8 = vld [vmem:[%s13903_s21 + $0x1e8] sm:$0xff]   ;;  %v12826_v11 = vld [vmem:[%s13903_s21 + $0x170] sm:$0xff]  }
  0x55   : > { %v12820_v5 = vld [vmem:[%s13903_s21 + $0x120] sm:$0xff]   ;;  %v12824_v9 = vld [vmem:[%s13903_s21 + $0x128] sm:$0xff]   ;;  %v12827_v12 = vld [vmem:[%s13903_s21 + $0x1f0] sm:$0xff]  }
  0x56   : > { %11469 = vmatpush3.bf16.msra.mxu0 %v12787_v19  ;;  %v2087_v51 = vrot.slane %v2059_v47, %v13959_v42  ;;  %8249 = vmatprep.mubr.bf16.mxu0 %v2080_v49  ;;  %v2090_v54 = vcombine.high %v2080_v49, %v2080_v49  ;;  %v12821_v6 = vld [vmem:[%s13903_s21 + $0x1a0] sm:$0xff]   ;;  %v12825_v10 = vld [vmem:[%s13903_s21 + $0x1a8] sm:$0xff]   ;;  %v12828_v13 = vld [vmem:[%s13903_s21 + $0x130] sm:$0xff]   ;;  %v2073_v19 = vrot.slane %v13963_v44, %v13959_v42 }
  0x57   : > { %11491 = vmatpush3.bf16.msra.mxu1 %v12788_v20  ;;  %11470 = vmatprep.subr.bf16.mxu0 %v12789_v21  ;;  %v12829_v14 = vld [vmem:[%s13903_s21 + $0x1b0] sm:$0xff]   ;;  %v12830_v15 = vld [vmem:[%s13903_s21 + $0x178] sm:$0xff]   ;;  %v12834_v20 = vld [vmem:[%s13903_s21 + $0x240] sm:$0xff]  }
  0x58   : > { %11492 = vmatprep.subr.bf16.mxu1 %v12790_v22  ;;  %v2091_v57 = vcombine.high %v2087_v51, %v2087_v51  ;;  %8289 = vmatprep.mubr.bf16.mxu1 %v2090_v54  ;;  %v12831_v16 = vld [vmem:[%s13903_s21 + $0x1f8] sm:$0xff]   ;;  %v12835_v21 = vld [vmem:[%s13903_s21 + $0x2c0] sm:$0xff]   ;;  %v12842_v29 = vld [vmem:[%s13903_s21 + $0x250] sm:$0xff]  }
  0x59   : > { %v12832_v17 = vld [vmem:[%s13903_s21 + $0x138] sm:$0xff]   ;;  %v12836_v22 = vld [vmem:[%s13903_s21 + $0x200] sm:$0xff]   ;;  %v12854_v41 = vld [vmem:[%s13903_s21 + $0x268] sm:$0xff]  }
  0x5a   : > { %11471 = vmatpush3.bf16.msra.mxu0 %v12791_v23  ;;  %v12833_v18 = vld [vmem:[%s13903_s21 + $0x1b8] sm:$0xff]   ;;  %v12837_v23 = vld [vmem:[%s13903_s21 + $0x280] sm:$0xff]   ;;  %v12855_v43 = vld [vmem:[%s13903_s21 + $0x2e8] sm:$0xff]  }
  0x5b   : > { %11493 = vmatpush3.bf16.msra.mxu1 %v12792_v24  ;;  %11472 = vmatprep.subr.bf16.mxu0 %v12793_v25  ;;  %v2089_v24 = vcombine.high %v2073_v19, %v2073_v19  ;;  %v12838_v25 = vld [vmem:[%s13903_s21 + $0x248] sm:$0xff]   ;;  %v12847_v34 = vld [vmem:[%s13903_s21 + $0x2d8] sm:$0xff]   ;;  %v12850_v37 = vld [vmem:[%s13903_s21 + $0x260] sm:$0xff]  }
  0x5c   : > { %11494 = vmatprep.subr.bf16.mxu1 %v12794_v26  ;;  %v12839_v26 = vld [vmem:[%s13903_s21 + $0x2c8] sm:$0xff]   ;;  %v12848_v35 = vld [vmem:[%s13903_s21 + $0x218] sm:$0xff]   ;;  %v12851_v38 = vld [vmem:[%s13903_s21 + $0x2e0] sm:$0xff]  }
  0x5d   : > { %v12853_v40 = vld [vmem:[%s13903_s21 + $0x2a0] sm:$0xff]   ;;  %v12856_v44 = vld [vmem:[%s13903_s21 + $0x228] sm:$0xff]  }
  0x5e   : > { %11473 = vmatpush3.bf16.msra.mxu0 %v12795_v27  ;;  %v12840_v27 = vld [vmem:[%s13903_s21 + $0x208] sm:$0xff]  }
  0x5f   : > { %11495 = vmatpush3.bf16.msra.mxu1 %v12796_v28  ;;  %11474 = vmatprep.subr.bf16.mxu0 %v12797_v30  ;;  %v12841_v28 = vld [vmem:[%s13903_s21 + $0x288] sm:$0xff]   ;;  %v12843_v30 = vld [vmem:[%s13903_s21 + $0x2d0] sm:$0xff]  }
  0x60   : > { %11496 = vmatprep.subr.bf16.mxu1 %v12798_v31  ;;  %v12844_v31 = vld [vmem:[%s13903_s21 + $0x210] sm:$0xff]   ;;  %v12857_v45 = vld [vmem:[%s13903_s21 + $0x2a8] sm:$0xff]  }
  0x61   : > { %v224_v47 = vld [vmem:[%s13921_s27 + $0x8] sm:$0xff] }
  0x62   : > { %11475 = vmatpush3.bf16.msra.mxu0 %v12799_v32  ;;  %v12845_v32 = vld [vmem:[%s13903_s21 + $0x290] sm:$0xff]   ;;  %v2099_v49 = vrot.slane %v224_v47, %v13959_v42 }
  0x63   : > { %11497 = vmatpush3.bf16.msra.mxu1 %v12800_v33  ;;  %11504 = vmatprep.subr.bf16.mxu0 %v12802_v36  ;;  %v12846_v33 = vld [vmem:[%s13903_s21 + $0x258] sm:$0xff]  }
  0x64   : > { %11526 = vmatprep.subr.bf16.mxu1 %v12803_v39  ;;  %v12849_v36 = vld [vmem:[%s13903_s21 + $0x298] sm:$0xff]   ;;  %v12852_v39 = vld [vmem:[%s13903_s21 + $0x220] sm:$0xff]  }
  0x65   : > { %8250 = vmatmul.mubr.bf16.vlgmr.msra.gmra.mrb[0].mxu0 %v2066_v46  ;;  %v12858_v46 = vld [vmem:[%s13903_s21 + $0x270] sm:$0xff]  }
  0x66   : > { %11505 = vmatpush3.bf16.msra.mxu0 %v12804_v48  ;;  %8290 = vmatmul.mubr.bf16.vlgmr.msra.gmra.mrb[0].mxu1 %v2088_v52  ;;  %v12859_v48 = vld [vmem:[%s13903_s21 + $0x2f0] sm:$0xff]  }
  0x67   : > { %11506 = vmatprep.subr.bf16.mxu0 %v12806_v53  ;;  %11527 = vmatpush3.bf16.msra.mxu1 %v12805_v50  ;;  %v2092_v50 = vcombine.high %v224_v47, %v224_v47  ;;  %v12861_v52 = vld [vmem:[%s13903_s21 + $0x2b0] sm:$0xff]   ;;  %v2107_v53 = vcombine.high %v2099_v49, %v2099_v49 }
  0x68   : > { %8329 = vmatprep.mubr.bf16.mxu0 %v2087_v51  ;;  %11528 = vmatprep.subr.bf16.mxu1 %v12807_v55  ;;  %v12860_v51 = vld [vmem:[%s13903_s21 + $0x230] sm:$0xff]   ;;  %v12862_v55 = vld [vmem:[%s13903_s21 + $0x278] sm:$0xff]  }
  0x69   : > { %8369 = vmatprep.mubr.bf16.mxu1 %v2091_v57  ;;  %v14033_v54 = vrot.slane %v2092_v50, %v13959_v42  ;;  %v2129_v57 = vrot.slane %v2107_v53, %v13959_v42  ;;  %v12909_v47 = vld [vmem:[%s13903_s21 + $0x410] sm:$0xff]   ;;  %v12912_v50 = vld [vmem:[%s13903_s21 + $0x4d8] sm:$0xff]   ;;  %v12915_v53 = vld [vmem:[%s13903_s21 + $0x460] sm:$0xff]  }
  0x6a   : > { %11507 = vmatpush3.bf16.msra.mxu0 %v12808_v56  ;;  %v12863_v56 = vld [vmem:[%s13903_s21 + $0x2f8] sm:$0xff]  }
  0x6b   : > { %11508 = vmatprep.subr.bf16.mxu0 %v12810_v59  ;;  %11529 = vmatpush3.bf16.msra.mxu1 %v12809_v58  ;;  %v2108_v58 = vcombine.high %v14033_v54, %v14033_v54  ;;  %v12864_v59 = vld [vmem:[%s13903_s21 + $0x238] sm:$0xff]  }
  0x6c   : > { %11530 = vmatprep.subr.bf16.mxu1 %v12811_v60  ;;  %v12865_v60 = vld [vmem:[%s13903_s21 + $0x2b8] sm:$0xff]  }
  0x6e   : > { %11509 = vmatpush3.bf16.msra.mxu0 %v12812_v61  ;;  %v2139_v61 = vcombine.high %v2129_v57, %v2129_v57 }
  0x6f   : > { %11510 = vmatprep.subr.bf16.mxu0 %v12814_v63  ;;  %11531 = vmatpush3.bf16.msra.mxu1 %v12813_v62  ;;  %v2115_v62 = vrot.slane %v2099_v49, %v13959_v42  ;;  %v12866_v63 = vld [vmem:[%s13903_s21 + $0x340] sm:$0xff]   ;;  %v12911_v49 = vld [vmem:[%s13903_s21 + $0x458] sm:$0xff]  }
  0x70   : > { %11532 = vmatprep.subr.bf16.mxu1 %v12815_v0  ;;  %v12867_v0 = vld [vmem:[%s13903_s21 + $0x3c0] sm:$0xff]  }
  0x72   : > { %11511 = vmatpush3.bf16.msra.mxu0 %v12816_v1  ;;  %v2136_v1 = vrot.slane %v2108_v58, %v13959_v42  ;;  %v12920_v58 = vld [vmem:[%s13903_s21 + $0x4e8] sm:$0xff]  }
  0x73   : > { %11512 = vmatprep.subr.bf16.mxu0 %v12818_v3  ;;  %11533 = vmatpush3.bf16.msra.mxu1 %v12817_v2  ;;  %v12868_v2 = vld [vmem:[%s13903_s21 + $0x300] sm:$0xff]  }
  0x74   : > { %11534 = vmatprep.subr.bf16.mxu1 %v12819_v4  ;;  %v12869_v3 = vld [vmem:[%s13903_s21 + $0x380] sm:$0xff]   ;;  %v2137_v4 = vcombine.high %v2115_v62, %v2115_v62 }
  0x76   : > { %11513 = vmatpush3.bf16.msra.mxu0 %v12820_v5  ;;  %v12870_v5 = vld [vmem:[%s13903_s21 + $0x348] sm:$0xff]  }
  0x77   : > { %11514 = vmatprep.subr.bf16.mxu0 %v12822_v7  ;;  %11535 = vmatpush3.bf16.msra.mxu1 %v12821_v6  ;;  %v12871_v6 = vld [vmem:[%s13903_s21 + $0x3c8] sm:$0xff]   ;;  %v2140_v7 = vcombine.high %v2136_v1, %v2136_v1 }
  0x78   : > { %11536 = vmatprep.subr.bf16.mxu1 %v12823_v8  ;;  %v12872_v8 = vld [vmem:[%s13903_s21 + $0x308] sm:$0xff]  }
  0x7a   : > { %11515 = vmatpush3.bf16.msra.mxu0 %v12824_v9  ;;  %v12873_v9 = vld [vmem:[%s13903_s21 + $0x388] sm:$0xff]  }
  0x7b   : > { %11516 = vmatprep.subr.bf16.mxu0 %v12826_v11  ;;  %11537 = vmatpush3.bf16.msra.mxu1 %v12825_v10  ;;  %v12874_v10 = vld [vmem:[%s13903_s21 + $0x350] sm:$0xff]  }
  0x7c   : > { %11538 = vmatprep.subr.bf16.mxu1 %v12827_v12  ;;  %v12875_v11 = vld [vmem:[%s13903_s21 + $0x3d0] sm:$0xff]  }
  0x7d   : > { %v12876_v12 = vld [vmem:[%s13903_s21 + $0x310] sm:$0xff]  }
  0x7e   : > { %11517 = vmatpush3.bf16.msra.mxu0 %v12828_v13  ;;  %v12877_v13 = vld [vmem:[%s13903_s21 + $0x390] sm:$0xff]  }
  0x7f   : > { %11518 = vmatprep.subr.bf16.mxu0 %v12830_v15  ;;  %11539 = vmatpush3.bf16.msra.mxu1 %v12829_v14  ;;  %v12878_v14 = vld [vmem:[%s13903_s21 + $0x358] sm:$0xff]  }
  0x80   : > { %11540 = vmatprep.subr.bf16.mxu1 %v12831_v16  ;;  %v12879_v15 = vld [vmem:[%s13903_s21 + $0x3d8] sm:$0xff]  }
  0x81   : > { %v12880_v16 = vld [vmem:[%s13903_s21 + $0x318] sm:$0xff]  }
  0x82   : > { %11519 = vmatpush3.bf16.msra.mxu0 %v12832_v17  ;;  %v12881_v17 = vld [vmem:[%s13903_s21 + $0x398] sm:$0xff]  }
  0x83   : > { %11548 = vmatprep.subr.bf16.mxu0 %v12834_v20  ;;  %11541 = vmatpush3.bf16.msra.mxu1 %v12833_v18  ;;  %v12882_v18 = vld [vmem:[%s13903_s21 + $0x360] sm:$0xff]  }
  0x84   : > { %11570 = vmatprep.subr.bf16.mxu1 %v12835_v21  ;;  %v12884_v20 = vld [vmem:[%s13903_s21 + $0x320] sm:$0xff]  }
  0x85   : > { %8330 = vmatmul.mubr.bf16.vlgmr.msra.gmra.mrb[4].mxu0 %v2073_v19  ;;  %v12883_v19 = vld [vmem:[%s13903_s21 + $0x3e0] sm:$0xff]  }
  0x86   : > { %11549 = vmatpush3.bf16.msra.mxu0 %v12836_v22  ;;  %8370 = vmatmul.mubr.bf16.vlgmr.msra.gmra.mrb[4].mxu1 %v2089_v24  ;;  %v12885_v21 = vld [vmem:[%s13903_s21 + $0x3a0] sm:$0xff]   ;;  %v12886_v22 = vld [vmem:[%s13903_s21 + $0x368] sm:$0xff]  }
  0x87   : > { %11550 = vmatprep.subr.bf16.mxu0 %v12838_v25  ;;  %11571 = vmatpush3.bf16.msra.mxu1 %v12837_v23  ;;  %v12887_v23 = vld [vmem:[%s13903_s21 + $0x3e8] sm:$0xff]  }
  0x88   : > { %11572 = vmatprep.subr.bf16.mxu1 %v12839_v26  ;;  %8409 = vmatprep.mubr.bf16.mxu0 %v2129_v57  ;;  %v12888_v24 = vld [vmem:[%s13903_s21 + $0x328] sm:$0xff]   ;;  %v12890_v26 = vld [vmem:[%s13903_s21 + $0x370] sm:$0xff]  }
  0x89   : > { %8449 = vmatprep.mubr.bf16.mxu1 %v2139_v61  ;;  %v12889_v25 = vld [vmem:[%s13903_s21 + $0x3a8] sm:$0xff]   ;;  %v12923_v61 = vld [vmem:[%s13903_s21 + $0x470] sm:$0xff]  }
  0x8a   : > { %11551 = vmatpush3.bf16.msra.mxu0 %v12840_v27  ;;  %v12891_v27 = vld [vmem:[%s13903_s21 + $0x3f0] sm:$0xff]   ;;  %v12919_v57 = vld [vmem:[%s13903_s21 + $0x468] sm:$0xff]  }
  0x8b   : > { %11552 = vmatprep.subr.bf16.mxu0 %v12842_v29  ;;  %11573 = vmatpush3.bf16.msra.mxu1 %v12841_v28  ;;  %v12892_v28 = vld [vmem:[%s13903_s21 + $0x330] sm:$0xff]  }
  0x8c   : > { %11574 = vmatprep.subr.bf16.mxu1 %v12843_v30  ;;  %v12893_v29 = vld [vmem:[%s13903_s21 + $0x3b0] sm:$0xff]   ;;  %v12894_v30 = vld [vmem:[%s13903_s21 + $0x378] sm:$0xff]  }
  0x8e   : > { %11553 = vmatpush3.bf16.msra.mxu0 %v12844_v31  ;;  %v12895_v31 = vld [vmem:[%s13903_s21 + $0x3f8] sm:$0xff]  }
  0x8f   : > { %11554 = vmatprep.subr.bf16.mxu0 %v12846_v33  ;;  %11575 = vmatpush3.bf16.msra.mxu1 %v12845_v32  ;;  %v12896_v32 = vld [vmem:[%s13903_s21 + $0x338] sm:$0xff]  }
  0x90   : > { %11576 = vmatprep.subr.bf16.mxu1 %v12847_v34  ;;  %v12897_v33 = vld [vmem:[%s13903_s21 + $0x3b8] sm:$0xff]   ;;  %v2122_v34 = vrot.slane %v14033_v54, %v13959_v42  ;;  %v12916_v54 = vld [vmem:[%s13903_s21 + $0x4e0] sm:$0xff]  }
  0x92   : > { %11555 = vmatpush3.bf16.msra.mxu0 %v12848_v35  ;;  %v12899_v35 = vld [vmem:[%s13903_s21 + $0x440] sm:$0xff]  }
  0x93   : > { %11556 = vmatprep.subr.bf16.mxu0 %v12850_v37  ;;  %11577 = vmatpush3.bf16.msra.mxu1 %v12849_v36  ;;  %v12900_v36 = vld [vmem:[%s13903_s21 + $0x4c0] sm:$0xff]  }
  0x94   : > { %11578 = vmatprep.subr.bf16.mxu1 %v12851_v38  ;;  %v12901_v37 = vld [vmem:[%s13903_s21 + $0x400] sm:$0xff]  }
  0x95   : > { %v12902_v38 = vld [vmem:[%s13903_s21 + $0x480] sm:$0xff]  }
  0x96   : > { %11557 = vmatpush3.bf16.msra.mxu0 %v12852_v39  ;;  %v2138_v39 = vcombine.high %v2122_v34, %v2122_v34 }
  0x97   : > { %11558 = vmatprep.subr.bf16.mxu0 %v12854_v41  ;;  %11579 = vmatpush3.bf16.msra.mxu1 %v12853_v40  ;;  %v12903_v40 = vld [vmem:[%s13903_s21 + $0x448] sm:$0xff]  }
  0x98   : > { %11580 = vmatprep.subr.bf16.mxu1 %v12855_v43  ;;  %v12904_v41 = vld [vmem:[%s13903_s21 + $0x4c8] sm:$0xff]  }
  0x99   : > { %v12905_v43 = vld [vmem:[%s13903_s21 + $0x408] sm:$0xff]  }
  0x9a   : > { %11559 = vmatpush3.bf16.msra.mxu0 %v12856_v44  ;;  %v12906_v44 = vld [vmem:[%s13903_s21 + $0x488] sm:$0xff]  }
  0x9b   : > { %11560 = vmatprep.subr.bf16.mxu0 %v12858_v46  ;;  %11581 = vmatpush3.bf16.msra.mxu1 %v12857_v45  ;;  %v12907_v45 = vld [vmem:[%s13903_s21 + $0x450] sm:$0xff]  }
  0x9c   : > { %11582 = vmatprep.subr.bf16.mxu1 %v12859_v48  ;;  %v12908_v46 = vld [vmem:[%s13903_s21 + $0x4d0] sm:$0xff]  }
  0x9d   : > { %v12910_v48 = vld [vmem:[%s13903_s21 + $0x490] sm:$0xff]  }
  0x9e   : > { %11561 = vmatpush3.bf16.msra.mxu0 %v12860_v51  ;;  %v12913_v51 = vld [vmem:[%s13903_s21 + $0x418] sm:$0xff]  }
  0x9f   : > { %11562 = vmatprep.subr.bf16.mxu0 %v12862_v55  ;;  %11583 = vmatpush3.bf16.msra.mxu1 %v12861_v52  ;;  %v12914_v52 = vld [vmem:[%s13903_s21 + $0x498] sm:$0xff]   ;;  %v12917_v55 = vld [vmem:[%s13903_s21 + $0x420] sm:$0xff]  }
  0xa0   : > { %11584 = vmatprep.subr.bf16.mxu1 %v12863_v56  ;;  %v12918_v56 = vld [vmem:[%s13903_s21 + $0x4a0] sm:$0xff]  }
  0xa2   : > { %11563 = vmatpush3.bf16.msra.mxu0 %v12864_v59  ;;  %v12921_v59 = vld [vmem:[%s13903_s21 + $0x428] sm:$0xff]  }
  0xa3   : > { %11592 = vmatprep.subr.bf16.mxu0 %v12866_v63  ;;  %11585 = vmatpush3.bf16.msra.mxu1 %v12865_v60  ;;  %v12922_v60 = vld [vmem:[%s13903_s21 + $0x4a8] sm:$0xff]   ;;  %v12924_v63 = vld [vmem:[%s13903_s21 + $0x4f0] sm:$0xff]  }
  0xa4   : > { %11614 = vmatprep.subr.bf16.mxu1 %v12867_v0 }
  0xa5   : > { %8410 = vmatmul.mubr.bf16.vlgmr.msra.gmra.mrb[8].mxu0 %v2115_v62  ;;  %v225_v62 = vld [vmem:[%s13921_s27 + $0x10] sm:$0xff] }
  0xa6   : > { %11593 = vmatpush3.bf16.msra.mxu0 %v12868_v2  ;;  %8489 = vmatprep.mubr.bf16.mxu0 %v2136_v1  ;;  %v2148_v0 = vrot.slane %v225_v62, %v13959_v42  ;;  %v2141_v1 = vcombine.high %v225_v62, %v225_v62  ;;  %v12925_v2 = vld [vmem:[%s13903_s21 + $0x430] sm:$0xff]  }
  0xa7   : > { %8450 = vmatmul.mubr.bf16.vlgmr.msra.gmra.mrb[8].mxu1 %v2137_v4  ;;  %11594 = vmatprep.subr.bf16.mxu0 %v12870_v5  ;;  %v12974_v62 = vld [vmem:[%s13903_s21 + $0x610] sm:$0xff]  }
  0xa8   : > { %11615 = vmatpush3.bf16.msra.mxu1 %v12869_v3  ;;  %8529 = vmatprep.mubr.bf16.mxu1 %v2140_v7  ;;  %v12926_v3 = vld [vmem:[%s13903_s21 + $0x4b0] sm:$0xff]   ;;  %v2156_v4 = vcombine.high %v2148_v0, %v2148_v0  ;;  %v14109_v5 = vrot.slane %v2141_v1, %v13959_v42  ;;  %v12928_v7 = vld [vmem:[%s13903_s21 + $0x4f8] sm:$0xff]  }
  0xa9   : > { %11616 = vmatprep.subr.bf16.mxu1 %v12871_v6  ;;  %v12927_v6 = vld [vmem:[%s13903_s21 + $0x478] sm:$0xff]  }
  0xaa   : > { %11595 = vmatpush3.bf16.msra.mxu0 %v12872_v8  ;;  %v2178_v8 = vrot.slane %v2156_v4, %v13959_v42  ;;  %v12977_v1 = vld [vmem:[%s13903_s21 + $0x6d8] sm:$0xff]   ;;  %v12980_v4 = vld [vmem:[%s13903_s21 + $0x660] sm:$0xff]  }
  0xab   : > { %11596 = vmatprep.subr.bf16.mxu0 %v12874_v10  ;;  %v12929_v10 = vld [vmem:[%s13903_s21 + $0x438] sm:$0xff]  }
  0xac   : > { %11617 = vmatpush3.bf16.msra.mxu1 %v12873_v9  ;;  %v2157_v9 = vcombine.high %v14109_v5, %v14109_v5 }
  0xad   : > { %11618 = vmatprep.subr.bf16.mxu1 %v12875_v11  ;;  %v12930_v11 = vld [vmem:[%s13903_s21 + $0x4b8] sm:$0xff]  }
  0xae   : > { %11597 = vmatpush3.bf16.msra.mxu0 %v12876_v12  ;;  %v2188_v12 = vcombine.high %v2178_v8, %v2178_v8 }
  0xaf   : > { %11598 = vmatprep.subr.bf16.mxu0 %v12878_v14  ;;  %v12931_v14 = vld [vmem:[%s13903_s21 + $0x540] sm:$0xff]  }
  0xb0   : > { %11619 = vmatpush3.bf16.msra.mxu1 %v12877_v13  ;;  %v2164_v13 = vrot.slane %v2148_v0, %v13959_v42  ;;  %v12976_v0 = vld [vmem:[%s13903_s21 + $0x658] sm:$0xff]  }
  0xb1   : > { %11620 = vmatprep.subr.bf16.mxu1 %v12879_v15  ;;  %v12932_v15 = vld [vmem:[%s13903_s21 + $0x5c0] sm:$0xff]  }
  0xb2   : > { %11599 = vmatpush3.bf16.msra.mxu0 %v12880_v16  ;;  %v2185_v16 = vrot.slane %v2157_v9, %v13959_v42  ;;  %v12985_v9 = vld [vmem:[%s13903_s21 + $0x6e8] sm:$0xff]  }
  0xb3   : > { %11600 = vmatprep.subr.bf16.mxu0 %v12882_v18  ;;  %v12934_v18 = vld [vmem:[%s13903_s21 + $0x580] sm:$0xff]  }
  0xb4   : > { %11621 = vmatpush3.bf16.msra.mxu1 %v12881_v17  ;;  %v12933_v17 = vld [vmem:[%s13903_s21 + $0x500] sm:$0xff]  }
  0xb5   : > { %11622 = vmatprep.subr.bf16.mxu1 %v12883_v19  ;;  %v2186_v19 = vcombine.high %v2164_v13, %v2164_v13 }
  0xb6   : > { %11601 = vmatpush3.bf16.msra.mxu0 %v12884_v20  ;;  %v12935_v20 = vld [vmem:[%s13903_s21 + $0x548] sm:$0xff]  }
  0xb7   : > { %11602 = vmatprep.subr.bf16.mxu0 %v12886_v22  ;;  %v2189_v22 = vcombine.high %v2185_v16, %v2185_v16 }
  0xb8   : > { %11623 = vmatpush3.bf16.msra.mxu1 %v12885_v21  ;;  %v12936_v21 = vld [vmem:[%s13903_s21 + $0x5c8] sm:$0xff]  }
  0xb9   : > { %11624 = vmatprep.subr.bf16.mxu1 %v12887_v23  ;;  %v12937_v23 = vld [vmem:[%s13903_s21 + $0x508] sm:$0xff]  }
  0xba   : > { %11603 = vmatpush3.bf16.msra.mxu0 %v12888_v24  ;;  %v12938_v24 = vld [vmem:[%s13903_s21 + $0x588] sm:$0xff]  }
  0xbb   : > { %11604 = vmatprep.subr.bf16.mxu0 %v12890_v26  ;;  %v12940_v26 = vld [vmem:[%s13903_s21 + $0x5d0] sm:$0xff]  }
  0xbc   : > { %11625 = vmatpush3.bf16.msra.mxu1 %v12889_v25  ;;  %v12939_v25 = vld [vmem:[%s13903_s21 + $0x550] sm:$0xff]  }
  0xbd   : > { %11626 = vmatprep.subr.bf16.mxu1 %v12891_v27  ;;  %v12941_v27 = vld [vmem:[%s13903_s21 + $0x510] sm:$0xff]  }
  0xbe   : > { %11605 = vmatpush3.bf16.msra.mxu0 %v12892_v28  ;;  %v12942_v28 = vld [vmem:[%s13903_s21 + $0x590] sm:$0xff]  }
  0xbf   : > { %11606 = vmatprep.subr.bf16.mxu0 %v12894_v30  ;;  %v12944_v30 = vld [vmem:[%s13903_s21 + $0x5d8] sm:$0xff]  }
  0xc0   : > { %11627 = vmatpush3.bf16.msra.mxu1 %v12893_v29  ;;  %v12943_v29 = vld [vmem:[%s13903_s21 + $0x558] sm:$0xff]  }
  0xc1   : > { %11628 = vmatprep.subr.bf16.mxu1 %v12895_v31  ;;  %v12945_v31 = vld [vmem:[%s13903_s21 + $0x518] sm:$0xff]  }
  0xc2   : > { %11607 = vmatpush3.bf16.msra.mxu0 %v12896_v32  ;;  %v12946_v32 = vld [vmem:[%s13903_s21 + $0x598] sm:$0xff]  }
  0xc3   : > { %11636 = vmatprep.subr.bf16.mxu0 %v12899_v35  ;;  %v12949_v35 = vld [vmem:[%s13903_s21 + $0x520] sm:$0xff]  }
  0xc4   : > { %11629 = vmatpush3.bf16.msra.mxu1 %v12897_v33  ;;  %v12947_v33 = vld [vmem:[%s13903_s21 + $0x560] sm:$0xff]  }
  0xc5   : > { %8490 = vmatmul.mubr.bf16.vlgmr.msra.gmra.mrb[12].mxu0 %v2122_v34  ;;  %11658 = vmatprep.subr.bf16.mxu1 %v12900_v36  ;;  %v12948_v34 = vld [vmem:[%s13903_s21 + $0x5e0] sm:$0xff]  }
  0xc6   : > { %11637 = vmatpush3.bf16.msra.mxu0 %v12901_v37  ;;  %8569 = vmatprep.mubr.bf16.mxu0 %v2178_v8  ;;  %v12950_v36 = vld [vmem:[%s13903_s21 + $0x5a0] sm:$0xff]   ;;  %v12951_v37 = vld [vmem:[%s13903_s21 + $0x568] sm:$0xff]  }
  0xc7   : > { %8530 = vmatmul.mubr.bf16.vlgmr.msra.gmra.mrb[12].mxu1 %v2138_v39  ;;  %11638 = vmatprep.subr.bf16.mxu0 %v12903_v40  ;;  %v12953_v39 = vld [vmem:[%s13903_s21 + $0x528] sm:$0xff]  }
  0xc8   : > { %11659 = vmatpush3.bf16.msra.mxu1 %v12902_v38  ;;  %8609 = vmatprep.mubr.bf16.mxu1 %v2188_v12  ;;  %v12952_v38 = vld [vmem:[%s13903_s21 + $0x5e8] sm:$0xff]   ;;  %v12988_v12 = vld [vmem:[%s13903_s21 + $0x670] sm:$0xff]  }
  0xc9   : > { %11660 = vmatprep.subr.bf16.mxu1 %v12904_v41  ;;  %v12954_v40 = vld [vmem:[%s13903_s21 + $0x5a8] sm:$0xff]   ;;  %v12955_v41 = vld [vmem:[%s13903_s21 + $0x570] sm:$0xff]  }
  0xca   : > { %11639 = vmatpush3.bf16.msra.mxu0 %v12905_v43  ;;  %v12956_v43 = vld [vmem:[%s13903_s21 + $0x5f0] sm:$0xff]   ;;  %v12984_v8 = vld [vmem:[%s13903_s21 + $0x668] sm:$0xff]  }
  0xcb   : > { %11640 = vmatprep.subr.bf16.mxu0 %v12907_v45  ;;  %v12958_v45 = vld [vmem:[%s13903_s21 + $0x5b0] sm:$0xff]  }
  0xcc   : > { %11661 = vmatpush3.bf16.msra.mxu1 %v12906_v44  ;;  %v12957_v44 = vld [vmem:[%s13903_s21 + $0x530] sm:$0xff]  }
  0xcd   : > { %11662 = vmatprep.subr.bf16.mxu1 %v12908_v46  ;;  %v12959_v46 = vld [vmem:[%s13903_s21 + $0x578] sm:$0xff]  }
  0xce   : > { %11641 = vmatpush3.bf16.msra.mxu0 %v12909_v47  ;;  %v12960_v47 = vld [vmem:[%s13903_s21 + $0x5f8] sm:$0xff]  }
  0xcf   : > { %11642 = vmatprep.subr.bf16.mxu0 %v12911_v49  ;;  %v12962_v49 = vld [vmem:[%s13903_s21 + $0x5b8] sm:$0xff]  }
  0xd0   : > { %11663 = vmatpush3.bf16.msra.mxu1 %v12910_v48  ;;  %v12961_v48 = vld [vmem:[%s13903_s21 + $0x538] sm:$0xff]  }
  0xd1   : > { %11664 = vmatprep.subr.bf16.mxu1 %v12912_v50  ;;  %v2171_v50 = vrot.slane %v14109_v5, %v13959_v42  ;;  %v12981_v5 = vld [vmem:[%s13903_s21 + $0x6e0] sm:$0xff]  }
  0xd2   : > { %11643 = vmatpush3.bf16.msra.mxu0 %v12913_v51  ;;  %v12964_v51 = vld [vmem:[%s13903_s21 + $0x640] sm:$0xff]  }
  0xd3   : > { %11644 = vmatprep.subr.bf16.mxu0 %v12915_v53  ;;  %v12966_v53 = vld [vmem:[%s13903_s21 + $0x600] sm:$0xff]  }
  0xd4   : > { %11665 = vmatpush3.bf16.msra.mxu1 %v12914_v52  ;;  %v12965_v52 = vld [vmem:[%s13903_s21 + $0x6c0] sm:$0xff]  }
  0xd5   : > { %11666 = vmatprep.subr.bf16.mxu1 %v12916_v54  ;;  %v12967_v54 = vld [vmem:[%s13903_s21 + $0x680] sm:$0xff]  }
  0xd6   : > { %11645 = vmatpush3.bf16.msra.mxu0 %v12917_v55  ;;  %v2187_v55 = vcombine.high %v2171_v50, %v2171_v50 }
  0xd7   : > { %11646 = vmatprep.subr.bf16.mxu0 %v12919_v57  ;;  %v12969_v57 = vld [vmem:[%s13903_s21 + $0x6c8] sm:$0xff]  }
  0xd8   : > { %11667 = vmatpush3.bf16.msra.mxu1 %v12918_v56  ;;  %v12968_v56 = vld [vmem:[%s13903_s21 + $0x648] sm:$0xff]  }
  0xd9   : > { %11668 = vmatprep.subr.bf16.mxu1 %v12920_v58  ;;  %v12970_v58 = vld [vmem:[%s13903_s21 + $0x608] sm:$0xff]  }
  0xda   : > { %11647 = vmatpush3.bf16.msra.mxu0 %v12921_v59  ;;  %v12971_v59 = vld [vmem:[%s13903_s21 + $0x688] sm:$0xff]  }
  0xdb   : > { %11648 = vmatprep.subr.bf16.mxu0 %v12923_v61  ;;  %v12973_v61 = vld [vmem:[%s13903_s21 + $0x6d0] sm:$0xff]  }
  0xdc   : > { %11669 = vmatpush3.bf16.msra.mxu1 %v12922_v60  ;;  %v12972_v60 = vld [vmem:[%s13903_s21 + $0x650] sm:$0xff]  }
  0xdd   : > { %11670 = vmatprep.subr.bf16.mxu1 %v12924_v63  ;;  %v12975_v63 = vld [vmem:[%s13903_s21 + $0x690] sm:$0xff]  }
  0xde   : > { %11649 = vmatpush3.bf16.msra.mxu0 %v12925_v2  ;;  %v12978_v2 = vld [vmem:[%s13903_s21 + $0x618] sm:$0xff]  }
  0xdf   : > { %11650 = vmatprep.subr.bf16.mxu0 %v12927_v6  ;;  %v12982_v6 = vld [vmem:[%s13903_s21 + $0x620] sm:$0xff]  }
  0xe0   : > { %11671 = vmatpush3.bf16.msra.mxu1 %v12926_v3  ;;  %v12979_v3 = vld [vmem:[%s13903_s21 + $0x698] sm:$0xff]  }
  0xe1   : > { %11672 = vmatprep.subr.bf16.mxu1 %v12928_v7  ;;  %v12983_v7 = vld [vmem:[%s13903_s21 + $0x6a0] sm:$0xff]  }
  0xe2   : > { %11651 = vmatpush3.bf16.msra.mxu0 %v12929_v10  ;;  %v12986_v10 = vld [vmem:[%s13903_s21 + $0x628] sm:$0xff]  }
  0xe3   : > { %11680 = vmatprep.subr.bf16.mxu0 %v12931_v14  ;;  %v226_v14 = vld [vmem:[%s13921_s27 + $0x18] sm:$0xff] }
  0xe4   : > { %11673 = vmatpush3.bf16.msra.mxu1 %v12930_v11  ;;  %v12987_v11 = vld [vmem:[%s13903_s21 + $0x6a8] sm:$0xff]  }
  0xe5   : > { %8570 = vmatmul.mubr.bf16.vlgmr.msra.gmra.mrb[16].mxu0 %v2164_v13  ;;  %11702 = vmatprep.subr.bf16.mxu1 %v12932_v15  ;;  %v12989_v13 = vld [vmem:[%s13903_s21 + $0x6f0] sm:$0xff]  }
  0xe6   : > { %11681 = vmatpush3.bf16.msra.mxu0 %v12933_v17  ;;  %8649 = vmatprep.mubr.bf16.mxu0 %v2185_v16  ;;  %v12990_v15 = vld [vmem:[%s13903_s21 + $0x630] sm:$0xff]   ;;  %v2197_v16 = vrot.slane %v226_v14, %v13959_v42  ;;  %v2190_v17 = vcombine.high %v226_v14, %v226_v14  ;;  %v13030_v14 = vld [vmem:[%s13903_s21 + $0x8c0] sm:$0xff]  }
  0xe7   : > { %8610 = vmatmul.mubr.bf16.vlgmr.msra.gmra.mrb[16].mxu1 %v2186_v19  ;;  %11682 = vmatprep.subr.bf16.mxu0 %v12935_v20  ;;  %v12992_v19 = vld [vmem:[%s13903_s21 + $0x678] sm:$0xff]  }
  0xe8   : > { %11703 = vmatpush3.bf16.msra.mxu1 %v12934_v18  ;;  %8689 = vmatprep.mubr.bf16.mxu1 %v2189_v22  ;;  %v12991_v18 = vld [vmem:[%s13903_s21 + $0x6b0] sm:$0xff]   ;;  %v2205_v20 = vcombine.high %v2197_v16, %v2197_v16  ;;  %v12993_v22 = vld [vmem:[%s13903_s21 + $0x6f8] sm:$0xff]  }
  0xe9   : > { %11704 = vmatprep.subr.bf16.mxu1 %v12936_v21  ;;  %v14186_v21 = vrot.slane %v2190_v17, %v13959_v42 }
  0xea   : > { %11683 = vmatpush3.bf16.msra.mxu0 %v12937_v23  ;;  %v12994_v23 = vld [vmem:[%s13903_s21 + $0x638] sm:$0xff]  }
  0xeb   : > { %11684 = vmatprep.subr.bf16.mxu0 %v12939_v25  ;;  %v2206_v25 = vcombine.high %v14186_v21, %v14186_v21 }
  0xec   : > { %11705 = vmatpush3.bf16.msra.mxu1 %v12938_v24  ;;  %v2227_v24 = vrot.slane %v2205_v20, %v13959_v42  ;;  %v13035_v20 = vld [vmem:[%s13903_s21 + $0x808] sm:$0xff]  }
  0xed   : > { %11706 = vmatprep.subr.bf16.mxu1 %v12940_v26  ;;  %v12995_v26 = vld [vmem:[%s13903_s21 + $0x6b8] sm:$0xff]  }
  0xee   : > { %11685 = vmatpush3.bf16.msra.mxu0 %v12941_v27  ;;  %v2237_v27 = vcombine.high %v2227_v24, %v2227_v24 }
  0xef   : > { %11686 = vmatprep.subr.bf16.mxu0 %v12943_v29  ;;  %v12996_v29 = vld [vmem:[%s13903_s21 + $0x740] sm:$0xff]  }
  0xf0   : > { %11707 = vmatpush3.bf16.msra.mxu1 %v12942_v28  ;;  %v2213_v28 = vrot.slane %v2197_v16, %v13959_v42  ;;  %v13032_v16 = vld [vmem:[%s13903_s21 + $0x880] sm:$0xff]  }
  0xf1   : > { %11708 = vmatprep.subr.bf16.mxu1 %v12944_v30  ;;  %v12997_v30 = vld [vmem:[%s13903_s21 + $0x7c0] sm:$0xff]  }
  0xf2   : > { %11687 = vmatpush3.bf16.msra.mxu0 %v12945_v31  ;;  %v2234_v31 = vrot.slane %v2206_v25, %v13959_v42  ;;  %v13040_v25 = vld [vmem:[%s13903_s21 + $0x890] sm:$0xff]  }
  0xf3   : > { %11688 = vmatprep.subr.bf16.mxu0 %v12947_v33  ;;  %v12999_v33 = vld [vmem:[%s13903_s21 + $0x780] sm:$0xff]  }
  0xf4   : > { %11709 = vmatpush3.bf16.msra.mxu1 %v12946_v32  ;;  %v12998_v32 = vld [vmem:[%s13903_s21 + $0x700] sm:$0xff]  }
  0xf5   : > { %11710 = vmatprep.subr.bf16.mxu1 %v12948_v34  ;;  %v2235_v34 = vcombine.high %v2213_v28, %v2213_v28 }
  0xf6   : > { %11689 = vmatpush3.bf16.msra.mxu0 %v12949_v35  ;;  %v13000_v35 = vld [vmem:[%s13903_s21 + $0x748] sm:$0xff]  }
  0xf7   : > { %11690 = vmatprep.subr.bf16.mxu0 %v12951_v37  ;;  %v2238_v37 = vcombine.high %v2234_v31, %v2234_v31 }
  0xf8   : > { %11711 = vmatpush3.bf16.msra.mxu1 %v12950_v36  ;;  %v13001_v36 = vld [vmem:[%s13903_s21 + $0x7c8] sm:$0xff]  }
  0xf9   : > { %11712 = vmatprep.subr.bf16.mxu1 %v12952_v38  ;;  %v13002_v38 = vld [vmem:[%s13903_s21 + $0x708] sm:$0xff]  }
  0xfa   : > { %11691 = vmatpush3.bf16.msra.mxu0 %v12953_v39  ;;  %v13003_v39 = vld [vmem:[%s13903_s21 + $0x788] sm:$0xff]  }
  0xfb   : > { %11692 = vmatprep.subr.bf16.mxu0 %v12955_v41  ;;  %v13005_v41 = vld [vmem:[%s13903_s21 + $0x7d0] sm:$0xff]  }
  0xfc   : > { %11713 = vmatpush3.bf16.msra.mxu1 %v12954_v40  ;;  %v13004_v40 = vld [vmem:[%s13903_s21 + $0x750] sm:$0xff]  }
  0xfd   : > { %11714 = vmatprep.subr.bf16.mxu1 %v12956_v43  ;;  %v13006_v43 = vld [vmem:[%s13903_s21 + $0x710] sm:$0xff]  }
  0xfe   : > { %11693 = vmatpush3.bf16.msra.mxu0 %v12957_v44  ;;  %v13007_v44 = vld [vmem:[%s13903_s21 + $0x790] sm:$0xff]  }
  0xff   : > { %11694 = vmatprep.subr.bf16.mxu0 %v12959_v46  ;;  %v13009_v46 = vld [vmem:[%s13903_s21 + $0x7d8] sm:$0xff]  }
 0x100   : > { %11715 = vmatpush3.bf16.msra.mxu1 %v12958_v45  ;;  %v13008_v45 = vld [vmem:[%s13903_s21 + $0x758] sm:$0xff]  }
 0x101   : > { %11716 = vmatprep.subr.bf16.mxu1 %v12960_v47  ;;  %v13010_v47 = vld [vmem:[%s13903_s21 + $0x718] sm:$0xff]  }
 0x102   : > { %11695 = vmatpush3.bf16.msra.mxu0 %v12961_v48  ;;  %v13011_v48 = vld [vmem:[%s13903_s21 + $0x798] sm:$0xff]  }
 0x103   : > { %11724 = vmatprep.subr.bf16.mxu0 %v12964_v51  ;;  %v13014_v51 = vld [vmem:[%s13903_s21 + $0x720] sm:$0xff]  }
 0x104   : > { %11717 = vmatpush3.bf16.msra.mxu1 %v12962_v49  ;;  %v13012_v49 = vld [vmem:[%s13903_s21 + $0x760] sm:$0xff]  }
 0x105   : > { %8650 = vmatmul.mubr.bf16.vlgmr.msra.gmra.mrb[20].mxu0 %v2171_v50  ;;  %11746 = vmatprep.subr.bf16.mxu1 %v12965_v52  ;;  %v13013_v50 = vld [vmem:[%s13903_s21 + $0x7e0] sm:$0xff]  }
 0x106   : > { %11725 = vmatpush3.bf16.msra.mxu0 %v12966_v53  ;;  %8729 = vmatprep.mubr.bf16.mxu0 %v2227_v24  ;;  %v13015_v52 = vld [vmem:[%s13903_s21 + $0x7a0] sm:$0xff]   ;;  %v13016_v53 = vld [vmem:[%s13903_s21 + $0x768] sm:$0xff]   ;;  %v13039_v24 = vld [vmem:[%s13903_s21 + $0x810] sm:$0xff]  }
 0x107   : > { %8690 = vmatmul.mubr.bf16.vlgmr.msra.gmra.mrb[20].mxu1 %v2187_v55  ;;  %11726 = vmatprep.subr.bf16.mxu0 %v12968_v56  ;;  %v13018_v55 = vld [vmem:[%s13903_s21 + $0x728] sm:$0xff]  }
 0x108   : > { %11747 = vmatpush3.bf16.msra.mxu1 %v12967_v54  ;;  %8769 = vmatprep.mubr.bf16.mxu1 %v2237_v27  ;;  %v13017_v54 = vld [vmem:[%s13903_s21 + $0x7e8] sm:$0xff]   ;;  %v13042_v27 = vld [vmem:[%s13903_s21 + $0x8d8] sm:$0xff]  }
 0x109   : > { %11748 = vmatprep.subr.bf16.mxu1 %v12969_v57  ;;  %v13019_v56 = vld [vmem:[%s13903_s21 + $0x7a8] sm:$0xff]   ;;  %v13020_v57 = vld [vmem:[%s13903_s21 + $0x770] sm:$0xff]  }
 0x10a   : > { %11727 = vmatpush3.bf16.msra.mxu0 %v12970_v58 }
 0x10b   : > { %11728 = vmatprep.subr.bf16.mxu0 %v12972_v60 }
 0x10c   : > { %11749 = vmatpush3.bf16.msra.mxu1 %v12971_v59  ;;  %v13021_v59 = vld [vmem:[%s13903_s21 + $0x7f0] sm:$0xff]  }
 0x10d   : > { %11750 = vmatprep.subr.bf16.mxu1 %v12973_v61  ;;  %v13022_v61 = vld [vmem:[%s13903_s21 + $0x730] sm:$0xff]  }
 0x10e   : > { %11729 = vmatpush3.bf16.msra.mxu0 %v12974_v62 }
 0x10f   : > { %11730 = vmatprep.subr.bf16.mxu0 %v12976_v0 }
 0x110   : > { %11751 = vmatpush3.bf16.msra.mxu1 %v12975_v63 }
 0x111   : > { %11752 = vmatprep.subr.bf16.mxu1 %v12977_v1  ;;  %v13023_v1 = vld [vmem:[%s13903_s21 + $0x7b0] sm:$0xff]  }
 0x112   : > { %11731 = vmatpush3.bf16.msra.mxu0 %v12978_v2  ;;  %v13024_v2 = vld [vmem:[%s13903_s21 + $0x778] sm:$0xff]  }
 0x113   : > { %11732 = vmatprep.subr.bf16.mxu0 %v12980_v4 }
 0x114   : > { %11753 = vmatpush3.bf16.msra.mxu1 %v12979_v3 }
 0x115   : > { %11754 = vmatprep.subr.bf16.mxu1 %v12981_v5 }
 0x116   : > { %11733 = vmatpush3.bf16.msra.mxu0 %v12982_v6 }
 0x117   : > { %11734 = vmatprep.subr.bf16.mxu0 %v12984_v8 }
 0x118   : > { %11755 = vmatpush3.bf16.msra.mxu1 %v12983_v7  ;;  %v13025_v7 = vld [vmem:[%s13903_s21 + $0x7f8] sm:$0xff]  }
 0x119   : > { %11756 = vmatprep.subr.bf16.mxu1 %v12985_v9  ;;  %v13026_v9 = vld [vmem:[%s13903_s21 + $0x738] sm:$0xff]  }
 0x11a   : > { %11735 = vmatpush3.bf16.msra.mxu0 %v12986_v10 }
 0x11b   : > { %11736 = vmatprep.subr.bf16.mxu0 %v12988_v12  ;;  %v2220_v12 = vrot.slane %v14186_v21, %v13959_v42  ;;  %v13036_v21 = vld [vmem:[%s13903_s21 + $0x888] sm:$0xff]  }
 0x11c   : > { %11757 = vmatpush3.bf16.msra.mxu1 %v12987_v11  ;;  %v13027_v11 = vld [vmem:[%s13903_s21 + $0x7b8] sm:$0xff]  }
 0x11d   : > { %11758 = vmatprep.subr.bf16.mxu1 %v12989_v13  ;;  %v13029_v13 = vld [vmem:[%s13903_s21 + $0x840] sm:$0xff]   ;;  %v2236_v17 = vcombine.high %v2220_v12, %v2220_v12 }
 0x11e   : > { %11737 = vmatpush3.bf16.msra.mxu0 %v12990_v15  ;;  %v13031_v15 = vld [vmem:[%s13903_s21 + $0x800] sm:$0xff]  }
 0x11f   : > { %11738 = vmatprep.subr.bf16.mxu0 %v12992_v19  ;;  %v13034_v19 = vld [vmem:[%s13903_s21 + $0x8c8] sm:$0xff]  }
 0x120   : > { %11759 = vmatpush3.bf16.msra.mxu1 %v12991_v18  ;;  %v13033_v18 = vld [vmem:[%s13903_s21 + $0x848] sm:$0xff]  }
 0x121   : > { %11760 = vmatprep.subr.bf16.mxu1 %v12993_v22  ;;  %v13037_v22 = vld [vmem:[%s13903_s21 + $0x850] sm:$0xff]  }
 0x122   : > { %11739 = vmatpush3.bf16.msra.mxu0 %v12994_v23  ;;  %v13038_v23 = vld [vmem:[%s13903_s21 + $0x8d0] sm:$0xff]  }
 0x123   : > { %11768 = vmatprep.subr.bf16.mxu0 %v12996_v29  ;;  %v13044_v29 = vld [vmem:[%s13903_s21 + $0x898] sm:$0xff]  }
 0x124   : > { %11761 = vmatpush3.bf16.msra.mxu1 %v12995_v26  ;;  %v13041_v26 = vld [vmem:[%s13903_s21 + $0x858] sm:$0xff]  }
 0x125   : > { %8730 = vmatmul.mubr.bf16.vlgmr.msra.gmra.mrb[24].mxu0 %v2213_v28  ;;  %11790 = vmatprep.subr.bf16.mxu1 %v12997_v30  ;;  %v13043_v28 = vld [vmem:[%s13903_s21 + $0x818] sm:$0xff]   ;;  %v13045_v30 = vld [vmem:[%s13903_s21 + $0x860] sm:$0xff]  }
 0x126   : > { %11769 = vmatpush3.bf16.msra.mxu0 %v12998_v32  ;;  %8809 = vmatprep.mubr.bf16.mxu0 %v2234_v31  ;;  %v13046_v31 = vld [vmem:[%s13903_s21 + $0x8e0] sm:$0xff]  }
 0x127   : > { %8770 = vmatmul.mubr.bf16.vlgmr.msra.gmra.mrb[24].mxu1 %v2235_v34  ;;  %11770 = vmatprep.subr.bf16.mxu0 %v13000_v35  ;;  %v13047_v32 = vld [vmem:[%s13903_s21 + $0x820] sm:$0xff]   ;;  %v13049_v34 = vld [vmem:[%s13903_s21 + $0x868] sm:$0xff]  }
 0x128   : > { %11791 = vmatpush3.bf16.msra.mxu1 %v12999_v33  ;;  %8849 = vmatprep.mubr.bf16.mxu1 %v2238_v37  ;;  %v13048_v33 = vld [vmem:[%s13903_s21 + $0x8a0] sm:$0xff]   ;;  %v13050_v35 = vld [vmem:[%s13903_s21 + $0x8e8] sm:$0xff]  }
 0x129   : > { %11792 = vmatprep.subr.bf16.mxu1 %v13001_v36  ;;  %v13051_v36 = vld [vmem:[%s13903_s21 + $0x828] sm:$0xff]  }
 0x12a   : > { %11771 = vmatpush3.bf16.msra.mxu0 %v13002_v38  ;;  %v13052_v37 = vld [vmem:[%s13903_s21 + $0x8a8] sm:$0xff]   ;;  %v13053_v38 = vld [vmem:[%s13903_s21 + $0x870] sm:$0xff]  }
 0x12b   : > { %11772 = vmatprep.subr.bf16.mxu0 %v13004_v40  ;;  %v13054_v40 = vld [vmem:[%s13903_s21 + $0x8f0] sm:$0xff]  }
 0x12c   : > { %11793 = vmatpush3.bf16.msra.mxu1 %v13003_v39 }
 0x12d   : > { %11794 = vmatprep.subr.bf16.mxu1 %v13005_v41  ;;  %v227_v41 = vld [vmem:[%s13921_s27 + $0x20] sm:$0xff] }
 0x12e   : > { %11773 = vmatpush3.bf16.msra.mxu0 %v13006_v43 }
 0x12f   : > { %11774 = vmatprep.subr.bf16.mxu0 %v13008_v45  ;;  %v2246_v45 = vrot.slane %v227_v41, %v13959_v42 }
 0x130   : > { %11795 = vmatpush3.bf16.msra.mxu1 %v13007_v44  ;;  %v13055_v44 = vld [vmem:[%s13903_s21 + $0x830] sm:$0xff]  }
 0x131   : > { %11796 = vmatprep.subr.bf16.mxu1 %v13009_v46  ;;  %v2239_v46 = vcombine.high %v227_v41, %v227_v41 }
 0x132   : > { %11775 = vmatpush3.bf16.msra.mxu0 %v13010_v47 }
 0x133   : > { %11776 = vmatprep.subr.bf16.mxu0 %v13012_v49 }
 0x134   : > { %11797 = vmatpush3.bf16.msra.mxu1 %v13011_v48 }
 0x135   : > { %11798 = vmatprep.subr.bf16.mxu1 %v13013_v50 }
 0x136   : > { %11777 = vmatpush3.bf16.msra.mxu0 %v13014_v51 }
 0x137   : > { %11778 = vmatprep.subr.bf16.mxu0 %v13016_v53  ;;  %v13057_v53 = vld [vmem:[%s13903_s21 + $0x878] sm:$0xff]  }
 0x138   : > { %11799 = vmatpush3.bf16.msra.mxu1 %v13015_v52  ;;  %v11476_v58 = vpop.f32.mrb[0].mxu0  ;;  %v13056_v52 = vld [vmem:[%s13903_s21 + $0x8b0] sm:$0xff]  }
 0x139   : > { %v11477_v60 = vpop.f32.mrb[1].mxu0  ;;  %11800 = vmatprep.subr.bf16.mxu1 %v13017_v54  ;;  %v11498_v62 = vpop.f32.mrb[0].mxu1  ;;  %v2254_v54 = vcombine.high %v2246_v45, %v2246_v45 }
 0x13a   : > { %v11478_v63 = vadd.f32 %v11477_v60, %v11476_v58  ;;  %v11479_v0 = vpop.f32.mrb[2].mxu0  ;;  %11779 = vmatpush3.bf16.msra.mxu0 %v13018_v55  ;;  %v11499_v3 = vpop.f32.mrb[1].mxu1  ;;  %v14264_v55 = vrot.slane %v2239_v46, %v13959_v42 }
 0x13b   : > { %v11480_v4 = vpop.f32.mrb[3].mxu0  ;;  %11780 = vmatprep.subr.bf16.mxu0 %v13020_v57  ;;  %v11500_v5 = vadd.f32 %v11499_v3, %v11498_v62  ;;  %v11501_v6 = vpop.f32.mrb[2].mxu1  ;;  %v2276_v62 = vrot.slane %v2254_v54, %v13959_v42  ;;  %v2262_v3 = vrot.slane %v2246_v45, %v13959_v42  ;;  %v13095_v54 = vld [vmem:[%s13903_s21 + $0xac0] sm:$0xff]  }
 0x13c   : > { %11801 = vmatpush3.bf16.msra.mxu1 %v13019_v56  ;;  %v11502_v8 = vpop.f32.mrb[3].mxu1  ;;  %v13061_v4 = vld [vmem:[%s13903_s21 + $0x940] sm:$0xff]  }
 0x13d   : > { %11802 = vmatprep.subr.bf16.mxu1 %v13021_v59  ;;  %v14227_v10 = vadd.f32 %v11500_v5, %v11478_v63  ;;  %v13058_v59 = vld [vmem:[%s13903_s21 + $0x8f8] sm:$0xff]   ;;  %v2255_v63 = vcombine.high %v14264_v55, %v14264_v55  ;;  %v13062_v5 = vld [vmem:[%s13903_s21 + $0x9c0] sm:$0xff]  }
 0x13e   : > { %11781 = vmatpush3.bf16.msra.mxu0 %v13022_v61  ;;  %v13059_v61 = vld [vmem:[%s13903_s21 + $0x838] sm:$0xff]   ;;  %v13064_v8 = vld [vmem:[%s13903_s21 + $0x980] sm:$0xff]  }
 0x13f   : > { %11782 = vmatprep.subr.bf16.mxu0 %v13024_v2  ;;  %v2286_v2 = vcombine.high %v2276_v62, %v2276_v62  ;;  %v2283_v6 = vrot.slane %v2255_v63, %v13959_v42  ;;  %v13103_v63 = vld [vmem:[%s13903_s21 + $0xad0] sm:$0xff]  }
 0x140   : > { %11803 = vmatpush3.bf16.msra.mxu1 %v13023_v1  ;;  %v13060_v1 = vld [vmem:[%s13903_s21 + $0x8b8] sm:$0xff]  }
 0x141   : > { %11804 = vmatprep.subr.bf16.mxu1 %v13025_v7  ;;  %v13063_v7 = vld [vmem:[%s13903_s21 + $0x900] sm:$0xff]  }
 0x142   : > { %11783 = vmatpush3.bf16.msra.mxu0 %v13026_v9  ;;  %v2284_v9 = vcombine.high %v2262_v3, %v2262_v3 }
 0x143   : > { %11812 = vmatprep.subr.bf16.mxu0 %v13029_v13  ;;  %v13067_v13 = vld [vmem:[%s13903_s21 + $0x908] sm:$0xff]  }
 0x144   : > { %11805 = vmatpush3.bf16.msra.mxu1 %v13027_v11  ;;  %v13066_v11 = vld [vmem:[%s13903_s21 + $0x9c8] sm:$0xff]  }
 0x145   : > { %8810 = vmatmul.mubr.bf16.vlgmr.msra.gmra.mrb[28].mxu0 %v2220_v12  ;;  %11834 = vmatprep.subr.bf16.mxu1 %v13030_v14  ;;  %v2287_v12 = vcombine.high %v2283_v6, %v2283_v6  ;;  %v13068_v14 = vld [vmem:[%s13903_s21 + $0x988] sm:$0xff]  }
 0x146   : > { %11813 = vmatpush3.bf16.msra.mxu0 %v13031_v15  ;;  %8889 = vmatprep.mubr.bf16.mxu0 %v2276_v62  ;;  %v13069_v15 = vld [vmem:[%s13903_s21 + $0x950] sm:$0xff]  }
 0x147   : > { %8850 = vmatmul.mubr.bf16.vlgmr.msra.gmra.mrb[28].mxu1 %v2236_v17  ;;  %11814 = vmatprep.subr.bf16.mxu0 %v13033_v18  ;;  %v13071_v17 = vld [vmem:[%s13903_s21 + $0x910] sm:$0xff]  }
 0x148   : > { %11835 = vmatpush3.bf16.msra.mxu1 %v13032_v16  ;;  %8929 = vmatprep.mubr.bf16.mxu1 %v2286_v2  ;;  %v13070_v16 = vld [vmem:[%s13903_s21 + $0x9d0] sm:$0xff]   ;;  %v13106_v2 = vld [vmem:[%s13903_s21 + $0xa58] sm:$0xff]  }
 0x149   : > { %11836 = vmatprep.subr.bf16.mxu1 %v13034_v19  ;;  %v13072_v18 = vld [vmem:[%s13903_s21 + $0x990] sm:$0xff]   ;;  %v13073_v19 = vld [vmem:[%s13903_s21 + $0x958] sm:$0xff]  }
 0x14a   : > { %11815 = vmatpush3.bf16.msra.mxu0 %v13035_v20  ;;  %v13074_v20 = vld [vmem:[%s13903_s21 + $0x9d8] sm:$0xff]   ;;  %v13102_v62 = vld [vmem:[%s13903_s21 + $0xa50] sm:$0xff]  }
 0x14b   : > { %11816 = vmatprep.subr.bf16.mxu0 %v13037_v22  ;;  %v13076_v22 = vld [vmem:[%s13903_s21 + $0x998] sm:$0xff]  }
 0x14c   : > { %11837 = vmatpush3.bf16.msra.mxu1 %v13036_v21  ;;  %v13075_v21 = vld [vmem:[%s13903_s21 + $0x918] sm:$0xff]  }
 0x14d   : > { %11838 = vmatprep.subr.bf16.mxu1 %v13038_v23  ;;  %v13077_v23 = vld [vmem:[%s13903_s21 + $0x960] sm:$0xff]  }
 0x14e   : > { %11817 = vmatpush3.bf16.msra.mxu0 %v13039_v24  ;;  %v13078_v24 = vld [vmem:[%s13903_s21 + $0x9e0] sm:$0xff]  }
 0x14f   : > { %11818 = vmatprep.subr.bf16.mxu0 %v13041_v26  ;;  %v13080_v26 = vld [vmem:[%s13903_s21 + $0x9a0] sm:$0xff]  }
 0x150   : > { %11839 = vmatpush3.bf16.msra.mxu1 %v13040_v25  ;;  %v13079_v25 = vld [vmem:[%s13903_s21 + $0x920] sm:$0xff]  }
 0x151   : > { %11840 = vmatprep.subr.bf16.mxu1 %v13042_v27  ;;  %v13081_v27 = vld [vmem:[%s13903_s21 + $0x968] sm:$0xff]  }
 0x152   : > { %11819 = vmatpush3.bf16.msra.mxu0 %v13043_v28  ;;  %v13082_v28 = vld [vmem:[%s13903_s21 + $0x9e8] sm:$0xff]  }
 0x153   : > { %11820 = vmatprep.subr.bf16.mxu0 %v13045_v30  ;;  %v13084_v30 = vld [vmem:[%s13903_s21 + $0x9a8] sm:$0xff]  }
 0x154   : > { %11841 = vmatpush3.bf16.msra.mxu1 %v13044_v29  ;;  %v13083_v29 = vld [vmem:[%s13903_s21 + $0x928] sm:$0xff]  }
 0x155   : > { %11842 = vmatprep.subr.bf16.mxu1 %v13046_v31  ;;  %v13085_v31 = vld [vmem:[%s13903_s21 + $0x970] sm:$0xff]  }
 0x156   : > { %11821 = vmatpush3.bf16.msra.mxu0 %v13047_v32 }
 0x157   : > { %11822 = vmatprep.subr.bf16.mxu0 %v13049_v34 }
 0x158   : > { %11843 = vmatpush3.bf16.msra.mxu1 %v13048_v33  ;;  %v11520_v39 = vpop.f32.mrb[4].mxu0  ;;  %v13086_v33 = vld [vmem:[%s13903_s21 + $0x9f0] sm:$0xff]  }
 0x159   : > { %v11521_v43 = vpop.f32.mrb[5].mxu0  ;;  %11844 = vmatprep.subr.bf16.mxu1 %v13050_v35  ;;  %v11542_v47 = vpop.f32.mrb[4].mxu1  ;;  %v13087_v35 = vld [vmem:[%s13903_s21 + $0x930] sm:$0xff]  }
 0x15a   : > { %v11522_v48 = vadd.f32 %v11521_v43, %v11520_v39  ;;  %v11523_v49 = vpop.f32.mrb[6].mxu0  ;;  %11823 = vmatpush3.bf16.msra.mxu0 %v13051_v36  ;;  %v11543_v50 = vpop.f32.mrb[5].mxu1  ;;  %v13088_v39 = vld [vmem:[%s13903_s21 + $0x9b0] sm:$0xff]  }
 0x15b   : > { %v11524_v51 = vpop.f32.mrb[7].mxu0  ;;  %11824 = vmatprep.subr.bf16.mxu0 %v13053_v38  ;;  %v11544_v57 = vadd.f32 %v11543_v50, %v11542_v47  ;;  %v11545_v58 = vpop.f32.mrb[6].mxu1  ;;  %v13090_v47 = vld [vmem:[%s13903_s21 + $0x9f8] sm:$0xff]  }
 0x15c   : > { %v8332_v56 = vadd.f32 %v11522_v48, %v14227_v10  ;;  %11845 = vmatpush3.bf16.msra.mxu1 %v13052_v37  ;;  %v11546_v60 = vpop.f32.mrb[7].mxu1  ;;  %v13065_v10 = vld [vmem:[%s13903_s21 + $0x948] sm:$0xff]   ;;  %v13091_v49 = vld [vmem:[%s13903_s21 + $0x938] sm:$0xff]  }
 0x15d   : > { %11846 = vmatprep.subr.bf16.mxu1 %v13054_v40  ;;  %v13089_v40 = vld [vmem:[%s13903_s21 + $0x978] sm:$0xff]   ;;  %v13099_v60 = vld [vmem:[%s13903_s21 + $0xac8] sm:$0xff]  }
 0x15e   : > { %v14272_v0 = vadd.f32 %v11544_v57, %v8332_v56  ;;  %11825 = vmatpush3.bf16.msra.mxu0 %v13055_v44  ;;  %v13092_v51 = vld [vmem:[%s13903_s21 + $0x9b8] sm:$0xff]   ;;  %v13096_v56 = vld [vmem:[%s13903_s21 + $0xa00] sm:$0xff]  }
 0x15f   : > { %11826 = vmatprep.subr.bf16.mxu0 %v13057_v53  ;;  %v13094_v53 = vld [vmem:[%s13903_s21 + $0xa40] sm:$0xff]  }
 0x160   : > { %11847 = vmatpush3.bf16.msra.mxu1 %v13056_v52  ;;  %v2269_v52 = vrot.slane %v14264_v55, %v13959_v42  ;;  %v13097_v57 = vld [vmem:[%s13903_s21 + $0xa80] sm:$0xff]   ;;  %v13100_v55 = vld [vmem:[%s13903_s21 + $0xa08] sm:$0xff]  }
 0x161   : > { %11848 = vmatprep.subr.bf16.mxu1 %v13058_v59  ;;  %v13098_v59 = vld [vmem:[%s13903_s21 + $0xa48] sm:$0xff]  }
 0x162   : > { %11827 = vmatpush3.bf16.msra.mxu0 %v13059_v61  ;;  %v2285_v58 = vcombine.high %v2269_v52, %v2269_v52  ;;  %v13101_v61 = vld [vmem:[%s13903_s21 + $0xa88] sm:$0xff]  }
 0x163   : > { %11856 = vmatprep.subr.bf16.mxu0 %v13061_v4  ;;  %v13108_v4 = vld [vmem:[%s13903_s21 + $0xa18] sm:$0xff]  }
 0x164   : > { %11849 = vmatpush3.bf16.msra.mxu1 %v13060_v1  ;;  %v13105_v1 = vld [vmem:[%s13903_s21 + $0xa90] sm:$0xff]  }
 0x165   : > { %8890 = vmatmul.mubr.bf16.vlgmr.msra.gmra.mrb[32].mxu0 %v2262_v3  ;;  %11878 = vmatprep.subr.bf16.mxu1 %v13062_v5  ;;  %v13107_v3 = vld [vmem:[%s13903_s21 + $0xad8] sm:$0xff]  }
 0x166   : > { %11857 = vmatpush3.bf16.msra.mxu0 %v13063_v7  ;;  %8969 = vmatprep.mubr.bf16.mxu0 %v2283_v6  ;;  %v13109_v5 = vld [vmem:[%s13903_s21 + $0xa98] sm:$0xff]   ;;  %v13110_v6 = vld [vmem:[%s13903_s21 + $0xa60] sm:$0xff]  }
 0x167   : > { %8930 = vmatmul.mubr.bf16.vlgmr.msra.gmra.mrb[32].mxu1 %v2284_v9  ;;  %11858 = vmatprep.subr.bf16.mxu0 %v13065_v10  ;;  %v13111_v7 = vld [vmem:[%s13903_s21 + $0xae0] sm:$0xff]   ;;  %v13114_v10 = vld [vmem:[%s13903_s21 + $0xa68] sm:$0xff]  }
 0x168   : > { %11879 = vmatpush3.bf16.msra.mxu1 %v13064_v8  ;;  %9009 = vmatprep.mubr.bf16.mxu1 %v2287_v12  ;;  %v13112_v8 = vld [vmem:[%s13903_s21 + $0xa20] sm:$0xff]   ;;  %v13116_v12 = vld [vmem:[%s13903_s21 + $0xa28] sm:$0xff]  }
 0x169   : > { %11880 = vmatprep.subr.bf16.mxu1 %v13066_v11  ;;  %v13113_v9 = vld [vmem:[%s13903_s21 + $0xaa0] sm:$0xff]   ;;  %v13115_v11 = vld [vmem:[%s13903_s21 + $0xae8] sm:$0xff]  }
 0x16a   : > { %11859 = vmatpush3.bf16.msra.mxu0 %v13067_v13  ;;  %v13117_v13 = vld [vmem:[%s13903_s21 + $0xaa8] sm:$0xff]  }
 0x16b   : > { %11860 = vmatprep.subr.bf16.mxu0 %v13069_v15 }
 0x16c   : > { %11881 = vmatpush3.bf16.msra.mxu1 %v13068_v14  ;;  %v13118_v14 = vld [vmem:[%s13903_s21 + $0xa70] sm:$0xff]  }
 0x16d   : > { %11882 = vmatprep.subr.bf16.mxu1 %v13070_v16  ;;  %v13119_v16 = vld [vmem:[%s13903_s21 + $0xaf0] sm:$0xff]  }
 0x16e   : > { %11861 = vmatpush3.bf16.msra.mxu0 %v13071_v17 }
 0x16f   : > { %11862 = vmatprep.subr.bf16.mxu0 %v13073_v19  ;;  %v228_v19 = vld [vmem:[%s13921_s27 + $0x28] sm:$0xff] }
 0x170   : > { %11883 = vmatpush3.bf16.msra.mxu1 %v13072_v18  ;;  %v13120_v18 = vld [vmem:[%s13903_s21 + $0xa30] sm:$0xff]  }
 0x171   : > { %11884 = vmatprep.subr.bf16.mxu1 %v13074_v20 }
 0x172   : > { %11863 = vmatpush3.bf16.msra.mxu0 %v13075_v21 }
 0x173   : > { %11864 = vmatprep.subr.bf16.mxu0 %v13077_v23  ;;  %v2295_v23 = vrot.slane %v228_v19, %v13959_v42 }
 0x174   : > { %11885 = vmatpush3.bf16.msra.mxu1 %v13076_v22 }
 0x175   : > { %11886 = vmatprep.subr.bf16.mxu1 %v13078_v24  ;;  %v2288_v24 = vcombine.high %v228_v19, %v228_v19 }
 0x176   : > { %11865 = vmatpush3.bf16.msra.mxu0 %v13079_v25 }
 0x177   : > { %11866 = vmatprep.subr.bf16.mxu0 %v13081_v27  ;;  %v13121_v27 = vld [vmem:[%s13903_s21 + $0xab0] sm:$0xff]  }
 0x178   : > { %11887 = vmatpush3.bf16.msra.mxu1 %v13080_v26  ;;  %v11564_v32 = vpop.f32.mrb[8].mxu0 }
 0x179   : > { %v11565_v34 = vpop.f32.mrb[9].mxu0  ;;  %11888 = vmatprep.subr.bf16.mxu1 %v13082_v28  ;;  %v13122_v28 = vld [vmem:[%s13903_s21 + $0xa78] sm:$0xff]  }
 0x17a   : > { %v11586_v36 = vpop.f32.mrb[8].mxu1  ;;  %v11566_v37 = vadd.f32 %v11565_v34, %v11564_v32  ;;  %v11567_v38 = vpop.f32.mrb[10].mxu0  ;;  %11867 = vmatpush3.bf16.msra.mxu0 %v13083_v29  ;;  %v13123_v32 = vld [vmem:[%s13903_s21 + $0xaf8] sm:$0xff]  }
 0x17b   : > { %v11587_v41 = vpop.f32.mrb[9].mxu1  ;;  %v11568_v43 = vpop.f32.mrb[11].mxu0  ;;  %11868 = vmatprep.subr.bf16.mxu0 %v13085_v31  ;;  %v13125_v38 = vld [vmem:[%s13903_s21 + $0xab8] sm:$0xff]  }
 0x17c   : > { %v8412_v44 = vadd.f32 %v11566_v37, %v14272_v0  ;;  %v11588_v45 = vadd.f32 %v11587_v41, %v11586_v36  ;;  %v11589_v46 = vpop.f32.mrb[10].mxu1  ;;  %11889 = vmatpush3.bf16.msra.mxu1 %v13084_v30  ;;  %v13104_v0 = vld [vmem:[%s13903_s21 + $0xa10] sm:$0xff]   ;;  %v14349_v36 = vrot.slane %v2288_v24, %v13959_v42  ;;  %v13126_v41 = vld [vmem:[%s13903_s21 + $0xb40] sm:$0xff]   ;;  %v13156_v24 = vld [vmem:[%s13903_s21 + $0xb38] sm:$0xff]  }
 0x17d   : > { %v11590_v48 = vpop.f32.mrb[11].mxu1  ;;  %11890 = vmatprep.subr.bf16.mxu1 %v13086_v33  ;;  %v2303_v33 = vcombine.high %v2295_v23, %v2295_v23  ;;  %v13128_v46 = vld [vmem:[%s13903_s21 + $0xb00] sm:$0xff]  }
 0x17e   : > { %v14309_v50 = vadd.f32 %v11588_v45, %v8412_v44  ;;  %11869 = vmatpush3.bf16.msra.mxu0 %v13087_v35  ;;  %v13124_v35 = vld [vmem:[%s13903_s21 + $0xa38] sm:$0xff]   ;;  %v2304_v43 = vcombine.high %v14349_v36, %v14349_v36  ;;  %v13127_v45 = vld [vmem:[%s13903_s21 + $0xbc0] sm:$0xff]  }
 0x17f   : > { %11870 = vmatprep.subr.bf16.mxu0 %v13089_v40  ;;  %v2311_v40 = vrot.slane %v2295_v23, %v13959_v42  ;;  %v13129_v48 = vld [vmem:[%s13903_s21 + $0xb80] sm:$0xff]  }
 0x180   : > { %11891 = vmatpush3.bf16.msra.mxu1 %v13088_v39  ;;  %v2325_v39 = vrot.slane %v2303_v33, %v13959_v42  ;;  %v13163_v33 = vld [vmem:[%s13903_s21 + $0xc48] sm:$0xff]  }
 0x181   : > { %11892 = vmatprep.subr.bf16.mxu1 %v13090_v47  ;;  %v2332_v47 = vrot.slane %v2304_v43, %v13959_v42  ;;  %v13172_v43 = vld [vmem:[%s13903_s21 + $0xcd8] sm:$0xff]  }
 0x182   : > { %11871 = vmatpush3.bf16.msra.mxu0 %v13091_v49  ;;  %v2335_v44 = vcombine.high %v2325_v39, %v2325_v39  ;;  %v2333_v49 = vcombine.high %v2311_v40, %v2311_v40 }
 0x183   : > { %11900 = vmatprep.subr.bf16.mxu0 %v13094_v53  ;;  %v13132_v53 = vld [vmem:[%s13903_s21 + $0xb08] sm:$0xff]  }
 0x184   : > { %11893 = vmatpush3.bf16.msra.mxu1 %v13092_v51  ;;  %v13131_v51 = vld [vmem:[%s13903_s21 + $0xbc8] sm:$0xff]  }
 0x185   : > { %8970 = vmatmul.mubr.bf16.vlgmr.msra.gmra.mrb[36].mxu0 %v2269_v52  ;;  %11922 = vmatprep.subr.bf16.mxu1 %v13095_v54  ;;  %v2336_v52 = vcombine.high %v2332_v47, %v2332_v47  ;;  %v13133_v54 = vld [vmem:[%s13903_s21 + $0xb88] sm:$0xff]  }
 0x186   : > { %11901 = vmatpush3.bf16.msra.mxu0 %v13096_v56  ;;  %9049 = vmatprep.mubr.bf16.mxu0 %v2325_v39  ;;  %v13134_v56 = vld [vmem:[%s13903_s21 + $0xb50] sm:$0xff]  }
 0x187   : > { %9010 = vmatmul.mubr.bf16.vlgmr.msra.gmra.mrb[36].mxu1 %v2285_v58  ;;  %11902 = vmatprep.subr.bf16.mxu0 %v13098_v59  ;;  %v13136_v58 = vld [vmem:[%s13903_s21 + $0xb10] sm:$0xff]  }
 0x188   : > { %11923 = vmatpush3.bf16.msra.mxu1 %v13097_v57  ;;  %9089 = vmatprep.mubr.bf16.mxu1 %v2335_v44  ;;  %v13135_v57 = vld [vmem:[%s13903_s21 + $0xbd0] sm:$0xff]   ;;  %v13173_v44 = vld [vmem:[%s13903_s21 + $0xc18] sm:$0xff]  }
 0x189   : > { %11924 = vmatprep.subr.bf16.mxu1 %v13099_v60  ;;  %v13137_v59 = vld [vmem:[%s13903_s21 + $0xb90] sm:$0xff]   ;;  %v13138_v60 = vld [vmem:[%s13903_s21 + $0xb58] sm:$0xff]  }
 0x18a   : > { %11903 = vmatpush3.bf16.msra.mxu0 %v13100_v55  ;;  %v13139_v55 = vld [vmem:[%s13903_s21 + $0xbd8] sm:$0xff]   ;;  %v13169_v39 = vld [vmem:[%s13903_s21 + $0xc10] sm:$0xff]  }
 0x18b   : > { %11904 = vmatprep.subr.bf16.mxu0 %v13102_v62  ;;  %v13141_v62 = vld [vmem:[%s13903_s21 + $0xb98] sm:$0xff]  }
 0x18c   : > { %11925 = vmatpush3.bf16.msra.mxu1 %v13101_v61  ;;  %v13140_v61 = vld [vmem:[%s13903_s21 + $0xb18] sm:$0xff]  }
 0x18d   : > { %11926 = vmatprep.subr.bf16.mxu1 %v13103_v63  ;;  %v13142_v63 = vld [vmem:[%s13903_s21 + $0xb60] sm:$0xff]  }
 0x18e   : > { %11905 = vmatpush3.bf16.msra.mxu0 %v13104_v0  ;;  %v13143_v0 = vld [vmem:[%s13903_s21 + $0xbe0] sm:$0xff]  }
 0x18f   : > { %11906 = vmatprep.subr.bf16.mxu0 %v13106_v2  ;;  %v13145_v2 = vld [vmem:[%s13903_s21 + $0xba0] sm:$0xff]  }
 0x190   : > { %11927 = vmatpush3.bf16.msra.mxu1 %v13105_v1  ;;  %v13144_v1 = vld [vmem:[%s13903_s21 + $0xb20] sm:$0xff]  }
 0x191   : > { %11928 = vmatprep.subr.bf16.mxu1 %v13107_v3  ;;  %v13146_v3 = vld [vmem:[%s13903_s21 + $0xb68] sm:$0xff]  }
 0x192   : > { %11907 = vmatpush3.bf16.msra.mxu0 %v13108_v4  ;;  %v13147_v4 = vld [vmem:[%s13903_s21 + $0xbe8] sm:$0xff]  }
 0x193   : > { %11908 = vmatprep.subr.bf16.mxu0 %v13110_v6  ;;  %v13149_v6 = vld [vmem:[%s13903_s21 + $0xba8] sm:$0xff]  }
 0x194   : > { %11929 = vmatpush3.bf16.msra.mxu1 %v13109_v5  ;;  %v13148_v5 = vld [vmem:[%s13903_s21 + $0xb28] sm:$0xff]  }
 0x195   : > { %11930 = vmatprep.subr.bf16.mxu1 %v13111_v7  ;;  %v13150_v7 = vld [vmem:[%s13903_s21 + $0xb70] sm:$0xff]  }
 0x196   : > { %11909 = vmatpush3.bf16.msra.mxu0 %v13112_v8 }
 0x197   : > { %11910 = vmatprep.subr.bf16.mxu0 %v13114_v10 }
 0x198   : > { %11931 = vmatpush3.bf16.msra.mxu1 %v13113_v9  ;;  %v11608_v15 = vpop.f32.mrb[12].mxu0  ;;  %v13151_v9 = vld [vmem:[%s13903_s21 + $0xbf0] sm:$0xff]  }
 0x199   : > { %v11609_v17 = vpop.f32.mrb[13].mxu0  ;;  %11932 = vmatprep.subr.bf16.mxu1 %v13115_v11  ;;  %v13152_v11 = vld [vmem:[%s13903_s21 + $0xb30] sm:$0xff]  }
 0x19a   : > { %v11630_v20 = vpop.f32.mrb[12].mxu1  ;;  %v11610_v21 = vadd.f32 %v11609_v17, %v11608_v15  ;;  %v11611_v22 = vpop.f32.mrb[14].mxu0  ;;  %11911 = vmatpush3.bf16.msra.mxu0 %v13116_v12  ;;  %v13153_v15 = vld [vmem:[%s13903_s21 + $0xbb0] sm:$0xff]  }
 0x19b   : > { %v11631_v25 = vpop.f32.mrb[13].mxu1  ;;  %v11612_v26 = vpop.f32.mrb[15].mxu0  ;;  %11912 = vmatprep.subr.bf16.mxu0 %v13118_v14  ;;  %v13155_v22 = vld [vmem:[%s13903_s21 + $0xbf8] sm:$0xff]  }
 0x19c   : > { %v8492_v29 = vadd.f32 %v11610_v21, %v14309_v50  ;;  %v11632_v30 = vadd.f32 %v11631_v25, %v11630_v20  ;;  %v11633_v31 = vpop.f32.mrb[14].mxu1  ;;  %11933 = vmatpush3.bf16.msra.mxu1 %v13117_v13  ;;  %v13130_v50 = vld [vmem:[%s13903_s21 + $0xb48] sm:$0xff]   ;;  %v13157_v26 = vld [vmem:[%s13903_s21 + $0xbb8] sm:$0xff]  }
 0x19d   : > { %v11634_v34 = vpop.f32.mrb[15].mxu1  ;;  %11934 = vmatprep.subr.bf16.mxu1 %v13119_v16  ;;  %v13154_v16 = vld [vmem:[%s13903_s21 + $0xb78] sm:$0xff]   ;;  %v13162_v31 = vld [vmem:[%s13903_s21 + $0xc80] sm:$0xff]  }
 0x19e   : > { %v14351_v37 = vadd.f32 %v11632_v30, %v8492_v29  ;;  %11913 = vmatpush3.bf16.msra.mxu0 %v13120_v18  ;;  %v13160_v29 = vld [vmem:[%s13903_s21 + $0xcc0] sm:$0xff]   ;;  %v13164_v34 = vld [vmem:[%s13903_s21 + $0xcc8] sm:$0xff]  }
 0x19f   : > { %11914 = vmatprep.subr.bf16.mxu0 %v13122_v28  ;;  %v13159_v28 = vld [vmem:[%s13903_s21 + $0xc40] sm:$0xff]  }
 0x1a0   : > { %11935 = vmatpush3.bf16.msra.mxu1 %v13121_v27  ;;  %v2318_v27 = vrot.slane %v14349_v36, %v13959_v42  ;;  %v13161_v30 = vld [vmem:[%s13903_s21 + $0xc00] sm:$0xff]   ;;  %v13166_v36 = vld [vmem:[%s13903_s21 + $0xc88] sm:$0xff]  }
 0x1a1   : > { %11936 = vmatprep.subr.bf16.mxu1 %v13123_v32 }
 0x1a2   : > { %11915 = vmatpush3.bf16.msra.mxu0 %v13124_v35  ;;  %v2334_v32 = vcombine.high %v2318_v27, %v2318_v27  ;;  %v13165_v35 = vld [vmem:[%s13903_s21 + $0xc08] sm:$0xff]  }
 0x1a3   : > { %11944 = vmatprep.subr.bf16.mxu0 %v13126_v41  ;;  %v13171_v41 = vld [vmem:[%s13903_s21 + $0xc58] sm:$0xff]  }
 0x1a4   : > { %11937 = vmatpush3.bf16.msra.mxu1 %v13125_v38  ;;  %v13168_v38 = vld [vmem:[%s13903_s21 + $0xcd0] sm:$0xff]  }
 0x1a5   : > { %9050 = vmatmul.mubr.bf16.vlgmr.msra.gmra.mrb[40].mxu0 %v2311_v40  ;;  %11966 = vmatprep.subr.bf16.mxu1 %v13127_v45  ;;  %v13170_v40 = vld [vmem:[%s13903_s21 + $0xc90] sm:$0xff]   ;;  %v13174_v45 = vld [vmem:[%s13903_s21 + $0xc98] sm:$0xff]  }
 0x1a6   : > { %11945 = vmatpush3.bf16.msra.mxu0 %v13128_v46  ;;  %9129 = vmatprep.mubr.bf16.mxu0 %v2332_v47  ;;  %v13175_v46 = vld [vmem:[%s13903_s21 + $0xc60] sm:$0xff]  }
 0x1a7   : > { %9090 = vmatmul.mubr.bf16.vlgmr.msra.gmra.mrb[40].mxu1 %v2333_v49  ;;  %11946 = vmatprep.subr.bf16.mxu0 %v13130_v50  ;;  %v13176_v47 = vld [vmem:[%s13903_s21 + $0xce0] sm:$0xff]   ;;  %v13179_v50 = vld [vmem:[%s13903_s21 + $0xc68] sm:$0xff]  }
 0x1a8   : > { %11967 = vmatpush3.bf16.msra.mxu1 %v13129_v48  ;;  %9169 = vmatprep.mubr.bf16.mxu1 %v2336_v52  ;;  %v13177_v48 = vld [vmem:[%s13903_s21 + $0xc20] sm:$0xff]   ;;  %v13181_v52 = vld [vmem:[%s13903_s21 + $0xc28] sm:$0xff]  }
 0x1a9   : > { %11968 = vmatprep.subr.bf16.mxu1 %v13131_v51  ;;  %v13178_v49 = vld [vmem:[%s13903_s21 + $0xca0] sm:$0xff]   ;;  %v13180_v51 = vld [vmem:[%s13903_s21 + $0xce8] sm:$0xff]  }
 0x1aa   : > { %11947 = vmatpush3.bf16.msra.mxu0 %v13132_v53  ;;  %v13182_v53 = vld [vmem:[%s13903_s21 + $0xca8] sm:$0xff]  }
 0x1ab   : > { %11948 = vmatprep.subr.bf16.mxu0 %v13134_v56 }
 0x1ac   : > { %11969 = vmatpush3.bf16.msra.mxu1 %v13133_v54  ;;  %v13183_v54 = vld [vmem:[%s13903_s21 + $0xc70] sm:$0xff]  }
 0x1ad   : > { %11970 = vmatprep.subr.bf16.mxu1 %v13135_v57  ;;  %v13184_v57 = vld [vmem:[%s13903_s21 + $0xcf0] sm:$0xff]  }
 0x1ae   : > { %11949 = vmatpush3.bf16.msra.mxu0 %v13136_v58 }
 0x1af   : > { %11950 = vmatprep.subr.bf16.mxu0 %v13138_v60 }
 0x1b0   : > { %11971 = vmatpush3.bf16.msra.mxu1 %v13137_v59  ;;  %v13185_v59 = vld [vmem:[%s13903_s21 + $0xc30] sm:$0xff]  }
 0x1b1   : > { %11972 = vmatprep.subr.bf16.mxu1 %v13139_v55 }
 0x1b2   : > { %11951 = vmatpush3.bf16.msra.mxu0 %v13140_v61 }
 0x1b3   : > { %11952 = vmatprep.subr.bf16.mxu0 %v13142_v63  ;;  %v13187_v63 = vld [vmem:[%s13903_s21 + $0xc78] sm:$0xff]  }
 0x1b4   : > { %11973 = vmatpush3.bf16.msra.mxu1 %v13141_v62  ;;  %v13186_v62 = vld [vmem:[%s13903_s21 + $0xcb0] sm:$0xff]  }
 0x1b5   : > { %11974 = vmatprep.subr.bf16.mxu1 %v13143_v0  ;;  %v229_v0 = vld [vmem:[%s13921_s27 + $0x30] sm:$0xff] }
 0x1b6   : > { %11953 = vmatpush3.bf16.msra.mxu0 %v13144_v1 }
 0x1b7   : > { %11954 = vmatprep.subr.bf16.mxu0 %v13146_v3  ;;  %v2344_v3 = vrot.slane %v229_v0, %v13959_v42 }
 0x1b8   : > { %11975 = vmatpush3.bf16.msra.mxu1 %v13145_v2  ;;  %v11652_v8 = vpop.f32.mrb[16].mxu0 }
 0x1b9   : > { %v11653_v10 = vpop.f32.mrb[17].mxu0  ;;  %11976 = vmatprep.subr.bf16.mxu1 %v13147_v4  ;;  %v2337_v4 = vcombine.high %v229_v0, %v229_v0  ;;  %v13221_v0 = vld [vmem:[%s13903_s21 + $0xd38] sm:$0xff]  }
 0x1ba   : > { %v11674_v12 = vpop.f32.mrb[16].mxu1  ;;  %v11654_v13 = vadd.f32 %v11653_v10, %v11652_v8  ;;  %v11655_v14 = vpop.f32.mrb[18].mxu0  ;;  %11955 = vmatpush3.bf16.msra.mxu0 %v13148_v5  ;;  %v13188_v8 = vld [vmem:[%s13903_s21 + $0xcf8] sm:$0xff]  }
 0x1bb   : > { %v11675_v17 = vpop.f32.mrb[17].mxu1  ;;  %v11656_v18 = vpop.f32.mrb[19].mxu0  ;;  %11956 = vmatprep.subr.bf16.mxu0 %v13150_v7  ;;  %v13189_v10 = vld [vmem:[%s13903_s21 + $0xc38] sm:$0xff]  }
 0x1bc   : > { %v8572_v19 = vadd.f32 %v11654_v13, %v14351_v37  ;;  %v11676_v20 = vadd.f32 %v11675_v17, %v11674_v12  ;;  %v11677_v21 = vpop.f32.mrb[18].mxu1  ;;  %11977 = vmatpush3.bf16.msra.mxu1 %v13149_v6  ;;  %v13167_v37 = vld [vmem:[%s13903_s21 + $0xc50] sm:$0xff]   ;;  %v14431_v12 = vrot.slane %v2337_v4, %v13959_v42  ;;  %v13190_v14 = vld [vmem:[%s13903_s21 + $0xcb8] sm:$0xff]   ;;  %v13191_v17 = vld [vmem:[%s13903_s21 + $0xd40] sm:$0xff]  }
 0x1bd   : > { %v11678_v23 = vpop.f32.mrb[19].mxu1  ;;  %11978 = vmatprep.subr.bf16.mxu1 %v13151_v9  ;;  %v13193_v21 = vld [vmem:[%s13903_s21 + $0xd00] sm:$0xff]  }
 0x1be   : > { %v14391_v25 = vadd.f32 %v11676_v20, %v8572_v19  ;;  %11957 = vmatpush3.bf16.msra.mxu0 %v13152_v11  ;;  %v2352_v11 = vcombine.high %v2344_v3, %v2344_v3  ;;  %v2353_v18 = vcombine.high %v14431_v12, %v14431_v12  ;;  %v13192_v19 = vld [vmem:[%s13903_s21 + $0xdc0] sm:$0xff]  }
 0x1bf   : > { %11958 = vmatprep.subr.bf16.mxu0 %v13154_v16  ;;  %v2360_v16 = vrot.slane %v2344_v3, %v13959_v42  ;;  %v13194_v23 = vld [vmem:[%s13903_s21 + $0xd80] sm:$0xff]   ;;  %v2367_v3 = vrot.slane %v14431_v12, %v13959_v42  ;;  %v13231_v12 = vld [vmem:[%s13903_s21 + $0xe88] sm:$0xff]  }
 0x1c0   : > { %11979 = vmatpush3.bf16.msra.mxu1 %v13153_v15  ;;  %v2374_v15 = vrot.slane %v2352_v11, %v13959_v42  ;;  %v13224_v4 = vld [vmem:[%s13903_s21 + $0xe40] sm:$0xff]   ;;  %v13230_v11 = vld [vmem:[%s13903_s21 + $0xe08] sm:$0xff]  }
 0x1c1   : > { %11980 = vmatprep.subr.bf16.mxu1 %v13155_v22  ;;  %v2381_v22 = vrot.slane %v2353_v18, %v13959_v42  ;;  %v13237_v18 = vld [vmem:[%s13903_s21 + $0xed8] sm:$0xff]  }
 0x1c2   : > { %11959 = vmatpush3.bf16.msra.mxu0 %v13156_v24  ;;  %v2384_v20 = vcombine.high %v2374_v15, %v2374_v15  ;;  %v2382_v24 = vcombine.high %v2360_v16, %v2360_v16 }
 0x1c3   : > { %11988 = vmatprep.subr.bf16.mxu0 %v13159_v28  ;;  %v13197_v28 = vld [vmem:[%s13903_s21 + $0xd08] sm:$0xff]  }
 0x1c4   : > { %11981 = vmatpush3.bf16.msra.mxu1 %v13157_v26  ;;  %v13196_v26 = vld [vmem:[%s13903_s21 + $0xdc8] sm:$0xff]  }
 0x1c5   : > { %9130 = vmatmul.mubr.bf16.vlgmr.msra.gmra.mrb[44].mxu0 %v2318_v27  ;;  %12010 = vmatprep.subr.bf16.mxu1 %v13160_v29  ;;  %v2385_v27 = vcombine.high %v2381_v22, %v2381_v22  ;;  %v13198_v29 = vld [vmem:[%s13903_s21 + $0xd88] sm:$0xff]  }
 0x1c6   : > { %11989 = vmatpush3.bf16.msra.mxu0 %v13161_v30  ;;  %9209 = vmatprep.mubr.bf16.mxu0 %v2374_v15  ;;  %v13199_v30 = vld [vmem:[%s13903_s21 + $0xd50] sm:$0xff]  }
 0x1c7   : > { %9170 = vmatmul.mubr.bf16.vlgmr.msra.gmra.mrb[44].mxu1 %v2334_v32  ;;  %11990 = vmatprep.subr.bf16.mxu0 %v13163_v33  ;;  %v13201_v32 = vld [vmem:[%s13903_s21 + $0xd10] sm:$0xff]  }
 0x1c8   : > { %12011 = vmatpush3.bf16.msra.mxu1 %v13162_v31  ;;  %9249 = vmatprep.mubr.bf16.mxu1 %v2384_v20  ;;  %v13200_v31 = vld [vmem:[%s13903_s21 + $0xdd0] sm:$0xff]   ;;  %v13239_v20 = vld [vmem:[%s13903_s21 + $0xe98] sm:$0xff]  }
 0x1c9   : > { %12012 = vmatprep.subr.bf16.mxu1 %v13164_v34  ;;  %v13202_v33 = vld [vmem:[%s13903_s21 + $0xd90] sm:$0xff]   ;;  %v13203_v34 = vld [vmem:[%s13903_s21 + $0xd58] sm:$0xff]  }
 0x1ca   : > { %11991 = vmatpush3.bf16.msra.mxu0 %v13165_v35  ;;  %v13204_v35 = vld [vmem:[%s13903_s21 + $0xdd8] sm:$0xff]   ;;  %v13234_v15 = vld [vmem:[%s13903_s21 + $0xe10] sm:$0xff]  }
 0x1cb   : > { %11992 = vmatprep.subr.bf16.mxu0 %v13167_v37  ;;  %v13206_v37 = vld [vmem:[%s13903_s21 + $0xd98] sm:$0xff]  }
 0x1cc   : > { %12013 = vmatpush3.bf16.msra.mxu1 %v13166_v36  ;;  %v13205_v36 = vld [vmem:[%s13903_s21 + $0xd18] sm:$0xff]  }
 0x1cd   : > { %12014 = vmatprep.subr.bf16.mxu1 %v13168_v38  ;;  %v13207_v38 = vld [vmem:[%s13903_s21 + $0xd60] sm:$0xff]  }
 0x1ce   : > { %11993 = vmatpush3.bf16.msra.mxu0 %v13169_v39  ;;  %v13208_v39 = vld [vmem:[%s13903_s21 + $0xde0] sm:$0xff]  }
 0x1cf   : > { %11994 = vmatprep.subr.bf16.mxu0 %v13171_v41  ;;  %v13210_v41 = vld [vmem:[%s13903_s21 + $0xda0] sm:$0xff]  }
 0x1d0   : > { %12015 = vmatpush3.bf16.msra.mxu1 %v13170_v40  ;;  %v13209_v40 = vld [vmem:[%s13903_s21 + $0xd20] sm:$0xff]  }
 0x1d1   : > { %12016 = vmatprep.subr.bf16.mxu1 %v13172_v43  ;;  %v13211_v43 = vld [vmem:[%s13903_s21 + $0xd68] sm:$0xff]  }
 0x1d2   : > { %11995 = vmatpush3.bf16.msra.mxu0 %v13173_v44  ;;  %v13212_v44 = vld [vmem:[%s13903_s21 + $0xde8] sm:$0xff]  }
 0x1d3   : > { %11996 = vmatprep.subr.bf16.mxu0 %v13175_v46  ;;  %v13214_v46 = vld [vmem:[%s13903_s21 + $0xda8] sm:$0xff]  }
 0x1d4   : > { %12017 = vmatpush3.bf16.msra.mxu1 %v13174_v45  ;;  %v13213_v45 = vld [vmem:[%s13903_s21 + $0xd28] sm:$0xff]  }
 0x1d5   : > { %12018 = vmatprep.subr.bf16.mxu1 %v13176_v47  ;;  %v13215_v47 = vld [vmem:[%s13903_s21 + $0xd70] sm:$0xff]  }
 0x1d6   : > { %11997 = vmatpush3.bf16.msra.mxu0 %v13177_v48 }
 0x1d7   : > { %11998 = vmatprep.subr.bf16.mxu0 %v13179_v50 }
 0x1d8   : > { %12019 = vmatpush3.bf16.msra.mxu1 %v13178_v49  ;;  %v11696_v56 = vpop.f32.mrb[20].mxu0  ;;  %v13216_v49 = vld [vmem:[%s13903_s21 + $0xdf0] sm:$0xff]  }
 0x1d9   : > { %v11697_v58 = vpop.f32.mrb[21].mxu0  ;;  %12020 = vmatprep.subr.bf16.mxu1 %v13180_v51  ;;  %v13217_v51 = vld [vmem:[%s13903_s21 + $0xd30] sm:$0xff]  }
 0x1da   : > { %v11718_v60 = vpop.f32.mrb[20].mxu1  ;;  %v11698_v55 = vadd.f32 %v11697_v58, %v11696_v56  ;;  %v11699_v61 = vpop.f32.mrb[22].mxu0  ;;  %11999 = vmatpush3.bf16.msra.mxu0 %v13181_v52  ;;  %v13218_v56 = vld [vmem:[%s13903_s21 + $0xdb0] sm:$0xff]  }
 0x1db   : > { %v11719_v1 = vpop.f32.mrb[21].mxu1  ;;  %v11700_v2 = vpop.f32.mrb[23].mxu0  ;;  %12000 = vmatprep.subr.bf16.mxu0 %v13183_v54 }
 0x1dc   : > { %v8652_v5 = vadd.f32 %v11698_v55, %v14391_v25  ;;  %v11720_v6 = vadd.f32 %v11719_v1, %v11718_v60  ;;  %v11721_v7 = vpop.f32.mrb[22].mxu1  ;;  %12021 = vmatpush3.bf16.msra.mxu1 %v13182_v53  ;;  %v13195_v25 = vld [vmem:[%s13903_s21 + $0xd48] sm:$0xff]   ;;  %v13222_v2 = vld [vmem:[%s13903_s21 + $0xdb8] sm:$0xff]  }
 0x1dd   : > { %v11722_v9 = vpop.f32.mrb[23].mxu1  ;;  %12022 = vmatprep.subr.bf16.mxu1 %v13184_v57  ;;  %v13219_v57 = vld [vmem:[%s13903_s21 + $0xd78] sm:$0xff]   ;;  %v13227_v7 = vld [vmem:[%s13903_s21 + $0xe80] sm:$0xff]  }
 0x1de   : > { %v14433_v13 = vadd.f32 %v11720_v6, %v8652_v5  ;;  %12001 = vmatpush3.bf16.msra.mxu0 %v13185_v59  ;;  %v13225_v5 = vld [vmem:[%s13903_s21 + $0xec0] sm:$0xff]   ;;  %v13228_v9 = vld [vmem:[%s13903_s21 + $0xe48] sm:$0xff]  }
 0x1df   : > { %12002 = vmatprep.subr.bf16.mxu0 %v13187_v63  ;;  %v13226_v6 = vld [vmem:[%s13903_s21 + $0xe00] sm:$0xff]  }
 0x1e0   : > { %12023 = vmatpush3.bf16.msra.mxu1 %v13186_v62  ;;  %v13220_v62 = vld [vmem:[%s13903_s21 + $0xdf8] sm:$0xff]  }
 0x1e1   : > { %12024 = vmatprep.subr.bf16.mxu1 %v13188_v8  ;;  %v2383_v8 = vcombine.high %v2367_v3, %v2367_v3 }
 0x1e2   : > { %12003 = vmatpush3.bf16.msra.mxu0 %v13189_v10  ;;  %v13229_v10 = vld [vmem:[%s13903_s21 + $0xec8] sm:$0xff]  }
 0x1e3   : > { %12032 = vmatprep.subr.bf16.mxu0 %v13191_v17  ;;  %v13236_v17 = vld [vmem:[%s13903_s21 + $0xe58] sm:$0xff]  }
 0x1e4   : > { %12025 = vmatpush3.bf16.msra.mxu1 %v13190_v14  ;;  %v13233_v14 = vld [vmem:[%s13903_s21 + $0xed0] sm:$0xff]  }
 0x1e5   : > { %9210 = vmatmul.mubr.bf16.vlgmr.msra.gmra.mrb[48].mxu0 %v2360_v16  ;;  %12054 = vmatprep.subr.bf16.mxu1 %v13192_v19  ;;  %v13235_v16 = vld [vmem:[%s13903_s21 + $0xe90] sm:$0xff]   ;;  %v13238_v19 = vld [vmem:[%s13903_s21 + $0xe18] sm:$0xff]  }
 0x1e6   : > { %12033 = vmatpush3.bf16.msra.mxu0 %v13193_v21  ;;  %9289 = vmatprep.mubr.bf16.mxu0 %v2381_v22  ;;  %v13240_v21 = vld [vmem:[%s13903_s21 + $0xe60] sm:$0xff]  }
 0x1e7   : > { %9250 = vmatmul.mubr.bf16.vlgmr.msra.gmra.mrb[48].mxu1 %v2382_v24  ;;  %12034 = vmatprep.subr.bf16.mxu0 %v13195_v25  ;;  %v13241_v22 = vld [vmem:[%s13903_s21 + $0xee0] sm:$0xff]   ;;  %v13244_v25 = vld [vmem:[%s13903_s21 + $0xe68] sm:$0xff]  }
 0x1e8   : > { %12055 = vmatpush3.bf16.msra.mxu1 %v13194_v23  ;;  %9329 = vmatprep.mubr.bf16.mxu1 %v2385_v27  ;;  %v13242_v23 = vld [vmem:[%s13903_s21 + $0xe20] sm:$0xff]   ;;  %v13246_v27 = vld [vmem:[%s13903_s21 + $0xe28] sm:$0xff]  }
 0x1e9   : > { %12056 = vmatprep.subr.bf16.mxu1 %v13196_v26  ;;  %v13243_v24 = vld [vmem:[%s13903_s21 + $0xea0] sm:$0xff]   ;;  %v13245_v26 = vld [vmem:[%s13903_s21 + $0xee8] sm:$0xff]  }
 0x1ea   : > { %12035 = vmatpush3.bf16.msra.mxu0 %v13197_v28  ;;  %v13247_v28 = vld [vmem:[%s13903_s21 + $0xea8] sm:$0xff]  }
 0x1eb   : > { %12036 = vmatprep.subr.bf16.mxu0 %v13199_v30 }
 0x1ec   : > { %12057 = vmatpush3.bf16.msra.mxu1 %v13198_v29  ;;  %v13248_v29 = vld [vmem:[%s13903_s21 + $0xe70] sm:$0xff]  }
 0x1ed   : > { %12058 = vmatprep.subr.bf16.mxu1 %v13200_v31  ;;  %v13249_v31 = vld [vmem:[%s13903_s21 + $0xef0] sm:$0xff]  }
 0x1ee   : > { %12037 = vmatpush3.bf16.msra.mxu0 %v13201_v32 }
 0x1ef   : > { %12038 = vmatprep.subr.bf16.mxu0 %v13203_v34 }
 0x1f0   : > { %12059 = vmatpush3.bf16.msra.mxu1 %v13202_v33  ;;  %v13250_v33 = vld [vmem:[%s13903_s21 + $0xe30] sm:$0xff]  }
 0x1f1   : > { %12060 = vmatprep.subr.bf16.mxu1 %v13204_v35 }
 0x1f2   : > { %12039 = vmatpush3.bf16.msra.mxu0 %v13205_v36 }
 0x1f3   : > { %12040 = vmatprep.subr.bf16.mxu0 %v13207_v38  ;;  %v13252_v38 = vld [vmem:[%s13903_s21 + $0xe78] sm:$0xff]  }
 0x1f4   : > { %12061 = vmatpush3.bf16.msra.mxu1 %v13206_v37  ;;  %v13251_v37 = vld [vmem:[%s13903_s21 + $0xeb0] sm:$0xff]  }
 0x1f5   : > { %12062 = vmatprep.subr.bf16.mxu1 %v13208_v39 }
 0x1f6   : > { %12041 = vmatpush3.bf16.msra.mxu0 %v13209_v40 }
 0x1f7   : > { %12042 = vmatprep.subr.bf16.mxu0 %v13211_v43 }
 0x1f8   : > { %12063 = vmatpush3.bf16.msra.mxu1 %v13210_v41  ;;  %v11740_v48 = vpop.f32.mrb[24].mxu0  ;;  %v13253_v41 = vld [vmem:[%s13903_s21 + $0xef8] sm:$0xff]  }
 0x1f9   : > { %v11741_v50 = vpop.f32.mrb[25].mxu0  ;;  %12064 = vmatprep.subr.bf16.mxu1 %v13212_v44 }
 0x1fa   : > { %v11762_v52 = vpop.f32.mrb[24].mxu1  ;;  %v11742_v53 = vadd.f32 %v11741_v50, %v11740_v48  ;;  %v11743_v54 = vpop.f32.mrb[26].mxu0  ;;  %12043 = vmatpush3.bf16.msra.mxu0 %v13213_v45  ;;  %v13254_v48 = vld [vmem:[%s13903_s21 + $0xe38] sm:$0xff]  }
 0x1fb   : > { %v11763_v58 = vpop.f32.mrb[25].mxu1  ;;  %v11744_v59 = vpop.f32.mrb[27].mxu0  ;;  %12044 = vmatprep.subr.bf16.mxu0 %v13215_v47 }
 0x1fc   : > { %v8732_v60 = vadd.f32 %v11742_v53, %v14433_v13  ;;  %v11764_v55 = vadd.f32 %v11763_v58, %v11762_v52  ;;  %v11765_v61 = vpop.f32.mrb[26].mxu1  ;;  %12065 = vmatpush3.bf16.msra.mxu1 %v13214_v46  ;;  %v13232_v13 = vld [vmem:[%s13903_s21 + $0xe50] sm:$0xff]   ;;  %v13255_v52 = vld [vmem:[%s13903_s21 + $0xeb8] sm:$0xff]   ;;  %v13257_v58 = vld [vmem:[%s13903_s21 + $0xfc0] sm:$0xff]  }
 0x1fd   : > { %v11766_v63 = vpop.f32.mrb[27].mxu1  ;;  %12066 = vmatprep.subr.bf16.mxu1 %v13216_v49  ;;  %v230_v46 = vld [vmem:[%s13921_s27 + $0x38] sm:$0xff]  ;;  %v13259_v61 = vld [vmem:[%s13903_s21 + $0xf80] sm:$0xff]  }
 0x1fe   : > { %v14473_v1 = vadd.f32 %v11764_v55, %v8732_v60  ;;  %12045 = vmatpush3.bf16.msra.mxu0 %v13217_v51  ;;  %v2393_v49 = vrot.slane %v230_v46, %v13959_v42  ;;  %v2386_v50 = vcombine.high %v230_v46, %v230_v46  ;;  %v13258_v60 = vld [vmem:[%s13903_s21 + $0xf00] sm:$0xff]  }
 0x1ff   : > { %12046 = vmatprep.subr.bf16.mxu0 %v13219_v57  ;;  %v13291_v46 = vld [vmem:[%s13903_s21 + $0x1000] sm:$0xff]  }
 0x200   : > { %12067 = vmatpush3.bf16.msra.mxu1 %v13218_v56  ;;  %v2401_v53 = vcombine.high %v2393_v49, %v2393_v49  ;;  %v2409_v54 = vrot.slane %v2393_v49, %v13959_v42  ;;  %v13256_v56 = vld [vmem:[%s13903_s21 + $0xf40] sm:$0xff]   ;;  %v14518_v57 = vrot.slane %v2386_v50, %v13959_v42  ;;  %v13293_v49 = vld [vmem:[%s13903_s21 + $0x1048] sm:$0xff]  }
 0x201   : > { %12068 = vmatprep.subr.bf16.mxu1 %v13220_v62  ;;  %v13294_v50 = vld [vmem:[%s13903_s21 + $0x10c8] sm:$0xff]  }
 0x202   : > { %12047 = vmatpush3.bf16.msra.mxu0 %v13221_v0  ;;  %v2423_v59 = vrot.slane %v2401_v53, %v13959_v42  ;;  %v2402_v55 = vcombine.high %v14518_v57, %v14518_v57  ;;  %v2431_v63 = vcombine.high %v2409_v54, %v2409_v54  ;;  %v13260_v0 = vld [vmem:[%s13903_s21 + $0xf48] sm:$0xff]   ;;  %v13297_v53 = vld [vmem:[%s13903_s21 + $0x1050] sm:$0xff]  }
 0x203   : > { %12076 = vmatprep.subr.bf16.mxu0 %v13224_v4 }
 0x204   : > { %12069 = vmatpush3.bf16.msra.mxu1 %v13222_v2  ;;  %v2433_v62 = vcombine.high %v2423_v59, %v2423_v59  ;;  %v13261_v2 = vld [vmem:[%s13903_s21 + $0xfc8] sm:$0xff]  }
 0x205   : > { %9290 = vmatmul.mubr.bf16.vlgmr.msra.gmra.mrb[52].mxu0 %v2367_v3  ;;  %12098 = vmatprep.subr.bf16.mxu1 %v13225_v5  ;;  %v13262_v3 = vld [vmem:[%s13903_s21 + $0xf08] sm:$0xff]  }
 0x206   : > { %12077 = vmatpush3.bf16.msra.mxu0 %v13226_v6  ;;  %9369 = vmatprep.mubr.bf16.mxu0 %v2423_v59  ;;  %v13263_v5 = vld [vmem:[%s13903_s21 + $0xf88] sm:$0xff]   ;;  %v13264_v6 = vld [vmem:[%s13903_s21 + $0xf50] sm:$0xff]   ;;  %v13302_v59 = vld [vmem:[%s13903_s21 + $0x10d8] sm:$0xff]  }
 0x207   : > { %9330 = vmatmul.mubr.bf16.vlgmr.msra.gmra.mrb[52].mxu1 %v2383_v8  ;;  %12078 = vmatprep.subr.bf16.mxu0 %v13228_v9  ;;  %v13266_v8 = vld [vmem:[%s13903_s21 + $0xf10] sm:$0xff]  }
 0x208   : > { %12099 = vmatpush3.bf16.msra.mxu1 %v13227_v7  ;;  %9409 = vmatprep.mubr.bf16.mxu1 %v2433_v62  ;;  %v13265_v7 = vld [vmem:[%s13903_s21 + $0xfd0] sm:$0xff]   ;;  %v13306_v62 = vld [vmem:[%s13903_s21 + $0x10e0] sm:$0xff]  }
 0x209   : > { %12100 = vmatprep.subr.bf16.mxu1 %v13229_v10  ;;  %v13267_v9 = vld [vmem:[%s13903_s21 + $0xf90] sm:$0xff]   ;;  %v13268_v10 = vld [vmem:[%s13903_s21 + $0xf58] sm:$0xff]  }
 0x20a   : > { %12079 = vmatpush3.bf16.msra.mxu0 %v13230_v11  ;;  %v13269_v11 = vld [vmem:[%s13903_s21 + $0xfd8] sm:$0xff]  }
 0x20b   : > { %12080 = vmatprep.subr.bf16.mxu0 %v13232_v13  ;;  %v13271_v13 = vld [vmem:[%s13903_s21 + $0xf98] sm:$0xff]  }
 0x20c   : > { %12101 = vmatpush3.bf16.msra.mxu1 %v13231_v12  ;;  %v13270_v12 = vld [vmem:[%s13903_s21 + $0xf18] sm:$0xff]  }
 0x20d   : > { %12102 = vmatprep.subr.bf16.mxu1 %v13233_v14  ;;  %v13272_v14 = vld [vmem:[%s13903_s21 + $0xf60] sm:$0xff]  }
 0x20e   : > { %12081 = vmatpush3.bf16.msra.mxu0 %v13234_v15  ;;  %v13273_v15 = vld [vmem:[%s13903_s21 + $0xfe0] sm:$0xff]  }
 0x20f   : > { %12082 = vmatprep.subr.bf16.mxu0 %v13236_v17  ;;  %v13275_v17 = vld [vmem:[%s13903_s21 + $0xfa0] sm:$0xff]  }
 0x210   : > { %12103 = vmatpush3.bf16.msra.mxu1 %v13235_v16  ;;  %v13274_v16 = vld [vmem:[%s13903_s21 + $0xf20] sm:$0xff]  }
 0x211   : > { %12104 = vmatprep.subr.bf16.mxu1 %v13237_v18  ;;  %v13276_v18 = vld [vmem:[%s13903_s21 + $0xf68] sm:$0xff]  }
 0x212   : > { %12083 = vmatpush3.bf16.msra.mxu0 %v13238_v19  ;;  %v13277_v19 = vld [vmem:[%s13903_s21 + $0xfe8] sm:$0xff]  }
 0x213   : > { %12084 = vmatprep.subr.bf16.mxu0 %v13240_v21  ;;  %v13279_v21 = vld [vmem:[%s13903_s21 + $0xfa8] sm:$0xff]  }
 0x214   : > { %12105 = vmatpush3.bf16.msra.mxu1 %v13239_v20  ;;  %v13278_v20 = vld [vmem:[%s13903_s21 + $0xf28] sm:$0xff]  }
 0x215   : > { %12106 = vmatprep.subr.bf16.mxu1 %v13241_v22  ;;  %v13280_v22 = vld [vmem:[%s13903_s21 + $0xf70] sm:$0xff]  }
 0x216   : > { %12085 = vmatpush3.bf16.msra.mxu0 %v13242_v23 }
 0x217   : > { %12086 = vmatprep.subr.bf16.mxu0 %v13244_v25 }
 0x218   : > { %12107 = vmatpush3.bf16.msra.mxu1 %v13243_v24  ;;  %v11784_v30 = vpop.f32.mrb[28].mxu0  ;;  %v13281_v24 = vld [vmem:[%s13903_s21 + $0xff0] sm:$0xff]  }
 0x219   : > { %v11785_v32 = vpop.f32.mrb[29].mxu0  ;;  %12108 = vmatprep.subr.bf16.mxu1 %v13245_v26  ;;  %v13282_v26 = vld [vmem:[%s13903_s21 + $0xf30] sm:$0xff]  }
 0x21a   : > { %v11806_v34 = vpop.f32.mrb[28].mxu1  ;;  %v11786_v35 = vadd.f32 %v11785_v32, %v11784_v30  ;;  %v11787_v36 = vpop.f32.mrb[30].mxu0  ;;  %12087 = vmatpush3.bf16.msra.mxu0 %v13246_v27  ;;  %v13283_v30 = vld [vmem:[%s13903_s21 + $0xfb0] sm:$0xff]  }
 0x21b   : > { %v11807_v39 = vpop.f32.mrb[29].mxu1  ;;  %v11788_v40 = vpop.f32.mrb[31].mxu0  ;;  %12088 = vmatprep.subr.bf16.mxu0 %v13248_v29 }
 0x21c   : > { %v8812_v43 = vadd.f32 %v11786_v35, %v14473_v1  ;;  %v11808_v44 = vadd.f32 %v11807_v39, %v11806_v34  ;;  %v11809_v45 = vpop.f32.mrb[30].mxu1  ;;  %12109 = vmatpush3.bf16.msra.mxu1 %v13247_v28  ;;  %v2430_v1 = vrot.slane %v2402_v55, %v13959_v42  ;;  %v13286_v39 = vld [vmem:[%s13903_s21 + $0xf38] sm:$0xff]  }
 0x21d   : > { %v11810_v47 = vpop.f32.mrb[31].mxu1  ;;  %12110 = vmatprep.subr.bf16.mxu1 %v13249_v31  ;;  %v13284_v31 = vld [vmem:[%s13903_s21 + $0xf78] sm:$0xff]   ;;  %v13290_v45 = vld [vmem:[%s13903_s21 + $0x10c0] sm:$0xff]  }
 0x21e   : > { %v14512_v51 = vadd.f32 %v11808_v44, %v8812_v43  ;;  %12089 = vmatpush3.bf16.msra.mxu0 %v13250_v33  ;;  %v2434_v4 = vcombine.high %v2430_v1, %v2430_v1  ;;  %v2416_v43 = vrot.slane %v14518_v57, %v13959_v42  ;;  %v13289_v44 = vld [vmem:[%s13903_s21 + $0x1040] sm:$0xff]   ;;  %v13300_v57 = vld [vmem:[%s13903_s21 + $0x1090] sm:$0xff]   ;;  %v13304_v55 = vld [vmem:[%s13903_s21 + $0x1098] sm:$0xff]  }
 0x21f   : > { %12090 = vmatprep.subr.bf16.mxu0 %v13252_v38  ;;  %v13292_v47 = vld [vmem:[%s13903_s21 + $0x1080] sm:$0xff]  }
 0x220   : > { %12111 = vmatpush3.bf16.msra.mxu1 %v13251_v37  ;;  %v13285_v37 = vld [vmem:[%s13903_s21 + $0xff8] sm:$0xff]  }
 0x221   : > { %12112 = vmatprep.subr.bf16.mxu1 %v13253_v41  ;;  %v13287_v41 = vld [vmem:[%s13903_s21 + $0xfb8] sm:$0xff]  }
 0x222   : > { %12091 = vmatpush3.bf16.msra.mxu0 %v13254_v48  ;;  %v2432_v48 = vcombine.high %v2416_v43, %v2416_v43 }
 0x223   : > { %12120 = vmatprep.subr.bf16.mxu0 %v13256_v56  ;;  %v13299_v56 = vld [vmem:[%s13903_s21 + $0x1010] sm:$0xff]  }
 0x224   : > { %12113 = vmatpush3.bf16.msra.mxu1 %v13255_v52  ;;  %v13296_v52 = vld [vmem:[%s13903_s21 + $0x1088] sm:$0xff]  }
 0x225   : > { %9370 = vmatmul.mubr.bf16.vlgmr.msra.gmra.mrb[56].mxu0 %v2409_v54  ;;  %12142 = vmatprep.subr.bf16.mxu1 %v13257_v58  ;;  %v13298_v54 = vld [vmem:[%s13903_s21 + $0x10d0] sm:$0xff]   ;;  %v13301_v58 = vld [vmem:[%s13903_s21 + $0x1058] sm:$0xff]  }
 0x226   : > { %12121 = vmatpush3.bf16.msra.mxu0 %v13258_v60  ;;  %9449 = vmatprep.mubr.bf16.mxu0 %v2430_v1  ;;  %v13303_v60 = vld [vmem:[%s13903_s21 + $0x1018] sm:$0xff]   ;;  %v13309_v1 = vld [vmem:[%s13903_s21 + $0x1068] sm:$0xff]  }
 0x227   : > { %9410 = vmatmul.mubr.bf16.vlgmr.msra.gmra.mrb[56].mxu1 %v2431_v63  ;;  %12122 = vmatprep.subr.bf16.mxu0 %v13260_v0  ;;  %v13307_v63 = vld [vmem:[%s13903_s21 + $0x1020] sm:$0xff]  }
 0x228   : > { %12143 = vmatpush3.bf16.msra.mxu1 %v13259_v61  ;;  %9489 = vmatprep.mubr.bf16.mxu1 %v2434_v4  ;;  %v13305_v61 = vld [vmem:[%s13903_s21 + $0x1060] sm:$0xff]   ;;  %v13312_v4 = vld [vmem:[%s13903_s21 + $0x10a8] sm:$0xff]  }
 0x229   : > { %12144 = vmatprep.subr.bf16.mxu1 %v13261_v2  ;;  %v13308_v0 = vld [vmem:[%s13903_s21 + $0x10a0] sm:$0xff]   ;;  %v13310_v2 = vld [vmem:[%s13903_s21 + $0x10e8] sm:$0xff]  }
 0x22a   : > { %12123 = vmatpush3.bf16.msra.mxu0 %v13262_v3  ;;  %v13311_v3 = vld [vmem:[%s13903_s21 + $0x1028] sm:$0xff]  }
 0x22b   : > { %12124 = vmatprep.subr.bf16.mxu0 %v13264_v6 }
 0x22c   : > { %12145 = vmatpush3.bf16.msra.mxu1 %v13263_v5  ;;  %v13313_v5 = vld [vmem:[%s13903_s21 + $0x1070] sm:$0xff]  }
 0x22d   : > { %12146 = vmatprep.subr.bf16.mxu1 %v13265_v7  ;;  %v13314_v7 = vld [vmem:[%s13903_s21 + $0x10f0] sm:$0xff]  }
 0x22e   : > { %12125 = vmatpush3.bf16.msra.mxu0 %v13266_v8 }
 0x22f   : > { %12126 = vmatprep.subr.bf16.mxu0 %v13268_v10 }
 0x230   : > { %12147 = vmatpush3.bf16.msra.mxu1 %v13267_v9  ;;  %v13315_v9 = vld [vmem:[%s13903_s21 + $0x1030] sm:$0xff]  }
 0x231   : > { %12148 = vmatprep.subr.bf16.mxu1 %v13269_v11 }
 0x232   : > { %12127 = vmatpush3.bf16.msra.mxu0 %v13270_v12 }
 0x233   : > { %12128 = vmatprep.subr.bf16.mxu0 %v13272_v14  ;;  %v13317_v14 = vld [vmem:[%s13903_s21 + $0x1078] sm:$0xff]  }
 0x234   : > { %12149 = vmatpush3.bf16.msra.mxu1 %v13271_v13  ;;  %v13316_v13 = vld [vmem:[%s13903_s21 + $0x10b0] sm:$0xff]  }
 0x235   : > { %12150 = vmatprep.subr.bf16.mxu1 %v13273_v15 }
 0x236   : > { %12129 = vmatpush3.bf16.msra.mxu0 %v13274_v16 }
 0x237   : > { %12130 = vmatprep.subr.bf16.mxu0 %v13276_v18 }
 0x238   : > { %12151 = vmatpush3.bf16.msra.mxu1 %v13275_v17  ;;  %v11828_v23 = vpop.f32.mrb[32].mxu0  ;;  %v13318_v17 = vld [vmem:[%s13903_s21 + $0x10f8] sm:$0xff]  }
 0x239   : > { %v11829_v25 = vpop.f32.mrb[33].mxu0  ;;  %12152 = vmatprep.subr.bf16.mxu1 %v13277_v19 }
 0x23a   : > { %v11850_v27 = vpop.f32.mrb[32].mxu1  ;;  %v11830_v28 = vadd.f32 %v11829_v25, %v11828_v23  ;;  %v11831_v29 = vpop.f32.mrb[34].mxu0  ;;  %12131 = vmatpush3.bf16.msra.mxu0 %v13278_v20  ;;  %v231_v23 = vld [vmem:[%s13921_s27 + $0x40] sm:$0xff] }
 0x23b   : > { %v11851_v32 = vpop.f32.mrb[33].mxu1  ;;  %v11832_v33 = vpop.f32.mrb[35].mxu0  ;;  %12132 = vmatprep.subr.bf16.mxu0 %v13280_v22  ;;  %v13320_v25 = vld [vmem:[%s13903_s21 + $0x10b8] sm:$0xff]  }
 0x23c   : > { %v8892_v34 = vadd.f32 %v11830_v28, %v14512_v51  ;;  %v11852_v35 = vadd.f32 %v11851_v32, %v11850_v27  ;;  %v11853_v36 = vpop.f32.mrb[34].mxu1  ;;  %12153 = vmatpush3.bf16.msra.mxu1 %v13279_v21  ;;  %v13295_v51 = vld [vmem:[%s13903_s21 + $0x1008] sm:$0xff]   ;;  %v13319_v21 = vld [vmem:[%s13903_s21 + $0x1038] sm:$0xff]   ;;  %v2435_v27 = vcombine.high %v231_v23, %v231_v23  ;;  %v13321_v28 = vld [vmem:[%s13903_s21 + $0x1140] sm:$0xff]  }
 0x23d   : > { %v11854_v38 = vpop.f32.mrb[35].mxu1  ;;  %12154 = vmatprep.subr.bf16.mxu1 %v13281_v24  ;;  %v13323_v33 = vld [vmem:[%s13903_s21 + $0x1100] sm:$0xff]  }
 0x23e   : > { %v14555_v40 = vadd.f32 %v11852_v35, %v8892_v34  ;;  %12133 = vmatpush3.bf16.msra.mxu0 %v13282_v26  ;;  %v2442_v26 = vrot.slane %v231_v23, %v13959_v42  ;;  %v14601_v32 = vrot.slane %v2435_v27, %v13959_v42  ;;  %v13324_v35 = vld [vmem:[%s13903_s21 + $0x1180] sm:$0xff]   ;;  %v13325_v38 = vld [vmem:[%s13903_s21 + $0x1148] sm:$0xff]  }
 0x23f   : > { %12134 = vmatprep.subr.bf16.mxu0 %v13284_v31  ;;  %v13322_v31 = vld [vmem:[%s13903_s21 + $0x11c0] sm:$0xff]   ;;  %v13361_v27 = vld [vmem:[%s13903_s21 + $0x1288] sm:$0xff]  }
 0x240   : > { %12155 = vmatpush3.bf16.msra.mxu1 %v13283_v30  ;;  %v2450_v29 = vcombine.high %v2442_v26, %v2442_v26  ;;  %v2458_v30 = vrot.slane %v2442_v26, %v13959_v42  ;;  %v2451_v36 = vcombine.high %v14601_v32, %v14601_v32  ;;  %v13360_v26 = vld [vmem:[%s13903_s21 + $0x1208] sm:$0xff]  }
 0x241   : > { %12156 = vmatprep.subr.bf16.mxu1 %v13285_v37 }
 0x242   : > { %12135 = vmatpush3.bf16.msra.mxu0 %v13286_v39  ;;  %v2472_v34 = vrot.slane %v2450_v29, %v13959_v42  ;;  %v2480_v37 = vcombine.high %v2458_v30, %v2458_v30  ;;  %v13363_v29 = vld [vmem:[%s13903_s21 + $0x12d0] sm:$0xff]  }
 0x243   : > { %12164 = vmatprep.subr.bf16.mxu0 %v13289_v44  ;;  %v13328_v44 = vld [vmem:[%s13903_s21 + $0x1188] sm:$0xff]  }
 0x244   : > { %12157 = vmatpush3.bf16.msra.mxu1 %v13287_v41  ;;  %v2482_v39 = vcombine.high %v2472_v34, %v2472_v34  ;;  %v2479_v41 = vrot.slane %v2451_v36, %v13959_v42  ;;  %v13370_v36 = vld [vmem:[%s13903_s21 + $0x1260] sm:$0xff]  }
 0x245   : > { %9450 = vmatmul.mubr.bf16.vlgmr.msra.gmra.mrb[60].mxu0 %v2416_v43  ;;  %12186 = vmatprep.subr.bf16.mxu1 %v13290_v45  ;;  %v13327_v43 = vld [vmem:[%s13903_s21 + $0x1108] sm:$0xff]  }
 0x246   : > { %12165 = vmatpush3.bf16.msra.mxu0 %v13291_v46  ;;  %9529 = vmatprep.mubr.bf16.mxu0 %v2472_v34  ;;  %v2483_v45 = vcombine.high %v2479_v41, %v2479_v41  ;;  %v13329_v46 = vld [vmem:[%s13903_s21 + $0x1150] sm:$0xff]   ;;  %v13368_v34 = vld [vmem:[%s13903_s21 + $0x1218] sm:$0xff]  }
 0x247   : > { %9490 = vmatmul.mubr.bf16.vlgmr.msra.gmra.mrb[60].mxu1 %v2432_v48  ;;  %12166 = vmatprep.subr.bf16.mxu0 %v13293_v49  ;;  %v13331_v48 = vld [vmem:[%s13903_s21 + $0x1110] sm:$0xff]  }
 0x248   : > { %12187 = vmatpush3.bf16.msra.mxu1 %v13292_v47  ;;  %9569 = vmatprep.mubr.bf16.mxu1 %v2482_v39  ;;  %v13330_v47 = vld [vmem:[%s13903_s21 + $0x11d0] sm:$0xff]   ;;  %v13373_v39 = vld [vmem:[%s13903_s21 + $0x12a0] sm:$0xff]  }
 0x249   : > { %12188 = vmatprep.subr.bf16.mxu1 %v13294_v50  ;;  %v13332_v49 = vld [vmem:[%s13903_s21 + $0x1190] sm:$0xff]   ;;  %v13333_v50 = vld [vmem:[%s13903_s21 + $0x1158] sm:$0xff]  }
 0x24a   : > { %12167 = vmatpush3.bf16.msra.mxu0 %v13295_v51  ;;  %v13334_v51 = vld [vmem:[%s13903_s21 + $0x11d8] sm:$0xff]  }
 0x24b   : > { %12168 = vmatprep.subr.bf16.mxu0 %v13297_v53  ;;  %v13336_v53 = vld [vmem:[%s13903_s21 + $0x1198] sm:$0xff]  }
 0x24c   : > { %12189 = vmatpush3.bf16.msra.mxu1 %v13296_v52  ;;  %v13335_v52 = vld [vmem:[%s13903_s21 + $0x1118] sm:$0xff]  }
 0x24d   : > { %12190 = vmatprep.subr.bf16.mxu1 %v13298_v54  ;;  %v13337_v54 = vld [vmem:[%s13903_s21 + $0x1160] sm:$0xff]  }
 0x24e   : > { %12169 = vmatpush3.bf16.msra.mxu0 %v13299_v56  ;;  %v13338_v56 = vld [vmem:[%s13903_s21 + $0x11e0] sm:$0xff]  }
 0x24f   : > { %12170 = vmatprep.subr.bf16.mxu0 %v13301_v58  ;;  %v13340_v58 = vld [vmem:[%s13903_s21 + $0x11a0] sm:$0xff]  }
 0x250   : > { %12191 = vmatpush3.bf16.msra.mxu1 %v13300_v57  ;;  %v13339_v57 = vld [vmem:[%s13903_s21 + $0x1120] sm:$0xff]  }
 0x251   : > { %12192 = vmatprep.subr.bf16.mxu1 %v13302_v59  ;;  %v13341_v59 = vld [vmem:[%s13903_s21 + $0x1168] sm:$0xff]  }
 0x252   : > { %12171 = vmatpush3.bf16.msra.mxu0 %v13303_v60  ;;  %v13342_v60 = vld [vmem:[%s13903_s21 + $0x11e8] sm:$0xff]  }
 0x253   : > { %12172 = vmatprep.subr.bf16.mxu0 %v13305_v61  ;;  %v13344_v61 = vld [vmem:[%s13903_s21 + $0x11a8] sm:$0xff]  }
 0x254   : > { %12193 = vmatpush3.bf16.msra.mxu1 %v13304_v55  ;;  %v13343_v55 = vld [vmem:[%s13903_s21 + $0x1128] sm:$0xff]  }
 0x255   : > { %12194 = vmatprep.subr.bf16.mxu1 %v13306_v62  ;;  %v13345_v62 = vld [vmem:[%s13903_s21 + $0x1170] sm:$0xff]  }
 0x256   : > { %12173 = vmatpush3.bf16.msra.mxu0 %v13307_v63 }
 0x257   : > { %12174 = vmatprep.subr.bf16.mxu0 %v13309_v1 }
 0x258   : > { %12195 = vmatpush3.bf16.msra.mxu1 %v13308_v0  ;;  %v11872_v6 = vpop.f32.mrb[36].mxu0  ;;  %v13346_v0 = vld [vmem:[%s13903_s21 + $0x11f0] sm:$0xff]  }
 0x259   : > { %v11873_v8 = vpop.f32.mrb[37].mxu0  ;;  %12196 = vmatprep.subr.bf16.mxu1 %v13310_v2  ;;  %v13347_v2 = vld [vmem:[%s13903_s21 + $0x1130] sm:$0xff]  }
 0x25a   : > { %v11894_v10 = vpop.f32.mrb[36].mxu1  ;;  %v11874_v11 = vadd.f32 %v11873_v8, %v11872_v6  ;;  %v11875_v12 = vpop.f32.mrb[38].mxu0  ;;  %12175 = vmatpush3.bf16.msra.mxu0 %v13311_v3  ;;  %v13348_v6 = vld [vmem:[%s13903_s21 + $0x11b0] sm:$0xff]  }
 0x25b   : > { %v11895_v15 = vpop.f32.mrb[37].mxu1  ;;  %v11876_v16 = vpop.f32.mrb[39].mxu0  ;;  %12176 = vmatprep.subr.bf16.mxu0 %v13313_v5 }
 0x25c   : > { %v8972_v18 = vadd.f32 %v11874_v11, %v14555_v40  ;;  %v11896_v19 = vadd.f32 %v11895_v15, %v11894_v10  ;;  %v11897_v20 = vpop.f32.mrb[38].mxu1  ;;  %12197 = vmatpush3.bf16.msra.mxu1 %v13312_v4  ;;  %v13326_v40 = vld [vmem:[%s13903_s21 + $0x11c8] sm:$0xff]   ;;  %v13351_v15 = vld [vmem:[%s13903_s21 + $0x1138] sm:$0xff]  }
 0x25d   : > { %v11898_v22 = vpop.f32.mrb[39].mxu1  ;;  %12198 = vmatprep.subr.bf16.mxu1 %v13314_v7  ;;  %v13349_v7 = vld [vmem:[%s13903_s21 + $0x1178] sm:$0xff]   ;;  %v13355_v20 = vld [vmem:[%s13903_s21 + $0x12c0] sm:$0xff]  }
 0x25e   : > { %v14593_v24 = vadd.f32 %v11896_v19, %v8972_v18  ;;  %12177 = vmatpush3.bf16.msra.mxu0 %v13315_v9  ;;  %v2465_v18 = vrot.slane %v14601_v32, %v13959_v42  ;;  %v13354_v19 = vld [vmem:[%s13903_s21 + $0x1240] sm:$0xff]   ;;  %v13366_v32 = vld [vmem:[%s13903_s21 + $0x1258] sm:$0xff]  }
 0x25f   : > { %12178 = vmatprep.subr.bf16.mxu0 %v13317_v14  ;;  %v13357_v22 = vld [vmem:[%s13903_s21 + $0x1280] sm:$0xff]  }
 0x260   : > { %12199 = vmatpush3.bf16.msra.mxu1 %v13316_v13  ;;  %v13350_v13 = vld [vmem:[%s13903_s21 + $0x11f8] sm:$0xff]   ;;  %v2481_v23 = vcombine.high %v2465_v18, %v2465_v18 }
 0x261   : > { %12200 = vmatprep.subr.bf16.mxu1 %v13318_v17  ;;  %v13352_v17 = vld [vmem:[%s13903_s21 + $0x11b8] sm:$0xff]  }
 0x262   : > { %12179 = vmatpush3.bf16.msra.mxu0 %v13319_v21  ;;  %v13356_v21 = vld [vmem:[%s13903_s21 + $0x1200] sm:$0xff]  }
 0x263   : > { %12208 = vmatprep.subr.bf16.mxu0 %v13321_v28  ;;  %v13362_v28 = vld [vmem:[%s13903_s21 + $0x1250] sm:$0xff]  }
 0x264   : > { %12201 = vmatpush3.bf16.msra.mxu1 %v13320_v25  ;;  %v13359_v25 = vld [vmem:[%s13903_s21 + $0x12c8] sm:$0xff]  }
 0x265   : > { %9530 = vmatmul.mubr.bf16.vlgmr.msra.gmra.mrb[64].mxu0 %v2458_v30  ;;  %12230 = vmatprep.subr.bf16.mxu1 %v13322_v31  ;;  %v13364_v30 = vld [vmem:[%s13903_s21 + $0x1210] sm:$0xff]  }
 0x266   : > { %12209 = vmatpush3.bf16.msra.mxu0 %v13323_v33  ;;  %9609 = vmatprep.mubr.bf16.mxu0 %v2479_v41  ;;  %v13365_v31 = vld [vmem:[%s13903_s21 + $0x1290] sm:$0xff]   ;;  %v13367_v33 = vld [vmem:[%s13903_s21 + $0x12d8] sm:$0xff]   ;;  %v13375_v41 = vld [vmem:[%s13903_s21 + $0x12e8] sm:$0xff]  }
 0x267   : > { %9570 = vmatmul.mubr.bf16.vlgmr.msra.gmra.mrb[64].mxu1 %v2480_v37  ;;  %12210 = vmatprep.subr.bf16.mxu0 %v13325_v38  ;;  %v13371_v37 = vld [vmem:[%s13903_s21 + $0x12e0] sm:$0xff]  }
 0x268   : > { %12231 = vmatpush3.bf16.msra.mxu1 %v13324_v35  ;;  %9649 = vmatprep.mubr.bf16.mxu1 %v2483_v45  ;;  %v13369_v35 = vld [vmem:[%s13903_s21 + $0x1298] sm:$0xff]   ;;  %v13372_v38 = vld [vmem:[%s13903_s21 + $0x1220] sm:$0xff]   ;;  %v13378_v45 = vld [vmem:[%s13903_s21 + $0x1270] sm:$0xff]  }
 0x269   : > { %12232 = vmatprep.subr.bf16.mxu1 %v13326_v40  ;;  %v13374_v40 = vld [vmem:[%s13903_s21 + $0x1268] sm:$0xff]  }
 0x26a   : > { %12211 = vmatpush3.bf16.msra.mxu0 %v13327_v43  ;;  %v13376_v43 = vld [vmem:[%s13903_s21 + $0x1228] sm:$0xff]  }
 0x26b   : > { %12212 = vmatprep.subr.bf16.mxu0 %v13329_v46 }
 0x26c   : > { %12233 = vmatpush3.bf16.msra.mxu1 %v13328_v44  ;;  %v13377_v44 = vld [vmem:[%s13903_s21 + $0x12a8] sm:$0xff]  }
 0x26d   : > { %12234 = vmatprep.subr.bf16.mxu1 %v13330_v47  ;;  %v13379_v47 = vld [vmem:[%s13903_s21 + $0x12f0] sm:$0xff]  }
 0x26e   : > { %12213 = vmatpush3.bf16.msra.mxu0 %v13331_v48 }
 0x26f   : > { %12214 = vmatprep.subr.bf16.mxu0 %v13333_v50 }
 0x270   : > { %12235 = vmatpush3.bf16.msra.mxu1 %v13332_v49  ;;  %v13380_v49 = vld [vmem:[%s13903_s21 + $0x1230] sm:$0xff]  }
 0x271   : > { %12236 = vmatprep.subr.bf16.mxu1 %v13334_v51 }
 0x272   : > { %12215 = vmatpush3.bf16.msra.mxu0 %v13335_v52 }
 0x273   : > { %12216 = vmatprep.subr.bf16.mxu0 %v13337_v54  ;;  %v13382_v54 = vld [vmem:[%s13903_s21 + $0x1278] sm:$0xff]  }
 0x274   : > { %12237 = vmatpush3.bf16.msra.mxu1 %v13336_v53  ;;  %v13381_v53 = vld [vmem:[%s13903_s21 + $0x12b0] sm:$0xff]  }
 0x275   : > { %12238 = vmatprep.subr.bf16.mxu1 %v13338_v56 }
 0x276   : > { %12217 = vmatpush3.bf16.msra.mxu0 %v13339_v57 }
 0x277   : > { %12218 = vmatprep.subr.bf16.mxu0 %v13341_v59 }
 0x278   : > { %12239 = vmatpush3.bf16.msra.mxu1 %v13340_v58  ;;  %v11916_v63 = vpop.f32.mrb[40].mxu0 }
 0x279   : > { %v11917_v1 = vpop.f32.mrb[41].mxu0  ;;  %12240 = vmatprep.subr.bf16.mxu1 %v13342_v60 }
 0x27a   : > { %v11938_v3 = vpop.f32.mrb[40].mxu1  ;;  %v11918_v4 = vadd.f32 %v11917_v1, %v11916_v63  ;;  %v11919_v5 = vpop.f32.mrb[42].mxu0  ;;  %12219 = vmatpush3.bf16.msra.mxu0 %v13343_v55  ;;  %v13383_v55 = vld [vmem:[%s13903_s21 + $0x12f8] sm:$0xff]  }
 0x27b   : > { %v11939_v8 = vpop.f32.mrb[41].mxu1  ;;  %v11920_v9 = vpop.f32.mrb[43].mxu0  ;;  %12220 = vmatprep.subr.bf16.mxu0 %v13345_v62  ;;  %v13384_v62 = vld [vmem:[%s13903_s21 + $0x1238] sm:$0xff]  }
 0x27c   : > { %v9052_v10 = vadd.f32 %v11918_v4, %v14593_v24  ;;  %v11940_v11 = vadd.f32 %v11939_v8, %v11938_v3  ;;  %v11941_v12 = vpop.f32.mrb[42].mxu1  ;;  %12241 = vmatpush3.bf16.msra.mxu1 %v13344_v61  ;;  %v13358_v24 = vld [vmem:[%s13903_s21 + $0x1248] sm:$0xff]   ;;  %v13385_v4 = vld [vmem:[%s13903_s21 + $0x12b8] sm:$0xff]  }
 0x27d   : > { %v11942_v14 = vpop.f32.mrb[43].mxu1  ;;  %12242 = vmatprep.subr.bf16.mxu1 %v13346_v0  ;;  %v232_v0 = vld [vmem:[%s13921_s27 + $0x48] sm:$0xff] }
 0x27e   : > { %v14637_v16 = vadd.f32 %v11940_v11, %v9052_v10  ;;  %12221 = vmatpush3.bf16.msra.mxu0 %v13347_v2  ;;  %v2491_v1 = vrot.slane %v232_v0, %v13959_v42  ;;  %v13386_v2 = vld [vmem:[%s13903_s21 + $0x1340] sm:$0xff]   ;;  %v2484_v3 = vcombine.high %v232_v0, %v232_v0 }
 0x27f   : > { %12222 = vmatprep.subr.bf16.mxu0 %v13349_v7  ;;  %v13387_v7 = vld [vmem:[%s13903_s21 + $0x13c0] sm:$0xff]  }
 0x280   : > { %12243 = vmatpush3.bf16.msra.mxu1 %v13348_v6  ;;  %v2499_v5 = vcombine.high %v2491_v1, %v2491_v1  ;;  %v2507_v6 = vrot.slane %v2491_v1, %v13959_v42  ;;  %v14683_v8 = vrot.slane %v2484_v3, %v13959_v42  ;;  %v13388_v10 = vld [vmem:[%s13903_s21 + $0x1300] sm:$0xff]   ;;  %v13424_v1 = vld [vmem:[%s13903_s21 + $0x14c8] sm:$0xff]   ;;  %v13427_v3 = vld [vmem:[%s13903_s21 + $0x1450] sm:$0xff]  }
 0x281   : > { %12244 = vmatprep.subr.bf16.mxu1 %v13350_v13  ;;  %v13390_v13 = vld [vmem:[%s13903_s21 + $0x1348] sm:$0xff]   ;;  %v13422_v0 = vld [vmem:[%s13903_s21 + $0x1480] sm:$0xff]  }
 0x282   : > { %12223 = vmatpush3.bf16.msra.mxu0 %v13351_v15  ;;  %v2521_v9 = vrot.slane %v2499_v5, %v13959_v42  ;;  %v2500_v11 = vcombine.high %v14683_v8, %v14683_v8  ;;  %v2529_v12 = vcombine.high %v2507_v6, %v2507_v6  ;;  %v13389_v15 = vld [vmem:[%s13903_s21 + $0x1380] sm:$0xff]   ;;  %v13428_v5 = vld [vmem:[%s13903_s21 + $0x14d0] sm:$0xff]  }
 0x283   : > { %12252 = vmatprep.subr.bf16.mxu0 %v13354_v19 }
 0x284   : > { %12245 = vmatpush3.bf16.msra.mxu1 %v13352_v17  ;;  %v2531_v14 = vcombine.high %v2521_v9, %v2521_v9  ;;  %v13391_v17 = vld [vmem:[%s13903_s21 + $0x13c8] sm:$0xff]  }
 0x285   : > { %9610 = vmatmul.mubr.bf16.vlgmr.msra.gmra.mrb[68].mxu0 %v2465_v18  ;;  %12274 = vmatprep.subr.bf16.mxu1 %v13355_v20  ;;  %v13392_v18 = vld [vmem:[%s13903_s21 + $0x1308] sm:$0xff]   ;;  %v13394_v20 = vld [vmem:[%s13903_s21 + $0x1350] sm:$0xff]  }
 0x286   : > { %12253 = vmatpush3.bf16.msra.mxu0 %v13356_v21  ;;  %9689 = vmatprep.mubr.bf16.mxu0 %v2521_v9  ;;  %v13393_v21 = vld [vmem:[%s13903_s21 + $0x1388] sm:$0xff]   ;;  %v13432_v9 = vld [vmem:[%s13903_s21 + $0x14d8] sm:$0xff]  }
 0x287   : > { %9650 = vmatmul.mubr.bf16.vlgmr.msra.gmra.mrb[68].mxu1 %v2481_v23  ;;  %12254 = vmatprep.subr.bf16.mxu0 %v13358_v24  ;;  %v13396_v23 = vld [vmem:[%s13903_s21 + $0x1310] sm:$0xff]   ;;  %v13398_v24 = vld [vmem:[%s13903_s21 + $0x1358] sm:$0xff]  }
 0x288   : > { %12275 = vmatpush3.bf16.msra.mxu1 %v13357_v22  ;;  %9729 = vmatprep.mubr.bf16.mxu1 %v2531_v14  ;;  %v13395_v22 = vld [vmem:[%s13903_s21 + $0x13d0] sm:$0xff]   ;;  %v13437_v14 = vld [vmem:[%s13903_s21 + $0x1420] sm:$0xff]  }
 0x289   : > { %12276 = vmatprep.subr.bf16.mxu1 %v13359_v25  ;;  %v13397_v25 = vld [vmem:[%s13903_s21 + $0x1390] sm:$0xff]  }
 0x28a   : > { %12255 = vmatpush3.bf16.msra.mxu0 %v13360_v26  ;;  %v13399_v26 = vld [vmem:[%s13903_s21 + $0x13d8] sm:$0xff]  }
 0x28b   : > { %12256 = vmatprep.subr.bf16.mxu0 %v13362_v28  ;;  %v13402_v28 = vld [vmem:[%s13903_s21 + $0x1360] sm:$0xff]  }
 0x28c   : > { %12277 = vmatpush3.bf16.msra.mxu1 %v13361_v27  ;;  %v13400_v27 = vld [vmem:[%s13903_s21 + $0x1318] sm:$0xff]  }
 0x28d   : > { %12278 = vmatprep.subr.bf16.mxu1 %v13363_v29  ;;  %v13401_v29 = vld [vmem:[%s13903_s21 + $0x1398] sm:$0xff]  }
 0x28e   : > { %12257 = vmatpush3.bf16.msra.mxu0 %v13364_v30  ;;  %v13403_v30 = vld [vmem:[%s13903_s21 + $0x13e0] sm:$0xff]  }
 0x28f   : > { %12258 = vmatprep.subr.bf16.mxu0 %v13366_v32  ;;  %v13406_v32 = vld [vmem:[%s13903_s21 + $0x1368] sm:$0xff]  }
 0x290   : > { %12279 = vmatpush3.bf16.msra.mxu1 %v13365_v31  ;;  %v13404_v31 = vld [vmem:[%s13903_s21 + $0x1320] sm:$0xff]  }
 0x291   : > { %12280 = vmatprep.subr.bf16.mxu1 %v13367_v33  ;;  %v13405_v33 = vld [vmem:[%s13903_s21 + $0x13a0] sm:$0xff]  }
 0x292   : > { %12259 = vmatpush3.bf16.msra.mxu0 %v13368_v34  ;;  %v13407_v34 = vld [vmem:[%s13903_s21 + $0x13e8] sm:$0xff]  }
 0x293   : > { %12260 = vmatprep.subr.bf16.mxu0 %v13370_v36 }
 0x294   : > { %12281 = vmatpush3.bf16.msra.mxu1 %v13369_v35  ;;  %v13408_v35 = vld [vmem:[%s13903_s21 + $0x1328] sm:$0xff]  }
 0x295   : > { %12282 = vmatprep.subr.bf16.mxu1 %v13371_v37  ;;  %v13410_v37 = vld [vmem:[%s13903_s21 + $0x1370] sm:$0xff]  }
 0x296   : > { %12261 = vmatpush3.bf16.msra.mxu0 %v13372_v38 }
 0x297   : > { %12262 = vmatprep.subr.bf16.mxu0 %v13374_v40 }
 0x298   : > { %12283 = vmatpush3.bf16.msra.mxu1 %v13373_v39  ;;  %v11960_v46 = vpop.f32.mrb[44].mxu0  ;;  %v13409_v39 = vld [vmem:[%s13903_s21 + $0x13a8] sm:$0xff]  }
 0x299   : > { %v11961_v48 = vpop.f32.mrb[45].mxu0  ;;  %12284 = vmatprep.subr.bf16.mxu1 %v13375_v41 }
 0x29a   : > { %v11982_v50 = vpop.f32.mrb[44].mxu1  ;;  %v11962_v51 = vadd.f32 %v11961_v48, %v11960_v46  ;;  %v11963_v52 = vpop.f32.mrb[46].mxu0  ;;  %12263 = vmatpush3.bf16.msra.mxu0 %v13376_v43 }
 0x29b   : > { %v11983_v56 = vpop.f32.mrb[45].mxu1  ;;  %v11964_v57 = vpop.f32.mrb[47].mxu0  ;;  %12264 = vmatprep.subr.bf16.mxu0 %v13378_v45  ;;  %v13412_v45 = vld [vmem:[%s13903_s21 + $0x1330] sm:$0xff]  }
 0x29c   : > { %v9132_v58 = vadd.f32 %v11962_v51, %v14637_v16  ;;  %v11984_v59 = vadd.f32 %v11983_v56, %v11982_v50  ;;  %v11985_v60 = vpop.f32.mrb[46].mxu1  ;;  %12285 = vmatpush3.bf16.msra.mxu1 %v13377_v44  ;;  %v2528_v16 = vrot.slane %v2500_v11, %v13959_v42  ;;  %v13411_v44 = vld [vmem:[%s13903_s21 + $0x13f0] sm:$0xff]   ;;  %v13414_v51 = vld [vmem:[%s13903_s21 + $0x1378] sm:$0xff]   ;;  %v13435_v11 = vld [vmem:[%s13903_s21 + $0x1460] sm:$0xff]  }
 0x29d   : > { %v11986_v61 = vpop.f32.mrb[47].mxu1  ;;  %12286 = vmatprep.subr.bf16.mxu1 %v13379_v47  ;;  %v13415_v56 = vld [vmem:[%s13903_s21 + $0x13f8] sm:$0xff]  }
 0x29e   : > { %v14674_v63 = vadd.f32 %v11984_v59, %v9132_v58  ;;  %12265 = vmatpush3.bf16.msra.mxu0 %v13380_v49  ;;  %v2532_v19 = vcombine.high %v2528_v16, %v2528_v16  ;;  %v13416_v57 = vld [vmem:[%s13903_s21 + $0x1338] sm:$0xff]   ;;  %v2514_v58 = vrot.slane %v14683_v8, %v13959_v42  ;;  %v13419_v59 = vld [vmem:[%s13903_s21 + $0x1440] sm:$0xff]   ;;  %v13430_v8 = vld [vmem:[%s13903_s21 + $0x1490] sm:$0xff]  }
 0x29f   : > { %12266 = vmatprep.subr.bf16.mxu0 %v13382_v54  ;;  %v13417_v60 = vld [vmem:[%s13903_s21 + $0x13b8] sm:$0xff]   ;;  %v13421_v61 = vld [vmem:[%s13903_s21 + $0x1400] sm:$0xff]  }
 0x2a0   : > { %12287 = vmatpush3.bf16.msra.mxu1 %v13381_v53  ;;  %v13413_v53 = vld [vmem:[%s13903_s21 + $0x13b0] sm:$0xff]  }
 0x2a1   : > { %12288 = vmatprep.subr.bf16.mxu1 %v13383_v55  ;;  %v13420_v55 = vld [vmem:[%s13903_s21 + $0x14c0] sm:$0xff]  }
 0x2a2   : > { %12267 = vmatpush3.bf16.msra.mxu0 %v13384_v62  ;;  %v2530_v62 = vcombine.high %v2514_v58, %v2514_v58 }
 0x2a3   : > { %12296 = vmatprep.subr.bf16.mxu0 %v13386_v2  ;;  %v13425_v2 = vld [vmem:[%s13903_s21 + $0x1408] sm:$0xff]  }
 0x2a4   : > { %12289 = vmatpush3.bf16.msra.mxu1 %v13385_v4  ;;  %v13426_v4 = vld [vmem:[%s13903_s21 + $0x1488] sm:$0xff]  }
 0x2a5   : > { %12318 = vmatprep.subr.bf16.mxu1 %v13387_v7  ;;  %9690 = vmatmul.mubr.bf16.vlgmr.msra.gmra.mrb[72].mxu0 %v2507_v6  ;;  %v13429_v6 = vld [vmem:[%s13903_s21 + $0x1410] sm:$0xff]   ;;  %v13431_v7 = vld [vmem:[%s13903_s21 + $0x1458] sm:$0xff]  }
 0x2a6   : > { %12297 = vmatpush3.bf16.msra.mxu0 %v13388_v10  ;;  %9769 = vmatprep.mubr.bf16.mxu0 %v2528_v16  ;;  %v13433_v10 = vld [vmem:[%s13903_s21 + $0x1418] sm:$0xff]   ;;  %v13438_v16 = vld [vmem:[%s13903_s21 + $0x14a0] sm:$0xff]  }
 0x2a7   : > { %9730 = vmatmul.mubr.bf16.vlgmr.msra.gmra.mrb[72].mxu1 %v2529_v12  ;;  %12298 = vmatprep.subr.bf16.mxu0 %v13390_v13  ;;  %v13434_v12 = vld [vmem:[%s13903_s21 + $0x1498] sm:$0xff]   ;;  %v13436_v13 = vld [vmem:[%s13903_s21 + $0x14e0] sm:$0xff]  }
 0x2a8   : > { %12319 = vmatpush3.bf16.msra.mxu1 %v13389_v15  ;;  %9809 = vmatprep.mubr.bf16.mxu1 %v2532_v19  ;;  %v13439_v15 = vld [vmem:[%s13903_s21 + $0x1468] sm:$0xff]  }
 0x2a9   : > { %12320 = vmatprep.subr.bf16.mxu1 %v13391_v17  ;;  %v13440_v17 = vld [vmem:[%s13903_s21 + $0x14e8] sm:$0xff]  }
 0x2aa   : > { %12299 = vmatpush3.bf16.msra.mxu0 %v13392_v18  ;;  %v13441_v18 = vld [vmem:[%s13903_s21 + $0x1428] sm:$0xff]  }
 0x2ab   : > { %12300 = vmatprep.subr.bf16.mxu0 %v13394_v20  ;;  %v13443_v20 = vld [vmem:[%s13903_s21 + $0x1470] sm:$0xff]  }
 0x2ac   : > { %12321 = vmatpush3.bf16.msra.mxu1 %v13393_v21 }
 0x2ad   : > { %12322 = vmatprep.subr.bf16.mxu1 %v13395_v22  ;;  %v13442_v22 = vld [vmem:[%s13903_s21 + $0x14a8] sm:$0xff]  }
 0x2ae   : > { %12301 = vmatpush3.bf16.msra.mxu0 %v13396_v23 }
 0x2af   : > { %12302 = vmatprep.subr.bf16.mxu0 %v13398_v24 }
 0x2b0   : > { %12323 = vmatpush3.bf16.msra.mxu1 %v13397_v25 }
 0x2b1   : > { %12324 = vmatprep.subr.bf16.mxu1 %v13399_v26  ;;  %v13444_v26 = vld [vmem:[%s13903_s21 + $0x14f0] sm:$0xff]  }
 0x2b2   : > { %12303 = vmatpush3.bf16.msra.mxu0 %v13400_v27  ;;  %v13445_v27 = vld [vmem:[%s13903_s21 + $0x1430] sm:$0xff]  }
 0x2b3   : > { %12304 = vmatprep.subr.bf16.mxu0 %v13402_v28 }
 0x2b4   : > { %12325 = vmatpush3.bf16.msra.mxu1 %v13401_v29 }
 0x2b5   : > { %12326 = vmatprep.subr.bf16.mxu1 %v13403_v30  ;;  %v13446_v30 = vld [vmem:[%s13903_s21 + $0x14b0] sm:$0xff]  }
 0x2b6   : > { %12305 = vmatpush3.bf16.msra.mxu0 %v13404_v31 }
 0x2b7   : > { %12306 = vmatprep.subr.bf16.mxu0 %v13406_v32 }
 0x2b8   : > { %v12004_v36 = vpop.f32.mrb[48].mxu0  ;;  %12327 = vmatpush3.bf16.msra.mxu1 %v13405_v33 }
 0x2b9   : > { %v12005_v38 = vpop.f32.mrb[49].mxu0  ;;  %12328 = vmatprep.subr.bf16.mxu1 %v13407_v34  ;;  %v13447_v34 = vld [vmem:[%s13903_s21 + $0x1478] sm:$0xff]  }
 0x2ba   : > { %v12026_v40 = vpop.f32.mrb[48].mxu1  ;;  %v12006_v41 = vadd.f32 %v12005_v38, %v12004_v36  ;;  %v12007_v43 = vpop.f32.mrb[50].mxu0  ;;  %12307 = vmatpush3.bf16.msra.mxu0 %v13408_v35  ;;  %v13448_v36 = vld [vmem:[%s13903_s21 + $0x14f8] sm:$0xff]  }
 0x2bb   : > { %v12027_v46 = vpop.f32.mrb[49].mxu1  ;;  %v12008_v47 = vpop.f32.mrb[51].mxu0  ;;  %12308 = vmatprep.subr.bf16.mxu0 %v13410_v37  ;;  %v13449_v38 = vld [vmem:[%s13903_s21 + $0x1438] sm:$0xff]  }
 0x2bc   : > { %v9212_v48 = vadd.f32 %v12006_v41, %v14674_v63  ;;  %v12028_v49 = vadd.f32 %v12027_v46, %v12026_v40  ;;  %v12029_v50 = vpop.f32.mrb[50].mxu1  ;;  %12329 = vmatpush3.bf16.msra.mxu1 %v13409_v39  ;;  %v13423_v63 = vld [vmem:[%s13903_s21 + $0x1448] sm:$0xff]   ;;  %v13451_v41 = vld [vmem:[%s13903_s21 + $0x1540] sm:$0xff]  }
 0x2bd   : > { %v12030_v52 = vpop.f32.mrb[51].mxu1  ;;  %12330 = vmatprep.subr.bf16.mxu1 %v13411_v44  ;;  %v233_v39 = vld [vmem:[%s13921_s27 + $0x50] sm:$0xff]  ;;  %v13450_v44 = vld [vmem:[%s13903_s21 + $0x14b8] sm:$0xff]   ;;  %v13452_v47 = vld [vmem:[%s13903_s21 + $0x15c0] sm:$0xff]  }
 0x2be   : > { %v14717_v54 = vadd.f32 %v12028_v49, %v9212_v48  ;;  %12309 = vmatpush3.bf16.msra.mxu0 %v13412_v45  ;;  %v2540_v40 = vrot.slane %v233_v39, %v13959_v42  ;;  %v2533_v43 = vcombine.high %v233_v39, %v233_v39  ;;  %v13453_v49 = vld [vmem:[%s13903_s21 + $0x1500] sm:$0xff]   ;;  %v13488_v39 = vld [vmem:[%s13903_s21 + $0x1648] sm:$0xff]  }
 0x2bf   : > { %12310 = vmatprep.subr.bf16.mxu0 %v13414_v51  ;;  %v13454_v51 = vld [vmem:[%s13903_s21 + $0x1580] sm:$0xff]  }
 0x2c0   : > { %12331 = vmatpush3.bf16.msra.mxu1 %v13413_v53  ;;  %v2548_v45 = vcombine.high %v2540_v40, %v2540_v40  ;;  %v2556_v46 = vrot.slane %v2540_v40, %v13959_v42  ;;  %v14765_v48 = vrot.slane %v2533_v43, %v13959_v42  ;;  %v13489_v40 = vld [vmem:[%s13903_s21 + $0x16c8] sm:$0xff]  }
 0x2c1   : > { %12332 = vmatprep.subr.bf16.mxu1 %v13415_v56  ;;  %v13491_v43 = vld [vmem:[%s13903_s21 + $0x1688] sm:$0xff]  }
 0x2c2   : > { %12311 = vmatpush3.bf16.msra.mxu0 %v13416_v57  ;;  %v2570_v50 = vrot.slane %v2548_v45, %v13959_v42  ;;  %v2549_v52 = vcombine.high %v14765_v48, %v14765_v48  ;;  %v2578_v53 = vcombine.high %v2556_v46, %v2556_v46  ;;  %v13456_v57 = vld [vmem:[%s13903_s21 + $0x15c8] sm:$0xff]   ;;  %v13493_v45 = vld [vmem:[%s13903_s21 + $0x16d0] sm:$0xff]  }
 0x2c3   : > { %12340 = vmatprep.subr.bf16.mxu0 %v13419_v59  ;;  %v13457_v59 = vld [vmem:[%s13903_s21 + $0x1508] sm:$0xff]  }
 0x2c4   : > { %12333 = vmatpush3.bf16.msra.mxu1 %v13417_v60  ;;  %v2580_v56 = vcombine.high %v2570_v50, %v2570_v50  ;;  %v13458_v60 = vld [vmem:[%s13903_s21 + $0x1588] sm:$0xff]  }
 0x2c5   : > { %9770 = vmatmul.mubr.bf16.vlgmr.msra.gmra.mrb[76].mxu0 %v2514_v58  ;;  %12362 = vmatprep.subr.bf16.mxu1 %v13420_v55  ;;  %v2577_v58 = vrot.slane %v2549_v52, %v13959_v42  ;;  %v13500_v52 = vld [vmem:[%s13903_s21 + $0x1660] sm:$0xff]  }
 0x2c6   : > { %12341 = vmatpush3.bf16.msra.mxu0 %v13421_v61  ;;  %9849 = vmatprep.mubr.bf16.mxu0 %v2570_v50  ;;  %v13459_v61 = vld [vmem:[%s13903_s21 + $0x1550] sm:$0xff]   ;;  %v13498_v50 = vld [vmem:[%s13903_s21 + $0x1618] sm:$0xff]  }
 0x2c7   : > { %9810 = vmatmul.mubr.bf16.vlgmr.msra.gmra.mrb[76].mxu1 %v2530_v62  ;;  %12342 = vmatprep.subr.bf16.mxu0 %v13423_v63  ;;  %v2581_v55 = vcombine.high %v2577_v58, %v2577_v58  ;;  %v13460_v62 = vld [vmem:[%s13903_s21 + $0x15d0] sm:$0xff]  }
 0x2c8   : > { %12363 = vmatpush3.bf16.msra.mxu1 %v13422_v0  ;;  %9889 = vmatprep.mubr.bf16.mxu1 %v2580_v56  ;;  %v13461_v63 = vld [vmem:[%s13903_s21 + $0x1510] sm:$0xff]   ;;  %v13503_v56 = vld [vmem:[%s13903_s21 + $0x16a0] sm:$0xff]  }
 0x2c9   : > { %12364 = vmatprep.subr.bf16.mxu1 %v13424_v1  ;;  %v13462_v0 = vld [vmem:[%s13903_s21 + $0x1590] sm:$0xff]   ;;  %v13463_v1 = vld [vmem:[%s13903_s21 + $0x1558] sm:$0xff]  }
 0x2ca   : > { %12343 = vmatpush3.bf16.msra.mxu0 %v13425_v2  ;;  %v13464_v2 = vld [vmem:[%s13903_s21 + $0x15d8] sm:$0xff]  }
 0x2cb   : > { %12344 = vmatprep.subr.bf16.mxu0 %v13427_v3  ;;  %v13465_v3 = vld [vmem:[%s13903_s21 + $0x1518] sm:$0xff]  }
 0x2cc   : > { %12365 = vmatpush3.bf16.msra.mxu1 %v13426_v4  ;;  %v13466_v4 = vld [vmem:[%s13903_s21 + $0x1598] sm:$0xff]  }
 0x2cd   : > { %12366 = vmatprep.subr.bf16.mxu1 %v13428_v5  ;;  %v13467_v5 = vld [vmem:[%s13903_s21 + $0x1560] sm:$0xff]  }
 0x2ce   : > { %12345 = vmatpush3.bf16.msra.mxu0 %v13429_v6  ;;  %v13468_v6 = vld [vmem:[%s13903_s21 + $0x15e0] sm:$0xff]  }
 0x2cf   : > { %12346 = vmatprep.subr.bf16.mxu0 %v13431_v7  ;;  %v13469_v7 = vld [vmem:[%s13903_s21 + $0x1520] sm:$0xff]  }
 0x2d0   : > { %12367 = vmatpush3.bf16.msra.mxu1 %v13430_v8  ;;  %v13470_v8 = vld [vmem:[%s13903_s21 + $0x15a0] sm:$0xff]  }
 0x2d1   : > { %12368 = vmatprep.subr.bf16.mxu1 %v13432_v9  ;;  %v13471_v9 = vld [vmem:[%s13903_s21 + $0x1568] sm:$0xff]  }
 0x2d2   : > { %12347 = vmatpush3.bf16.msra.mxu0 %v13433_v10  ;;  %v13472_v10 = vld [vmem:[%s13903_s21 + $0x15e8] sm:$0xff]  }
 0x2d3   : > { %12348 = vmatprep.subr.bf16.mxu0 %v13435_v11  ;;  %v13473_v11 = vld [vmem:[%s13903_s21 + $0x1528] sm:$0xff]  }
 0x2d4   : > { %12369 = vmatpush3.bf16.msra.mxu1 %v13434_v12 }
 0x2d5   : > { %12370 = vmatprep.subr.bf16.mxu1 %v13436_v13  ;;  %v13474_v13 = vld [vmem:[%s13903_s21 + $0x15a8] sm:$0xff]  }
 0x2d6   : > { %12349 = vmatpush3.bf16.msra.mxu0 %v13437_v14 }
 0x2d7   : > { %12350 = vmatprep.subr.bf16.mxu0 %v13439_v15  ;;  %v13475_v15 = vld [vmem:[%s13903_s21 + $0x1570] sm:$0xff]  }
 0x2d8   : > { %v12048_v19 = vpop.f32.mrb[52].mxu0  ;;  %12371 = vmatpush3.bf16.msra.mxu1 %v13438_v16 }
 0x2d9   : > { %v12049_v21 = vpop.f32.mrb[53].mxu0  ;;  %12372 = vmatprep.subr.bf16.mxu1 %v13440_v17 }
 0x2da   : > { %v12070_v23 = vpop.f32.mrb[52].mxu1  ;;  %v12050_v24 = vadd.f32 %v12049_v21, %v12048_v19  ;;  %v12051_v25 = vpop.f32.mrb[54].mxu0  ;;  %12351 = vmatpush3.bf16.msra.mxu0 %v13441_v18  ;;  %v13476_v19 = vld [vmem:[%s13903_s21 + $0x15f0] sm:$0xff]  }
 0x2db   : > { %v12071_v28 = vpop.f32.mrb[53].mxu1  ;;  %v12052_v29 = vpop.f32.mrb[55].mxu0  ;;  %12352 = vmatprep.subr.bf16.mxu0 %v13443_v20  ;;  %v13477_v20 = vld [vmem:[%s13903_s21 + $0x1530] sm:$0xff]  }
 0x2dc   : > { %v9292_v31 = vadd.f32 %v12050_v24, %v14717_v54  ;;  %v12072_v32 = vadd.f32 %v12071_v28, %v12070_v23  ;;  %v12073_v33 = vpop.f32.mrb[54].mxu1  ;;  %12373 = vmatpush3.bf16.msra.mxu1 %v13442_v22  ;;  %v13455_v54 = vld [vmem:[%s13903_s21 + $0x1548] sm:$0xff]   ;;  %v13479_v28 = vld [vmem:[%s13903_s21 + $0x1578] sm:$0xff]  }
 0x2dd   : > { %v12074_v35 = vpop.f32.mrb[55].mxu1  ;;  %12374 = vmatprep.subr.bf16.mxu1 %v13444_v26  ;;  %v13478_v26 = vld [vmem:[%s13903_s21 + $0x15b0] sm:$0xff]   ;;  %v2563_v33 = vrot.slane %v14765_v48, %v13959_v42  ;;  %v13496_v48 = vld [vmem:[%s13903_s21 + $0x1658] sm:$0xff]  }
 0x2de   : > { %v14755_v37 = vadd.f32 %v12072_v32, %v9292_v31  ;;  %12353 = vmatpush3.bf16.msra.mxu0 %v13445_v27  ;;  %v13481_v31 = vld [vmem:[%s13903_s21 + $0x1538] sm:$0xff]   ;;  %v13485_v35 = vld [vmem:[%s13903_s21 + $0x16c0] sm:$0xff]  }
 0x2df   : > { %12354 = vmatprep.subr.bf16.mxu0 %v13447_v34  ;;  %v13482_v32 = vld [vmem:[%s13903_s21 + $0x15b8] sm:$0xff]   ;;  %v13484_v34 = vld [vmem:[%s13903_s21 + $0x1640] sm:$0xff]  }
 0x2e0   : > { %12375 = vmatpush3.bf16.msra.mxu1 %v13446_v30  ;;  %v13480_v30 = vld [vmem:[%s13903_s21 + $0x15f8] sm:$0xff]  }
 0x2e1   : > { %12376 = vmatprep.subr.bf16.mxu1 %v13448_v36  ;;  %v13486_v36 = vld [vmem:[%s13903_s21 + $0x1600] sm:$0xff]  }
 0x2e2   : > { %12355 = vmatpush3.bf16.msra.mxu0 %v13449_v38  ;;  %v2579_v38 = vcombine.high %v2563_v33, %v2563_v33 }
 0x2e3   : > { %12384 = vmatprep.subr.bf16.mxu0 %v13451_v41  ;;  %v13490_v41 = vld [vmem:[%s13903_s21 + $0x1608] sm:$0xff]  }
 0x2e4   : > { %12377 = vmatpush3.bf16.msra.mxu1 %v13450_v44  ;;  %v13492_v44 = vld [vmem:[%s13903_s21 + $0x1650] sm:$0xff]  }
 0x2e5   : > { %12406 = vmatprep.subr.bf16.mxu1 %v13452_v47  ;;  %9850 = vmatmul.mubr.bf16.vlgmr.msra.gmra.mrb[80].mxu0 %v2556_v46  ;;  %v13494_v46 = vld [vmem:[%s13903_s21 + $0x1610] sm:$0xff]  }
 0x2e6   : > { %12385 = vmatpush3.bf16.msra.mxu0 %v13453_v49  ;;  %9929 = vmatprep.mubr.bf16.mxu0 %v2577_v58  ;;  %v13495_v47 = vld [vmem:[%s13903_s21 + $0x1690] sm:$0xff]   ;;  %v13497_v49 = vld [vmem:[%s13903_s21 + $0x16d8] sm:$0xff]   ;;  %v13505_v58 = vld [vmem:[%s13903_s21 + $0x16e8] sm:$0xff]  }
 0x2e7   : > { %9890 = vmatmul.mubr.bf16.vlgmr.msra.gmra.mrb[80].mxu1 %v2578_v53  ;;  %12386 = vmatprep.subr.bf16.mxu0 %v13455_v54  ;;  %v13501_v53 = vld [vmem:[%s13903_s21 + $0x16e0] sm:$0xff]  }
 0x2e8   : > { %12407 = vmatpush3.bf16.msra.mxu1 %v13454_v51  ;;  %9969 = vmatprep.mubr.bf16.mxu1 %v2581_v55  ;;  %v13499_v51 = vld [vmem:[%s13903_s21 + $0x1698] sm:$0xff]   ;;  %v13502_v54 = vld [vmem:[%s13903_s21 + $0x1620] sm:$0xff]   ;;  %v13507_v55 = vld [vmem:[%s13903_s21 + $0x16a8] sm:$0xff]  }
 0x2e9   : > { %12408 = vmatprep.subr.bf16.mxu1 %v13456_v57  ;;  %v13504_v57 = vld [vmem:[%s13903_s21 + $0x1668] sm:$0xff]  }
 0x2ea   : > { %12387 = vmatpush3.bf16.msra.mxu0 %v13457_v59  ;;  %v13506_v59 = vld [vmem:[%s13903_s21 + $0x1628] sm:$0xff]  }
 0x2eb   : > { %12388 = vmatprep.subr.bf16.mxu0 %v13459_v61 }
 0x2ec   : > { %12409 = vmatpush3.bf16.msra.mxu1 %v13458_v60 }
 0x2ed   : > { %12410 = vmatprep.subr.bf16.mxu1 %v13460_v62  ;;  %v13508_v62 = vld [vmem:[%s13903_s21 + $0x1670] sm:$0xff]  }
 0x2ee   : > { %12389 = vmatpush3.bf16.msra.mxu0 %v13461_v63 }
 0x2ef   : > { %12390 = vmatprep.subr.bf16.mxu0 %v13463_v1 }
 0x2f0   : > { %12411 = vmatpush3.bf16.msra.mxu1 %v13462_v0 }
 0x2f1   : > { %12412 = vmatprep.subr.bf16.mxu1 %v13464_v2  ;;  %v13509_v2 = vld [vmem:[%s13903_s21 + $0x16f0] sm:$0xff]  }
 0x2f2   : > { %12391 = vmatpush3.bf16.msra.mxu0 %v13465_v3  ;;  %v13510_v3 = vld [vmem:[%s13903_s21 + $0x1630] sm:$0xff]  }
 0x2f3   : > { %12392 = vmatprep.subr.bf16.mxu0 %v13467_v5 }
 0x2f4   : > { %12413 = vmatpush3.bf16.msra.mxu1 %v13466_v4 }
 0x2f5   : > { %12414 = vmatprep.subr.bf16.mxu1 %v13468_v6 }
 0x2f6   : > { %12393 = vmatpush3.bf16.msra.mxu0 %v13469_v7 }
 0x2f7   : > { %12394 = vmatprep.subr.bf16.mxu0 %v13471_v9  ;;  %v13511_v9 = vld [vmem:[%s13903_s21 + $0x16b0] sm:$0xff]  }
 0x2f8   : > { %v12092_v12 = vpop.f32.mrb[56].mxu0  ;;  %12415 = vmatpush3.bf16.msra.mxu1 %v13470_v8 }
 0x2f9   : > { %v12093_v14 = vpop.f32.mrb[57].mxu0  ;;  %12416 = vmatprep.subr.bf16.mxu1 %v13472_v10 }
 0x2fa   : > { %v12114_v16 = vpop.f32.mrb[56].mxu1  ;;  %v12094_v17 = vadd.f32 %v12093_v14, %v12092_v12  ;;  %v12095_v18 = vpop.f32.mrb[58].mxu0  ;;  %12395 = vmatpush3.bf16.msra.mxu0 %v13473_v11  ;;  %v13512_v11 = vld [vmem:[%s13903_s21 + $0x1678] sm:$0xff]  }
 0x2fb   : > { %v12115_v21 = vpop.f32.mrb[57].mxu1  ;;  %v12096_v22 = vpop.f32.mrb[59].mxu0  ;;  %12396 = vmatprep.subr.bf16.mxu0 %v13475_v15  ;;  %v13514_v14 = vld [vmem:[%s13903_s21 + $0x1638] sm:$0xff]  }
 0x2fc   : > { %v9372_v23 = vadd.f32 %v12094_v17, %v14755_v37  ;;  %v12116_v24 = vadd.f32 %v12115_v21, %v12114_v16  ;;  %v12117_v25 = vpop.f32.mrb[58].mxu1  ;;  %12417 = vmatpush3.bf16.msra.mxu1 %v13474_v13  ;;  %v13487_v37 = vld [vmem:[%s13903_s21 + $0x1680] sm:$0xff]   ;;  %v13513_v13 = vld [vmem:[%s13903_s21 + $0x16f8] sm:$0xff]  }
 0x2fd   : > { %v12118_v27 = vpop.f32.mrb[59].mxu1  ;;  %12418 = vmatprep.subr.bf16.mxu1 %v13476_v19  ;;  %v234_v15 = vld [vmem:[%s13921_s27 + $0x58] sm:$0xff]  ;;  %v13516_v17 = vld [vmem:[%s13903_s21 + $0x1740] sm:$0xff]  }
 0x2fe   : > { %v14799_v29 = vadd.f32 %v12116_v24, %v9372_v23  ;;  %12397 = vmatpush3.bf16.msra.mxu0 %v13477_v20  ;;  %v2589_v16 = vrot.slane %v234_v15, %v13959_v42  ;;  %v2582_v18 = vcombine.high %v234_v15, %v234_v15  ;;  %v13515_v19 = vld [vmem:[%s13903_s21 + $0x16b8] sm:$0xff]   ;;  %v13517_v22 = vld [vmem:[%s13903_s21 + $0x17c0] sm:$0xff]   ;;  %v13553_v15 = vld [vmem:[%s13903_s21 + $0x1848] sm:$0xff]  }
 0x2ff   : > { %12398 = vmatprep.subr.bf16.mxu0 %v13479_v28  ;;  %v13518_v24 = vld [vmem:[%s13903_s21 + $0x1700] sm:$0xff]  }
 0x300   : > { %12419 = vmatpush3.bf16.msra.mxu1 %v13478_v26  ;;  %v2597_v20 = vcombine.high %v2589_v16, %v2589_v16  ;;  %v2605_v21 = vrot.slane %v2589_v16, %v13959_v42  ;;  %v14847_v23 = vrot.slane %v2582_v18, %v13959_v42  ;;  %v13519_v26 = vld [vmem:[%s13903_s21 + $0x1780] sm:$0xff]   ;;  %v13554_v16 = vld [vmem:[%s13903_s21 + $0x18c8] sm:$0xff]  }
 0x301   : > { %12420 = vmatprep.subr.bf16.mxu1 %v13480_v30  ;;  %v13556_v18 = vld [vmem:[%s13903_s21 + $0x1888] sm:$0xff]  }
 0x302   : > { %12399 = vmatpush3.bf16.msra.mxu0 %v13481_v31  ;;  %v2619_v25 = vrot.slane %v2597_v20, %v13959_v42  ;;  %v2598_v27 = vcombine.high %v14847_v23, %v14847_v23  ;;  %v2627_v28 = vcombine.high %v2605_v21, %v2605_v21  ;;  %v13521_v31 = vld [vmem:[%s13903_s21 + $0x17c8] sm:$0xff]   ;;  %v13558_v20 = vld [vmem:[%s13903_s21 + $0x18d0] sm:$0xff]  }
 0x303   : > { %12428 = vmatprep.subr.bf16.mxu0 %v13484_v34  ;;  %v13523_v34 = vld [vmem:[%s13903_s21 + $0x1788] sm:$0xff]  }
 0x304   : > { %12421 = vmatpush3.bf16.msra.mxu1 %v13482_v32  ;;  %v2629_v30 = vcombine.high %v2619_v25, %v2619_v25  ;;  %v2626_v32 = vrot.slane %v2598_v27, %v13959_v42  ;;  %v13565_v27 = vld [vmem:[%s13903_s21 + $0x1860] sm:$0xff]  }
 0x305   : > { %9930 = vmatmul.mubr.bf16.vlgmr.msra.gmra.mrb[84].mxu0 %v2563_v33  ;;  %12450 = vmatprep.subr.bf16.mxu1 %v13485_v35  ;;  %v13522_v33 = vld [vmem:[%s13903_s21 + $0x1708] sm:$0xff]  }
 0x306   : > { %12429 = vmatpush3.bf16.msra.mxu0 %v13486_v36  ;;  %10009 = vmatprep.mubr.bf16.mxu0 %v2619_v25  ;;  %v2630_v35 = vcombine.high %v2626_v32, %v2626_v32  ;;  %v13524_v36 = vld [vmem:[%s13903_s21 + $0x1750] sm:$0xff]   ;;  %v13563_v25 = vld [vmem:[%s13903_s21 + $0x1818] sm:$0xff]  }
 0x307   : > { %9970 = vmatmul.mubr.bf16.vlgmr.msra.gmra.mrb[84].mxu1 %v2579_v38  ;;  %12430 = vmatprep.subr.bf16.mxu0 %v13488_v39  ;;  %v13526_v38 = vld [vmem:[%s13903_s21 + $0x1710] sm:$0xff]  }
 0x308   : > { %12451 = vmatpush3.bf16.msra.mxu1 %v13487_v37  ;;  %10049 = vmatprep.mubr.bf16.mxu1 %v2629_v30  ;;  %v13525_v37 = vld [vmem:[%s13903_s21 + $0x17d0] sm:$0xff]   ;;  %v13568_v30 = vld [vmem:[%s13903_s21 + $0x18a0] sm:$0xff]  }
 0x309   : > { %12452 = vmatprep.subr.bf16.mxu1 %v13489_v40  ;;  %v13527_v39 = vld [vmem:[%s13903_s21 + $0x1790] sm:$0xff]   ;;  %v13528_v40 = vld [vmem:[%s13903_s21 + $0x1758] sm:$0xff]  }
 0x30a   : > { %12431 = vmatpush3.bf16.msra.mxu0 %v13490_v41  ;;  %v13529_v41 = vld [vmem:[%s13903_s21 + $0x17d8] sm:$0xff]  }
 0x30b   : > { %12432 = vmatprep.subr.bf16.mxu0 %v13492_v44  ;;  %v13531_v44 = vld [vmem:[%s13903_s21 + $0x1798] sm:$0xff]  }
 0x30c   : > { %12453 = vmatpush3.bf16.msra.mxu1 %v13491_v43  ;;  %v13530_v43 = vld [vmem:[%s13903_s21 + $0x1718] sm:$0xff]  }
 0x30d   : > { %12454 = vmatprep.subr.bf16.mxu1 %v13493_v45  ;;  %v13532_v45 = vld [vmem:[%s13903_s21 + $0x1760] sm:$0xff]  }
 0x30e   : > { %12433 = vmatpush3.bf16.msra.mxu0 %v13494_v46  ;;  %v13533_v46 = vld [vmem:[%s13903_s21 + $0x17e0] sm:$0xff]  }
 0x30f   : > { %12434 = vmatprep.subr.bf16.mxu0 %v13496_v48  ;;  %v13535_v48 = vld [vmem:[%s13903_s21 + $0x17a0] sm:$0xff]  }
 0x310   : > { %12455 = vmatpush3.bf16.msra.mxu1 %v13495_v47  ;;  %v13534_v47 = vld [vmem:[%s13903_s21 + $0x1720] sm:$0xff]  }
 0x311   : > { %12456 = vmatprep.subr.bf16.mxu1 %v13497_v49  ;;  %v13536_v49 = vld [vmem:[%s13903_s21 + $0x1768] sm:$0xff]  }
 0x312   : > { %12435 = vmatpush3.bf16.msra.mxu0 %v13498_v50  ;;  %v13537_v50 = vld [vmem:[%s13903_s21 + $0x17e8] sm:$0xff]  }
 0x313   : > { %12436 = vmatprep.subr.bf16.mxu0 %v13500_v52  ;;  %v13538_v52 = vld [vmem:[%s13903_s21 + $0x1728] sm:$0xff]  }
 0x314   : > { %12457 = vmatpush3.bf16.msra.mxu1 %v13499_v51 }
 0x315   : > { %12458 = vmatprep.subr.bf16.mxu1 %v13501_v53 }
 0x316   : > { %12437 = vmatpush3.bf16.msra.mxu0 %v13502_v54  ;;  %v13539_v54 = vld [vmem:[%s13903_s21 + $0x17a8] sm:$0xff]  }
 0x317   : > { %12438 = vmatprep.subr.bf16.mxu0 %v13504_v57 }
 0x318   : > { %v12136_v60 = vpop.f32.mrb[60].mxu0  ;;  %12459 = vmatpush3.bf16.msra.mxu1 %v13503_v56 }
 0x319   : > { %v12137_v61 = vpop.f32.mrb[61].mxu0  ;;  %12460 = vmatprep.subr.bf16.mxu1 %v13505_v58 }
 0x31a   : > { %v12158_v63 = vpop.f32.mrb[60].mxu1  ;;  %v12138_v0 = vadd.f32 %v12137_v61, %v12136_v60  ;;  %v12139_v1 = vpop.f32.mrb[62].mxu0  ;;  %12439 = vmatpush3.bf16.msra.mxu0 %v13506_v59  ;;  %v13540_v59 = vld [vmem:[%s13903_s21 + $0x1770] sm:$0xff]  }
 0x31b   : > { %v12159_v4 = vpop.f32.mrb[61].mxu1  ;;  %v12140_v5 = vpop.f32.mrb[63].mxu0  ;;  %12440 = vmatprep.subr.bf16.mxu0 %v13508_v62  ;;  %v13541_v60 = vld [vmem:[%s13903_s21 + $0x17f0] sm:$0xff]  }
 0x31c   : > { %v9452_v6 = vadd.f32 %v12138_v0, %v14799_v29  ;;  %v12160_v7 = vadd.f32 %v12159_v4, %v12158_v63  ;;  %v12161_v8 = vpop.f32.mrb[62].mxu1  ;;  %12461 = vmatpush3.bf16.msra.mxu1 %v13507_v55  ;;  %v13520_v29 = vld [vmem:[%s13903_s21 + $0x1748] sm:$0xff]   ;;  %v13542_v1 = vld [vmem:[%s13903_s21 + $0x1730] sm:$0xff]   ;;  %v13544_v5 = vld [vmem:[%s13903_s21 + $0x1778] sm:$0xff]  }
 0x31d   : > { %v12162_v10 = vpop.f32.mrb[63].mxu1  ;;  %12462 = vmatprep.subr.bf16.mxu1 %v13509_v2  ;;  %v13547_v8 = vld [vmem:[%s13903_s21 + $0x17b8] sm:$0xff]  }
 0x31e   : > { %v14836_v12 = vadd.f32 %v12160_v7, %v9452_v6  ;;  %12441 = vmatpush3.bf16.msra.mxu0 %v13510_v3  ;;  %v13543_v3 = vld [vmem:[%s13903_s21 + $0x17b0] sm:$0xff]   ;;  %v13545_v6 = vld [vmem:[%s13903_s21 + $0x17f8] sm:$0xff]   ;;  %v13549_v10 = vld [vmem:[%s13903_s21 + $0x1840] sm:$0xff]  }
 0x31f   : > { %12442 = vmatprep.subr.bf16.mxu0 %v13512_v11  ;;  %v13546_v7 = vld [vmem:[%s13903_s21 + $0x1738] sm:$0xff]   ;;  %v13550_v11 = vld [vmem:[%s13903_s21 + $0x18c0] sm:$0xff]  }
 0x320   : > { %12463 = vmatpush3.bf16.msra.mxu1 %v13511_v9  ;;  %v2612_v9 = vrot.slane %v14847_v23, %v13959_v42  ;;  %v13561_v23 = vld [vmem:[%s13903_s21 + $0x1858] sm:$0xff]  }
 0x321   : > { %12464 = vmatprep.subr.bf16.mxu1 %v13513_v13  ;;  %v13552_v13 = vld [vmem:[%s13903_s21 + $0x1880] sm:$0xff]  }
 0x322   : > { %12443 = vmatpush3.bf16.msra.mxu0 %v13514_v14  ;;  %v2628_v14 = vcombine.high %v2612_v9, %v2612_v9 }
 0x323   : > { %12472 = vmatprep.subr.bf16.mxu0 %v13516_v17  ;;  %v13555_v17 = vld [vmem:[%s13903_s21 + $0x1808] sm:$0xff]  }
 0x324   : > { %12465 = vmatpush3.bf16.msra.mxu1 %v13515_v19  ;;  %v13557_v19 = vld [vmem:[%s13903_s21 + $0x1850] sm:$0xff]  }
 0x325   : > { %12494 = vmatprep.subr.bf16.mxu1 %v13517_v22  ;;  %10010 = vmatmul.mubr.bf16.vlgmr.msra.gmra.mrb[88].mxu0 %v2605_v21  ;;  %v13559_v21 = vld [vmem:[%s13903_s21 + $0x1810] sm:$0xff]  }
 0x326   : > { %12473 = vmatpush3.bf16.msra.mxu0 %v13518_v24  ;;  %10089 = vmatprep.mubr.bf16.mxu0 %v2626_v32  ;;  %v13560_v22 = vld [vmem:[%s13903_s21 + $0x1890] sm:$0xff]   ;;  %v13562_v24 = vld [vmem:[%s13903_s21 + $0x18d8] sm:$0xff]   ;;  %v13570_v32 = vld [vmem:[%s13903_s21 + $0x18e8] sm:$0xff]  }
 0x327   : > { %10050 = vmatmul.mubr.bf16.vlgmr.msra.gmra.mrb[88].mxu1 %v2627_v28  ;;  %12474 = vmatprep.subr.bf16.mxu0 %v13520_v29  ;;  %v13566_v28 = vld [vmem:[%s13903_s21 + $0x18e0] sm:$0xff]  }
 0x328   : > { %12495 = vmatpush3.bf16.msra.mxu1 %v13519_v26  ;;  %10129 = vmatprep.mubr.bf16.mxu1 %v2630_v35  ;;  %v13564_v26 = vld [vmem:[%s13903_s21 + $0x1898] sm:$0xff]   ;;  %v13567_v29 = vld [vmem:[%s13903_s21 + $0x1820] sm:$0xff]  }
 0x329   : > { %12496 = vmatprep.subr.bf16.mxu1 %v13521_v31  ;;  %v13569_v31 = vld [vmem:[%s13903_s21 + $0x1868] sm:$0xff]  }
 0x32a   : > { %12475 = vmatpush3.bf16.msra.mxu0 %v13522_v33 }
 0x32b   : > { %12476 = vmatprep.subr.bf16.mxu0 %v13524_v36  ;;  %v13572_v36 = vld [vmem:[%s13903_s21 + $0x18a8] sm:$0xff]  }
 0x32c   : > { %12497 = vmatpush3.bf16.msra.mxu1 %v13523_v34  ;;  %v13571_v34 = vld [vmem:[%s13903_s21 + $0x1828] sm:$0xff]  }
 0x32d   : > { %12498 = vmatprep.subr.bf16.mxu1 %v13525_v37 }
 0x32e   : > { %12477 = vmatpush3.bf16.msra.mxu0 %v13526_v38 }
 0x32f   : > { %12478 = vmatprep.subr.bf16.mxu0 %v13528_v40  ;;  %v13573_v40 = vld [vmem:[%s13903_s21 + $0x1870] sm:$0xff]  }
 0x330   : > { %12499 = vmatpush3.bf16.msra.mxu1 %v13527_v39 }
 0x331   : > { %12500 = vmatprep.subr.bf16.mxu1 %v13529_v41  ;;  %v13574_v41 = vld [vmem:[%s13903_s21 + $0x18f0] sm:$0xff]  }
 0x332   : > { %12479 = vmatpush3.bf16.msra.mxu0 %v13530_v43 }
 0x333   : > { %12480 = vmatprep.subr.bf16.mxu0 %v13532_v45 }
 0x334   : > { %12501 = vmatpush3.bf16.msra.mxu1 %v13531_v44 }
 0x335   : > { %12502 = vmatprep.subr.bf16.mxu1 %v13533_v46 }
 0x336   : > { %12481 = vmatpush3.bf16.msra.mxu0 %v13534_v47 }
 0x337   : > { %12482 = vmatprep.subr.bf16.mxu0 %v13536_v49 }
 0x338   : > { %v12180_v51 = vpop.f32.mrb[64].mxu0  ;;  %12503 = vmatpush3.bf16.msra.mxu1 %v13535_v48  ;;  %v13575_v48 = vld [vmem:[%s13903_s21 + $0x1830] sm:$0xff]  }
 0x339   : > { %v12181_v53 = vpop.f32.mrb[65].mxu0  ;;  %12504 = vmatprep.subr.bf16.mxu1 %v13537_v50  ;;  %v13576_v50 = vld [vmem:[%s13903_s21 + $0x18b0] sm:$0xff]  }
 0x33a   : > { %v12202_v56 = vpop.f32.mrb[64].mxu1  ;;  %v12182_v57 = vadd.f32 %v12181_v53, %v12180_v51  ;;  %v12183_v58 = vpop.f32.mrb[66].mxu0  ;;  %12483 = vmatpush3.bf16.msra.mxu0 %v13538_v52  ;;  %v13577_v52 = vld [vmem:[%s13903_s21 + $0x1878] sm:$0xff]  }
 0x33b   : > { %v12203_v55 = vpop.f32.mrb[65].mxu1  ;;  %v12184_v61 = vpop.f32.mrb[67].mxu0  ;;  %12484 = vmatprep.subr.bf16.mxu0 %v13540_v59  ;;  %v13578_v53 = vld [vmem:[%s13903_s21 + $0x18f8] sm:$0xff]   ;;  %v13581_v58 = vld [vmem:[%s13903_s21 + $0x1940] sm:$0xff]  }
 0x33c   : > { %v9532_v62 = vadd.f32 %v12182_v57, %v14836_v12  ;;  %v12204_v63 = vadd.f32 %v12203_v55, %v12202_v56  ;;  %v12205_v0 = vpop.f32.mrb[66].mxu1  ;;  %12505 = vmatpush3.bf16.msra.mxu1 %v13539_v54  ;;  %v13551_v12 = vld [vmem:[%s13903_s21 + $0x1800] sm:$0xff]   ;;  %v13579_v54 = vld [vmem:[%s13903_s21 + $0x1838] sm:$0xff]  }
 0x33d   : > { %v12206_v2 = vpop.f32.mrb[67].mxu1  ;;  %12506 = vmatprep.subr.bf16.mxu1 %v13541_v60  ;;  %v235_v56 = vld [vmem:[%s13921_s27 + $0x60] sm:$0xff] }
 0x33e   : > { %v14880_v4 = vadd.f32 %v12204_v63, %v9532_v62  ;;  %12485 = vmatpush3.bf16.msra.mxu0 %v13542_v1  ;;  %v2638_v57 = vrot.slane %v235_v56, %v13959_v42  ;;  %v2631_v59 = vcombine.high %v235_v56, %v235_v56  ;;  %v13580_v60 = vld [vmem:[%s13903_s21 + $0x18b8] sm:$0xff]   ;;  %v13582_v62 = vld [vmem:[%s13903_s21 + $0x19c0] sm:$0xff]   ;;  %v13618_v56 = vld [vmem:[%s13903_s21 + $0x1a48] sm:$0xff]  }
 0x33f   : > { %12486 = vmatprep.subr.bf16.mxu0 %v13544_v5  ;;  %v13583_v0 = vld [vmem:[%s13903_s21 + $0x1900] sm:$0xff]   ;;  %v13585_v5 = vld [vmem:[%s13903_s21 + $0x1948] sm:$0xff]  }
 0x340   : > { %12507 = vmatpush3.bf16.msra.mxu1 %v13543_v3  ;;  %v2646_v55 = vcombine.high %v2638_v57, %v2638_v57  ;;  %v2654_v61 = vrot.slane %v2638_v57, %v13959_v42  ;;  %v14929_v63 = vrot.slane %v2631_v59, %v13959_v42  ;;  %v13584_v2 = vld [vmem:[%s13903_s21 + $0x1980] sm:$0xff]   ;;  %v13619_v57 = vld [vmem:[%s13903_s21 + $0x1ac8] sm:$0xff]  }
 0x341   : > { %12508 = vmatprep.subr.bf16.mxu1 %v13545_v6  ;;  %v13621_v59 = vld [vmem:[%s13903_s21 + $0x1a88] sm:$0xff]  }
 0x342   : > { %12487 = vmatpush3.bf16.msra.mxu0 %v13546_v7  ;;  %v2668_v1 = vrot.slane %v2646_v55, %v13959_v42  ;;  %v2647_v3 = vcombine.high %v14929_v63, %v14929_v63  ;;  %v13586_v7 = vld [vmem:[%s13903_s21 + $0x19c8] sm:$0xff]   ;;  %v13623_v55 = vld [vmem:[%s13903_s21 + $0x1ad0] sm:$0xff]  }
 0x343   : > { %12516 = vmatprep.subr.bf16.mxu0 %v13549_v10  ;;  %v13588_v10 = vld [vmem:[%s13903_s21 + $0x1988] sm:$0xff]  }
 0x344   : > { %12509 = vmatpush3.bf16.msra.mxu1 %v13547_v8  ;;  %v2678_v6 = vcombine.high %v2668_v1, %v2668_v1  ;;  %v2675_v8 = vrot.slane %v2647_v3, %v13959_v42  ;;  %v13630_v3 = vld [vmem:[%s13903_s21 + $0x1a60] sm:$0xff]  }
 0x345   : > { %10090 = vmatmul.mubr.bf16.vlgmr.msra.gmra.mrb[92].mxu0 %v2612_v9  ;;  %12538 = vmatprep.subr.bf16.mxu1 %v13550_v11  ;;  %v13587_v9 = vld [vmem:[%s13903_s21 + $0x1908] sm:$0xff]  }
 0x346   : > { %12517 = vmatpush3.bf16.msra.mxu0 %v13551_v12  ;;  %10169 = vmatprep.mubr.bf16.mxu0 %v2668_v1  ;;  %v2679_v11 = vcombine.high %v2675_v8, %v2675_v8  ;;  %v13589_v12 = vld [vmem:[%s13903_s21 + $0x1950] sm:$0xff]   ;;  %v13628_v1 = vld [vmem:[%s13903_s21 + $0x1a18] sm:$0xff]  }
 0x347   : > { %10130 = vmatmul.mubr.bf16.vlgmr.msra.gmra.mrb[92].mxu1 %v2628_v14  ;;  %12518 = vmatprep.subr.bf16.mxu0 %v13553_v15  ;;  %v13591_v14 = vld [vmem:[%s13903_s21 + $0x1910] sm:$0xff]  }
 0x348   : > { %12539 = vmatpush3.bf16.msra.mxu1 %v13552_v13  ;;  %10209 = vmatprep.mubr.bf16.mxu1 %v2678_v6  ;;  %v13590_v13 = vld [vmem:[%s13903_s21 + $0x19d0] sm:$0xff]   ;;  %v13633_v6 = vld [vmem:[%s13903_s21 + $0x1aa0] sm:$0xff]  }
 0x349   : > { %12540 = vmatprep.subr.bf16.mxu1 %v13554_v16  ;;  %v13592_v15 = vld [vmem:[%s13903_s21 + $0x1990] sm:$0xff]   ;;  %v13593_v16 = vld [vmem:[%s13903_s21 + $0x1958] sm:$0xff]  }
 0x34a   : > { %12519 = vmatpush3.bf16.msra.mxu0 %v13555_v17  ;;  %v13594_v17 = vld [vmem:[%s13903_s21 + $0x19d8] sm:$0xff]  }
 0x34b   : > { %12520 = vmatprep.subr.bf16.mxu0 %v13557_v19  ;;  %v13596_v19 = vld [vmem:[%s13903_s21 + $0x1998] sm:$0xff]  }
 0x34c   : > { %12541 = vmatpush3.bf16.msra.mxu1 %v13556_v18  ;;  %v13595_v18 = vld [vmem:[%s13903_s21 + $0x1918] sm:$0xff]  }
 0x34d   : > { %12542 = vmatprep.subr.bf16.mxu1 %v13558_v20  ;;  %v13597_v20 = vld [vmem:[%s13903_s21 + $0x1960] sm:$0xff]  }
 0x34e   : > { %12521 = vmatpush3.bf16.msra.mxu0 %v13559_v21  ;;  %v13598_v21 = vld [vmem:[%s13903_s21 + $0x19e0] sm:$0xff]  }
 0x34f   : > { %12522 = vmatprep.subr.bf16.mxu0 %v13561_v23  ;;  %v13600_v23 = vld [vmem:[%s13903_s21 + $0x19a0] sm:$0xff]  }
 0x350   : > { %12543 = vmatpush3.bf16.msra.mxu1 %v13560_v22  ;;  %v13599_v22 = vld [vmem:[%s13903_s21 + $0x1920] sm:$0xff]  }
 0x351   : > { %12544 = vmatprep.subr.bf16.mxu1 %v13562_v24  ;;  %v13601_v24 = vld [vmem:[%s13903_s21 + $0x1968] sm:$0xff]  }
 0x352   : > { %12523 = vmatpush3.bf16.msra.mxu0 %v13563_v25  ;;  %v13602_v25 = vld [vmem:[%s13903_s21 + $0x19e8] sm:$0xff]  }
 0x353   : > { %12524 = vmatprep.subr.bf16.mxu0 %v13565_v27  ;;  %v13603_v27 = vld [vmem:[%s13903_s21 + $0x1928] sm:$0xff]  }
 0x354   : > { %12545 = vmatpush3.bf16.msra.mxu1 %v13564_v26 }
 0x355   : > { %12546 = vmatprep.subr.bf16.mxu1 %v13566_v28 }
 0x356   : > { %12525 = vmatpush3.bf16.msra.mxu0 %v13567_v29  ;;  %v13604_v29 = vld [vmem:[%s13903_s21 + $0x19a8] sm:$0xff]  }
 0x357   : > { %12526 = vmatprep.subr.bf16.mxu0 %v13569_v31 }
 0x358   : > { %v12224_v33 = vpop.f32.mrb[68].mxu0  ;;  %12547 = vmatpush3.bf16.msra.mxu1 %v13568_v30 }
 0x359   : > { %v12225_v35 = vpop.f32.mrb[69].mxu0  ;;  %12548 = vmatprep.subr.bf16.mxu1 %v13570_v32 }
 0x35a   : > { %v12246_v37 = vpop.f32.mrb[68].mxu1  ;;  %v12226_v38 = vadd.f32 %v12225_v35, %v12224_v33  ;;  %v12227_v39 = vpop.f32.mrb[70].mxu0  ;;  %12527 = vmatpush3.bf16.msra.mxu0 %v13571_v34  ;;  %v13605_v33 = vld [vmem:[%s13903_s21 + $0x1970] sm:$0xff]  }
 0x35b   : > { %v12247_v43 = vpop.f32.mrb[69].mxu1  ;;  %v12228_v44 = vpop.f32.mrb[71].mxu0  ;;  %12528 = vmatprep.subr.bf16.mxu0 %v13573_v40  ;;  %v13606_v34 = vld [vmem:[%s13903_s21 + $0x19f0] sm:$0xff]  }
 0x35c   : > { %v9612_v45 = vadd.f32 %v12226_v38, %v14880_v4  ;;  %v12248_v46 = vadd.f32 %v12247_v43, %v12246_v37  ;;  %v12249_v47 = vpop.f32.mrb[70].mxu1  ;;  %12549 = vmatpush3.bf16.msra.mxu1 %v13572_v36  ;;  %v2676_v4 = vcombine.high %v2654_v61, %v2654_v61  ;;  %v13607_v40 = vld [vmem:[%s13903_s21 + $0x1930] sm:$0xff]  }
 0x35d   : > { %v12250_v49 = vpop.f32.mrb[71].mxu1  ;;  %12550 = vmatprep.subr.bf16.mxu1 %v13574_v41  ;;  %v13608_v43 = vld [vmem:[%s13903_s21 + $0x19b0] sm:$0xff]   ;;  %v13611_v47 = vld [vmem:[%s13903_s21 + $0x1938] sm:$0xff]  }
 0x35e   : > { %v14917_v51 = vadd.f32 %v12248_v46, %v9612_v45  ;;  %12529 = vmatpush3.bf16.msra.mxu0 %v13575_v48  ;;  %v13609_v45 = vld [vmem:[%s13903_s21 + $0x1978] sm:$0xff]   ;;  %v2661_v49 = vrot.slane %v14929_v63, %v13959_v42 }
 0x35f   : > { %12530 = vmatprep.subr.bf16.mxu0 %v13577_v52  ;;  %v13610_v46 = vld [vmem:[%s13903_s21 + $0x19f8] sm:$0xff]   ;;  %v13616_v52 = vld [vmem:[%s13903_s21 + $0x1a00] sm:$0xff]  }
 0x360   : > { %12551 = vmatpush3.bf16.msra.mxu1 %v13576_v50  ;;  %v13612_v48 = vld [vmem:[%s13903_s21 + $0x19b8] sm:$0xff]   ;;  %v13614_v50 = vld [vmem:[%s13903_s21 + $0x1a40] sm:$0xff]  }
 0x361   : > { %12552 = vmatprep.subr.bf16.mxu1 %v13578_v53  ;;  %v13617_v53 = vld [vmem:[%s13903_s21 + $0x1a80] sm:$0xff]   ;;  %v13626_v63 = vld [vmem:[%s13903_s21 + $0x1a58] sm:$0xff]  }
 0x362   : > { %12531 = vmatpush3.bf16.msra.mxu0 %v13579_v54  ;;  %v2677_v54 = vcombine.high %v2661_v49, %v2661_v49 }
 0x363   : > { %12560 = vmatprep.subr.bf16.mxu0 %v13581_v58  ;;  %v13620_v58 = vld [vmem:[%s13903_s21 + $0x1a08] sm:$0xff]  }
 0x364   : > { %12553 = vmatpush3.bf16.msra.mxu1 %v13580_v60  ;;  %v13622_v60 = vld [vmem:[%s13903_s21 + $0x1a50] sm:$0xff]  }
 0x365   : > { %12582 = vmatprep.subr.bf16.mxu1 %v13582_v62  ;;  %10170 = vmatmul.mubr.bf16.vlgmr.msra.gmra.mrb[96].mxu0 %v2654_v61  ;;  %v13624_v61 = vld [vmem:[%s13903_s21 + $0x1a10] sm:$0xff]  }
 0x366   : > { %12561 = vmatpush3.bf16.msra.mxu0 %v13583_v0  ;;  %10249 = vmatprep.mubr.bf16.mxu0 %v2675_v8  ;;  %v13625_v62 = vld [vmem:[%s13903_s21 + $0x1a90] sm:$0xff]   ;;  %v13627_v0 = vld [vmem:[%s13903_s21 + $0x1ad8] sm:$0xff]   ;;  %v13635_v8 = vld [vmem:[%s13903_s21 + $0x1ae8] sm:$0xff]  }
 0x367   : > { %10210 = vmatmul.mubr.bf16.vlgmr.msra.gmra.mrb[96].mxu1 %v2676_v4  ;;  %12562 = vmatprep.subr.bf16.mxu0 %v13585_v5  ;;  %v13631_v4 = vld [vmem:[%s13903_s21 + $0x1ae0] sm:$0xff]  }
 0x368   : > { %12583 = vmatpush3.bf16.msra.mxu1 %v13584_v2  ;;  %10289 = vmatprep.mubr.bf16.mxu1 %v2679_v11  ;;  %v13629_v2 = vld [vmem:[%s13903_s21 + $0x1a98] sm:$0xff]   ;;  %v13632_v5 = vld [vmem:[%s13903_s21 + $0x1a20] sm:$0xff]  }
 0x369   : > { %12584 = vmatprep.subr.bf16.mxu1 %v13586_v7  ;;  %v13634_v7 = vld [vmem:[%s13903_s21 + $0x1a68] sm:$0xff]  }
 0x36a   : > { %12563 = vmatpush3.bf16.msra.mxu0 %v13587_v9 }
 0x36b   : > { %12564 = vmatprep.subr.bf16.mxu0 %v13589_v12  ;;  %v13637_v12 = vld [vmem:[%s13903_s21 + $0x1aa8] sm:$0xff]  }
 0x36c   : > { %12585 = vmatpush3.bf16.msra.mxu1 %v13588_v10  ;;  %v13636_v10 = vld [vmem:[%s13903_s21 + $0x1a28] sm:$0xff]  }
 0x36d   : > { %12586 = vmatprep.subr.bf16.mxu1 %v13590_v13 }
 0x36e   : > { %12565 = vmatpush3.bf16.msra.mxu0 %v13591_v14 }
 0x36f   : > { %12566 = vmatprep.subr.bf16.mxu0 %v13593_v16  ;;  %v13638_v16 = vld [vmem:[%s13903_s21 + $0x1a70] sm:$0xff]  }
 0x370   : > { %12587 = vmatpush3.bf16.msra.mxu1 %v13592_v15 }
 0x371   : > { %12588 = vmatprep.subr.bf16.mxu1 %v13594_v17  ;;  %v13639_v17 = vld [vmem:[%s13903_s21 + $0x1af0] sm:$0xff]  }
 0x372   : > { %12567 = vmatpush3.bf16.msra.mxu0 %v13595_v18 }
 0x373   : > { %12568 = vmatprep.subr.bf16.mxu0 %v13597_v20 }
 0x374   : > { %12589 = vmatpush3.bf16.msra.mxu1 %v13596_v19 }
 0x375   : > { %12590 = vmatprep.subr.bf16.mxu1 %v13598_v21 }
 0x376   : > { %12569 = vmatpush3.bf16.msra.mxu0 %v13599_v22 }
 0x377   : > { %12570 = vmatprep.subr.bf16.mxu0 %v13601_v24 }
 0x378   : > { %v12268_v26 = vpop.f32.mrb[72].mxu0  ;;  %12591 = vmatpush3.bf16.msra.mxu1 %v13600_v23  ;;  %v13640_v23 = vld [vmem:[%s13903_s21 + $0x1a30] sm:$0xff]  }
 0x379   : > { %v12269_v28 = vpop.f32.mrb[73].mxu0  ;;  %12592 = vmatprep.subr.bf16.mxu1 %v13602_v25  ;;  %v13641_v25 = vld [vmem:[%s13903_s21 + $0x1ab0] sm:$0xff]  }
 0x37a   : > { %v12290_v30 = vpop.f32.mrb[72].mxu1  ;;  %v12270_v31 = vadd.f32 %v12269_v28, %v12268_v26  ;;  %v12271_v32 = vpop.f32.mrb[74].mxu0  ;;  %12571 = vmatpush3.bf16.msra.mxu0 %v13603_v27  ;;  %v13642_v27 = vld [vmem:[%s13903_s21 + $0x1a78] sm:$0xff]  }
 0x37b   : > { %v12291_v35 = vpop.f32.mrb[73].mxu1  ;;  %v12272_v36 = vpop.f32.mrb[75].mxu0  ;;  %12572 = vmatprep.subr.bf16.mxu0 %v13605_v33  ;;  %v13643_v28 = vld [vmem:[%s13903_s21 + $0x1af8] sm:$0xff]   ;;  %v13646_v32 = vld [vmem:[%s13903_s21 + $0x1b40] sm:$0xff]  }
 0x37c   : > { %v9692_v37 = vadd.f32 %v12270_v31, %v14917_v51  ;;  %v12292_v38 = vadd.f32 %v12291_v35, %v12290_v30  ;;  %v12293_v39 = vpop.f32.mrb[74].mxu1  ;;  %12593 = vmatpush3.bf16.msra.mxu1 %v13604_v29  ;;  %v13615_v51 = vld [vmem:[%s13903_s21 + $0x1ac0] sm:$0xff]   ;;  %v13644_v29 = vld [vmem:[%s13903_s21 + $0x1a38] sm:$0xff]  }
 0x37d   : > { %v12294_v41 = vpop.f32.mrb[75].mxu1  ;;  %12594 = vmatprep.subr.bf16.mxu1 %v13606_v34  ;;  %v236_v30 = vld [vmem:[%s13921_s27 + $0x68] sm:$0xff]  ;;  %v13645_v34 = vld [vmem:[%s13903_s21 + $0x1ab8] sm:$0xff]  }
 0x37e   : > { %v14962_v44 = vadd.f32 %v12292_v38, %v9692_v37  ;;  %12573 = vmatpush3.bf16.msra.mxu0 %v13607_v40  ;;  %v2687_v31 = vrot.slane %v236_v30, %v13959_v42  ;;  %v2680_v33 = vcombine.high %v236_v30, %v236_v30  ;;  %v13647_v37 = vld [vmem:[%s13903_s21 + $0x1bc0] sm:$0xff]  }
 0x37f   : > { %12574 = vmatprep.subr.bf16.mxu0 %v13609_v45  ;;  %v13648_v40 = vld [vmem:[%s13903_s21 + $0x1b00] sm:$0xff]  }
 0x380   : > { %12595 = vmatpush3.bf16.msra.mxu1 %v13608_v43  ;;  %v2695_v35 = vcombine.high %v2687_v31, %v2687_v31  ;;  %v2703_v36 = vrot.slane %v2687_v31, %v13959_v42  ;;  %v15011_v38 = vrot.slane %v2680_v33, %v13959_v42 }
 0x381   : > { %12596 = vmatprep.subr.bf16.mxu1 %v13610_v46  ;;  %v13649_v46 = vld [vmem:[%s13903_s21 + $0x1b80] sm:$0xff]  }
 0x382   : > { %12575 = vmatpush3.bf16.msra.mxu0 %v13611_v47  ;;  %v2717_v39 = vrot.slane %v2695_v35, %v13959_v42  ;;  %v2696_v41 = vcombine.high %v15011_v38, %v15011_v38  ;;  %v2725_v43 = vcombine.high %v2703_v36, %v2703_v36 }
 0x383   : > { %12604 = vmatprep.subr.bf16.mxu0 %v13614_v50 }
 0x384   : > { %12597 = vmatpush3.bf16.msra.mxu1 %v13612_v48  ;;  %v2727_v45 = vcombine.high %v2717_v39, %v2717_v39  ;;  %v2724_v47 = vrot.slane %v2696_v41, %v13959_v42  ;;  %v13651_v48 = vld [vmem:[%s13903_s21 + $0x1bc8] sm:$0xff]  }
 0x385   : > { %10250 = vmatmul.mubr.bf16.vlgmr.msra.gmra.mrb[100].mxu0 %v2661_v49  ;;  %12626 = vmatprep.subr.bf16.mxu1 %v13615_v51  ;;  %v13652_v49 = vld [vmem:[%s13903_s21 + $0x1b08] sm:$0xff]   ;;  %v13654_v51 = vld [vmem:[%s13903_s21 + $0x1b50] sm:$0xff]  }
 0x386   : > { %12605 = vmatpush3.bf16.msra.mxu0 %v13616_v52  ;;  %10329 = vmatprep.mubr.bf16.mxu0 %v2717_v39  ;;  %v2728_v50 = vcombine.high %v2724_v47, %v2724_v47  ;;  %v13653_v52 = vld [vmem:[%s13903_s21 + $0x1b88] sm:$0xff]  }
 0x387   : > { %10290 = vmatmul.mubr.bf16.vlgmr.msra.gmra.mrb[100].mxu1 %v2677_v54  ;;  %12606 = vmatprep.subr.bf16.mxu0 %v13618_v56  ;;  %v13656_v54 = vld [vmem:[%s13903_s21 + $0x1b10] sm:$0xff]   ;;  %v13658_v56 = vld [vmem:[%s13903_s21 + $0x1b58] sm:$0xff]  }
 0x388   : > { %12627 = vmatpush3.bf16.msra.mxu1 %v13617_v53  ;;  %10369 = vmatprep.mubr.bf16.mxu1 %v2727_v45  ;;  %v13655_v53 = vld [vmem:[%s13903_s21 + $0x1bd0] sm:$0xff]  }
 0x389   : > { %12628 = vmatprep.subr.bf16.mxu1 %v13619_v57  ;;  %v13657_v57 = vld [vmem:[%s13903_s21 + $0x1b90] sm:$0xff]  }
 0x38a   : > { %12607 = vmatpush3.bf16.msra.mxu0 %v13620_v58  ;;  %v13659_v58 = vld [vmem:[%s13903_s21 + $0x1bd8] sm:$0xff]  }
 0x38b   : > { %12608 = vmatprep.subr.bf16.mxu0 %v13622_v60  ;;  %v13662_v60 = vld [vmem:[%s13903_s21 + $0x1b60] sm:$0xff]  }
 0x38c   : > { %12629 = vmatpush3.bf16.msra.mxu1 %v13621_v59  ;;  %v13660_v59 = vld [vmem:[%s13903_s21 + $0x1b18] sm:$0xff]  }
 0x38d   : > { %12630 = vmatprep.subr.bf16.mxu1 %v13623_v55  ;;  %v13661_v55 = vld [vmem:[%s13903_s21 + $0x1b98] sm:$0xff]  }
 0x38e   : > { %12609 = vmatpush3.bf16.msra.mxu0 %v13624_v61  ;;  %v13663_v61 = vld [vmem:[%s13903_s21 + $0x1be0] sm:$0xff]  }
 0x38f   : > { %12610 = vmatprep.subr.bf16.mxu0 %v13626_v63  ;;  %v13666_v63 = vld [vmem:[%s13903_s21 + $0x1b68] sm:$0xff]  }
 0x390   : > { %12631 = vmatpush3.bf16.msra.mxu1 %v13625_v62  ;;  %v13664_v62 = vld [vmem:[%s13903_s21 + $0x1b20] sm:$0xff]  }
 0x391   : > { %12632 = vmatprep.subr.bf16.mxu1 %v13627_v0  ;;  %v13665_v0 = vld [vmem:[%s13903_s21 + $0x1ba0] sm:$0xff]  }
 0x392   : > { %12611 = vmatpush3.bf16.msra.mxu0 %v13628_v1 }
 0x393   : > { %12612 = vmatprep.subr.bf16.mxu0 %v13630_v3 }
 0x394   : > { %12633 = vmatpush3.bf16.msra.mxu1 %v13629_v2  ;;  %v13667_v2 = vld [vmem:[%s13903_s21 + $0x1be8] sm:$0xff]  }
 0x395   : > { %12634 = vmatprep.subr.bf16.mxu1 %v13631_v4  ;;  %v13668_v4 = vld [vmem:[%s13903_s21 + $0x1b28] sm:$0xff]  }
 0x396   : > { %12613 = vmatpush3.bf16.msra.mxu0 %v13632_v5 }
 0x397   : > { %12614 = vmatprep.subr.bf16.mxu0 %v13634_v7 }
 0x398   : > { %v12312_v9 = vpop.f32.mrb[76].mxu0  ;;  %12635 = vmatpush3.bf16.msra.mxu1 %v13633_v6 }
 0x399   : > { %v12313_v11 = vpop.f32.mrb[77].mxu0  ;;  %12636 = vmatprep.subr.bf16.mxu1 %v13635_v8  ;;  %v13669_v8 = vld [vmem:[%s13903_s21 + $0x1ba8] sm:$0xff]  }
 0x39a   : > { %v12334_v13 = vpop.f32.mrb[76].mxu1  ;;  %v12314_v14 = vadd.f32 %v12313_v11, %v12312_v9  ;;  %v12315_v15 = vpop.f32.mrb[78].mxu0  ;;  %12615 = vmatpush3.bf16.msra.mxu0 %v13636_v10  ;;  %v13670_v9 = vld [vmem:[%s13903_s21 + $0x1b70] sm:$0xff]  }
 0x39b   : > { %v12335_v18 = vpop.f32.mrb[77].mxu1  ;;  %v12316_v19 = vpop.f32.mrb[79].mxu0  ;;  %12616 = vmatprep.subr.bf16.mxu0 %v13638_v16  ;;  %v13671_v15 = vld [vmem:[%s13903_s21 + $0x1bf0] sm:$0xff]  }
 0x39c   : > { %v9772_v20 = vadd.f32 %v12314_v14, %v14962_v44  ;;  %v12336_v21 = vadd.f32 %v12335_v18, %v12334_v13  ;;  %v12337_v22 = vpop.f32.mrb[78].mxu1  ;;  %12637 = vmatpush3.bf16.msra.mxu1 %v13637_v12  ;;  %v13650_v44 = vld [vmem:[%s13903_s21 + $0x1b48] sm:$0xff]   ;;  %v13674_v19 = vld [vmem:[%s13903_s21 + $0x1b78] sm:$0xff]  }
 0x39d   : > { %v12338_v24 = vpop.f32.mrb[79].mxu1  ;;  %12638 = vmatprep.subr.bf16.mxu1 %v13639_v17  ;;  %v13672_v17 = vld [vmem:[%s13903_s21 + $0x1b30] sm:$0xff]   ;;  %v13676_v22 = vld [vmem:[%s13903_s21 + $0x1b38] sm:$0xff]  }
 0x39e   : > { %v14999_v26 = vadd.f32 %v12336_v21, %v9772_v20  ;;  %12617 = vmatpush3.bf16.msra.mxu0 %v13640_v23  ;;  %v13673_v20 = vld [vmem:[%s13903_s21 + $0x1bb0] sm:$0xff]   ;;  %v13675_v21 = vld [vmem:[%s13903_s21 + $0x1bf8] sm:$0xff]   ;;  %v2710_v23 = vrot.slane %v15011_v38, %v13959_v42 }
 0x39f   : > { %12618 = vmatprep.subr.bf16.mxu0 %v13642_v27  ;;  %v13677_v24 = vld [vmem:[%s13903_s21 + $0x1bb8] sm:$0xff]  }
 0x3a0   : > { %12639 = vmatpush3.bf16.msra.mxu1 %v13641_v25  ;;  %v2726_v25 = vcombine.high %v2710_v23, %v2710_v23 }
 0x3a1   : > { %12640 = vmatprep.subr.bf16.mxu1 %v13643_v28 }
 0x3a2   : > { %12619 = vmatpush3.bf16.msra.mxu0 %v13644_v29 }
 0x3a3   : > { %12648 = vmatprep.subr.bf16.mxu0 %v13646_v32 }
 0x3a4   : > { %12641 = vmatpush3.bf16.msra.mxu1 %v13645_v34 }
 0x3a5   : > { %12670 = vmatprep.subr.bf16.mxu1 %v13647_v37  ;;  %10330 = vmatmul.mubr.bf16.vlgmr.msra.gmra.mrb[104].mxu0 %v2703_v36 }
 0x3a6   : > { %12649 = vmatpush3.bf16.msra.mxu0 %v13648_v40  ;;  %10409 = vmatprep.mubr.bf16.mxu0 %v2724_v47 }
 0x3a7   : > { %10370 = vmatmul.mubr.bf16.vlgmr.msra.gmra.mrb[104].mxu1 %v2725_v43  ;;  %12650 = vmatprep.subr.bf16.mxu0 %v13650_v44 }
 0x3a8   : > { %12671 = vmatpush3.bf16.msra.mxu1 %v13649_v46  ;;  %10449 = vmatprep.mubr.bf16.mxu1 %v2728_v50 }
 0x3a9   : > { %12672 = vmatprep.subr.bf16.mxu1 %v13651_v48 }
 0x3aa   : > { %12651 = vmatpush3.bf16.msra.mxu0 %v13652_v49 }
 0x3ab   : > { %12652 = vmatprep.subr.bf16.mxu0 %v13654_v51 }
 0x3ac   : > { %12673 = vmatpush3.bf16.msra.mxu1 %v13653_v52 }
 0x3ad   : > { %12674 = vmatprep.subr.bf16.mxu1 %v13655_v53 }
 0x3ae   : > { %12653 = vmatpush3.bf16.msra.mxu0 %v13656_v54 }
 0x3af   : > { %12654 = vmatprep.subr.bf16.mxu0 %v13658_v56 }
 0x3b0   : > { %12675 = vmatpush3.bf16.msra.mxu1 %v13657_v57 }
 0x3b1   : > { %12676 = vmatprep.subr.bf16.mxu1 %v13659_v58 }
 0x3b2   : > { %12655 = vmatpush3.bf16.msra.mxu0 %v13660_v59 }
 0x3b3   : > { %12656 = vmatprep.subr.bf16.mxu0 %v13662_v60 }
 0x3b4   : > { %12677 = vmatpush3.bf16.msra.mxu1 %v13661_v55 }
 0x3b5   : > { %12678 = vmatprep.subr.bf16.mxu1 %v13663_v61 }
 0x3b6   : > { %12657 = vmatpush3.bf16.msra.mxu0 %v13664_v62 }
 0x3b7   : > { %12658 = vmatprep.subr.bf16.mxu0 %v13666_v63 }
 0x3b8   : > { %v12356_v1 = vpop.f32.mrb[80].mxu0  ;;  %12679 = vmatpush3.bf16.msra.mxu1 %v13665_v0 }
 0x3b9   : > { %v12357_v3 = vpop.f32.mrb[81].mxu0  ;;  %12680 = vmatprep.subr.bf16.mxu1 %v13667_v2 }
 0x3ba   : > { %v12378_v5 = vpop.f32.mrb[80].mxu1  ;;  %v12358_v6 = vadd.f32 %v12357_v3, %v12356_v1  ;;  %v12359_v7 = vpop.f32.mrb[82].mxu0  ;;  %12659 = vmatpush3.bf16.msra.mxu0 %v13668_v4 }
 0x3bb   : > { %v12379_v10 = vpop.f32.mrb[81].mxu1  ;;  %v12360_v11 = vpop.f32.mrb[83].mxu0  ;;  %12660 = vmatprep.subr.bf16.mxu0 %v13670_v9 }
 0x3bc   : > { %v9852_v12 = vadd.f32 %v12358_v6, %v14999_v26  ;;  %v12380_v13 = vadd.f32 %v12379_v10, %v12378_v5  ;;  %v12381_v14 = vpop.f32.mrb[82].mxu1  ;;  %12681 = vmatpush3.bf16.msra.mxu1 %v13669_v8 }
 0x3bd   : > { %v12382_v16 = vpop.f32.mrb[83].mxu1  ;;  %12682 = vmatprep.subr.bf16.mxu1 %v13671_v15 }
 0x3be   : > { %v9892_v18 = vadd.f32 %v12380_v13, %v9852_v12  ;;  %12661 = vmatpush3.bf16.msra.mxu0 %v13672_v17 }
 0x3bf   : > { %12662 = vmatprep.subr.bf16.mxu0 %v13674_v19 }
 0x3c0   : > { %12683 = vmatpush3.bf16.msra.mxu1 %v13673_v20 }
 0x3c1   : > { %12684 = vmatprep.subr.bf16.mxu1 %v13675_v21 }
 0x3c2   : > { %12663 = vmatpush3.bf16.msra.mxu0 %v13676_v22 }
 0x3c4   : > { %12685 = vmatpush3.bf16.msra.mxu1 %v13677_v24 }
 0x3c5   : > { %10410 = vmatmul.mubr.bf16.vlgmr.msra.gmra.mrb[108].mxu0 %v2710_v23 }
 0x3c7   : > { %10450 = vmatmul.mubr.bf16.vlgmr.msra.gmra.mrb[108].mxu1 %v2726_v25 }
 0x3d8   : > { %v12400_v26 = vpop.f32.mrb[84].mxu0 }
 0x3d9   : > { %v12401_v27 = vpop.f32.mrb[85].mxu0 }
 0x3da   : > { %v12422_v28 = vpop.f32.mrb[84].mxu1  ;;  %v12402_v29 = vadd.f32 %v12401_v27, %v12400_v26  ;;  %v12403_v30 = vpop.f32.mrb[86].mxu0 }
 0x3db   : > { %v12423_v31 = vpop.f32.mrb[85].mxu1  ;;  %v12404_v32 = vpop.f32.mrb[87].mxu0 }
 0x3dc   : > { %v9932_v33 = vadd.f32 %v12402_v29, %v9892_v18  ;;  %v12424_v34 = vadd.f32 %v12423_v31, %v12422_v28  ;;  %v12425_v35 = vpop.f32.mrb[86].mxu1 }
 0x3dd   : > { %v12426_v36 = vpop.f32.mrb[87].mxu1 }
 0x3de   : > { %v9972_v42 = vadd.f32 %v12424_v34, %v9932_v33 }
 0x3f8   : > { %v12444_v37 = vpop.f32.mrb[88].mxu0 }
 0x3f9   : > { %v12445_v38 = vpop.f32.mrb[89].mxu0 }
 0x3fa   : > { %v12466_v39 = vpop.f32.mrb[88].mxu1  ;;  %v12446_v40 = vadd.f32 %v12445_v38, %v12444_v37  ;;  %v12447_v41 = vpop.f32.mrb[90].mxu0 }
 0x3fb   : > { %v12467_v43 = vpop.f32.mrb[89].mxu1  ;;  %v12448_v44 = vpop.f32.mrb[91].mxu0 }
 0x3fc   : > { %v10012_v45 = vadd.f32 %v12446_v40, %v9972_v42  ;;  %v12468_v46 = vadd.f32 %v12467_v43, %v12466_v39  ;;  %v12469_v47 = vpop.f32.mrb[90].mxu1  ;;  %v222_v44 = vld [vmem:[#allocation2] sm:$0x3] }
 0x3fd   : > { %v12470_v48 = vpop.f32.mrb[91].mxu1 }
 0x3fe   : > { %v10052_v49 = vadd.f32 %v12468_v46, %v10012_v45 }
 0x418   : > { %v12488_v50 = vpop.f32.mrb[92].mxu0 }
 0x419   : > { %v12489_v51 = vpop.f32.mrb[93].mxu0 }
 0x41a   : > { %v12510_v52 = vpop.f32.mrb[92].mxu1  ;;  %v12490_v53 = vadd.f32 %v12489_v51, %v12488_v50  ;;  %v12491_v54 = vpop.f32.mrb[94].mxu0 }
 0x41b   : > { %v12511_v56 = vpop.f32.mrb[93].mxu1  ;;  %v12492_v57 = vpop.f32.mrb[95].mxu0 }
 0x41c   : > { %v10092_v58 = vadd.f32 %v12490_v53, %v10052_v49  ;;  %v12512_v59 = vadd.f32 %v12511_v56, %v12510_v52  ;;  %v12513_v60 = vpop.f32.mrb[94].mxu1 }
 0x41d   : > { %v12514_v55 = vpop.f32.mrb[95].mxu1 }
 0x41e   : > { %v10132_v61 = vadd.f32 %v12512_v59, %v10092_v58 }
 0x438   : > { %v12532_v62 = vpop.f32.mrb[96].mxu0 }
 0x439   : > { %v12533_v63 = vpop.f32.mrb[97].mxu0 }
 0x43a   : > { %v12554_v0 = vpop.f32.mrb[96].mxu1  ;;  %v12534_v1 = vadd.f32 %v12533_v63, %v12532_v62  ;;  %v12535_v2 = vpop.f32.mrb[98].mxu0 }
 0x43b   : > { %v12555_v3 = vpop.f32.mrb[97].mxu1  ;;  %v12536_v4 = vpop.f32.mrb[99].mxu0 }
 0x43c   : > { %v10172_v5 = vadd.f32 %v12534_v1, %v10132_v61  ;;  %v12556_v6 = vadd.f32 %v12555_v3, %v12554_v0  ;;  %v12557_v7 = vpop.f32.mrb[98].mxu1 }
 0x43d   : > { %v12558_v8 = vpop.f32.mrb[99].mxu1 }
 0x43e   : > { %v10212_v9 = vadd.f32 %v12556_v6, %v10172_v5 }
 0x458   : > { %v12576_v10 = vpop.f32.mrb[100].mxu0 }
 0x459   : > { %v12577_v11 = vpop.f32.mrb[101].mxu0 }
 0x45a   : > { %v12598_v12 = vpop.f32.mrb[100].mxu1  ;;  %v12578_v13 = vadd.f32 %v12577_v11, %v12576_v10  ;;  %v12579_v14 = vpop.f32.mrb[102].mxu0 }
 0x45b   : > { %v12599_v15 = vpop.f32.mrb[101].mxu1  ;;  %v12580_v16 = vpop.f32.mrb[103].mxu0 }
 0x45c   : > { %v10252_v17 = vadd.f32 %v12578_v13, %v10212_v9  ;;  %v12600_v18 = vadd.f32 %v12599_v15, %v12598_v12  ;;  %v12601_v19 = vpop.f32.mrb[102].mxu1 }
 0x45d   : > { %v12602_v20 = vpop.f32.mrb[103].mxu1 }
 0x45e   : > { %v10292_v21 = vadd.f32 %v12600_v18, %v10252_v17 }
 0x478   : > { %v12620_v22 = vpop.f32.mrb[104].mxu0 }
 0x479   : > { %v12621_v23 = vpop.f32.mrb[105].mxu0 }
 0x47a   : > { %v12642_v24 = vpop.f32.mrb[104].mxu1  ;;  %v12622_v25 = vadd.f32 %v12621_v23, %v12620_v22  ;;  %v12623_v26 = vpop.f32.mrb[106].mxu0 }
 0x47b   : > { %v12643_v27 = vpop.f32.mrb[105].mxu1  ;;  %v12624_v28 = vpop.f32.mrb[107].mxu0 }
 0x47c   : > { %v10332_v29 = vadd.f32 %v12622_v25, %v10292_v21  ;;  %v12644_v30 = vadd.f32 %v12643_v27, %v12642_v24  ;;  %v12645_v31 = vpop.f32.mrb[106].mxu1 }
 0x47d   : > { %v12646_v32 = vpop.f32.mrb[107].mxu1 }
 0x47e   : > { %v10372_v33 = vadd.f32 %v12644_v30, %v10332_v29 }
 0x498   : > { %v12664_v34 = vpop.f32.mrb[108].mxu0 }
 0x499   : > { %v12665_v35 = vpop.f32.mrb[109].mxu0 }
 0x49a   : > { %v12686_v36 = vpop.f32.mrb[108].mxu1  ;;  %v12666_v42 = vadd.f32 %v12665_v35, %v12664_v34  ;;  %v12667_v37 = vpop.f32.mrb[110].mxu0 }
 0x49b   : > { %v12687_v38 = vpop.f32.mrb[109].mxu1  ;;  %v12668_v39 = vpop.f32.mrb[111].mxu0 }
 0x49c   : > { %v10412_v40 = vadd.f32 %v12666_v42, %v10372_v33  ;;  %v12688_v41 = vadd.f32 %v12687_v38, %v12686_v36  ;;  %v12689_v43 = vpop.f32.mrb[110].mxu1  ;;  %10462 = sbr.rel (%p11456_p6) target bundleno = 1195 (0x4ab), region = 40 }
 0x49d   : > { %v12690_v45 = vpop.f32.mrb[111].mxu1 }
 0x49e   : > { %v10452_v46 = vadd.f32 %v12688_v41, %v10412_v40 }
 0x4a0   : > { %v10457_v47 = vadd.f32 %v10452_v46, %v222_v44 }
 0x4a2   : > { %10458 = vst [vmem:[#allocation2] sm:$0x3] %v10457_v47 }
 0x4a9   : > { %v10463_v48 = vld [vmem:[#allocation2] sm:$0x3] }
 0x4aa   : > { %10464 = vst [vmem:[%s13916_s26] sm:$0x3] %v10463_v48 }
 0x4ab PF: > { %s15_s16 = sadd.s32 1, %s13775_s16   ;;  %s15081_s9 = smov %s13751_s10 }
 0x4ac   : > { %p12_p8 = scmp.ge.s32.totalorder %s15_s16, 16   ;;  %s15082_s10 = smov %s13755_s11 }
 0x4ad   : > { %s15083_s11 = smov %s13863_s3  ;;  %s15084_s12 = smov %s13767_s14 }
 0x4ae   : > { %s15085_s13 = smov %s13771_s15  ;;  %s15086_s14 = smov %s15089_s18 }
 0x4af   : > { %s15087_s15 = smov %s15093_s19  ;;  %14 = sbr.rel (!%p12_p8) target bundleno = 5 (0x5), region = 79 }
 0x4b6   :  { %10484 = vsyncpa [#allocation4], 1 }
 0x4b7   :  { %10486 = vsyncpa [#allocation4 + $0x1], 1 }

// kernel: simple_cnn_forward.7
= control target key start
LH: loop header
LB: loop body
LE: loop exit
PB: predicated region body
PF: predicated region fallthrough
CT: control target
= control target key end

     0   :  { %v248_v3 = vmov 0.0|0.0   ;;  %vm249_vm0 = vmmov 0   ;;  %v250_v6 = vmov 0.0   ;;  %s349_s0 = inlined_call_operand.vmem [shape: f32[2,2,128], index: 0, kind: input, shape index: {}]   ;;  %s350_s1 = inlined_call_operand.vmem [shape: f32[1,128], index: 1, kind: input, shape index: {}]   ;;  %s351_s2 = inlined_call_operand.vmem [shape: f32[128,4], index: 2, kind: input, shape index: {}]   ;;  %s352_s3 = inlined_call_operand.vmem [shape: f32[1,4], index: 3, kind: input, shape index: {}]   ;;  %s353_s4 = inlined_call_operand.hbm [shape: f32[2,4], index: 4, kind: output, shape index: {}]  }
   0x1   :  { %v33_v0 = vld [vmem:[%s351_s2] sm:$0xff]  ;;  %v34_v1 = vld [vmem:[%s351_s2 + $0x8] sm:$0xff]  ;;  %v35_v2 = vld [vmem:[%s351_s2 + $0x10] sm:$0xff]  ;;  %196 = vmatprep.subr.bf16.mxu0 %v248_v3  ;;  %193 = vmatprep.mubr.msk.f32.mxu0 %vm249_vm0, %v250_v6 }
   0x2   :  { %v197_v4 = vpack.c.bf16 %v34_v1, %v33_v0  ;;  %v36_v5 = vld [vmem:[%s351_s2 + $0x18] sm:$0xff]  ;;  %v37_v8 = vld [vmem:[%s351_s2 + $0x20] sm:$0xff]  ;;  %v38_v9 = vld [vmem:[%s351_s2 + $0x28] sm:$0xff] }
   0x3   :  { %v200_v7 = vpack.c.bf16 %v36_v5, %v35_v2  ;;  %v203_v10 = vpack.c.bf16 %v38_v9, %v37_v8 }
   0x4   :  { %198 = vmatpush3.bf16.msra.mxu0 %v197_v4 }
   0x5   :  { %199 = vmatprep.subr.bf16.mxu0 %v248_v3 }
   0x8   :  { %201 = vmatpush3.bf16.msra.mxu0 %v200_v7 }
   0x9   :  { %9 = vsyncpa [#allocation3], 0  ;;  %202 = vmatprep.subr.bf16.mxu0 %v248_v3  ;;  %v39_v11 = vld [vmem:[%s351_s2 + $0x30] sm:$0xff]  ;;  %v40_v12 = vld [vmem:[%s351_s2 + $0x38] sm:$0xff]  ;;  %vm20_vm1 = vcmask 1041408   ;;  %vm126_vm2 = vcmask 25600  }
   0xa   :  { %v206_v13 = vpack.c.bf16 %v40_v12, %v39_v11  ;;  %v41_v14 = vld [vmem:[%s351_s2 + $0x40] sm:$0xff]  ;;  %v42_v15 = vld [vmem:[%s351_s2 + $0x48] sm:$0xff]  ;;  %v43_v17 = vld [vmem:[%s351_s2 + $0x50] sm:$0xff] }
   0xb   :  { %v209_v16 = vpack.c.bf16 %v42_v15, %v41_v14  ;;  %v44_v18 = vld [vmem:[%s351_s2 + $0x58] sm:$0xff]  ;;  %v18_v19 = vld [vmem:[%s349_s0] sm:$0x3]  ;;  %v19_v20 = vld [vmem:[%s349_s0 + $0x2] sm:$0x3] }
   0xc   :  { %204 = vmatpush3.bf16.msra.mxu0 %v203_v10  ;;  %v212_v21 = vpack.c.bf16 %v44_v18, %v43_v17  ;;  %v21_v22 = vsel %vm20_vm1, %v18_v19, 0.0  ;;  %v22_v23 = vsel %vm20_vm1, %v19_v20, 0.0  ;;  %v45_v24 = vld [vmem:[%s351_s2 + $0x60] sm:$0xff]  ;;  %v46_v25 = vld [vmem:[%s351_s2 + $0x68] sm:$0xff]  ;;  %v47_v29 = vld [vmem:[%s351_s2 + $0x70] sm:$0xff] }
   0xd   :  { %205 = vmatprep.subr.bf16.mxu0 %v248_v3  ;;  %v23_v26 = vadd.f32 %v22_v23, %v21_v22  ;;  %v215_v27 = vpack.c.bf16 %v46_v25, %v45_v24  ;;  %v142_v28 = vld [vmem:[%s350_s1] ss:$0 sm:$0xff]  ;;  %v48_v30 = vld [vmem:[%s351_s2 + $0x78] sm:$0xff]  ;;  %s251_s1 = smov [#allocation2]  }
   0xe   :  { %v218_v32 = vpack.c.bf16 %v48_v30, %v47_v29  ;;  %v143_v34 = vld [vmem:[%s352_s3] ss:$0 sm:$0xff]  ;;  %s134_s28 = sshll.u32 %s251_s1, 4  ;;  %s135_s28 = int_to_ptr.vmem [resolvable:$true] %s134_s28 }
   0xf   :  { %v31_v31 = vadd.f32 %v142_v28, %v23_v26  ;;  %s224_s2 = scalar_lea.vmem %s135_s28, 32  ;;  %p229_p1 = scmp.lt.s32.totalorder %s135_s28, %s135_s28 }
  0x10   :  { %207 = vmatpush3.bf16.msra.mxu0 %v206_v13  ;;  %p225_p0 = scmp.ne.s32.totalorder %s135_s28, %s224_s2  ;;  %p230_p2 = scmp.lt.s32.totalorder %s224_s2, %s224_s2 }
  0x11   :  { %208 = vmatprep.subr.bf16.mxu0 %v248_v3  ;;  %v32_v33 = vmax.f32 %v31_v31, 0.0 }
  0x12   :  { %p231_p3 = por %p230_p2, %p229_p1 }
  0x14   :  { %210 = vmatpush3.bf16.msra.mxu0 %v209_v16  ;;  %p232_p4 = pnand %p231_p3, %p225_p0 }
  0x15   :  { %211 = vmatprep.subr.bf16.mxu0 %v248_v3 }
  0x18   :  { %213 = vmatpush3.bf16.msra.mxu0 %v212_v21 }
  0x19   :  { %214 = vmatprep.subr.bf16.mxu0 %v248_v3 }
  0x1c   :  { %216 = vmatpush3.bf16.msra.mxu0 %v215_v27 }
  0x1d   :  { %217 = vmatprep.subr.bf16.mxu0 %v248_v3 }
  0x20   :  { %219 = vmatpush3.bf16.msra.mxu0 %v218_v32 }
  0x23   :  { %194 = vmatmul.mubr.f32.vlgmr.msra.gmra.mrb[0].mxu0 %v32_v33 }
  0xf6   :  { %v122_v35 = vpop.f32.mrb[0].mxu0 }
  0xf7   :  { %v123_v36 = vadd.f32 %v143_v34, %v122_v35  ;;  %v195_v37 = vpop.f32.mrb[1].mxu0 }
  0xf9   :  { %127 = vst.msk [vmem:[#allocation2] sm:$0x3] %vm126_vm2, %v123_v36 }
  0xfa   :  { %235 = shalt.err (!%p232_p4)
}
  0xfb   :  { %s236_s5 = scalar_lea.hbm %s353_s4, 32 }
  0xfc   :  { %p237_p5 = scmp.ne.s32.totalorder %s353_s4, %s236_s5  ;;  %p240_p6 = scmp.lt.u32.totalorder %s236_s5, %s353_s4 }
  0xfe   :  { %p242_p7 = pnand %p240_p6, %p237_p5 }
 0x100   :  { %245 = shalt.err (!%p242_p7)
}
 0x101   :  { %137 = dma.vmem_to_hbm [thread:$0]  %s135_s28, 32, %s353_s4, [#allocation3]  }
 0x102   :  { %246 = dma.done.wait [#allocation3], 32  }
 0x103   :  { %247 = vsyncadd [#allocation3], 4294967264 }
 0x104   :  { %141 = vsyncpa [#allocation3], 1 }

</bundles_post_ra>
